<compile_context>
chip_gen: v7x
topology: tpu7x:2x2x1
jax: 0.10.0
libtpu: 0.0.40
codegen_flags: <defaults>
</compile_context>

<pallas_src>
import functools

import jax
import jax.numpy as jnp
from jax.experimental import pallas as pl
from jax.experimental.pallas import tpu as pltpu

HI = jax.lax.Precision.HIGHEST


def _round_up(a, m):
    return -(-a // m) * m


def _ltae_kernel(T_seq, n_head, d_in, d_model, d_mlp, eps, unroll,
                 x_ref, pe_ref,
                 gin_ref, bin_ref, mgin_ref, mgin_t_ref,
                 wc_ref, wqk_ref, bq_ref, et_ref,
                 w1_ref, b1_ref,
                 mgo_ref, mgo_t_ref, gout_ref, bout_ref,
                 out_ref, acc_scr):
    f32 = jnp.float32
    G = n_head
    P = out_ref.shape[-1]                       # pixels on lanes (multiple of 128)
    inv_cnt_in = 1.0 / float(T_seq * (d_in // G))
    inv_cnt_out = 1.0 / float(d_mlp // G)

    mg_in = mgin_ref[...]                       # (G, d_in)   channel -> group membership
    mg_in_t = mgin_t_ref[...]                   # (d_in, G)   group -> channel expansion

    # ---- in_norm stats: single fused pass; per-group sum & sum-of-squares (small carries) ----
    def _stats(t, carry):
        gs1, gs2 = carry
        xt = x_ref[t].astype(f32)
        gs1 = gs1 + jnp.dot(mg_in, xt, precision=HI, preferred_element_type=f32)
        gs2 = gs2 + jnp.dot(mg_in, xt * xt, precision=HI, preferred_element_type=f32)
        return gs1, gs2

    gs1, gs2 = jax.lax.fori_loop(
        0, T_seq, _stats,
        (jnp.zeros((G, P), f32), jnp.zeros((G, P), f32)), unroll=unroll)
    gmean = gs1 * inv_cnt_in                                                  # (G, P)
    gvar = jnp.maximum(gs2 * inv_cnt_in - gmean * gmean, 0.0)
    inv_g = jax.lax.rsqrt(gvar + eps)
    mean_c = jnp.dot(mg_in_t, gmean, precision=HI, preferred_element_type=f32)   # (d_in, P)
    inv_c = jnp.dot(mg_in_t, inv_g, precision=HI, preferred_element_type=f32)
    scale_c = inv_c * gin_ref[...]              # gamma (d_in, 1) broadcast over lanes
    shift_c = bin_ref[...] - mean_c * scale_c

    wc = wc_ref[...]                            # (d_model, d_in)  inconv weight (LHS)
    wqk = wqk_ref[...]                          # (n_head, d_model) folded Q/temp @ Wk
    bq = bq_ref[...]                            # (n_head, 1)       folded Q/temp @ bk
    e_t = et_ref[...]                           # (d_model, n_head) head -> channel expansion

    # ---- online (flash-style) softmax over T; accumulator in VMEM scratch ----
    acc_scr[...] = jnp.zeros_like(acc_scr)

    def _step(t, carry):
        m_old, l_old = carry
        xn = x_ref[t].astype(f32) * scale_c + shift_c                        # (d_in, P)
        y = jnp.dot(wc, xn, precision=HI, preferred_element_type=f32) + pe_ref[t]   # (dm, P)
        s = jnp.dot(wqk, y, precision=HI, preferred_element_type=f32) + bq   # (n_head, P)
        m_new = jnp.maximum(m_old, s)
        alpha = jnp.exp(m_old - m_new)                                       # rescale factor
        p = jnp.exp(s - m_new)
        l_new = alpha * l_old + p
        alpha_c = jnp.dot(e_t, alpha, precision=HI, preferred_element_type=f32)
        p_c = jnp.dot(e_t, p, precision=HI, preferred_element_type=f32)
        acc_scr[...] = alpha_c * acc_scr[...] + p_c * y
        return m_new, l_new

    _, l = jax.lax.fori_loop(
        0, T_seq, _step,
        (jnp.full((n_head, P), -jnp.inf, jnp.float32),
         jnp.zeros((n_head, P), jnp.float32)),
        unroll=unroll)

    inv_l_c = jnp.dot(e_t, 1.0 / l, precision=HI, preferred_element_type=f32)    # exact divide
    out_cat = acc_scr[...] * inv_l_c                                         # (d_model, P)

    # ---- MLP: Linear with BatchNorm1d (eval) folded in, then ReLU; dropout = identity ----
    z = jnp.dot(w1_ref[...], out_cat, precision=HI, preferred_element_type=f32) + b1_ref[...]
    z = jnp.maximum(z, 0.0)

    # ---- out_norm: GroupNorm over channel groups, per pixel (centered variance) ----
    mg_o = mgo_ref[...]                         # (G, d_mlp)
    mg_o_t = mgo_t_ref[...]                     # (d_mlp, G)
    zmean = jnp.dot(mg_o, z, precision=HI, preferred_element_type=f32) * inv_cnt_out
    zc = z - jnp.dot(mg_o_t, zmean, precision=HI, preferred_element_type=f32)
    zvar = jnp.dot(mg_o, zc * zc, precision=HI, preferred_element_type=f32) * inv_cnt_out
    inv2 = jnp.dot(mg_o_t, jax.lax.rsqrt(zvar + eps), precision=HI,
                   preferred_element_type=f32)
    out_ref[...] = zc * inv2 * gout_ref[...] + bout_ref[...]


def _positional_table(batch_positions, d_pe, T_pe, repeat):
    idx = jnp.arange(d_pe)
    denom = jnp.power(float(T_pe), 2.0 * (idx // 2).astype(jnp.float32) / d_pe)
    tbl = batch_positions[:, :, None].astype(jnp.float32) / denom[None, None, :]
    tbl = jnp.where((idx % 2 == 0)[None, None, :], jnp.sin(tbl), jnp.cos(tbl))
    return jnp.tile(tbl, (1, 1, repeat))               # (B, T, d_pe*repeat)


def ltae2d_forward(x, batch_positions, params, *, n_head, d_k, d_model, mlp_out,
                   T_pe=1000, tile_n=1024):
    B, T_seq, C_in, Himg, Wimg = x.shape
    HW = Himg * Wimg
    G = n_head
    dm = d_model
    M1 = mlp_out
    dh = dm // n_head
    F = n_head * d_k
    eps = 1e-5
    temp = float(d_k) ** 0.5
    f32 = jnp.float32
    itemsize = jnp.dtype(x.dtype).itemsize      # x may be passed as bf16 to halve DMA bytes

    # ---- tile / VMEM budget selection (generation-aware, v7x-safe fallback) ----
    try:
        vmem_cap = int(pltpu.get_tpu_info().vmem_capacity_bytes)
    except Exception:
        vmem_cap = 64 * 1024 * 1024
    budget = int(vmem_cap * 0.70)

    def _footprint(t):
        return (2 * T_seq * C_in * t * itemsize       # double-buffered x block
                + 2 * T_seq * dm * 4                  # double-buffered pe block
                + 2 * M1 * t * 4                      # double-buffered out block
                + dm * t * 4                          # attention accumulator scratch
                + (2 << 20))                          # constants + slack

    cap_tile = _round_up(HW, 128)
    tile = min(max(128, (int(tile_n) // 128) * 128), cap_tile)
    while tile > 128 and _footprint(tile) > budget:
        tile -= 128
    # keep >= 2 grid steps so both v7x TensorCores get work
    if B * (_round_up(HW, tile) // tile) < 2 and tile > 128:
        tile = max(128, ((tile // 2) // 128) * 128)
    HWp = _round_up(HW, tile)
    vmem_limit = int(min(max(_footprint(tile) * 3 // 2, 32 * 1024 * 1024), budget))

    # x: (B, T, C, H, W) -> (B, T, C, HW) is a pure reshape (no HBM transpose).
    x_hbm = x.reshape(B, T_seq, C_in, HW)
    if HWp != HW:
        x_hbm = jnp.pad(x_hbm, ((0, 0), (0, 0), (0, 0), (0, HWp - HW)))

    # Positional encoding per (batch, t) only; fold the inconv bias into it.
    pe = _positional_table(batch_positions, dm // n_head, T_pe, n_head)          # (B, T, dm)
    pe_hbm = (pe + params["bc"][None, None, :]).astype(f32)[..., None]           # (B, T, dm, 1)

    # Structural / folded constants (channel dims are matmul-LHS rows). All folds f32-exact.
    mg_in = jnp.repeat(jnp.eye(G, dtype=f32), C_in // G, axis=1)                 # (G, C_in)
    mg_out = jnp.repeat(jnp.eye(G, dtype=f32), M1 // G, axis=1)                  # (G, M1)
    e_t = jnp.repeat(jnp.eye(n_head, dtype=f32), dh, axis=0)                     # (dm, n_head)
    qblk = (jnp.eye(n_head, dtype=f32)[:, :, None]
            * params["Q"].astype(f32)[None, :, :]).reshape(n_head, F) / temp     # (H, F)
    wqk = jnp.dot(qblk, params["Wk"].astype(f32), precision=HI)                  # (H, dm)
    bq = jnp.dot(qblk, params["bk"].astype(f32), precision=HI).reshape(n_head, 1)

    bn_scale = params["bn_gamma"] / jnp.sqrt(params["bn_rvar"] + eps)
    w1f = (bn_scale[:, None] * params["W1"]).astype(f32)                         # (M1, dm)
    b1f = (bn_scale * (params["b1"] - params["bn_rmean"])
           + params["bn_beta"]).reshape(M1, 1).astype(f32)

    def col(v):
        return v.reshape(-1, 1).astype(f32)

    args = (
        x_hbm, pe_hbm,
        col(params["gn_in_gamma"]), col(params["gn_in_beta"]), mg_in, mg_in.T,
        params["Wc"].astype(f32), wqk, bq, e_t,
        w1f, b1f,
        mg_out, mg_out.T,
        col(params["gn_out_gamma"]), col(params["gn_out_beta"]),
    )

    def full_spec(a):
        nd = a.ndim
        return pl.BlockSpec(a.shape, lambda b, j, _nd=nd: (0,) * _nd)

    in_specs = [
        pl.BlockSpec((None, T_seq, C_in, tile), lambda b, j: (b, 0, 0, j)),
        pl.BlockSpec((None, T_seq, dm, 1), lambda b, j: (b, 0, 0, 0)),
    ] + [full_spec(a) for a in args[2:]]

    unroll = True if T_seq <= 12 else 4
    kernel = functools.partial(_ltae_kernel, T_seq, n_head, C_in, dm, M1, eps, unroll)

    npix = B * HWp
    flops = int(npix * (T_seq * (2 * C_in * dm + 2 * n_head * dm + 4 * dm
                                 + 6 * C_in + 12 * n_head)
                        + 2 * dm * M1 + 8 * dm + 14 * M1))
    transcendentals = int(npix * T_seq * 2 * n_head)
    bytes_accessed = int(B * T_seq * C_in * HWp * itemsize
                         + B * T_seq * dm * 4 + B * M1 * HWp * 4)

    out_hbm = pl.pallas_call(
        kernel,
        out_shape=jax.ShapeDtypeStruct((B, M1, HWp), f32),
        grid=(B, HWp // tile),
        in_specs=in_specs,
        out_specs=pl.BlockSpec((None, M1, tile), lambda b, j: (b, 0, j)),
        scratch_shapes=[
            pltpu.VMEM((dm, tile), f32),          # attention accumulator (in-place rescaled)
        ],
        compiler_params=pltpu.CompilerParams(
            dimension_semantics=("parallel", "parallel"),
            vmem_limit_bytes=vmem_limit),
        cost_estimate=pl.CostEstimate(flops=flops, transcendentals=transcendentals,
                                      bytes_accessed=bytes_accessed),
    )(*args)

    return out_hbm[:, :, :HW].reshape(B, M1, Himg, Wimg)    # (B, mlp[-1], H, W)


def ltae2d_reference(x, batch_positions, params, *, n_head, d_k, d_model, mlp_out, T_pe=1000):
    """Pure-JAX mirror of the PyTorch forward (eval mode), f32-precise matmuls."""
    B, T_seq, C_in, Himg, Wimg = x.shape
    N = B * Himg * Wimg
    eps = 1e-5
    G = n_head
    dm = d_model
    M1 = mlp_out
    dh = dm // n_head

    out = jnp.transpose(x, (0, 3, 4, 1, 2)).reshape(N, T_seq, C_in)
    # in_norm (GroupNorm on (N, C_in, T))
    o = jnp.transpose(out, (0, 2, 1))
    og = o.reshape(N, G, C_in // G, T_seq)
    mu = og.mean(axis=(2, 3), keepdims=True)
    var = og.var(axis=(2, 3), keepdims=True)
    og = (og - mu) / jnp.sqrt(var + eps)
    o = og.reshape(N, C_in, T_seq) * params["gn_in_gamma"][None, :, None] \
        + params["gn_in_beta"][None, :, None]
    out = jnp.transpose(o, (0, 2, 1))
    # inconv (1x1 Conv1d)
    out = jnp.einsum("ntc,mc->ntm", out, params["Wc"], precision=HI) + params["bc"]
    # positional encoding
    pe = _positional_table(batch_positions, dm // n_head, T_pe, n_head)
    pe = jnp.broadcast_to(pe[:, None], (B, Himg * Wimg, T_seq, dm)).reshape(N, T_seq, dm)
    out = out + pe
    # multi-head attention
    k = jnp.einsum("ntm,fm->ntf", out, params["Wk"], precision=HI) + params["bk"]
    k = k.reshape(N, T_seq, n_head, d_k)
    scores = jnp.einsum("hk,nthk->nht", params["Q"], k, precision=HI) / (float(d_k) ** 0.5)
    attn = jax.nn.softmax(scores, axis=-1)
    v = out.reshape(N, T_seq, n_head, dh)
    heads = jnp.einsum("nht,nthj->nhj", attn, v, precision=HI)
    out_cat = heads.reshape(N, dm)
    # MLP (Linear + BatchNorm1d eval + ReLU), dropout = identity
    z = jnp.dot(out_cat, params["W1"].T, precision=HI) + params["b1"]
    z = (z - params["bn_rmean"]) / jnp.sqrt(params["bn_rvar"] + eps) * params["bn_gamma"] \
        + params["bn_beta"]
    z = jnp.maximum(z, 0.0)
    # out_norm (GroupNorm on (N, M1))
    zg = z.reshape(N, G, M1 // G)
    mu2 = zg.mean(axis=2, keepdims=True)
    v2 = zg.var(axis=2, keepdims=True)
    zg = (zg - mu2) / jnp.sqrt(v2 + eps)
    z = zg.reshape(N, M1) * params["gn_out_gamma"] + params["gn_out_beta"]
    return z.reshape(B, Himg, Wimg, M1).transpose(0, 3, 1, 2)


if __name__ == "__main__":
    # small config consistent with LTAE2d(in_channels=16, n_head=4, d_k=4,
    #                                     mlp=[32, 16], d_model=32, T=1000)
    B, T_seq, C_in, Himg, Wimg = 2, 8, 16, 16, 16
    n_head, d_k, d_model, M1 = 4, 4, 32, 16
    F = n_head * d_k

    key = jax.random.PRNGKey(0)
    ks = jax.random.split(key, 18)
    params = {
        "gn_in_gamma": 1.0 + 0.1 * jax.random.normal(ks[0], (C_in,), jnp.float32),
        "gn_in_beta": 0.1 * jax.random.normal(ks[1], (C_in,), jnp.float32),
        "Wc": jax.random.normal(ks[2], (d_model, C_in), jnp.float32) * (2.0 / C_in) ** 0.5,
        "bc": 0.1 * jax.random.normal(ks[3], (d_model,), jnp.float32),
        "Q": jax.random.normal(ks[4], (n_head, d_k), jnp.float32) * (2.0 / d_k) ** 0.5,
        "Wk": jax.random.normal(ks[5], (F, d_model), jnp.float32) * (2.0 / d_k) ** 0.5,
        "bk": 0.1 * jax.random.normal(ks[6], (F,), jnp.float32),
        "W1": jax.random.normal(ks[7], (M1, d_model), jnp.float32) * (2.0 / d_model) ** 0.5,
        "b1": 0.1 * jax.random.normal(ks[8], (M1,), jnp.float32),
        "bn_gamma": 1.0 + 0.1 * jax.random.normal(ks[9], (M1,), jnp.float32),
        "bn_beta": 0.1 * jax.random.normal(ks[10], (M1,), jnp.float32),
        "bn_rmean": 0.1 * jax.random.normal(ks[11], (M1,), jnp.float32),
        "bn_rvar": 0.5 + jax.random.uniform(ks[12], (M1,), jnp.float32),
        "gn_out_gamma": 1.0 + 0.1 * jax.random.normal(ks[13], (M1,), jnp.float32),
        "gn_out_beta": 0.1 * jax.random.normal(ks[14], (M1,), jnp.float32),
    }

    x = jax.random.normal(ks[15], (B, T_seq, C_in, Himg, Wimg), jnp.float32)
    batch_positions = jnp.sort(
        jax.random.uniform(ks[16], (B, T_seq), jnp.float32, 0.0, 365.0), axis=1)

    out = ltae2d_forward(x, batch_positions, params, n_head=n_head, d_k=d_k,
                         d_model=d_model, mlp_out=M1, tile_n=1024)
    out = jax.block_until_ready(out)
    assert out.shape == (B, M1, Himg, Wimg)

    ref = ltae2d_reference(x, batch_positions, params, n_head=n_head, d_k=d_k,
                           d_model=d_model, mlp_out=M1)
    err = float(jnp.max(jnp.abs(out - ref)))
    assert err < 5e-2, f"kernel/reference mismatch: max abs err {err}"

    print("KERNEL_OK")
</pallas_src>

<mosaic_0001>
module attributes {stable_mosaic.version = 11 : i64} {
  func.func @_ltae_kernel(%arg0: i32, %arg1: i32, %arg2: memref<1x8x16x256xf32, #tpu.memory_space<vmem>>, %arg3: memref<1x8x32x1xf32, #tpu.memory_space<vmem>>, %arg4: memref<16x1xf32, #tpu.memory_space<vmem>>, %arg5: memref<16x1xf32, #tpu.memory_space<vmem>>, %arg6: memref<4x16xf32, #tpu.memory_space<vmem>>, %arg7: memref<16x4xf32, #tpu.memory_space<vmem>>, %arg8: memref<32x16xf32, #tpu.memory_space<vmem>>, %arg9: memref<4x32xf32, #tpu.memory_space<vmem>>, %arg10: memref<4x1xf32, #tpu.memory_space<vmem>>, %arg11: memref<32x4xf32, #tpu.memory_space<vmem>>, %arg12: memref<16x32xf32, #tpu.memory_space<vmem>>, %arg13: memref<16x1xf32, #tpu.memory_space<vmem>>, %arg14: memref<4x16xf32, #tpu.memory_space<vmem>>, %arg15: memref<16x4xf32, #tpu.memory_space<vmem>>, %arg16: memref<16x1xf32, #tpu.memory_space<vmem>>, %arg17: memref<16x1xf32, #tpu.memory_space<vmem>>, %arg18: memref<1x16x256xf32, #tpu.memory_space<vmem>>, %arg19: memref<32x256xf32, #tpu.memory_space<vmem>>) attributes {dimension_semantics = [#tpu.dimension_semantics<parallel>, #tpu.dimension_semantics<parallel>], iteration_bounds = array<i64: 2, 1>, scalar_prefetch = 0 : i64, scratch_operands = 1 : i64, tpu.core_type = #tpu.core_type<tc>, window_params = [{transform_indices = @transform_0, window_bounds = array<i64: 1, 8, 16, 256>}, {transform_indices = @transform_1, window_bounds = array<i64: 1, 8, 32, 1>}, {pipeline_mode = #tpu.pipeline_mode<synchronous>, transform_indices = @transform_2, window_bounds = array<i64: 16, 1>}, {pipeline_mode = #tpu.pipeline_mode<synchronous>, transform_indices = @transform_3, window_bounds = array<i64: 16, 1>}, {pipeline_mode = #tpu.pipeline_mode<synchronous>, transform_indices = @transform_4, window_bounds = array<i64: 4, 16>}, {pipeline_mode = #tpu.pipeline_mode<synchronous>, transform_indices = @transform_5, window_bounds = array<i64: 16, 4>}, {pipeline_mode = #tpu.pipeline_mode<synchronous>, transform_indices = @transform_6, window_bounds = array<i64: 32, 16>}, {pipeline_mode = #tpu.pipeline_mode<synchronous>, transform_indices = @transform_7, window_bounds = array<i64: 4, 32>}, {pipeline_mode = #tpu.pipeline_mode<synchronous>, transform_indices = @transform_8, window_bounds = array<i64: 4, 1>}, {pipeline_mode = #tpu.pipeline_mode<synchronous>, transform_indices = @transform_9, window_bounds = array<i64: 32, 4>}, {pipeline_mode = #tpu.pipeline_mode<synchronous>, transform_indices = @transform_10, window_bounds = array<i64: 16, 32>}, {pipeline_mode = #tpu.pipeline_mode<synchronous>, transform_indices = @transform_11, window_bounds = array<i64: 16, 1>}, {pipeline_mode = #tpu.pipeline_mode<synchronous>, transform_indices = @transform_12, window_bounds = array<i64: 4, 16>}, {pipeline_mode = #tpu.pipeline_mode<synchronous>, transform_indices = @transform_13, window_bounds = array<i64: 16, 4>}, {pipeline_mode = #tpu.pipeline_mode<synchronous>, transform_indices = @transform_14, window_bounds = array<i64: 16, 1>}, {pipeline_mode = #tpu.pipeline_mode<synchronous>, transform_indices = @transform_15, window_bounds = array<i64: 16, 1>}, {transform_indices = @transform_16, window_bounds = array<i64: 1, 16, 256>}]} {
    %c0 = arith.constant 0 : index
    %c0_0 = arith.constant 0 : index
    %0 = vector.load %arg6[%c0, %c0_0] : memref<4x16xf32, #tpu.memory_space<vmem>>, vector<4x16xf32>
    %c0_1 = arith.constant 0 : index
    %c0_2 = arith.constant 0 : index
    %1 = vector.load %arg7[%c0_1, %c0_2] : memref<16x4xf32, #tpu.memory_space<vmem>>, vector<16x4xf32>
    %cst = arith.constant 0.000000e+00 : f32
    %2 = vector.broadcast %cst : f32 to vector<4x256xf32>
    %cst_3 = arith.constant 0.000000e+00 : f32
    %3 = vector.broadcast %cst_3 : f32 to vector<4x256xf32>
    %c0_i32 = arith.constant 0 : i32
    %c0_4 = arith.constant 0 : index
    %4 = arith.index_cast %c0_i32 : i32 to index
    %c0_5 = arith.constant 0 : index
    %c0_6 = arith.constant 0 : index
    %5 = vector.load %arg2[%c0_4, %4, %c0_5, %c0_6] : memref<1x8x16x256xf32, #tpu.memory_space<vmem>>, vector<1x1x16x256xf32>
    %6 = vector.shape_cast %5 : vector<1x1x16x256xf32> to vector<16x256xf32>
    %cst_7 = arith.constant dense<0.000000e+00> : vector<4x256xf32>
    %7 = tpu.matmul %0, %6, %cst_7 {dimension_numbers = #tpu.dot_dimension_numbers<[1], [0], [0], [1], [0, 0, 1, 1], [], []>, precision = #tpu.contract_precision<fp32>} : vector<4x16xf32>, vector<16x256xf32>, vector<4x256xf32> -> vector<4x256xf32>
    %8 = arith.addf %2, %7 : vector<4x256xf32>
    %9 = arith.mulf %6, %6 : vector<16x256xf32>
    %cst_8 = arith.constant dense<0.000000e+00> : vector<4x256xf32>
    %10 = tpu.matmul %0, %9, %cst_8 {dimension_numbers = #tpu.dot_dimension_numbers<[1], [0], [0], [1], [0, 0, 1, 1], [], []>, precision = #tpu.contract_precision<fp32>} : vector<4x16xf32>, vector<16x256xf32>, vector<4x256xf32> -> vector<4x256xf32>
    %11 = arith.addf %3, %10 : vector<4x256xf32>
    %c1_i32 = arith.constant 1 : i32
    %c0_9 = arith.constant 0 : index
    %12 = arith.index_cast %c1_i32 : i32 to index
    %c0_10 = arith.constant 0 : index
    %c0_11 = arith.constant 0 : index
    %13 = vector.load %arg2[%c0_9, %12, %c0_10, %c0_11] : memref<1x8x16x256xf32, #tpu.memory_space<vmem>>, vector<1x1x16x256xf32>
    %14 = vector.shape_cast %13 : vector<1x1x16x256xf32> to vector<16x256xf32>
    %cst_12 = arith.constant dense<0.000000e+00> : vector<4x256xf32>
    %15 = tpu.matmul %0, %14, %cst_12 {dimension_numbers = #tpu.dot_dimension_numbers<[1], [0], [0], [1], [0, 0, 1, 1], [], []>, precision = #tpu.contract_precision<fp32>} : vector<4x16xf32>, vector<16x256xf32>, vector<4x256xf32> -> vector<4x256xf32>
    %16 = arith.addf %8, %15 : vector<4x256xf32>
    %17 = arith.mulf %14, %14 : vector<16x256xf32>
    %cst_13 = arith.constant dense<0.000000e+00> : vector<4x256xf32>
    %18 = tpu.matmul %0, %17, %cst_13 {dimension_numbers = #tpu.dot_dimension_numbers<[1], [0], [0], [1], [0, 0, 1, 1], [], []>, precision = #tpu.contract_precision<fp32>} : vector<4x16xf32>, vector<16x256xf32>, vector<4x256xf32> -> vector<4x256xf32>
    %19 = arith.addf %11, %18 : vector<4x256xf32>
    %c2_i32 = arith.constant 2 : i32
    %c0_14 = arith.constant 0 : index
    %20 = arith.index_cast %c2_i32 : i32 to index
    %c0_15 = arith.constant 0 : index
    %c0_16 = arith.constant 0 : index
    %21 = vector.load %arg2[%c0_14, %20, %c0_15, %c0_16] : memref<1x8x16x256xf32, #tpu.memory_space<vmem>>, vector<1x1x16x256xf32>
    %22 = vector.shape_cast %21 : vector<1x1x16x256xf32> to vector<16x256xf32>
    %cst_17 = arith.constant dense<0.000000e+00> : vector<4x256xf32>
    %23 = tpu.matmul %0, %22, %cst_17 {dimension_numbers = #tpu.dot_dimension_numbers<[1], [0], [0], [1], [0, 0, 1, 1], [], []>, precision = #tpu.contract_precision<fp32>} : vector<4x16xf32>, vector<16x256xf32>, vector<4x256xf32> -> vector<4x256xf32>
    %24 = arith.addf %16, %23 : vector<4x256xf32>
    %25 = arith.mulf %22, %22 : vector<16x256xf32>
    %cst_18 = arith.constant dense<0.000000e+00> : vector<4x256xf32>
    %26 = tpu.matmul %0, %25, %cst_18 {dimension_numbers = #tpu.dot_dimension_numbers<[1], [0], [0], [1], [0, 0, 1, 1], [], []>, precision = #tpu.contract_precision<fp32>} : vector<4x16xf32>, vector<16x256xf32>, vector<4x256xf32> -> vector<4x256xf32>
    %27 = arith.addf %19, %26 : vector<4x256xf32>
    %c3_i32 = arith.constant 3 : i32
    %c0_19 = arith.constant 0 : index
    %28 = arith.index_cast %c3_i32 : i32 to index
    %c0_20 = arith.constant 0 : index
    %c0_21 = arith.constant 0 : index
    %29 = vector.load %arg2[%c0_19, %28, %c0_20, %c0_21] : memref<1x8x16x256xf32, #tpu.memory_space<vmem>>, vector<1x1x16x256xf32>
    %30 = vector.shape_cast %29 : vector<1x1x16x256xf32> to vector<16x256xf32>
    %cst_22 = arith.constant dense<0.000000e+00> : vector<4x256xf32>
    %31 = tpu.matmul %0, %30, %cst_22 {dimension_numbers = #tpu.dot_dimension_numbers<[1], [0], [0], [1], [0, 0, 1, 1], [], []>, precision = #tpu.contract_precision<fp32>} : vector<4x16xf32>, vector<16x256xf32>, vector<4x256xf32> -> vector<4x256xf32>
    %32 = arith.addf %24, %31 : vector<4x256xf32>
    %33 = arith.mulf %30, %30 : vector<16x256xf32>
    %cst_23 = arith.constant dense<0.000000e+00> : vector<4x256xf32>
    %34 = tpu.matmul %0, %33, %cst_23 {dimension_numbers = #tpu.dot_dimension_numbers<[1], [0], [0], [1], [0, 0, 1, 1], [], []>, precision = #tpu.contract_precision<fp32>} : vector<4x16xf32>, vector<16x256xf32>, vector<4x256xf32> -> vector<4x256xf32>
    %35 = arith.addf %27, %34 : vector<4x256xf32>
    %c4_i32 = arith.constant 4 : i32
    %c0_24 = arith.constant 0 : index
    %36 = arith.index_cast %c4_i32 : i32 to index
    %c0_25 = arith.constant 0 : index
    %c0_26 = arith.constant 0 : index
    %37 = vector.load %arg2[%c0_24, %36, %c0_25, %c0_26] : memref<1x8x16x256xf32, #tpu.memory_space<vmem>>, vector<1x1x16x256xf32>
    %38 = vector.shape_cast %37 : vector<1x1x16x256xf32> to vector<16x256xf32>
    %cst_27 = arith.constant dense<0.000000e+00> : vector<4x256xf32>
    %39 = tpu.matmul %0, %38, %cst_27 {dimension_numbers = #tpu.dot_dimension_numbers<[1], [0], [0], [1], [0, 0, 1, 1], [], []>, precision = #tpu.contract_precision<fp32>} : vector<4x16xf32>, vector<16x256xf32>, vector<4x256xf32> -> vector<4x256xf32>
    %40 = arith.addf %32, %39 : vector<4x256xf32>
    %41 = arith.mulf %38, %38 : vector<16x256xf32>
    %cst_28 = arith.constant dense<0.000000e+00> : vector<4x256xf32>
    %42 = tpu.matmul %0, %41, %cst_28 {dimension_numbers = #tpu.dot_dimension_numbers<[1], [0], [0], [1], [0, 0, 1, 1], [], []>, precision = #tpu.contract_precision<fp32>} : vector<4x16xf32>, vector<16x256xf32>, vector<4x256xf32> -> vector<4x256xf32>
    %43 = arith.addf %35, %42 : vector<4x256xf32>
    %c5_i32 = arith.constant 5 : i32
    %c0_29 = arith.constant 0 : index
    %44 = arith.index_cast %c5_i32 : i32 to index
    %c0_30 = arith.constant 0 : index
    %c0_31 = arith.constant 0 : index
    %45 = vector.load %arg2[%c0_29, %44, %c0_30, %c0_31] : memref<1x8x16x256xf32, #tpu.memory_space<vmem>>, vector<1x1x16x256xf32>
    %46 = vector.shape_cast %45 : vector<1x1x16x256xf32> to vector<16x256xf32>
    %cst_32 = arith.constant dense<0.000000e+00> : vector<4x256xf32>
    %47 = tpu.matmul %0, %46, %cst_32 {dimension_numbers = #tpu.dot_dimension_numbers<[1], [0], [0], [1], [0, 0, 1, 1], [], []>, precision = #tpu.contract_precision<fp32>} : vector<4x16xf32>, vector<16x256xf32>, vector<4x256xf32> -> vector<4x256xf32>
    %48 = arith.addf %40, %47 : vector<4x256xf32>
    %49 = arith.mulf %46, %46 : vector<16x256xf32>
    %cst_33 = arith.constant dense<0.000000e+00> : vector<4x256xf32>
    %50 = tpu.matmul %0, %49, %cst_33 {dimension_numbers = #tpu.dot_dimension_numbers<[1], [0], [0], [1], [0, 0, 1, 1], [], []>, precision = #tpu.contract_precision<fp32>} : vector<4x16xf32>, vector<16x256xf32>, vector<4x256xf32> -> vector<4x256xf32>
    %51 = arith.addf %43, %50 : vector<4x256xf32>
    %c6_i32 = arith.constant 6 : i32
    %c0_34 = arith.constant 0 : index
    %52 = arith.index_cast %c6_i32 : i32 to index
    %c0_35 = arith.constant 0 : index
    %c0_36 = arith.constant 0 : index
    %53 = vector.load %arg2[%c0_34, %52, %c0_35, %c0_36] : memref<1x8x16x256xf32, #tpu.memory_space<vmem>>, vector<1x1x16x256xf32>
    %54 = vector.shape_cast %53 : vector<1x1x16x256xf32> to vector<16x256xf32>
    %cst_37 = arith.constant dense<0.000000e+00> : vector<4x256xf32>
    %55 = tpu.matmul %0, %54, %cst_37 {dimension_numbers = #tpu.dot_dimension_numbers<[1], [0], [0], [1], [0, 0, 1, 1], [], []>, precision = #tpu.contract_precision<fp32>} : vector<4x16xf32>, vector<16x256xf32>, vector<4x256xf32> -> vector<4x256xf32>
    %56 = arith.addf %48, %55 : vector<4x256xf32>
    %57 = arith.mulf %54, %54 : vector<16x256xf32>
    %cst_38 = arith.constant dense<0.000000e+00> : vector<4x256xf32>
    %58 = tpu.matmul %0, %57, %cst_38 {dimension_numbers = #tpu.dot_dimension_numbers<[1], [0], [0], [1], [0, 0, 1, 1], [], []>, precision = #tpu.contract_precision<fp32>} : vector<4x16xf32>, vector<16x256xf32>, vector<4x256xf32> -> vector<4x256xf32>
    %59 = arith.addf %51, %58 : vector<4x256xf32>
    %c7_i32 = arith.constant 7 : i32
    %c0_39 = arith.constant 0 : index
    %60 = arith.index_cast %c7_i32 : i32 to index
    %c0_40 = arith.constant 0 : index
    %c0_41 = arith.constant 0 : index
    %61 = vector.load %arg2[%c0_39, %60, %c0_40, %c0_41] : memref<1x8x16x256xf32, #tpu.memory_space<vmem>>, vector<1x1x16x256xf32>
    %62 = vector.shape_cast %61 : vector<1x1x16x256xf32> to vector<16x256xf32>
    %cst_42 = arith.constant dense<0.000000e+00> : vector<4x256xf32>
    %63 = tpu.matmul %0, %62, %cst_42 {dimension_numbers = #tpu.dot_dimension_numbers<[1], [0], [0], [1], [0, 0, 1, 1], [], []>, precision = #tpu.contract_precision<fp32>} : vector<4x16xf32>, vector<16x256xf32>, vector<4x256xf32> -> vector<4x256xf32>
    %64 = arith.addf %56, %63 : vector<4x256xf32>
    %65 = arith.mulf %62, %62 : vector<16x256xf32>
    %cst_43 = arith.constant dense<0.000000e+00> : vector<4x256xf32>
    %66 = tpu.matmul %0, %65, %cst_43 {dimension_numbers = #tpu.dot_dimension_numbers<[1], [0], [0], [1], [0, 0, 1, 1], [], []>, precision = #tpu.contract_precision<fp32>} : vector<4x16xf32>, vector<16x256xf32>, vector<4x256xf32> -> vector<4x256xf32>
    %67 = arith.addf %59, %66 : vector<4x256xf32>
    %c8_i32 = arith.constant 8 : i32
    %cst_44 = arith.constant 3.125000e-02 : f32
    %68 = vector.broadcast %cst_44 : f32 to vector<4x256xf32>
    %69 = arith.mulf %64, %68 : vector<4x256xf32>
    %cst_45 = arith.constant 3.125000e-02 : f32
    %70 = vector.broadcast %cst_45 : f32 to vector<4x256xf32>
    %71 = arith.mulf %67, %70 : vector<4x256xf32>
    %72 = arith.mulf %69, %69 : vector<4x256xf32>
    %73 = arith.subf %71, %72 : vector<4x256xf32>
    %cst_46 = arith.constant 0.000000e+00 : f32
    %74 = vector.broadcast %cst_46 : f32 to vector<4x256xf32>
    %75 = arith.maximumf %73, %74 : vector<4x256xf32>
    %cst_47 = arith.constant 9.99999974E-6 : f32
    %76 = vector.broadcast %cst_47 : f32 to vector<4x256xf32>
    %77 = arith.addf %75, %76 : vector<4x256xf32>
    %78 = math.rsqrt %77 : vector<4x256xf32>
    %cst_48 = arith.constant dense<0.000000e+00> : vector<16x256xf32>
    %79 = tpu.matmul %1, %69, %cst_48 {dimension_numbers = #tpu.dot_dimension_numbers<[1], [0], [0], [1], [0, 0, 1, 1], [], []>, precision = #tpu.contract_precision<fp32>} : vector<16x4xf32>, vector<4x256xf32>, vector<16x256xf32> -> vector<16x256xf32>
    %cst_49 = arith.constant dense<0.000000e+00> : vector<16x256xf32>
    %80 = tpu.matmul %1, %78, %cst_49 {dimension_numbers = #tpu.dot_dimension_numbers<[1], [0], [0], [1], [0, 0, 1, 1], [], []>, precision = #tpu.contract_precision<fp32>} : vector<16x4xf32>, vector<4x256xf32>, vector<16x256xf32> -> vector<16x256xf32>
    %c0_50 = arith.constant 0 : index
    %c0_51 = arith.constant 0 : index
    %81 = vector.load %arg4[%c0_50, %c0_51] : memref<16x1xf32, #tpu.memory_space<vmem>>, vector<16x1xf32>
    %82 = vector.broadcast %81 : vector<16x1xf32> to vector<16x256xf32>
    %83 = arith.mulf %80, %82 : vector<16x256xf32>
    %c0_52 = arith.constant 0 : index
    %c0_53 = arith.constant 0 : index
    %84 = vector.load %arg5[%c0_52, %c0_53] : memref<16x1xf32, #tpu.memory_space<vmem>>, vector<16x1xf32>
    %85 = arith.mulf %79, %83 : vector<16x256xf32>
    %86 = vector.broadcast %84 : vector<16x1xf32> to vector<16x256xf32>
    %87 = arith.subf %86, %85 : vector<16x256xf32>
    %c0_54 = arith.constant 0 : index
    %c0_55 = arith.constant 0 : index
    %88 = vector.load %arg8[%c0_54, %c0_55] : memref<32x16xf32, #tpu.memory_space<vmem>>, vector<32x16xf32>
    %c0_56 = arith.constant 0 : index
    %c0_57 = arith.constant 0 : index
    %89 = vector.load %arg9[%c0_56, %c0_57] : memref<4x32xf32, #tpu.memory_space<vmem>>, vector<4x32xf32>
    %c0_58 = arith.constant 0 : index
    %c0_59 = arith.constant 0 : index
    %90 = vector.load %arg10[%c0_58, %c0_59] : memref<4x1xf32, #tpu.memory_space<vmem>>, vector<4x1xf32>
    %c0_60 = arith.constant 0 : index
    %c0_61 = arith.constant 0 : index
    %91 = vector.load %arg11[%c0_60, %c0_61] : memref<32x4xf32, #tpu.memory_space<vmem>>, vector<32x4xf32>
    %cst_62 = arith.constant 0.000000e+00 : f32
    %92 = vector.broadcast %cst_62 : f32 to vector<32x256xf32>
    %c0_63 = arith.constant 0 : index
    %c0_64 = arith.constant 0 : index
    %93 = vector.load %arg19[%c0_63, %c0_64] : memref<32x256xf32, #tpu.memory_space<vmem>>, vector<32x256xf32>
    tpu.vector_store %arg19[%c0_63, %c0_64], %92 {strides = array<i32>} : memref<32x256xf32, #tpu.memory_space<vmem>>, vector<32x256xf32>,
    %cst_65 = arith.constant 0xFF800000 : f32
    %94 = vector.broadcast %cst_65 : f32 to vector<4x256xf32>
    %cst_66 = arith.constant 0.000000e+00 : f32
    %95 = vector.broadcast %cst_66 : f32 to vector<4x256xf32>
    %c0_i32_67 = arith.constant 0 : i32
    %c0_68 = arith.constant 0 : index
    %96 = arith.index_cast %c0_i32_67 : i32 to index
    %c0_69 = arith.constant 0 : index
    %c0_70 = arith.constant 0 : index
    %97 = vector.load %arg2[%c0_68, %96, %c0_69, %c0_70] : memref<1x8x16x256xf32, #tpu.memory_space<vmem>>, vector<1x1x16x256xf32>
    %98 = vector.shape_cast %97 : vector<1x1x16x256xf32> to vector<16x256xf32>
    %99 = arith.mulf %98, %83 : vector<16x256xf32>
    %100 = arith.addf %99, %87 : vector<16x256xf32>
    %cst_71 = arith.constant dense<0.000000e+00> : vector<32x256xf32>
    %101 = tpu.matmul %88, %100, %cst_71 {dimension_numbers = #tpu.dot_dimension_numbers<[1], [0], [0], [1], [0, 0, 1, 1], [], []>, precision = #tpu.contract_precision<fp32>} : vector<32x16xf32>, vector<16x256xf32>, vector<32x256xf32> -> vector<32x256xf32>
    %c0_72 = arith.constant 0 : index
    %102 = arith.index_cast %c0_i32_67 : i32 to index
    %c0_73 = arith.constant 0 : index
    %c0_74 = arith.constant 0 : index
    %103 = vector.load %arg3[%c0_72, %102, %c0_73, %c0_74] : memref<1x8x32x1xf32, #tpu.memory_space<vmem>>, vector<1x1x32x1xf32>
    %104 = vector.shape_cast %103 : vector<1x1x32x1xf32> to vector<32x1xf32>
    %105 = vector.broadcast %104 : vector<32x1xf32> to vector<32x256xf32>
    %106 = arith.addf %101, %105 : vector<32x256xf32>
    %cst_75 = arith.constant dense<0.000000e+00> : vector<4x256xf32>
    %107 = tpu.matmul %89, %106, %cst_75 {dimension_numbers = #tpu.dot_dimension_numbers<[1], [0], [0], [1], [0, 0, 1, 1], [], []>, precision = #tpu.contract_precision<fp32>} : vector<4x32xf32>, vector<32x256xf32>, vector<4x256xf32> -> vector<4x256xf32>
    %108 = vector.broadcast %90 : vector<4x1xf32> to vector<4x256xf32>
    %109 = arith.addf %107, %108 : vector<4x256xf32>
    %110 = arith.maximumf %94, %109 : vector<4x256xf32>
    %111 = arith.subf %94, %110 : vector<4x256xf32>
    %112 = math.exp %111 : vector<4x256xf32>
    %113 = arith.subf %109, %110 : vector<4x256xf32>
    %114 = math.exp %113 : vector<4x256xf32>
    %115 = arith.mulf %112, %95 : vector<4x256xf32>
    %116 = arith.addf %115, %114 : vector<4x256xf32>
    %cst_76 = arith.constant dense<0.000000e+00> : vector<32x256xf32>
    %117 = tpu.matmul %91, %112, %cst_76 {dimension_numbers = #tpu.dot_dimension_numbers<[1], [0], [0], [1], [0, 0, 1, 1], [], []>, precision = #tpu.contract_precision<fp32>} : vector<32x4xf32>, vector<4x256xf32>, vector<32x256xf32> -> vector<32x256xf32>
    %cst_77 = arith.constant dense<0.000000e+00> : vector<32x256xf32>
    %118 = tpu.matmul %91, %114, %cst_77 {dimension_numbers = #tpu.dot_dimension_numbers<[1], [0], [0], [1], [0, 0, 1, 1], [], []>, precision = #tpu.contract_precision<fp32>} : vector<32x4xf32>, vector<4x256xf32>, vector<32x256xf32> -> vector<32x256xf32>
    %c0_78 = arith.constant 0 : index
    %c0_79 = arith.constant 0 : index
    %119 = vector.load %arg19[%c0_78, %c0_79] : memref<32x256xf32, #tpu.memory_space<vmem>>, vector<32x256xf32>
    %120 = arith.mulf %117, %119 : vector<32x256xf32>
    %121 = arith.mulf %118, %106 : vector<32x256xf32>
    %122 = arith.addf %120, %121 : vector<32x256xf32>
    %c0_80 = arith.constant 0 : index
    %c0_81 = arith.constant 0 : index
    %123 = vector.load %arg19[%c0_80, %c0_81] : memref<32x256xf32, #tpu.memory_space<vmem>>, vector<32x256xf32>
    tpu.vector_store %arg19[%c0_80, %c0_81], %122 {strides = array<i32>} : memref<32x256xf32, #tpu.memory_space<vmem>>, vector<32x256xf32>,
    %c1_i32_82 = arith.constant 1 : i32
    %c0_83 = arith.constant 0 : index
    %124 = arith.index_cast %c1_i32_82 : i32 to index
    %c0_84 = arith.constant 0 : index
    %c0_85 = arith.constant 0 : index
    %125 = vector.load %arg2[%c0_83, %124, %c0_84, %c0_85] : memref<1x8x16x256xf32, #tpu.memory_space<vmem>>, vector<1x1x16x256xf32>
    %126 = vector.shape_cast %125 : vector<1x1x16x256xf32> to vector<16x256xf32>
    %127 = arith.mulf %126, %83 : vector<16x256xf32>
    %128 = arith.addf %127, %87 : vector<16x256xf32>
    %cst_86 = arith.constant dense<0.000000e+00> : vector<32x256xf32>
    %129 = tpu.matmul %88, %128, %cst_86 {dimension_numbers = #tpu.dot_dimension_numbers<[1], [0], [0], [1], [0, 0, 1, 1], [], []>, precision = #tpu.contract_precision<fp32>} : vector<32x16xf32>, vector<16x256xf32>, vector<32x256xf32> -> vector<32x256xf32>
    %c0_87 = arith.constant 0 : index
    %130 = arith.index_cast %c1_i32_82 : i32 to index
    %c0_88 = arith.constant 0 : index
    %c0_89 = arith.constant 0 : index
    %131 = vector.load %arg3[%c0_87, %130, %c0_88, %c0_89] : memref<1x8x32x1xf32, #tpu.memory_space<vmem>>, vector<1x1x32x1xf32>
    %132 = vector.shape_cast %131 : vector<1x1x32x1xf32> to vector<32x1xf32>
    %133 = vector.broadcast %132 : vector<32x1xf32> to vector<32x256xf32>
    %134 = arith.addf %129, %133 : vector<32x256xf32>
    %cst_90 = arith.constant dense<0.000000e+00> : vector<4x256xf32>
    %135 = tpu.matmul %89, %134, %cst_90 {dimension_numbers = #tpu.dot_dimension_numbers<[1], [0], [0], [1], [0, 0, 1, 1], [], []>, precision = #tpu.contract_precision<fp32>} : vector<4x32xf32>, vector<32x256xf32>, vector<4x256xf32> -> vector<4x256xf32>
    %136 = vector.broadcast %90 : vector<4x1xf32> to vector<4x256xf32>
    %137 = arith.addf %135, %136 : vector<4x256xf32>
    %138 = arith.maximumf %110, %137 : vector<4x256xf32>
    %139 = arith.subf %110, %138 : vector<4x256xf32>
    %140 = math.exp %139 : vector<4x256xf32>
    %141 = arith.subf %137, %138 : vector<4x256xf32>
    %142 = math.exp %141 : vector<4x256xf32>
    %143 = arith.mulf %140, %116 : vector<4x256xf32>
    %144 = arith.addf %143, %142 : vector<4x256xf32>
    %cst_91 = arith.constant dense<0.000000e+00> : vector<32x256xf32>
    %145 = tpu.matmul %91, %140, %cst_91 {dimension_numbers = #tpu.dot_dimension_numbers<[1], [0], [0], [1], [0, 0, 1, 1], [], []>, precision = #tpu.contract_precision<fp32>} : vector<32x4xf32>, vector<4x256xf32>, vector<32x256xf32> -> vector<32x256xf32>
    %cst_92 = arith.constant dense<0.000000e+00> : vector<32x256xf32>
    %146 = tpu.matmul %91, %142, %cst_92 {dimension_numbers = #tpu.dot_dimension_numbers<[1], [0], [0], [1], [0, 0, 1, 1], [], []>, precision = #tpu.contract_precision<fp32>} : vector<32x4xf32>, vector<4x256xf32>, vector<32x256xf32> -> vector<32x256xf32>
    %c0_93 = arith.constant 0 : index
    %c0_94 = arith.constant 0 : index
    %147 = vector.load %arg19[%c0_93, %c0_94] : memref<32x256xf32, #tpu.memory_space<vmem>>, vector<32x256xf32>
    %148 = arith.mulf %145, %147 : vector<32x256xf32>
    %149 = arith.mulf %146, %134 : vector<32x256xf32>
    %150 = arith.addf %148, %149 : vector<32x256xf32>
    %c0_95 = arith.constant 0 : index
    %c0_96 = arith.constant 0 : index
    %151 = vector.load %arg19[%c0_95, %c0_96] : memref<32x256xf32, #tpu.memory_space<vmem>>, vector<32x256xf32>
    tpu.vector_store %arg19[%c0_95, %c0_96], %150 {strides = array<i32>} : memref<32x256xf32, #tpu.memory_space<vmem>>, vector<32x256xf32>,
    %c2_i32_97 = arith.constant 2 : i32
    %c0_98 = arith.constant 0 : index
    %152 = arith.index_cast %c2_i32_97 : i32 to index
    %c0_99 = arith.constant 0 : index
    %c0_100 = arith.constant 0 : index
    %153 = vector.load %arg2[%c0_98, %152, %c0_99, %c0_100] : memref<1x8x16x256xf32, #tpu.memory_space<vmem>>, vector<1x1x16x256xf32>
    %154 = vector.shape_cast %153 : vector<1x1x16x256xf32> to vector<16x256xf32>
    %155 = arith.mulf %154, %83 : vector<16x256xf32>
    %156 = arith.addf %155, %87 : vector<16x256xf32>
    %cst_101 = arith.constant dense<0.000000e+00> : vector<32x256xf32>
    %157 = tpu.matmul %88, %156, %cst_101 {dimension_numbers = #tpu.dot_dimension_numbers<[1], [0], [0], [1], [0, 0, 1, 1], [], []>, precision = #tpu.contract_precision<fp32>} : vector<32x16xf32>, vector<16x256xf32>, vector<32x256xf32> -> vector<32x256xf32>
    %c0_102 = arith.constant 0 : index
    %158 = arith.index_cast %c2_i32_97 : i32 to index
    %c0_103 = arith.constant 0 : index
    %c0_104 = arith.constant 0 : index
    %159 = vector.load %arg3[%c0_102, %158, %c0_103, %c0_104] : memref<1x8x32x1xf32, #tpu.memory_space<vmem>>, vector<1x1x32x1xf32>
    %160 = vector.shape_cast %159 : vector<1x1x32x1xf32> to vector<32x1xf32>
    %161 = vector.broadcast %160 : vector<32x1xf32> to vector<32x256xf32>
    %162 = arith.addf %157, %161 : vector<32x256xf32>
    %cst_105 = arith.constant dense<0.000000e+00> : vector<4x256xf32>
    %163 = tpu.matmul %89, %162, %cst_105 {dimension_numbers = #tpu.dot_dimension_numbers<[1], [0], [0], [1], [0, 0, 1, 1], [], []>, precision = #tpu.contract_precision<fp32>} : vector<4x32xf32>, vector<32x256xf32>, vector<4x256xf32> -> vector<4x256xf32>
    %164 = vector.broadcast %90 : vector<4x1xf32> to vector<4x256xf32>
    %165 = arith.addf %163, %164 : vector<4x256xf32>
    %166 = arith.maximumf %138, %165 : vector<4x256xf32>
    %167 = arith.subf %138, %166 : vector<4x256xf32>
    %168 = math.exp %167 : vector<4x256xf32>
    %169 = arith.subf %165, %166 : vector<4x256xf32>
    %170 = math.exp %169 : vector<4x256xf32>
    %171 = arith.mulf %168, %144 : vector<4x256xf32>
    %172 = arith.addf %171, %170 : vector<4x256xf32>
    %cst_106 = arith.constant dense<0.000000e+00> : vector<32x256xf32>
    %173 = tpu.matmul %91, %168, %cst_106 {dimension_numbers = #tpu.dot_dimension_numbers<[1], [0], [0], [1], [0, 0, 1, 1], [], []>, precision = #tpu.contract_precision<fp32>} : vector<32x4xf32>, vector<4x256xf32>, vector<32x256xf32> -> vector<32x256xf32>
    %cst_107 = arith.constant dense<0.000000e+00> : vector<32x256xf32>
    %174 = tpu.matmul %91, %170, %cst_107 {dimension_numbers = #tpu.dot_dimension_numbers<[1], [0], [0], [1], [0, 0, 1, 1], [], []>, precision = #tpu.contract_precision<fp32>} : vector<32x4xf32>, vector<4x256xf32>, vector<32x256xf32> -> vector<32x256xf32>
    %c0_108 = arith.constant 0 : index
    %c0_109 = arith.constant 0 : index
    %175 = vector.load %arg19[%c0_108, %c0_109] : memref<32x256xf32, #tpu.memory_space<vmem>>, vector<32x256xf32>
    %176 = arith.mulf %173, %175 : vector<32x256xf32>
    %177 = arith.mulf %174, %162 : vector<32x256xf32>
    %178 = arith.addf %176, %177 : vector<32x256xf32>
    %c0_110 = arith.constant 0 : index
    %c0_111 = arith.constant 0 : index
    %179 = vector.load %arg19[%c0_110, %c0_111] : memref<32x256xf32, #tpu.memory_space<vmem>>, vector<32x256xf32>
    tpu.vector_store %arg19[%c0_110, %c0_111], %178 {strides = array<i32>} : memref<32x256xf32, #tpu.memory_space<vmem>>, vector<32x256xf32>,
    %c3_i32_112 = arith.constant 3 : i32
    %c0_113 = arith.constant 0 : index
    %180 = arith.index_cast %c3_i32_112 : i32 to index
    %c0_114 = arith.constant 0 : index
    %c0_115 = arith.constant 0 : index
    %181 = vector.load %arg2[%c0_113, %180, %c0_114, %c0_115] : memref<1x8x16x256xf32, #tpu.memory_space<vmem>>, vector<1x1x16x256xf32>
    %182 = vector.shape_cast %181 : vector<1x1x16x256xf32> to vector<16x256xf32>
    %183 = arith.mulf %182, %83 : vector<16x256xf32>
    %184 = arith.addf %183, %87 : vector<16x256xf32>
    %cst_116 = arith.constant dense<0.000000e+00> : vector<32x256xf32>
    %185 = tpu.matmul %88, %184, %cst_116 {dimension_numbers = #tpu.dot_dimension_numbers<[1], [0], [0], [1], [0, 0, 1, 1], [], []>, precision = #tpu.contract_precision<fp32>} : vector<32x16xf32>, vector<16x256xf32>, vector<32x256xf32> -> vector<32x256xf32>
    %c0_117 = arith.constant 0 : index
    %186 = arith.index_cast %c3_i32_112 : i32 to index
    %c0_118 = arith.constant 0 : index
    %c0_119 = arith.constant 0 : index
    %187 = vector.load %arg3[%c0_117, %186, %c0_118, %c0_119] : memref<1x8x32x1xf32, #tpu.memory_space<vmem>>, vector<1x1x32x1xf32>
    %188 = vector.shape_cast %187 : vector<1x1x32x1xf32> to vector<32x1xf32>
    %189 = vector.broadcast %188 : vector<32x1xf32> to vector<32x256xf32>
    %190 = arith.addf %185, %189 : vector<32x256xf32>
    %cst_120 = arith.constant dense<0.000000e+00> : vector<4x256xf32>
    %191 = tpu.matmul %89, %190, %cst_120 {dimension_numbers = #tpu.dot_dimension_numbers<[1], [0], [0], [1], [0, 0, 1, 1], [], []>, precision = #tpu.contract_precision<fp32>} : vector<4x32xf32>, vector<32x256xf32>, vector<4x256xf32> -> vector<4x256xf32>
    %192 = vector.broadcast %90 : vector<4x1xf32> to vector<4x256xf32>
    %193 = arith.addf %191, %192 : vector<4x256xf32>
    %194 = arith.maximumf %166, %193 : vector<4x256xf32>
    %195 = arith.subf %166, %194 : vector<4x256xf32>
    %196 = math.exp %195 : vector<4x256xf32>
    %197 = arith.subf %193, %194 : vector<4x256xf32>
    %198 = math.exp %197 : vector<4x256xf32>
    %199 = arith.mulf %196, %172 : vector<4x256xf32>
    %200 = arith.addf %199, %198 : vector<4x256xf32>
    %cst_121 = arith.constant dense<0.000000e+00> : vector<32x256xf32>
    %201 = tpu.matmul %91, %196, %cst_121 {dimension_numbers = #tpu.dot_dimension_numbers<[1], [0], [0], [1], [0, 0, 1, 1], [], []>, precision = #tpu.contract_precision<fp32>} : vector<32x4xf32>, vector<4x256xf32>, vector<32x256xf32> -> vector<32x256xf32>
    %cst_122 = arith.constant dense<0.000000e+00> : vector<32x256xf32>
    %202 = tpu.matmul %91, %198, %cst_122 {dimension_numbers = #tpu.dot_dimension_numbers<[1], [0], [0], [1], [0, 0, 1, 1], [], []>, precision = #tpu.contract_precision<fp32>} : vector<32x4xf32>, vector<4x256xf32>, vector<32x256xf32> -> vector<32x256xf32>
    %c0_123 = arith.constant 0 : index
    %c0_124 = arith.constant 0 : index
    %203 = vector.load %arg19[%c0_123, %c0_124] : memref<32x256xf32, #tpu.memory_space<vmem>>, vector<32x256xf32>
    %204 = arith.mulf %201, %203 : vector<32x256xf32>
    %205 = arith.mulf %202, %190 : vector<32x256xf32>
    %206 = arith.addf %204, %205 : vector<32x256xf32>
    %c0_125 = arith.constant 0 : index
    %c0_126 = arith.constant 0 : index
    %207 = vector.load %arg19[%c0_125, %c0_126] : memref<32x256xf32, #tpu.memory_space<vmem>>, vector<32x256xf32>
    tpu.vector_store %arg19[%c0_125, %c0_126], %206 {strides = array<i32>} : memref<32x256xf32, #tpu.memory_space<vmem>>, vector<32x256xf32>,
    %c4_i32_127 = arith.constant 4 : i32
    %c0_128 = arith.constant 0 : index
    %208 = arith.index_cast %c4_i32_127 : i32 to index
    %c0_129 = arith.constant 0 : index
    %c0_130 = arith.constant 0 : index
    %209 = vector.load %arg2[%c0_128, %208, %c0_129, %c0_130] : memref<1x8x16x256xf32, #tpu.memory_space<vmem>>, vector<1x1x16x256xf32>
    %210 = vector.shape_cast %209 : vector<1x1x16x256xf32> to vector<16x256xf32>
    %211 = arith.mulf %210, %83 : vector<16x256xf32>
    %212 = arith.addf %211, %87 : vector<16x256xf32>
    %cst_131 = arith.constant dense<0.000000e+00> : vector<32x256xf32>
    %213 = tpu.matmul %88, %212, %cst_131 {dimension_numbers = #tpu.dot_dimension_numbers<[1], [0], [0], [1], [0, 0, 1, 1], [], []>, precision = #tpu.contract_precision<fp32>} : vector<32x16xf32>, vector<16x256xf32>, vector<32x256xf32> -> vector<32x256xf32>
    %c0_132 = arith.constant 0 : index
    %214 = arith.index_cast %c4_i32_127 : i32 to index
    %c0_133 = arith.constant 0 : index
    %c0_134 = arith.constant 0 : index
    %215 = vector.load %arg3[%c0_132, %214, %c0_133, %c0_134] : memref<1x8x32x1xf32, #tpu.memory_space<vmem>>, vector<1x1x32x1xf32>
    %216 = vector.shape_cast %215 : vector<1x1x32x1xf32> to vector<32x1xf32>
    %217 = vector.broadcast %216 : vector<32x1xf32> to vector<32x256xf32>
    %218 = arith.addf %213, %217 : vector<32x256xf32>
    %cst_135 = arith.constant dense<0.000000e+00> : vector<4x256xf32>
    %219 = tpu.matmul %89, %218, %cst_135 {dimension_numbers = #tpu.dot_dimension_numbers<[1], [0], [0], [1], [0, 0, 1, 1], [], []>, precision = #tpu.contract_precision<fp32>} : vector<4x32xf32>, vector<32x256xf32>, vector<4x256xf32> -> vector<4x256xf32>
    %220 = vector.broadcast %90 : vector<4x1xf32> to vector<4x256xf32>
    %221 = arith.addf %219, %220 : vector<4x256xf32>
    %222 = arith.maximumf %194, %221 : vector<4x256xf32>
    %223 = arith.subf %194, %222 : vector<4x256xf32>
    %224 = math.exp %223 : vector<4x256xf32>
    %225 = arith.subf %221, %222 : vector<4x256xf32>
    %226 = math.exp %225 : vector<4x256xf32>
    %227 = arith.mulf %224, %200 : vector<4x256xf32>
    %228 = arith.addf %227, %226 : vector<4x256xf32>
    %cst_136 = arith.constant dense<0.000000e+00> : vector<32x256xf32>
    %229 = tpu.matmul %91, %224, %cst_136 {dimension_numbers = #tpu.dot_dimension_numbers<[1], [0], [0], [1], [0, 0, 1, 1], [], []>, precision = #tpu.contract_precision<fp32>} : vector<32x4xf32>, vector<4x256xf32>, vector<32x256xf32> -> vector<32x256xf32>
    %cst_137 = arith.constant dense<0.000000e+00> : vector<32x256xf32>
    %230 = tpu.matmul %91, %226, %cst_137 {dimension_numbers = #tpu.dot_dimension_numbers<[1], [0], [0], [1], [0, 0, 1, 1], [], []>, precision = #tpu.contract_precision<fp32>} : vector<32x4xf32>, vector<4x256xf32>, vector<32x256xf32> -> vector<32x256xf32>
    %c0_138 = arith.constant 0 : index
    %c0_139 = arith.constant 0 : index
    %231 = vector.load %arg19[%c0_138, %c0_139] : memref<32x256xf32, #tpu.memory_space<vmem>>, vector<32x256xf32>
    %232 = arith.mulf %229, %231 : vector<32x256xf32>
    %233 = arith.mulf %230, %218 : vector<32x256xf32>
    %234 = arith.addf %232, %233 : vector<32x256xf32>
    %c0_140 = arith.constant 0 : index
    %c0_141 = arith.constant 0 : index
    %235 = vector.load %arg19[%c0_140, %c0_141] : memref<32x256xf32, #tpu.memory_space<vmem>>, vector<32x256xf32>
    tpu.vector_store %arg19[%c0_140, %c0_141], %234 {strides = array<i32>} : memref<32x256xf32, #tpu.memory_space<vmem>>, vector<32x256xf32>,
    %c5_i32_142 = arith.constant 5 : i32
    %c0_143 = arith.constant 0 : index
    %236 = arith.index_cast %c5_i32_142 : i32 to index
    %c0_144 = arith.constant 0 : index
    %c0_145 = arith.constant 0 : index
    %237 = vector.load %arg2[%c0_143, %236, %c0_144, %c0_145] : memref<1x8x16x256xf32, #tpu.memory_space<vmem>>, vector<1x1x16x256xf32>
    %238 = vector.shape_cast %237 : vector<1x1x16x256xf32> to vector<16x256xf32>
    %239 = arith.mulf %238, %83 : vector<16x256xf32>
    %240 = arith.addf %239, %87 : vector<16x256xf32>
    %cst_146 = arith.constant dense<0.000000e+00> : vector<32x256xf32>
    %241 = tpu.matmul %88, %240, %cst_146 {dimension_numbers = #tpu.dot_dimension_numbers<[1], [0], [0], [1], [0, 0, 1, 1], [], []>, precision = #tpu.contract_precision<fp32>} : vector<32x16xf32>, vector<16x256xf32>, vector<32x256xf32> -> vector<32x256xf32>
    %c0_147 = arith.constant 0 : index
    %242 = arith.index_cast %c5_i32_142 : i32 to index
    %c0_148 = arith.constant 0 : index
    %c0_149 = arith.constant 0 : index
    %243 = vector.load %arg3[%c0_147, %242, %c0_148, %c0_149] : memref<1x8x32x1xf32, #tpu.memory_space<vmem>>, vector<1x1x32x1xf32>
    %244 = vector.shape_cast %243 : vector<1x1x32x1xf32> to vector<32x1xf32>
    %245 = vector.broadcast %244 : vector<32x1xf32> to vector<32x256xf32>
    %246 = arith.addf %241, %245 : vector<32x256xf32>
    %cst_150 = arith.constant dense<0.000000e+00> : vector<4x256xf32>
    %247 = tpu.matmul %89, %246, %cst_150 {dimension_numbers = #tpu.dot_dimension_numbers<[1], [0], [0], [1], [0, 0, 1, 1], [], []>, precision = #tpu.contract_precision<fp32>} : vector<4x32xf32>, vector<32x256xf32>, vector<4x256xf32> -> vector<4x256xf32>
    %248 = vector.broadcast %90 : vector<4x1xf32> to vector<4x256xf32>
    %249 = arith.addf %247, %248 : vector<4x256xf32>
    %250 = arith.maximumf %222, %249 : vector<4x256xf32>
    %251 = arith.subf %222, %250 : vector<4x256xf32>
    %252 = math.exp %251 : vector<4x256xf32>
    %253 = arith.subf %249, %250 : vector<4x256xf32>
    %254 = math.exp %253 : vector<4x256xf32>
    %255 = arith.mulf %252, %228 : vector<4x256xf32>
    %256 = arith.addf %255, %254 : vector<4x256xf32>
    %cst_151 = arith.constant dense<0.000000e+00> : vector<32x256xf32>
    %257 = tpu.matmul %91, %252, %cst_151 {dimension_numbers = #tpu.dot_dimension_numbers<[1], [0], [0], [1], [0, 0, 1, 1], [], []>, precision = #tpu.contract_precision<fp32>} : vector<32x4xf32>, vector<4x256xf32>, vector<32x256xf32> -> vector<32x256xf32>
    %cst_152 = arith.constant dense<0.000000e+00> : vector<32x256xf32>
    %258 = tpu.matmul %91, %254, %cst_152 {dimension_numbers = #tpu.dot_dimension_numbers<[1], [0], [0], [1], [0, 0, 1, 1], [], []>, precision = #tpu.contract_precision<fp32>} : vector<32x4xf32>, vector<4x256xf32>, vector<32x256xf32> -> vector<32x256xf32>
    %c0_153 = arith.constant 0 : index
    %c0_154 = arith.constant 0 : index
    %259 = vector.load %arg19[%c0_153, %c0_154] : memref<32x256xf32, #tpu.memory_space<vmem>>, vector<32x256xf32>
    %260 = arith.mulf %257, %259 : vector<32x256xf32>
    %261 = arith.mulf %258, %246 : vector<32x256xf32>
    %262 = arith.addf %260, %261 : vector<32x256xf32>
    %c0_155 = arith.constant 0 : index
    %c0_156 = arith.constant 0 : index
    %263 = vector.load %arg19[%c0_155, %c0_156] : memref<32x256xf32, #tpu.memory_space<vmem>>, vector<32x256xf32>
    tpu.vector_store %arg19[%c0_155, %c0_156], %262 {strides = array<i32>} : memref<32x256xf32, #tpu.memory_space<vmem>>, vector<32x256xf32>,
    %c6_i32_157 = arith.constant 6 : i32
    %c0_158 = arith.constant 0 : index
    %264 = arith.index_cast %c6_i32_157 : i32 to index
    %c0_159 = arith.constant 0 : index
    %c0_160 = arith.constant 0 : index
    %265 = vector.load %arg2[%c0_158, %264, %c0_159, %c0_160] : memref<1x8x16x256xf32, #tpu.memory_space<vmem>>, vector<1x1x16x256xf32>
    %266 = vector.shape_cast %265 : vector<1x1x16x256xf32> to vector<16x256xf32>
    %267 = arith.mulf %266, %83 : vector<16x256xf32>
    %268 = arith.addf %267, %87 : vector<16x256xf32>
    %cst_161 = arith.constant dense<0.000000e+00> : vector<32x256xf32>
    %269 = tpu.matmul %88, %268, %cst_161 {dimension_numbers = #tpu.dot_dimension_numbers<[1], [0], [0], [1], [0, 0, 1, 1], [], []>, precision = #tpu.contract_precision<fp32>} : vector<32x16xf32>, vector<16x256xf32>, vector<32x256xf32> -> vector<32x256xf32>
    %c0_162 = arith.constant 0 : index
    %270 = arith.index_cast %c6_i32_157 : i32 to index
    %c0_163 = arith.constant 0 : index
    %c0_164 = arith.constant 0 : index
    %271 = vector.load %arg3[%c0_162, %270, %c0_163, %c0_164] : memref<1x8x32x1xf32, #tpu.memory_space<vmem>>, vector<1x1x32x1xf32>
    %272 = vector.shape_cast %271 : vector<1x1x32x1xf32> to vector<32x1xf32>
    %273 = vector.broadcast %272 : vector<32x1xf32> to vector<32x256xf32>
    %274 = arith.addf %269, %273 : vector<32x256xf32>
    %cst_165 = arith.constant dense<0.000000e+00> : vector<4x256xf32>
    %275 = tpu.matmul %89, %274, %cst_165 {dimension_numbers = #tpu.dot_dimension_numbers<[1], [0], [0], [1], [0, 0, 1, 1], [], []>, precision = #tpu.contract_precision<fp32>} : vector<4x32xf32>, vector<32x256xf32>, vector<4x256xf32> -> vector<4x256xf32>
    %276 = vector.broadcast %90 : vector<4x1xf32> to vector<4x256xf32>
    %277 = arith.addf %275, %276 : vector<4x256xf32>
    %278 = arith.maximumf %250, %277 : vector<4x256xf32>
    %279 = arith.subf %250, %278 : vector<4x256xf32>
    %280 = math.exp %279 : vector<4x256xf32>
    %281 = arith.subf %277, %278 : vector<4x256xf32>
    %282 = math.exp %281 : vector<4x256xf32>
    %283 = arith.mulf %280, %256 : vector<4x256xf32>
    %284 = arith.addf %283, %282 : vector<4x256xf32>
    %cst_166 = arith.constant dense<0.000000e+00> : vector<32x256xf32>
    %285 = tpu.matmul %91, %280, %cst_166 {dimension_numbers = #tpu.dot_dimension_numbers<[1], [0], [0], [1], [0, 0, 1, 1], [], []>, precision = #tpu.contract_precision<fp32>} : vector<32x4xf32>, vector<4x256xf32>, vector<32x256xf32> -> vector<32x256xf32>
    %cst_167 = arith.constant dense<0.000000e+00> : vector<32x256xf32>
    %286 = tpu.matmul %91, %282, %cst_167 {dimension_numbers = #tpu.dot_dimension_numbers<[1], [0], [0], [1], [0, 0, 1, 1], [], []>, precision = #tpu.contract_precision<fp32>} : vector<32x4xf32>, vector<4x256xf32>, vector<32x256xf32> -> vector<32x256xf32>
    %c0_168 = arith.constant 0 : index
    %c0_169 = arith.constant 0 : index
    %287 = vector.load %arg19[%c0_168, %c0_169] : memref<32x256xf32, #tpu.memory_space<vmem>>, vector<32x256xf32>
    %288 = arith.mulf %285, %287 : vector<32x256xf32>
    %289 = arith.mulf %286, %274 : vector<32x256xf32>
    %290 = arith.addf %288, %289 : vector<32x256xf32>
    %c0_170 = arith.constant 0 : index
    %c0_171 = arith.constant 0 : index
    %291 = vector.load %arg19[%c0_170, %c0_171] : memref<32x256xf32, #tpu.memory_space<vmem>>, vector<32x256xf32>
    tpu.vector_store %arg19[%c0_170, %c0_171], %290 {strides = array<i32>} : memref<32x256xf32, #tpu.memory_space<vmem>>, vector<32x256xf32>,
    %c7_i32_172 = arith.constant 7 : i32
    %c0_173 = arith.constant 0 : index
    %292 = arith.index_cast %c7_i32_172 : i32 to index
    %c0_174 = arith.constant 0 : index
    %c0_175 = arith.constant 0 : index
    %293 = vector.load %arg2[%c0_173, %292, %c0_174, %c0_175] : memref<1x8x16x256xf32, #tpu.memory_space<vmem>>, vector<1x1x16x256xf32>
    %294 = vector.shape_cast %293 : vector<1x1x16x256xf32> to vector<16x256xf32>
    %295 = arith.mulf %294, %83 : vector<16x256xf32>
    %296 = arith.addf %295, %87 : vector<16x256xf32>
    %cst_176 = arith.constant dense<0.000000e+00> : vector<32x256xf32>
    %297 = tpu.matmul %88, %296, %cst_176 {dimension_numbers = #tpu.dot_dimension_numbers<[1], [0], [0], [1], [0, 0, 1, 1], [], []>, precision = #tpu.contract_precision<fp32>} : vector<32x16xf32>, vector<16x256xf32>, vector<32x256xf32> -> vector<32x256xf32>
    %c0_177 = arith.constant 0 : index
    %298 = arith.index_cast %c7_i32_172 : i32 to index
    %c0_178 = arith.constant 0 : index
    %c0_179 = arith.constant 0 : index
    %299 = vector.load %arg3[%c0_177, %298, %c0_178, %c0_179] : memref<1x8x32x1xf32, #tpu.memory_space<vmem>>, vector<1x1x32x1xf32>
    %300 = vector.shape_cast %299 : vector<1x1x32x1xf32> to vector<32x1xf32>
    %301 = vector.broadcast %300 : vector<32x1xf32> to vector<32x256xf32>
    %302 = arith.addf %297, %301 : vector<32x256xf32>
    %cst_180 = arith.constant dense<0.000000e+00> : vector<4x256xf32>
    %303 = tpu.matmul %89, %302, %cst_180 {dimension_numbers = #tpu.dot_dimension_numbers<[1], [0], [0], [1], [0, 0, 1, 1], [], []>, precision = #tpu.contract_precision<fp32>} : vector<4x32xf32>, vector<32x256xf32>, vector<4x256xf32> -> vector<4x256xf32>
    %304 = vector.broadcast %90 : vector<4x1xf32> to vector<4x256xf32>
    %305 = arith.addf %303, %304 : vector<4x256xf32>
    %306 = arith.maximumf %278, %305 : vector<4x256xf32>
    %307 = arith.subf %278, %306 : vector<4x256xf32>
    %308 = math.exp %307 : vector<4x256xf32>
    %309 = arith.subf %305, %306 : vector<4x256xf32>
    %310 = math.exp %309 : vector<4x256xf32>
    %311 = arith.mulf %308, %284 : vector<4x256xf32>
    %312 = arith.addf %311, %310 : vector<4x256xf32>
    %cst_181 = arith.constant dense<0.000000e+00> : vector<32x256xf32>
    %313 = tpu.matmul %91, %308, %cst_181 {dimension_numbers = #tpu.dot_dimension_numbers<[1], [0], [0], [1], [0, 0, 1, 1], [], []>, precision = #tpu.contract_precision<fp32>} : vector<32x4xf32>, vector<4x256xf32>, vector<32x256xf32> -> vector<32x256xf32>
    %cst_182 = arith.constant dense<0.000000e+00> : vector<32x256xf32>
    %314 = tpu.matmul %91, %310, %cst_182 {dimension_numbers = #tpu.dot_dimension_numbers<[1], [0], [0], [1], [0, 0, 1, 1], [], []>, precision = #tpu.contract_precision<fp32>} : vector<32x4xf32>, vector<4x256xf32>, vector<32x256xf32> -> vector<32x256xf32>
    %c0_183 = arith.constant 0 : index
    %c0_184 = arith.constant 0 : index
    %315 = vector.load %arg19[%c0_183, %c0_184] : memref<32x256xf32, #tpu.memory_space<vmem>>, vector<32x256xf32>
    %316 = arith.mulf %313, %315 : vector<32x256xf32>
    %317 = arith.mulf %314, %302 : vector<32x256xf32>
    %318 = arith.addf %316, %317 : vector<32x256xf32>
    %c0_185 = arith.constant 0 : index
    %c0_186 = arith.constant 0 : index
    %319 = vector.load %arg19[%c0_185, %c0_186] : memref<32x256xf32, #tpu.memory_space<vmem>>, vector<32x256xf32>
    tpu.vector_store %arg19[%c0_185, %c0_186], %318 {strides = array<i32>} : memref<32x256xf32, #tpu.memory_space<vmem>>, vector<32x256xf32>,
    %c8_i32_187 = arith.constant 8 : i32
    %cst_188 = arith.constant 1.000000e+00 : f32
    %320 = vector.broadcast %cst_188 : f32 to vector<4x256xf32>
    %321 = arith.divf %320, %312 : vector<4x256xf32>
    %cst_189 = arith.constant dense<0.000000e+00> : vector<32x256xf32>
    %322 = tpu.matmul %91, %321, %cst_189 {dimension_numbers = #tpu.dot_dimension_numbers<[1], [0], [0], [1], [0, 0, 1, 1], [], []>, precision = #tpu.contract_precision<fp32>} : vector<32x4xf32>, vector<4x256xf32>, vector<32x256xf32> -> vector<32x256xf32>
    %c0_190 = arith.constant 0 : index
    %c0_191 = arith.constant 0 : index
    %323 = vector.load %arg19[%c0_190, %c0_191] : memref<32x256xf32, #tpu.memory_space<vmem>>, vector<32x256xf32>
    %324 = arith.mulf %323, %322 : vector<32x256xf32>
    %c0_192 = arith.constant 0 : index
    %c0_193 = arith.constant 0 : index
    %325 = vector.load %arg12[%c0_192, %c0_193] : memref<16x32xf32, #tpu.memory_space<vmem>>, vector<16x32xf32>
    %cst_194 = arith.constant dense<0.000000e+00> : vector<16x256xf32>
    %326 = tpu.matmul %325, %324, %cst_194 {dimension_numbers = #tpu.dot_dimension_numbers<[1], [0], [0], [1], [0, 0, 1, 1], [], []>, precision = #tpu.contract_precision<fp32>} : vector<16x32xf32>, vector<32x256xf32>, vector<16x256xf32> -> vector<16x256xf32>
    %c0_195 = arith.constant 0 : index
    %c0_196 = arith.constant 0 : index
    %327 = vector.load %arg13[%c0_195, %c0_196] : memref<16x1xf32, #tpu.memory_space<vmem>>, vector<16x1xf32>
    %328 = vector.broadcast %327 : vector<16x1xf32> to vector<16x256xf32>
    %329 = arith.addf %326, %328 : vector<16x256xf32>
    %cst_197 = arith.constant 0.000000e+00 : f32
    %330 = vector.broadcast %cst_197 : f32 to vector<16x256xf32>
    %331 = arith.maximumf %329, %330 : vector<16x256xf32>
    %c0_198 = arith.constant 0 : index
    %c0_199 = arith.constant 0 : index
    %332 = vector.load %arg14[%c0_198, %c0_199] : memref<4x16xf32, #tpu.memory_space<vmem>>, vector<4x16xf32>
    %c0_200 = arith.constant 0 : index
    %c0_201 = arith.constant 0 : index
    %333 = vector.load %arg15[%c0_200, %c0_201] : memref<16x4xf32, #tpu.memory_space<vmem>>, vector<16x4xf32>
    %cst_202 = arith.constant dense<0.000000e+00> : vector<4x256xf32>
    %334 = tpu.matmul %332, %331, %cst_202 {dimension_numbers = #tpu.dot_dimension_numbers<[1], [0], [0], [1], [0, 0, 1, 1], [], []>, precision = #tpu.contract_precision<fp32>} : vector<4x16xf32>, vector<16x256xf32>, vector<4x256xf32> -> vector<4x256xf32>
    %cst_203 = arith.constant 2.500000e-01 : f32
    %335 = vector.broadcast %cst_203 : f32 to vector<4x256xf32>
    %336 = arith.mulf %334, %335 : vector<4x256xf32>
    %cst_204 = arith.constant dense<0.000000e+00> : vector<16x256xf32>
    %337 = tpu.matmul %333, %336, %cst_204 {dimension_numbers = #tpu.dot_dimension_numbers<[1], [0], [0], [1], [0, 0, 1, 1], [], []>, precision = #tpu.contract_precision<fp32>} : vector<16x4xf32>, vector<4x256xf32>, vector<16x256xf32> -> vector<16x256xf32>
    %338 = arith.subf %331, %337 : vector<16x256xf32>
    %339 = arith.mulf %338, %338 : vector<16x256xf32>
    %cst_205 = arith.constant dense<0.000000e+00> : vector<4x256xf32>
    %340 = tpu.matmul %332, %339, %cst_205 {dimension_numbers = #tpu.dot_dimension_numbers<[1], [0], [0], [1], [0, 0, 1, 1], [], []>, precision = #tpu.contract_precision<fp32>} : vector<4x16xf32>, vector<16x256xf32>, vector<4x256xf32> -> vector<4x256xf32>
    %cst_206 = arith.constant 2.500000e-01 : f32
    %341 = vector.broadcast %cst_206 : f32 to vector<4x256xf32>
    %342 = arith.mulf %340, %341 : vector<4x256xf32>
    %cst_207 = arith.constant 9.99999974E-6 : f32
    %343 = vector.broadcast %cst_207 : f32 to vector<4x256xf32>
    %344 = arith.addf %342, %343 : vector<4x256xf32>
    %345 = math.rsqrt %344 : vector<4x256xf32>
    %cst_208 = arith.constant dense<0.000000e+00> : vector<16x256xf32>
    %346 = tpu.matmul %333, %345, %cst_208 {dimension_numbers = #tpu.dot_dimension_numbers<[1], [0], [0], [1], [0, 0, 1, 1], [], []>, precision = #tpu.contract_precision<fp32>} : vector<16x4xf32>, vector<4x256xf32>, vector<16x256xf32> -> vector<16x256xf32>
    %347 = arith.mulf %338, %346 : vector<16x256xf32>
    %c0_209 = arith.constant 0 : index
    %c0_210 = arith.constant 0 : index
    %348 = vector.load %arg16[%c0_209, %c0_210] : memref<16x1xf32, #tpu.memory_space<vmem>>, vector<16x1xf32>
    %349 = vector.broadcast %348 : vector<16x1xf32> to vector<16x256xf32>
    %350 = arith.mulf %347, %349 : vector<16x256xf32>
    %c0_211 = arith.constant 0 : index
    %c0_212 = arith.constant 0 : index
    %351 = vector.load %arg17[%c0_211, %c0_212] : memref<16x1xf32, #tpu.memory_space<vmem>>, vector<16x1xf32>
    %352 = vector.broadcast %351 : vector<16x1xf32> to vector<16x256xf32>
    %353 = arith.addf %350, %352 : vector<16x256xf32>
    %c0_213 = arith.constant 0 : index
    %c0_214 = arith.constant 0 : index
    %c0_215 = arith.constant 0 : index
    %354 = vector.load %arg18[%c0_213, %c0_214, %c0_215] : memref<1x16x256xf32, #tpu.memory_space<vmem>>, vector<1x16x256xf32>
    %355 = vector.shape_cast %354 : vector<1x16x256xf32> to vector<16x256xf32>
    %356 = vector.shape_cast %353 : vector<16x256xf32> to vector<1x16x256xf32>
    tpu.vector_store %arg18[%c0_213, %c0_214, %c0_215], %356 {strides = array<i32>} : memref<1x16x256xf32, #tpu.memory_space<vmem>>, vector<1x16x256xf32>,
    return
  }
  func.func @transform_0(%arg0: i32, %arg1: i32) -> (i32, i32, i32, i32) {
    %c0_i32 = arith.constant 0 : i32
    %c0_i32_0 = arith.constant 0 : i32
    %c0_i32_1 = arith.constant 0 : i32
    return %arg0, %c0_i32, %c0_i32_0, %arg1 : i32, i32, i32, i32
  }
  func.func @transform_1(%arg0: i32, %arg1: i32) -> (i32, i32, i32, i32) {
    %c0_i32 = arith.constant 0 : i32
    %c0_i32_0 = arith.constant 0 : i32
    %c0_i32_1 = arith.constant 0 : i32
    %c0_i32_2 = arith.constant 0 : i32
    return %arg0, %c0_i32, %c0_i32_0, %c0_i32_1 : i32, i32, i32, i32
  }
  func.func @transform_2(%arg0: i32, %arg1: i32) -> (i32, i32) {
    %c0_i32 = arith.constant 0 : i32
    %c0_i32_0 = arith.constant 0 : i32
    %c0_i32_1 = arith.constant 0 : i32
    return %c0_i32, %c0_i32_0 : i32, i32
  }
  func.func @transform_3(%arg0: i32, %arg1: i32) -> (i32, i32) {
    %c0_i32 = arith.constant 0 : i32
    %c0_i32_0 = arith.constant 0 : i32
    %c0_i32_1 = arith.constant 0 : i32
    return %c0_i32, %c0_i32_0 : i32, i32
  }
  func.func @transform_4(%arg0: i32, %arg1: i32) -> (i32, i32) {
    %c0_i32 = arith.constant 0 : i32
    %c0_i32_0 = arith.constant 0 : i32
    %c0_i32_1 = arith.constant 0 : i32
    return %c0_i32, %c0_i32_0 : i32, i32
  }
  func.func @transform_5(%arg0: i32, %arg1: i32) -> (i32, i32) {
    %c0_i32 = arith.constant 0 : i32
    %c0_i32_0 = arith.constant 0 : i32
    %c0_i32_1 = arith.constant 0 : i32
    return %c0_i32, %c0_i32_0 : i32, i32
  }
  func.func @transform_6(%arg0: i32, %arg1: i32) -> (i32, i32) {
    %c0_i32 = arith.constant 0 : i32
    %c0_i32_0 = arith.constant 0 : i32
    %c0_i32_1 = arith.constant 0 : i32
    return %c0_i32, %c0_i32_0 : i32, i32
  }
  func.func @transform_7(%arg0: i32, %arg1: i32) -> (i32, i32) {
    %c0_i32 = arith.constant 0 : i32
    %c0_i32_0 = arith.constant 0 : i32
    %c0_i32_1 = arith.constant 0 : i32
    return %c0_i32, %c0_i32_0 : i32, i32
  }
  func.func @transform_8(%arg0: i32, %arg1: i32) -> (i32, i32) {
    %c0_i32 = arith.constant 0 : i32
    %c0_i32_0 = arith.constant 0 : i32
    %c0_i32_1 = arith.constant 0 : i32
    return %c0_i32, %c0_i32_0 : i32, i32
  }
  func.func @transform_9(%arg0: i32, %arg1: i32) -> (i32, i32) {
    %c0_i32 = arith.constant 0 : i32
    %c0_i32_0 = arith.constant 0 : i32
    %c0_i32_1 = arith.constant 0 : i32
    return %c0_i32, %c0_i32_0 : i32, i32
  }
  func.func @transform_10(%arg0: i32, %arg1: i32) -> (i32, i32) {
    %c0_i32 = arith.constant 0 : i32
    %c0_i32_0 = arith.constant 0 : i32
    %c0_i32_1 = arith.constant 0 : i32
    return %c0_i32, %c0_i32_0 : i32, i32
  }
  func.func @transform_11(%arg0: i32, %arg1: i32) -> (i32, i32) {
    %c0_i32 = arith.constant 0 : i32
    %c0_i32_0 = arith.constant 0 : i32
    %c0_i32_1 = arith.constant 0 : i32
    return %c0_i32, %c0_i32_0 : i32, i32
  }
  func.func @transform_12(%arg0: i32, %arg1: i32) -> (i32, i32) {
    %c0_i32 = arith.constant 0 : i32
    %c0_i32_0 = arith.constant 0 : i32
    %c0_i32_1 = arith.constant 0 : i32
    return %c0_i32, %c0_i32_0 : i32, i32
  }
  func.func @transform_13(%arg0: i32, %arg1: i32) -> (i32, i32) {
    %c0_i32 = arith.constant 0 : i32
    %c0_i32_0 = arith.constant 0 : i32
    %c0_i32_1 = arith.constant 0 : i32
    return %c0_i32, %c0_i32_0 : i32, i32
  }
  func.func @transform_14(%arg0: i32, %arg1: i32) -> (i32, i32) {
    %c0_i32 = arith.constant 0 : i32
    %c0_i32_0 = arith.constant 0 : i32
    %c0_i32_1 = arith.constant 0 : i32
    return %c0_i32, %c0_i32_0 : i32, i32
  }
  func.func @transform_15(%arg0: i32, %arg1: i32) -> (i32, i32) {
    %c0_i32 = arith.constant 0 : i32
    %c0_i32_0 = arith.constant 0 : i32
    %c0_i32_1 = arith.constant 0 : i32
    return %c0_i32, %c0_i32_0 : i32, i32
  }
  func.func @transform_16(%arg0: i32, %arg1: i32) -> (i32, i32, i32) {
    %c0_i32 = arith.constant 0 : i32
    %c0_i32_0 = arith.constant 0 : i32
    return %arg0, %c0_i32, %arg1 : i32, i32, i32
  }
}

</mosaic_0001>

<bundles_post_ra>
// kernel: tpu_custom_call.1
= control target key start
LH: loop header
LB: loop body
LE: loop exit
PB: predicated region body
PF: predicated region fallthrough
CT: control target
= control target key end

     0   :  { %s41059_s0 = inlined_call_operand.vmem [shape: f32[2,8,16,256], index: 0, kind: input, shape index: {}]   ;;  %s41060_s1 = inlined_call_operand.vmem [shape: f32[2,8,32,1], index: 1, kind: input, shape index: {}]   ;;  %s41061_s2 = inlined_call_operand.vmem [shape: f32[16,1], index: 2, kind: input, shape index: {}]   ;;  %s41062_s3 = inlined_call_operand.vmem [shape: f32[16,1], index: 3, kind: input, shape index: {}]   ;;  %s41063_s4 = inlined_call_operand.vmem [shape: f32[4,16], index: 4, kind: input, shape index: {}]   ;;  %s41064_s5 = inlined_call_operand.vmem [shape: f32[16,4], index: 5, kind: input, shape index: {}]   ;;  %s41065_s6 = inlined_call_operand.vmem [shape: f32[32,16], index: 6, kind: input, shape index: {}]   ;;  %s41066_s7 = inlined_call_operand.vmem [shape: f32[4,32], index: 7, kind: input, shape index: {}]   ;;  %s41067_s8 = inlined_call_operand.vmem [shape: f32[4,1], index: 8, kind: input, shape index: {}]   ;;  %s41068_s9 = inlined_call_operand.vmem [shape: f32[32,4], index: 9, kind: input, shape index: {}]   ;;  %s41069_s10 = inlined_call_operand.vmem [shape: f32[16,32], index: 10, kind: input, shape index: {}]   ;;  %s41070_s11 = inlined_call_operand.vmem [shape: f32[16,1], index: 11, kind: input, shape index: {}]   ;;  %s41071_s12 = inlined_call_operand.vmem [shape: f32[4,16], index: 12, kind: input, shape index: {}]   ;;  %s41072_s13 = inlined_call_operand.vmem [shape: f32[16,4], index: 13, kind: input, shape index: {}]   ;;  %s41073_s14 = inlined_call_operand.vmem [shape: f32[16,1], index: 14, kind: input, shape index: {}]   ;;  %s41074_s15 = inlined_call_operand.vmem [shape: f32[16,1], index: 15, kind: input, shape index: {}]   ;;  %s41075_s16 = inlined_call_operand.hbm [shape: f32[2,16,256], index: 16, kind: output, shape index: {}]  }
   0x1   :  { %41243 = sst [smem:[#allocation107_spill]] %s41059_s0 }
   0x2   :  { %41244 = sst [smem:[#allocation108_spill]] %s41063_s4 }
   0x3   :  { %21 = vsyncpa [#allocation4], 0 }
   0x4   :  { %23 = vsyncpa [#allocation4 + $0x1], 0  ;;  %s36159_s21 = smov 0   ;;  %s36161_s22 = smov 0  }
   0x5   :  { %s36163_s23 = smov 0   ;;  %s36165_s24 = smov 0  }
   0x6   :  { %s36167_s25 = smov 0   ;;  %s36169_s26 = smov 0  }
   0x7 LB: > { %41245 = sst [smem:[#allocation6_spill]] %s36047_s21  ;;  %s33222_s27 = sadd.s32 4294967295, %s36067_s26   ;;  %s36067_s26 = sphi %s36169_s26, %s29_s26   ;;  %s36063_s25 = sphi %s36167_s25, %s41767_s25   ;;  %s36059_s24 = sphi %s36165_s24, %s41766_s24   ;;  %s36055_s23 = sphi %s36163_s23, %s41765_s23   ;;  %s36051_s22 = sphi %s36161_s22, %s41769_s22   ;;  %s36047_s21 = sphi %s36159_s21, %s41768_s21  }
   0x8   : > { %41246 = sst [smem:[#allocation7_spill]] %s36055_s23  ;;  %s33223_s28 = sadd.s32 4294967294, %s36067_s26  }
   0x9   : > { %41247 = sst [smem:[#allocation8_spill]] %s36063_s25  ;;  %s41_s29 = sadd.s32 1, %s36063_s25 }
   0xa   : > { %s398_s30 = sadd.s32 1, %s36055_s23  ;;  %p43_p0 = scmp.ge.s32.totalorder %s41_s29, 2 }
   0xb   : > { %p408_p1 = scmp.ne.s32.totalorder %s36055_s23, %s36051_s22  ;;  %p409_p2 = scmp.eq.s32.totalorder %s33222_s27, 1 }
   0xc   : > { %p414_p3 = scmp.ne.s32.totalorder %s36051_s22, %s36047_s21  ;;  %s41771_s29 = smov (%p43_p0, %s41_s29), 0 }
   0xd   : > { %41248 = sst [smem:[#allocation9_spill]] %s41771_s29  ;;  %p36199_p4 = por %p409_p2, %p408_p1 }
   0xe   : > { %p415_p5 = scmp.eq.s32.totalorder %s33223_s28, 1  ;;  %s393_s17 = ssub.s32 %s36063_s25, %s41771_s29 }
   0xf   : > { %p33226_p6 = scmp.ge.s32.totalorder %s36067_s26, 1  ;;  %p396_p7 = scmp.eq.s32.totalorder %s393_s17, 0 }
  0x10   : > { %p36206_p8 = por %p415_p5, %p414_p3  ;;  %p496_p9 = scmp.lt.s32.totalorder %s36067_s26, 3 }
  0x11   : > { %s36212_s19 = scalar_select %p396_p7, %s36055_s23, %s398_s30  }
  0x12   : > { %s41250_s18 = scalar_select %p36206_p8, 1, 0 }
  0x13   : > { %41252 = sst [smem:[#allocation11_spill]] %s36212_s19  ;;  %p497_p10 = pnand %p33226_p6, %p496_p9 }
  0x14   : > { %41251 = sst [smem:[#allocation10_spill]] %s41250_s18 }
  0x15   : > { %500 = sbr.rel (%p497_p10) target bundleno = 8102 (0x1fa6), region = 84 }
  0x1c   : > { %p556_p11 = scmp.lt.s32.totalorder %s36059_s24, 1  ;;  %s41253_s4 = sld [smem:[#allocation108_spill]]  ;;  %vm587_vm0 = vcmask 130048   ;;  %v41088_v1 = vmov 0.0   ;;  %vm8543_vm1 = vcmask 31744   ;;  %vm8550_vm2 = vcmask 1043456  }
  0x1d   : > { %659 = vmatprep.mubr.f32.mxu0 %v41088_v1  ;;  %1645 = vmatprep.mubr.f32.mxu1 %v41088_v1  ;;  %s41254_s27 = sld [smem:[#allocation107_spill]]  ;;  %vm10336_vm3 = vcmask 261120   ;;  %s552_s23 = sand.u32 1, %s36051_s22  }
  0x1e   : > { %s36222_s28 = scalar_select %p556_p11, %s36059_s24, 1 }
  0x1f   : > { %s33227_s25 = sshll.u32 %s552_s23, 5 }
  0x20   : > { %s41076_s30 = sshll.u32 %s36222_s28, 8  ;;  %s41255_s19 = sshll.u32 %s36222_s28, 8 }
  0x21   : > { %s37174_s21 = scalar_lea.vmem %s41060_s1, %s41255_s19  ;;  %s554_s29 = scalar_lea.vmem [#allocation3], %s33227_s25 }
  0x22   : > { %v571_v0 = vld [vmem:[%s41253_s4] sm:$0xf]  ;;  %s33131_s18 = sshll.u32 %s554_s29, 4  ;;  %s41004_s18 = int_to_ptr.vmem [resolvable:$true] %s33131_s18 }
  0x23   : > { %v589_v2 = vsel %vm587_vm0, %v571_v0, 0  ;;  %s36235_s4 = scalar_lea.vmem %s41254_s27, %s41076_s30  ;;  %s41013_s27 = scalar_lea.sflag [#allocation4], %s552_s23 }
  0x24   : > { %v36224_v3 = vand.u32 4294901760, %v589_v2  ;;  %v33233_v5 = vld [vmem:[%s36235_s4 + $0x28] sm:$0xff]  ;;  %v33235_v6 = vld [vmem:[%s36235_s4 + $0x38] sm:$0xff]  ;;  %v33232_v7 = vld [vmem:[%s36235_s4 + $0x20] sm:$0xff]  ;;  %s36071_s30 = smov [#allocation3]  }
  0x25   : > { %v591_v9 = vand.u32 4294901760, %v33233_v5  ;;  %v595_v10 = vand.u32 4294901760, %v33235_v6  ;;  %v33234_v11 = vld [vmem:[%s36235_s4 + $0x30] sm:$0xff]  ;;  %v593_v12 = vand.u32 4294901760, %v33232_v7  ;;  %v1574_v13 = vmul.f32 %v33233_v5, %v33233_v5  ;;  %s35993_s17 = sshll.u32 %s36071_s30, 4  ;;  %s35994_s17 = int_to_ptr.vmem [resolvable:$false] %s35993_s17 }
  0x26   : > { %v36228_v4 = vsub.f32 %v589_v2, %v36224_v3  ;;  %v597_v14 = vand.u32 4294901760, %v33234_v11  ;;  %v1576_v15 = vmul.f32 %v33235_v6, %v33235_v6  ;;  %v1573_v16 = vmul.f32 %v33232_v7, %v33232_v7  ;;  %p35996_p1 = scmp.lt.s32.totalorder %s41004_s18, %s35994_s17 }
  0x27   : > { %v1575_v17 = vmul.f32 %v33234_v11, %v33234_v11  ;;  %v36244_v18 = vpack.c.bf16 %v595_v10, %v591_v9  ;;  %v36246_v19 = vsub.f32 %v33233_v5, %v591_v9  ;;  %v36248_v20 = vsub.f32 %v33235_v6, %v595_v10  ;;  %v577_v9 = vld [vmem:[%s36235_s4 + $0x18] sm:$0xff] }
  0x28   : > { %v36241_v8 = vand.u32 4294901760, %v36228_v4  ;;  %v36250_v21 = vsub.f32 %v33232_v7, %v593_v12  ;;  %v36252_v22 = vpack.c.bf16 %v597_v14, %v593_v12  ;;  %v36254_v23 = vsub.f32 %v33234_v11, %v597_v14  ;;  %v575_v7 = vld [vmem:[%s36235_s4 + $0x8] sm:$0xff] }
  0x29   : > { %v1577_v24 = vand.u32 4294901760, %v1574_v13  ;;  %v1581_v25 = vand.u32 4294901760, %v1576_v15  ;;  %33325 = vmatprep.subr.bf16.mxu0 %v36244_v18  ;;  %v1579_v26 = vand.u32 4294901760, %v1573_v16  ;;  %v1583_v27 = vand.u32 4294901760, %v1575_v17 }
  0x2a   : > { %v663_v28 = vsub.f32 %v36228_v4, %v36241_v8  ;;  %v673_v29 = vand.u32 4294901760, %v36246_v19  ;;  %33327 = vmatpush1.bf16.msra.mxu0 %v36252_v22  ;;  %v685_v33 = vand.u32 4294901760, %v36248_v20  ;;  %v679_v40 = vand.u32 4294901760, %v36250_v21 }
  0x2b   : > { %v36261_v30 = vpack.c.bf16 %v1581_v25, %v1577_v24  ;;  %v1658_v31 = vsub.f32 %v1574_v13, %v1577_v24  ;;  %v1670_v32 = vsub.f32 %v1576_v15, %v1581_v25  ;;  %v36264_v34 = vpack.c.bf16 %v1583_v27, %v1579_v26 }
  0x2c   : > { %v36266_v35 = vsub.f32 %v1573_v16, %v1579_v26  ;;  %v36268_v36 = vsub.f32 %v1575_v17, %v1583_v27  ;;  %v36270_v37 = vand.u32 4294901760, %v663_v28  ;;  %v674_v38 = vsub.f32 %v36246_v19, %v673_v29  ;;  %v574_v16 = vld [vmem:[%s36235_s4] sm:$0xff]  ;;  %v576_v17 = vld [vmem:[%s36235_s4 + $0x10] sm:$0xff] }
  0x2d   : > { %33373 = vmatprep.subr.bf16.mxu1 %v36261_v30  ;;  %v686_v39 = vsub.f32 %v36248_v20, %v685_v33  ;;  %v691_v41 = vand.u32 4294901760, %v36254_v23  ;;  %v1659_v42 = vand.u32 4294901760, %v1658_v31  ;;  %v1671_v43 = vand.u32 4294901760, %v1670_v32 }
  0x2e   : > { %33375 = vmatpush1.bf16.msra.mxu1 %v36264_v34  ;;  %665 = vmatmul.mubr.f32.vlgmr.msra.gmra.mrb[0].mxu0 %v36270_v37  ;;  %v1665_v44 = vand.u32 4294901760, %v36266_v35  ;;  %v1677_v45 = vand.u32 4294901760, %v36268_v36  ;;  %v675_v46 = vand.u32 4294901760, %v674_v38  ;;  %v680_v48 = vsub.f32 %v36250_v21, %v679_v40 }
  0x2f   : > { %v687_v47 = vand.u32 4294901760, %v686_v39  ;;  %v692_v49 = vsub.f32 %v36254_v23, %v691_v41  ;;  %755 = vmatprep.mubr.f32.mxu0 %v41088_v1  ;;  %v1660_v50 = vsub.f32 %v1658_v31, %v1659_v42  ;;  %v1672_v51 = vsub.f32 %v1670_v32, %v1671_v43 }
  0x30   : > { %v1666_v52 = vsub.f32 %v36266_v35, %v1665_v44  ;;  %v1678_v53 = vsub.f32 %v36268_v36, %v1677_v45  ;;  %v681_v55 = vand.u32 4294901760, %v680_v48  ;;  %v33332_v57 = vpack.c.bf16 %v36248_v20, %v36246_v19 }
  0x31   : > { %1651 = vmatmul.mubr.f32.vlgmr.msra.gmra.mrb[0].mxu1 %v36270_v37  ;;  %v33328_v54 = vpack.c.bf16 %v687_v47, %v675_v46  ;;  %v693_v56 = vand.u32 4294901760, %v692_v49  ;;  %v1661_v58 = vand.u32 4294901760, %v1660_v50  ;;  %v1673_v59 = vand.u32 4294901760, %v1672_v51 }
  0x32   : > { %v1667_v60 = vand.u32 4294901760, %v1666_v52  ;;  %v1679_v61 = vand.u32 4294901760, %v1678_v53  ;;  %1741 = vmatprep.mubr.f32.mxu1 %v41088_v1  ;;  %v33380_v2 = vpack.c.bf16 %v1670_v32, %v1658_v31  ;;  %v33334_v5 = vpack.c.bf16 %v36254_v23, %v36250_v21 }
  0x33   : > { %33329 = vmatprep.subr.bf16.mxu0 %v33328_v54  ;;  %v33330_v62 = vpack.c.bf16 %v693_v56, %v681_v55  ;;  %v33376_v63 = vpack.c.bf16 %v1673_v59, %v1661_v58  ;;  %v33382_v6 = vpack.c.bf16 %v36268_v36, %v36266_v35  ;;  %v33340_v10 = vpack.c.bf16 %v685_v33, %v673_v29 }
  0x34   : > { %v33378_v0 = vpack.c.bf16 %v1679_v61, %v1667_v60  ;;  %v33388_v11 = vpack.c.bf16 %v1671_v43, %v1659_v42  ;;  %v579_v12 = vmul.f32 %v575_v7, %v575_v7  ;;  %v581_v13 = vmul.f32 %v577_v9, %v577_v9 }
  0x35   : > { %33331 = vmatpush1.bf16.msra.mxu0 %v33330_v62  ;;  %33377 = vmatprep.subr.bf16.mxu1 %v33376_v63  ;;  %v1082_v14 = vand.u32 4294901760, %v575_v7  ;;  %v1086_v15 = vand.u32 4294901760, %v577_v9  ;;  %v33342_v24 = vpack.c.bf16 %v691_v41, %v679_v40  ;;  %v33390_v27 = vpack.c.bf16 %v1677_v45, %v1665_v44 }
  0x36   : > { %33333 = vmatprep.subr.bf16.mxu0 %v33332_v57  ;;  %33379 = vmatpush1.bf16.msra.mxu1 %v33378_v0  ;;  %v2068_v19 = vand.u32 4294901760, %v579_v12  ;;  %v2072_v20 = vand.u32 4294901760, %v581_v13  ;;  %v578_v28 = vmul.f32 %v574_v16, %v574_v16  ;;  %v580_v29 = vmul.f32 %v576_v17, %v576_v17 }
  0x37   : > { %33381 = vmatprep.subr.bf16.mxu1 %v33380_v2  ;;  %v36322_v25 = vsub.f32 %v575_v7, %v1082_v14  ;;  %v36324_v26 = vsub.f32 %v577_v9, %v1086_v15  ;;  %v1084_v21 = vand.u32 4294901760, %v574_v16  ;;  %v1088_v23 = vand.u32 4294901760, %v576_v17 }
  0x38   : > { %757 = vmatmul.mubr.f32.vlgmr.msra.gmra.mrb[0].mxu0 %v36224_v3  ;;  %v36331_v31 = vsub.f32 %v579_v12, %v2068_v19  ;;  %v36333_v32 = vsub.f32 %v581_v13, %v2072_v20  ;;  %v2070_v36 = vand.u32 4294901760, %v578_v28  ;;  %v2074_v38 = vand.u32 4294901760, %v580_v29  ;;  %v33237_v13 = vld [vmem:[%s36235_s4 + $0x48] sm:$0xff] }
  0x39   : > { %33335 = vmatpush1.bf16.msra.mxu0 %v33334_v5  ;;  %835 = vmatprep.mubr.f32.mxu0 %v41088_v1  ;;  %v1164_v33 = vand.u32 4294901760, %v36322_v25  ;;  %v1176_v35 = vand.u32 4294901760, %v36324_v26  ;;  %v36344_v41 = vsub.f32 %v574_v16, %v1084_v21  ;;  %v36346_v42 = vsub.f32 %v576_v17, %v1088_v23 }
  0x3a   : > { %1743 = vmatmul.mubr.f32.vlgmr.msra.gmra.mrb[0].mxu1 %v36224_v3  ;;  %33337 = vmatprep.subr.bf16.mxu0 %v36244_v18  ;;  %v2150_v39 = vand.u32 4294901760, %v36331_v31  ;;  %v2162_v40 = vand.u32 4294901760, %v36333_v32  ;;  %v36356_v45 = vsub.f32 %v578_v28, %v2070_v36  ;;  %v36361_v46 = vpack.c.bf16 %v2072_v20, %v2068_v19 }
  0x3b   : > { %33383 = vmatpush1.bf16.msra.mxu1 %v33382_v6  ;;  %1821 = vmatprep.mubr.f32.mxu1 %v41088_v1  ;;  %v1165_v43 = vsub.f32 %v36322_v25, %v1164_v33  ;;  %v1177_v44 = vsub.f32 %v36324_v26, %v1176_v35  ;;  %v1170_v49 = vand.u32 4294901760, %v36344_v41  ;;  %v1182_v50 = vand.u32 4294901760, %v36346_v42 }
  0x3c   : > { %33385 = vmatprep.subr.bf16.mxu1 %v36261_v30  ;;  %v2151_v47 = vsub.f32 %v36331_v31, %v2150_v39  ;;  %v2163_v48 = vsub.f32 %v36333_v32, %v2162_v40  ;;  %v2156_v53 = vand.u32 4294901760, %v36356_v45  ;;  %v36380_v56 = vpack.c.bf16 %v1088_v23, %v1084_v21 }
  0x3d   : > { %v1166_v51 = vand.u32 4294901760, %v1165_v43  ;;  %v1178_v52 = vand.u32 4294901760, %v1177_v44  ;;  %v1171_v57 = vsub.f32 %v36344_v41, %v1170_v49  ;;  %v36388_v59 = vpack.c.bf16 %v2074_v38, %v2070_v36 }
  0x3e   : > { %v2152_v54 = vand.u32 4294901760, %v2151_v47  ;;  %v2164_v55 = vand.u32 4294901760, %v2163_v48  ;;  %v2157_v60 = vsub.f32 %v36356_v45, %v2156_v53  ;;  %v33356_v7 = vpack.c.bf16 %v36324_v26, %v36322_v25  ;;  %v33236_v25 = vld [vmem:[%s36235_s4 + $0x40] sm:$0xff]  ;;  %v33238_v26 = vld [vmem:[%s36235_s4 + $0x50] sm:$0xff] }
  0x3f   : > { %v33352_v58 = vpack.c.bf16 %v1178_v52, %v1166_v51  ;;  %v1172_v63 = vand.u32 4294901760, %v1171_v57  ;;  %v33412_v16 = vpack.c.bf16 %v2162_v40, %v2150_v39  ;;  %v3058_v17 = vmul.f32 %v33237_v13, %v33237_v13 }
  0x40   : > { %838 = vmatmul.mubr.f32.vlgmr.msra.gmra.mrb[0].mxu0 %v36228_v4  ;;  %v33400_v62 = vpack.c.bf16 %v2164_v55, %v2152_v54  ;;  %v2158_v2 = vand.u32 4294901760, %v2157_v60  ;;  %v2564_v20 = vand.u32 4294901760, %v33237_v13  ;;  %v3057_v23 = vmul.f32 %v33236_v25, %v33236_v25 }
  0x41   : > { %33339 = vmatpush1.bf16.msra.mxu0 %v36252_v22  ;;  %912 = vmatprep.mubr.f32.mxu0 %v41088_v1  ;;  %v2570_v39 = vand.u32 4294901760, %v33238_v26 }
  0x42   : > { %1824 = vmatmul.mubr.f32.vlgmr.msra.gmra.mrb[0].mxu1 %v36228_v4  ;;  %33341 = vmatprep.subr.bf16.mxu0 %v33340_v10  ;;  %v33404_v10 = vpack.c.bf16 %v36333_v32, %v36331_v31  ;;  %v36442_v31 = vsub.f32 %v33237_v13, %v2564_v20 }
  0x43   : > { %33387 = vmatpush1.bf16.msra.mxu1 %v36264_v34  ;;  %1898 = vmatprep.mubr.f32.mxu1 %v41088_v1  ;;  %v36466_v47 = vsub.f32 %v33238_v26, %v2570_v39 }
  0x44   : > { %33389 = vmatprep.subr.bf16.mxu1 %v33388_v11  ;;  %v33358_v11 = vpack.c.bf16 %v36346_v42, %v36344_v41  ;;  %v2646_v40 = vand.u32 4294901760, %v36442_v31 }
  0x45   : > { %v2664_v54 = vand.u32 4294901760, %v36466_v47 }
  0x46   : > { %v2647_v48 = vsub.f32 %v36442_v31, %v2646_v40 }
  0x48   : > { %916 = vmatmul.mubr.f32.vlgmr.msra.gmra.mrb[0].mxu0 %v36241_v8  ;;  %v2648_v55 = vand.u32 4294901760, %v2647_v48 }
  0x49   : > { %33343 = vmatpush1.bf16.msra.mxu0 %v33342_v24  ;;  %998 = vmatprep.mubr.f32.mxu0 %v41088_v1 }
  0x4a   : > { %1902 = vmatmul.mubr.f32.vlgmr.msra.gmra.mrb[0].mxu1 %v36241_v8  ;;  %33345 = vmatprep.subr.bf16.mxu0 %v36244_v18  ;;  %v36348_v18 = vpack.c.bf16 %v1086_v15, %v1082_v14  ;;  %v33239_v14 = vld [vmem:[%s36235_s4 + $0x58] sm:$0xff]  ;;  %v33364_v15 = vpack.c.bf16 %v1176_v35, %v1164_v33  ;;  %v3059_v33 = vmul.f32 %v33238_v26, %v33238_v26 }
  0x4b   : > { %33391 = vmatpush1.bf16.msra.mxu1 %v33390_v27  ;;  %1984 = vmatprep.mubr.f32.mxu1 %v41088_v1  ;;  %v3060_v19 = vmul.f32 %v33239_v14, %v33239_v14  ;;  %v2568_v24 = vand.u32 4294901760, %v33239_v14  ;;  %v3061_v27 = vand.u32 4294901760, %v3058_v17 }
  0x4c   : > { %33393 = vmatprep.subr.bf16.mxu1 %v36261_v30  ;;  %v36358_v30 = vsub.f32 %v580_v29, %v2074_v38  ;;  %v33366_v29 = vpack.c.bf16 %v1182_v50, %v1170_v49  ;;  %v2566_v38 = vand.u32 4294901760, %v33236_v25  ;;  %v3067_v43 = vand.u32 4294901760, %v3059_v33 }
  0x4d   : > { %v3065_v28 = vand.u32 4294901760, %v3060_v19  ;;  %v36444_v32 = vsub.f32 %v33239_v14, %v2568_v24  ;;  %v36451_v35 = vsub.f32 %v3058_v17, %v3061_v27 }
  0x4e   : > { %v33406_v12 = vpack.c.bf16 %v36358_v30, %v36356_v45 }
  0x4f   : > { %v36453_v36 = vsub.f32 %v3060_v19, %v3065_v28  ;;  %v2658_v41 = vand.u32 4294901760, %v36444_v32  ;;  %v3143_v44 = vand.u32 4294901760, %v36451_v35  ;;  %v36481_v51 = vpack.c.bf16 %v3065_v28, %v3061_v27  ;;  %v33241_v19 = vld [vmem:[%s36235_s4 + $0x68] sm:$0xff] }
  0x50   : > { %1000 = vmatmul.mubr.f32.vlgmr.msra.gmra.mrb[0].mxu0 %v36224_v3  ;;  %v33428_v13 = vpack.c.bf16 %v36444_v32, %v36442_v31  ;;  %v4053_v26 = vmul.f32 %v33241_v19, %v33241_v19  ;;  %v3559_v28 = vand.u32 4294901760, %v33241_v19  ;;  %v33240_v31 = vld [vmem:[%s36235_s4 + $0x60] sm:$0xff] }
  0x51   : > { %33347 = vmatpush1.bf16.msra.mxu0 %v36252_v22  ;;  %1074 = vmatprep.mubr.f32.mxu0 %v41088_v1  ;;  %v2168_v22 = vand.u32 4294901760, %v36358_v30  ;;  %v3155_v45 = vand.u32 4294901760, %v36453_v36  ;;  %v2659_v49 = vsub.f32 %v36444_v32, %v2658_v41  ;;  %v3144_v52 = vsub.f32 %v36451_v35, %v3143_v44  ;;  %v33242_v32 = vld [vmem:[%s36235_s4 + $0x70] sm:$0xff] }
  0x52   : > { %1986 = vmatmul.mubr.f32.vlgmr.msra.gmra.mrb[0].mxu1 %v36224_v3  ;;  %33349 = vmatprep.subr.bf16.mxu0 %v36348_v18 }
  0x53   : > { %33395 = vmatpush1.bf16.msra.mxu1 %v36264_v34  ;;  %2060 = vmatprep.mubr.f32.mxu1 %v41088_v1  ;;  %v1183_v34 = vsub.f32 %v36346_v42, %v1182_v50  ;;  %v2169_v61 = vsub.f32 %v36358_v30, %v2168_v22  ;;  %v33414_v21 = vpack.c.bf16 %v2168_v22, %v2156_v53  ;;  %v3063_v42 = vand.u32 4294901760, %v3057_v23 }
  0x54   : > { %33397 = vmatprep.subr.bf16.mxu1 %v36361_v46  ;;  %v36464_v30 = vsub.f32 %v33236_v25, %v2566_v38  ;;  %v3156_v53 = vsub.f32 %v36453_v36, %v3155_v45  ;;  %v2660_v57 = vand.u32 4294901760, %v2659_v49  ;;  %v33460_v25 = vpack.c.bf16 %v3155_v45, %v3143_v44 }
  0x55   : > { %v1184_v0 = vand.u32 4294901760, %v1183_v34  ;;  %v2170_v5 = vand.u32 4294901760, %v2169_v61  ;;  %v36476_v50 = vsub.f32 %v3057_v23, %v3063_v42  ;;  %v36500_v61 = vpack.c.bf16 %v2570_v39, %v2566_v38 }
  0x56   : > { %v2652_v22 = vand.u32 4294901760, %v36464_v30  ;;  %v3157_v60 = vand.u32 4294901760, %v3156_v53  ;;  %v4052_v39 = vmul.f32 %v33240_v31, %v33240_v31  ;;  %v3565_v44 = vand.u32 4294901760, %v33242_v32 }
  0x57   : > { %v33354_v6 = vpack.c.bf16 %v1184_v0, %v1172_v63  ;;  %v33402_v9 = vpack.c.bf16 %v2170_v5, %v2158_v2  ;;  %v3149_v34 = vand.u32 4294901760, %v36476_v50  ;;  %v33424_v63 = vpack.c.bf16 %v2660_v57, %v2648_v55 }
  0x58   : > { %1076 = vmatmul.mubr.f32.vlgmr.msra.gmra.mrb[0].mxu0 %v36224_v3  ;;  %v36508_v0 = vpack.c.bf16 %v3067_v43, %v3063_v42 }
  0x59   : > { %33351 = vmatpush1.bf16.msra.mxu0 %v36380_v56  ;;  %1150 = vmatprep.mubr.f32.mxu0 %v41088_v1  ;;  %v3150_v2 = vsub.f32 %v36476_v50, %v3149_v34 }
  0x5a   : > { %2062 = vmatmul.mubr.f32.vlgmr.msra.gmra.mrb[0].mxu1 %v36224_v3  ;;  %33353 = vmatprep.subr.bf16.mxu0 %v33352_v58  ;;  %v3145_v58 = vand.u32 4294901760, %v3144_v52  ;;  %v36586_v52 = vsub.f32 %v33242_v32, %v3565_v44 }
  0x5b   : > { %33399 = vmatpush1.bf16.msra.mxu1 %v36388_v59  ;;  %2136 = vmatprep.mubr.f32.mxu1 %v41088_v1 }
  0x5c   : > { %33401 = vmatprep.subr.bf16.mxu1 %v33400_v62  ;;  %v2653_v62 = vsub.f32 %v36464_v30, %v2652_v22 }
  0x60   : > { %1156 = vmatmul.mubr.f32.vlgmr.msra.gmra.mrb[0].mxu0 %v36270_v37 }
  0x61   : > { %33355 = vmatpush1.bf16.msra.mxu0 %v33354_v6  ;;  %1246 = vmatprep.mubr.f32.mxu0 %v41088_v1  ;;  %v33448_v6 = vpack.c.bf16 %v3157_v60, %v3145_v58  ;;  %v3659_v58 = vand.u32 4294901760, %v36586_v52 }
  0x62   : > { %2142 = vmatmul.mubr.f32.vlgmr.msra.gmra.mrb[0].mxu1 %v36270_v37  ;;  %33357 = vmatprep.subr.bf16.mxu0 %v33356_v7  ;;  %v2654_v7 = vand.u32 4294901760, %v2653_v62 }
  0x63   : > { %33403 = vmatpush1.bf16.msra.mxu1 %v33402_v9  ;;  %2232 = vmatprep.mubr.f32.mxu1 %v41088_v1 }
  0x64   : > { %33405 = vmatprep.subr.bf16.mxu1 %v33404_v10  ;;  %v3151_v10 = vand.u32 4294901760, %v3150_v2 }
  0x68   : > { %1248 = vmatmul.mubr.f32.vlgmr.msra.gmra.mrb[0].mxu0 %v36224_v3 }
  0x69   : > { %33359 = vmatpush1.bf16.msra.mxu0 %v33358_v11  ;;  %1326 = vmatprep.mubr.f32.mxu0 %v41088_v1 }
  0x6a   : > { %2234 = vmatmul.mubr.f32.vlgmr.msra.gmra.mrb[0].mxu1 %v36224_v3  ;;  %33361 = vmatprep.subr.bf16.mxu0 %v36348_v18 }
  0x6b   : > { %33407 = vmatpush1.bf16.msra.mxu1 %v33406_v12  ;;  %2312 = vmatprep.mubr.f32.mxu1 %v41088_v1 }
  0x6c   : > { %33409 = vmatprep.subr.bf16.mxu1 %v36361_v46 }
  0x70   : > { %1329 = vmatmul.mubr.f32.vlgmr.msra.gmra.mrb[0].mxu0 %v36228_v4 }
  0x71   : > { %33363 = vmatpush1.bf16.msra.mxu0 %v36380_v56  ;;  %1403 = vmatprep.mubr.f32.mxu0 %v41088_v1 }
  0x72   : > { %2315 = vmatmul.mubr.f32.vlgmr.msra.gmra.mrb[0].mxu1 %v36228_v4  ;;  %33365 = vmatprep.subr.bf16.mxu0 %v33364_v15  ;;  %v33452_v15 = vpack.c.bf16 %v36453_v36, %v36451_v35  ;;  %v36562_v35 = vsub.f32 %v33241_v19, %v3559_v28 }
  0x73   : > { %33411 = vmatpush1.bf16.msra.mxu1 %v36388_v59  ;;  %2389 = vmatprep.mubr.f32.mxu1 %v41088_v1 }
  0x74   : > { %33413 = vmatprep.subr.bf16.mxu1 %v33412_v16  ;;  %v33430_v16 = vpack.c.bf16 %v36466_v47, %v36464_v30  ;;  %v3641_v45 = vand.u32 4294901760, %v36562_v35 }
  0x76   : > { %v3642_v53 = vsub.f32 %v36562_v35, %v3641_v45 }
  0x78   : > { %1407 = vmatmul.mubr.f32.vlgmr.msra.gmra.mrb[0].mxu0 %v36241_v8  ;;  %v3643_v60 = vand.u32 4294901760, %v3642_v53 }
  0x79   : > { %33367 = vmatpush1.bf16.msra.mxu0 %v33366_v29  ;;  %1489 = vmatprep.mubr.f32.mxu0 %v41088_v1 }
  0x7a   : > { %2393 = vmatmul.mubr.f32.vlgmr.msra.gmra.mrb[0].mxu1 %v36241_v8  ;;  %33369 = vmatprep.subr.bf16.mxu0 %v36348_v18  ;;  %v36468_v18 = vpack.c.bf16 %v2568_v24, %v2564_v20  ;;  %v33243_v20 = vld [vmem:[%s36235_s4 + $0x78] sm:$0xff]  ;;  %v33436_v24 = vpack.c.bf16 %v2658_v41, %v2646_v40  ;;  %v4054_v40 = vmul.f32 %v33242_v32, %v33242_v32 }
  0x7b   : > { %33415 = vmatpush1.bf16.msra.mxu1 %v33414_v21  ;;  %2475 = vmatprep.mubr.f32.mxu1 %v41088_v1  ;;  %v4055_v27 = vmul.f32 %v33243_v20, %v33243_v20  ;;  %v3563_v29 = vand.u32 4294901760, %v33243_v20  ;;  %v4056_v21 = vand.u32 4294901760, %v4053_v26 }
  0x7c   : > { %33417 = vmatprep.subr.bf16.mxu1 %v36361_v46  ;;  %v36478_v46 = vsub.f32 %v3059_v33, %v3067_v43  ;;  %v33438_v33 = vpack.c.bf16 %v2664_v54, %v2652_v22  ;;  %v3561_v43 = vand.u32 4294901760, %v33240_v31  ;;  %v4062_v48 = vand.u32 4294901760, %v4054_v40 }
  0x7d   : > { %v4060_v23 = vand.u32 4294901760, %v4055_v27  ;;  %v36564_v36 = vsub.f32 %v33243_v20, %v3563_v29  ;;  %v36571_v41 = vsub.f32 %v4053_v26, %v4056_v21 }
  0x7e   : > { %v33454_v17 = vpack.c.bf16 %v36478_v46, %v36476_v50 }
  0x7f   : > { %v36573_v42 = vsub.f32 %v4055_v27, %v4060_v23  ;;  %v3653_v30 = vand.u32 4294901760, %v36564_v36  ;;  %v4138_v49 = vand.u32 4294901760, %v36571_v41  ;;  %v36601_v55 = vpack.c.bf16 %v4060_v23, %v4056_v21  ;;  %v33245_v27 = vld [vmem:[%s36235_s4 + $0x88] sm:$0xff] }
  0x80   : > { %1491 = vmatmul.mubr.f32.vlgmr.msra.gmra.mrb[0].mxu0 %v36224_v3  ;;  %v33476_v19 = vpack.c.bf16 %v36564_v36, %v36562_v35  ;;  %v5048_v32 = vmul.f32 %v33245_v27, %v33245_v27  ;;  %v4554_v23 = vand.u32 4294901760, %v33245_v27  ;;  %v33244_v35 = vld [vmem:[%s36235_s4 + $0x80] sm:$0xff] }
  0x81   : > { %33371 = vmatpush1.bf16.msra.mxu0 %v36380_v56  ;;  %1565 = vmatprep.mubr.f32.mxu0 %v41088_v1  ;;  %v3161_v56 = vand.u32 4294901760, %v36478_v46  ;;  %v4150_v50 = vand.u32 4294901760, %v36573_v42  ;;  %v3654_v22 = vsub.f32 %v36564_v36, %v3653_v30  ;;  %v4139_v57 = vsub.f32 %v36571_v41, %v4138_v49  ;;  %v33246_v36 = vld [vmem:[%s36235_s4 + $0x90] sm:$0xff] }
  0x82   : > { %2477 = vmatmul.mubr.f32.vlgmr.msra.gmra.mrb[0].mxu1 %v36224_v3  ;;  %33421 = vmatprep.subr.bf16.mxu0 %v36468_v18 }
  0x83   : > { %33419 = vmatpush1.bf16.msra.mxu1 %v36388_v59  ;;  %2551 = vmatprep.mubr.f32.mxu1 %v41088_v1  ;;  %v2665_v59 = vsub.f32 %v36466_v47, %v2664_v54  ;;  %v3162_v5 = vsub.f32 %v36478_v46, %v3161_v56  ;;  %v33462_v38 = vpack.c.bf16 %v3161_v56, %v3149_v34  ;;  %v4058_v47 = vand.u32 4294901760, %v4052_v39 }
  0x84   : > { %33445 = vmatprep.subr.bf16.mxu1 %v36481_v51  ;;  %v36584_v46 = vsub.f32 %v33240_v31, %v3561_v43  ;;  %v4151_v34 = vsub.f32 %v36573_v42, %v4150_v50  ;;  %v3655_v62 = vand.u32 4294901760, %v3654_v22  ;;  %v33508_v31 = vpack.c.bf16 %v4150_v50, %v4138_v49 }
  0x85   : > { %v2666_v9 = vand.u32 4294901760, %v2665_v59  ;;  %v3163_v11 = vand.u32 4294901760, %v3162_v5  ;;  %v36596_v54 = vsub.f32 %v4052_v39, %v4058_v47  ;;  %v36620_v5 = vpack.c.bf16 %v3565_v44, %v3561_v43 }
  0x86   : > { %v3647_v56 = vand.u32 4294901760, %v36584_v46  ;;  %v4152_v2 = vand.u32 4294901760, %v4151_v34  ;;  %v5047_v44 = vmul.f32 %v33244_v35, %v33244_v35  ;;  %v4560_v49 = vand.u32 4294901760, %v33246_v36 }
  0x87   : > { %v33426_v12 = vpack.c.bf16 %v2666_v9, %v2654_v7  ;;  %v33450_v14 = vpack.c.bf16 %v3163_v11, %v3151_v10  ;;  %v4144_v59 = vand.u32 4294901760, %v36596_v54  ;;  %v33472_v7 = vpack.c.bf16 %v3655_v62, %v3643_v60 }
  0x88   : > { %1567 = vmatmul.mubr.f32.vlgmr.msra.gmra.mrb[0].mxu0 %v36224_v3  ;;  %v36628_v9 = vpack.c.bf16 %v4062_v48, %v4058_v47 }
  0x89   : > { %33423 = vmatpush1.bf16.msra.mxu0 %v36500_v61  ;;  %2632 = vmatprep.mubr.f32.mxu0 %v41088_v1  ;;  %v4145_v10 = vsub.f32 %v36596_v54, %v4144_v59 }
  0x8a   : > { %2553 = vmatmul.mubr.f32.vlgmr.msra.gmra.mrb[0].mxu1 %v36224_v3  ;;  %33425 = vmatprep.subr.bf16.mxu0 %v33424_v63  ;;  %v4140_v63 = vand.u32 4294901760, %v4139_v57  ;;  %v36706_v57 = vsub.f32 %v33246_v36, %v4560_v49 }
  0x8b   : > { %33447 = vmatpush1.bf16.msra.mxu1 %v36508_v0  ;;  %3129 = vmatprep.mubr.f32.mxu1 %v41088_v1 }
  0x8c   : > { %33449 = vmatprep.subr.bf16.mxu1 %v33448_v6  ;;  %v3648_v6 = vsub.f32 %v36584_v46, %v3647_v56 }
  0x90   : > { %2638 = vmatmul.mubr.f32.vlgmr.msra.gmra.mrb[0].mxu0 %v36270_v37 }
  0x91   : > { %33427 = vmatpush1.bf16.msra.mxu0 %v33426_v12  ;;  %2728 = vmatprep.mubr.f32.mxu0 %v41088_v1  ;;  %v33496_v12 = vpack.c.bf16 %v4152_v2, %v4140_v63  ;;  %v4654_v63 = vand.u32 4294901760, %v36706_v57 }
  0x92   : > { %3135 = vmatmul.mubr.f32.vlgmr.msra.gmra.mrb[0].mxu1 %v36270_v37  ;;  %33429 = vmatprep.subr.bf16.mxu0 %v33428_v13  ;;  %v3649_v13 = vand.u32 4294901760, %v3648_v6 }
  0x93   : > { %33451 = vmatpush1.bf16.msra.mxu1 %v33450_v14  ;;  %3225 = vmatprep.mubr.f32.mxu1 %v41088_v1 }
  0x94   : > { %33453 = vmatprep.subr.bf16.mxu1 %v33452_v15  ;;  %v4146_v15 = vand.u32 4294901760, %v4145_v10 }
  0x98   : > { %2730 = vmatmul.mubr.f32.vlgmr.msra.gmra.mrb[0].mxu0 %v36224_v3 }
  0x99   : > { %33431 = vmatpush1.bf16.msra.mxu0 %v33430_v16  ;;  %2808 = vmatprep.mubr.f32.mxu0 %v41088_v1 }
  0x9a   : > { %3227 = vmatmul.mubr.f32.vlgmr.msra.gmra.mrb[0].mxu1 %v36224_v3  ;;  %33433 = vmatprep.subr.bf16.mxu0 %v36468_v18 }
  0x9b   : > { %33455 = vmatpush1.bf16.msra.mxu1 %v33454_v17  ;;  %3305 = vmatprep.mubr.f32.mxu1 %v41088_v1 }
  0x9c   : > { %33457 = vmatprep.subr.bf16.mxu1 %v36481_v51 }
  0xa0   : > { %2811 = vmatmul.mubr.f32.vlgmr.msra.gmra.mrb[0].mxu0 %v36228_v4 }
  0xa1   : > { %33435 = vmatpush1.bf16.msra.mxu0 %v36500_v61  ;;  %2885 = vmatprep.mubr.f32.mxu0 %v41088_v1 }
  0xa2   : > { %3308 = vmatmul.mubr.f32.vlgmr.msra.gmra.mrb[0].mxu1 %v36228_v4  ;;  %33437 = vmatprep.subr.bf16.mxu0 %v33436_v24  ;;  %v33500_v24 = vpack.c.bf16 %v36573_v42, %v36571_v41  ;;  %v36682_v41 = vsub.f32 %v33245_v27, %v4554_v23 }
  0xa3   : > { %33459 = vmatpush1.bf16.msra.mxu1 %v36508_v0  ;;  %3382 = vmatprep.mubr.f32.mxu1 %v41088_v1 }
  0xa4   : > { %33461 = vmatprep.subr.bf16.mxu1 %v33460_v25  ;;  %v33478_v25 = vpack.c.bf16 %v36586_v52, %v36584_v46  ;;  %v4636_v50 = vand.u32 4294901760, %v36682_v41 }
  0xa6   : > { %v4637_v34 = vsub.f32 %v36682_v41, %v4636_v50 }
  0xa8   : > { %2889 = vmatmul.mubr.f32.vlgmr.msra.gmra.mrb[0].mxu0 %v36241_v8  ;;  %v4638_v2 = vand.u32 4294901760, %v4637_v34 }
  0xa9   : > { %33439 = vmatpush1.bf16.msra.mxu0 %v33438_v33  ;;  %2971 = vmatprep.mubr.f32.mxu0 %v41088_v1 }
  0xaa   : > { %3386 = vmatmul.mubr.f32.vlgmr.msra.gmra.mrb[0].mxu1 %v36241_v8  ;;  %33441 = vmatprep.subr.bf16.mxu0 %v36468_v18  ;;  %v36588_v18 = vpack.c.bf16 %v3563_v29, %v3559_v28  ;;  %v33247_v28 = vld [vmem:[%s36235_s4 + $0x98] sm:$0xff]  ;;  %v33484_v29 = vpack.c.bf16 %v3653_v30, %v3641_v45  ;;  %v5049_v45 = vmul.f32 %v33246_v36, %v33246_v36 }
  0xab   : > { %33463 = vmatpush1.bf16.msra.mxu1 %v33462_v38  ;;  %3468 = vmatprep.mubr.f32.mxu1 %v41088_v1  ;;  %v5050_v21 = vmul.f32 %v33247_v28, %v33247_v28  ;;  %v4558_v33 = vand.u32 4294901760, %v33247_v28  ;;  %v5051_v38 = vand.u32 4294901760, %v5048_v32 }
  0xac   : > { %33465 = vmatprep.subr.bf16.mxu1 %v36481_v51  ;;  %v36598_v51 = vsub.f32 %v4054_v40, %v4062_v48  ;;  %v33486_v40 = vpack.c.bf16 %v3659_v58, %v3647_v56  ;;  %v4556_v48 = vand.u32 4294901760, %v33244_v35  ;;  %v5057_v53 = vand.u32 4294901760, %v5049_v45 }
  0xad   : > { %v5055_v39 = vand.u32 4294901760, %v5050_v21  ;;  %v36684_v42 = vsub.f32 %v33247_v28, %v4558_v33  ;;  %v36691_v30 = vsub.f32 %v5048_v32, %v5051_v38 }
  0xae   : > { %v33502_v26 = vpack.c.bf16 %v36598_v51, %v36596_v54 }
  0xaf   : > { %v36693_v47 = vsub.f32 %v5050_v21, %v5055_v39  ;;  %v4648_v46 = vand.u32 4294901760, %v36684_v42  ;;  %v5133_v22 = vand.u32 4294901760, %v36691_v30  ;;  %v36721_v60 = vpack.c.bf16 %v5055_v39, %v5051_v38  ;;  %v33249_v21 = vld [vmem:[%s36235_s4 + $0xa8] sm:$0xff] }
  0xb0   : > { %2973 = vmatmul.mubr.f32.vlgmr.msra.gmra.mrb[0].mxu0 %v36224_v3  ;;  %v33524_v27 = vpack.c.bf16 %v36684_v42, %v36682_v41  ;;  %v6043_v36 = vmul.f32 %v33249_v21, %v33249_v21  ;;  %v5549_v39 = vand.u32 4294901760, %v33249_v21  ;;  %v33248_v41 = vld [vmem:[%s36235_s4 + $0xa0] sm:$0xff] }
  0xb1   : > { %33443 = vmatpush1.bf16.msra.mxu0 %v36500_v61  ;;  %3047 = vmatprep.mubr.f32.mxu0 %v41088_v1  ;;  %v4156_v61 = vand.u32 4294901760, %v36598_v51  ;;  %v5145_v54 = vand.u32 4294901760, %v36693_v47  ;;  %v4649_v56 = vsub.f32 %v36684_v42, %v4648_v46  ;;  %v5134_v62 = vsub.f32 %v36691_v30, %v5133_v22  ;;  %v33250_v42 = vld [vmem:[%s36235_s4 + $0xb0] sm:$0xff] }
  0xb2   : > { %3470 = vmatmul.mubr.f32.vlgmr.msra.gmra.mrb[0].mxu1 %v36224_v3  ;;  %33469 = vmatprep.subr.bf16.mxu0 %v36588_v18 }
  0xb3   : > { %33467 = vmatpush1.bf16.msra.mxu1 %v36508_v0  ;;  %3544 = vmatprep.mubr.f32.mxu1 %v41088_v1  ;;  %v3660_v0 = vsub.f32 %v36586_v52, %v3659_v58  ;;  %v4157_v11 = vsub.f32 %v36598_v51, %v4156_v61  ;;  %v33510_v43 = vpack.c.bf16 %v4156_v61, %v4144_v59  ;;  %v5053_v52 = vand.u32 4294901760, %v5047_v44 }
  0xb4   : > { %33493 = vmatprep.subr.bf16.mxu1 %v36601_v55  ;;  %v36704_v51 = vsub.f32 %v33244_v35, %v4556_v48  ;;  %v5146_v59 = vsub.f32 %v36693_v47, %v5145_v54  ;;  %v4650_v6 = vand.u32 4294901760, %v4649_v56  ;;  %v33556_v35 = vpack.c.bf16 %v5145_v54, %v5133_v22 }
  0xb5   : > { %v3661_v14 = vand.u32 4294901760, %v3660_v0  ;;  %v4158_v16 = vand.u32 4294901760, %v4157_v11  ;;  %v36716_v58 = vsub.f32 %v5047_v44, %v5053_v52  ;;  %v36740_v11 = vpack.c.bf16 %v4560_v49, %v4556_v48 }
  0xb6   : > { %v4642_v61 = vand.u32 4294901760, %v36704_v51  ;;  %v5147_v10 = vand.u32 4294901760, %v5146_v59  ;;  %v6042_v49 = vmul.f32 %v33248_v41, %v33248_v41  ;;  %v5555_v22 = vand.u32 4294901760, %v33250_v42 }
  0xb7   : > { %v33474_v17 = vpack.c.bf16 %v3661_v14, %v3649_v13  ;;  %v33498_v20 = vpack.c.bf16 %v4158_v16, %v4146_v15  ;;  %v5139_v0 = vand.u32 4294901760, %v36716_v58  ;;  %v33520_v13 = vpack.c.bf16 %v4650_v6, %v4638_v2 }
  0xb8   : > { %3049 = vmatmul.mubr.f32.vlgmr.msra.gmra.mrb[0].mxu0 %v36224_v3  ;;  %v36748_v14 = vpack.c.bf16 %v5057_v53, %v5053_v52 }
  0xb9   : > { %33471 = vmatpush1.bf16.msra.mxu0 %v36620_v5  ;;  %3627 = vmatprep.mubr.f32.mxu0 %v41088_v1  ;;  %v5140_v15 = vsub.f32 %v36716_v58, %v5139_v0 }
  0xba   : > { %3546 = vmatmul.mubr.f32.vlgmr.msra.gmra.mrb[0].mxu1 %v36224_v3  ;;  %33473 = vmatprep.subr.bf16.mxu0 %v33472_v7  ;;  %v5135_v7 = vand.u32 4294901760, %v5134_v62  ;;  %v36826_v62 = vsub.f32 %v33250_v42, %v5555_v22 }
  0xbb   : > { %33495 = vmatpush1.bf16.msra.mxu1 %v36628_v9  ;;  %4124 = vmatprep.mubr.f32.mxu1 %v41088_v1 }
  0xbc   : > { %33497 = vmatprep.subr.bf16.mxu1 %v33496_v12  ;;  %v4643_v12 = vsub.f32 %v36704_v51, %v4642_v61 }
  0xc0   : > { %3633 = vmatmul.mubr.f32.vlgmr.msra.gmra.mrb[0].mxu0 %v36270_v37 }
  0xc1   : > { %33475 = vmatpush1.bf16.msra.mxu0 %v33474_v17  ;;  %3723 = vmatprep.mubr.f32.mxu0 %v41088_v1  ;;  %v33544_v17 = vpack.c.bf16 %v5147_v10, %v5135_v7  ;;  %v5649_v7 = vand.u32 4294901760, %v36826_v62 }
  0xc2   : > { %4130 = vmatmul.mubr.f32.vlgmr.msra.gmra.mrb[0].mxu1 %v36270_v37  ;;  %33477 = vmatprep.subr.bf16.mxu0 %v33476_v19  ;;  %v4644_v19 = vand.u32 4294901760, %v4643_v12 }
  0xc3   : > { %33499 = vmatpush1.bf16.msra.mxu1 %v33498_v20  ;;  %4220 = vmatprep.mubr.f32.mxu1 %v41088_v1 }
  0xc4   : > { %33501 = vmatprep.subr.bf16.mxu1 %v33500_v24  ;;  %v5141_v24 = vand.u32 4294901760, %v5140_v15 }
  0xc8   : > { %3725 = vmatmul.mubr.f32.vlgmr.msra.gmra.mrb[0].mxu0 %v36224_v3 }
  0xc9   : > { %33479 = vmatpush1.bf16.msra.mxu0 %v33478_v25  ;;  %3803 = vmatprep.mubr.f32.mxu0 %v41088_v1 }
  0xca   : > { %4222 = vmatmul.mubr.f32.vlgmr.msra.gmra.mrb[0].mxu1 %v36224_v3  ;;  %33481 = vmatprep.subr.bf16.mxu0 %v36588_v18 }
  0xcb   : > { %33503 = vmatpush1.bf16.msra.mxu1 %v33502_v26  ;;  %4300 = vmatprep.mubr.f32.mxu1 %v41088_v1 }
  0xcc   : > { %33505 = vmatprep.subr.bf16.mxu1 %v36601_v55 }
  0xd0   : > { %3806 = vmatmul.mubr.f32.vlgmr.msra.gmra.mrb[0].mxu0 %v36228_v4 }
  0xd1   : > { %33483 = vmatpush1.bf16.msra.mxu0 %v36620_v5  ;;  %3880 = vmatprep.mubr.f32.mxu0 %v41088_v1 }
  0xd2   : > { %4303 = vmatmul.mubr.f32.vlgmr.msra.gmra.mrb[0].mxu1 %v36228_v4  ;;  %33485 = vmatprep.subr.bf16.mxu0 %v33484_v29  ;;  %v33548_v29 = vpack.c.bf16 %v36693_v47, %v36691_v30  ;;  %v36802_v30 = vsub.f32 %v33249_v21, %v5549_v39 }
  0xd3   : > { %33507 = vmatpush1.bf16.msra.mxu1 %v36628_v9  ;;  %4377 = vmatprep.mubr.f32.mxu1 %v41088_v1 }
  0xd4   : > { %33509 = vmatprep.subr.bf16.mxu1 %v33508_v31  ;;  %v33526_v31 = vpack.c.bf16 %v36706_v57, %v36704_v51  ;;  %v5631_v54 = vand.u32 4294901760, %v36802_v30 }
  0xd6   : > { %v5632_v59 = vsub.f32 %v36802_v30, %v5631_v54 }
  0xd8   : > { %3884 = vmatmul.mubr.f32.vlgmr.msra.gmra.mrb[0].mxu0 %v36241_v8  ;;  %v5633_v10 = vand.u32 4294901760, %v5632_v59 }
  0xd9   : > { %33487 = vmatpush1.bf16.msra.mxu0 %v33486_v40  ;;  %3966 = vmatprep.mubr.f32.mxu0 %v41088_v1 }
  0xda   : > { %4381 = vmatmul.mubr.f32.vlgmr.msra.gmra.mrb[0].mxu1 %v36241_v8  ;;  %33489 = vmatprep.subr.bf16.mxu0 %v36588_v18  ;;  %v36708_v18 = vpack.c.bf16 %v4558_v33, %v4554_v23  ;;  %v33251_v23 = vld [vmem:[%s36235_s4 + $0xb8] sm:$0xff]  ;;  %v33532_v33 = vpack.c.bf16 %v4648_v46, %v4636_v50  ;;  %v6044_v50 = vmul.f32 %v33250_v42, %v33250_v42 }
  0xdb   : > { %33511 = vmatpush1.bf16.msra.mxu1 %v33510_v43  ;;  %4463 = vmatprep.mubr.f32.mxu1 %v41088_v1  ;;  %v6045_v38 = vmul.f32 %v33251_v23, %v33251_v23  ;;  %v5553_v40 = vand.u32 4294901760, %v33251_v23  ;;  %v6046_v43 = vand.u32 4294901760, %v6043_v36 }
  0xdc   : > { %33513 = vmatprep.subr.bf16.mxu1 %v36601_v55  ;;  %v36718_v55 = vsub.f32 %v5049_v45, %v5057_v53  ;;  %v33534_v45 = vpack.c.bf16 %v4654_v63, %v4642_v61  ;;  %v5551_v53 = vand.u32 4294901760, %v33248_v41  ;;  %v6052_v34 = vand.u32 4294901760, %v6044_v50 }
  0xdd   : > { %v6050_v44 = vand.u32 4294901760, %v6045_v38  ;;  %v36804_v47 = vsub.f32 %v33251_v23, %v5553_v40  ;;  %v36811_v46 = vsub.f32 %v6043_v36, %v6046_v43 }
  0xde   : > { %v33550_v32 = vpack.c.bf16 %v36718_v55, %v36716_v58 }
  0xdf   : > { %v36813_v52 = vsub.f32 %v6045_v38, %v6050_v44  ;;  %v5643_v51 = vand.u32 4294901760, %v36804_v47  ;;  %v6128_v56 = vand.u32 4294901760, %v36811_v46  ;;  %v36841_v2 = vpack.c.bf16 %v6050_v44, %v6046_v43  ;;  %v33253_v38 = vld [vmem:[%s36235_s4 + $0xc8] sm:$0xff] }
  0xe0   : > { %3968 = vmatmul.mubr.f32.vlgmr.msra.gmra.mrb[0].mxu0 %v36224_v3  ;;  %v33572_v21 = vpack.c.bf16 %v36804_v47, %v36802_v30  ;;  %v7038_v42 = vmul.f32 %v33253_v38, %v33253_v38  ;;  %v6544_v44 = vand.u32 4294901760, %v33253_v38  ;;  %v33252_v30 = vld [vmem:[%s36235_s4 + $0xc0] sm:$0xff] }
  0xe1   : > { %33491 = vmatpush1.bf16.msra.mxu0 %v36620_v5  ;;  %4042 = vmatprep.mubr.f32.mxu0 %v41088_v1  ;;  %v5151_v5 = vand.u32 4294901760, %v36718_v55  ;;  %v6140_v58 = vand.u32 4294901760, %v36813_v52  ;;  %v5644_v61 = vsub.f32 %v36804_v47, %v5643_v51  ;;  %v6129_v6 = vsub.f32 %v36811_v46, %v6128_v56  ;;  %v33254_v47 = vld [vmem:[%s36235_s4 + $0xd0] sm:$0xff] }
  0xe2   : > { %4465 = vmatmul.mubr.f32.vlgmr.msra.gmra.mrb[0].mxu1 %v36224_v3  ;;  %33517 = vmatprep.subr.bf16.mxu0 %v36708_v18 }
  0xe3   : > { %33515 = vmatpush1.bf16.msra.mxu1 %v36628_v9  ;;  %4539 = vmatprep.mubr.f32.mxu1 %v41088_v1  ;;  %v4655_v9 = vsub.f32 %v36706_v57, %v4654_v63  ;;  %v5152_v16 = vsub.f32 %v36718_v55, %v5151_v5  ;;  %v33558_v48 = vpack.c.bf16 %v5151_v5, %v5139_v0  ;;  %v6048_v57 = vand.u32 4294901760, %v6042_v49 }
  0xe4   : > { %33541 = vmatprep.subr.bf16.mxu1 %v36721_v60  ;;  %v36824_v55 = vsub.f32 %v33248_v41, %v5551_v53  ;;  %v6141_v0 = vsub.f32 %v36813_v52, %v6140_v58  ;;  %v5645_v12 = vand.u32 4294901760, %v5644_v61  ;;  %v33604_v41 = vpack.c.bf16 %v6140_v58, %v6128_v56 }
  0xe5   : > { %v4656_v20 = vand.u32 4294901760, %v4655_v9  ;;  %v5153_v25 = vand.u32 4294901760, %v5152_v16  ;;  %v36836_v63 = vsub.f32 %v6042_v49, %v6048_v57  ;;  %v36860_v16 = vpack.c.bf16 %v5555_v22, %v5551_v53 }
  0xe6   : > { %v5637_v5 = vand.u32 4294901760, %v36824_v55  ;;  %v6142_v15 = vand.u32 4294901760, %v6141_v0  ;;  %v7037_v22 = vmul.f32 %v33252_v30, %v33252_v30  ;;  %v6550_v56 = vand.u32 4294901760, %v33254_v47 }
  0xe7   : > { %v33522_v26 = vpack.c.bf16 %v4656_v20, %v4644_v19  ;;  %v33546_v28 = vpack.c.bf16 %v5153_v25, %v5141_v24  ;;  %v6134_v9 = vand.u32 4294901760, %v36836_v63  ;;  %v33568_v19 = vpack.c.bf16 %v5645_v12, %v5633_v10 }
  0xe8   : > { %4044 = vmatmul.mubr.f32.vlgmr.msra.gmra.mrb[0].mxu0 %v36224_v3  ;;  %v36868_v20 = vpack.c.bf16 %v6052_v34, %v6048_v57 }
  0xe9   : > { %33519 = vmatpush1.bf16.msra.mxu0 %v36740_v11  ;;  %4622 = vmatprep.mubr.f32.mxu0 %v41088_v1  ;;  %v6135_v24 = vsub.f32 %v36836_v63, %v6134_v9 }
  0xea   : > { %4541 = vmatmul.mubr.f32.vlgmr.msra.gmra.mrb[0].mxu1 %v36224_v3  ;;  %33521 = vmatprep.subr.bf16.mxu0 %v33520_v13  ;;  %v6130_v13 = vand.u32 4294901760, %v6129_v6  ;;  %v36946_v6 = vsub.f32 %v33254_v47, %v6550_v56 }
  0xeb   : > { %33543 = vmatpush1.bf16.msra.mxu1 %v36748_v14  ;;  %5119 = vmatprep.mubr.f32.mxu1 %v41088_v1 }
  0xec   : > { %33545 = vmatprep.subr.bf16.mxu1 %v33544_v17  ;;  %v5638_v17 = vsub.f32 %v36824_v55, %v5637_v5 }
  0xf0   : > { %4628 = vmatmul.mubr.f32.vlgmr.msra.gmra.mrb[0].mxu0 %v36270_v37 }
  0xf1   : > { %33523 = vmatpush1.bf16.msra.mxu0 %v33522_v26  ;;  %4718 = vmatprep.mubr.f32.mxu0 %v41088_v1  ;;  %v33592_v26 = vpack.c.bf16 %v6142_v15, %v6130_v13  ;;  %v6644_v13 = vand.u32 4294901760, %v36946_v6 }
  0xf2   : > { %5125 = vmatmul.mubr.f32.vlgmr.msra.gmra.mrb[0].mxu1 %v36270_v37  ;;  %33525 = vmatprep.subr.bf16.mxu0 %v33524_v27  ;;  %v5639_v27 = vand.u32 4294901760, %v5638_v17 }
  0xf3   : > { %33547 = vmatpush1.bf16.msra.mxu1 %v33546_v28  ;;  %5215 = vmatprep.mubr.f32.mxu1 %v41088_v1 }
  0xf4   : > { %33549 = vmatprep.subr.bf16.mxu1 %v33548_v29  ;;  %v6136_v29 = vand.u32 4294901760, %v6135_v24 }
  0xf8   : > { %4720 = vmatmul.mubr.f32.vlgmr.msra.gmra.mrb[0].mxu0 %v36224_v3 }
  0xf9   : > { %33527 = vmatpush1.bf16.msra.mxu0 %v33526_v31  ;;  %4798 = vmatprep.mubr.f32.mxu0 %v41088_v1 }
  0xfa   : > { %5217 = vmatmul.mubr.f32.vlgmr.msra.gmra.mrb[0].mxu1 %v36224_v3  ;;  %33529 = vmatprep.subr.bf16.mxu0 %v36708_v18 }
  0xfb   : > { %33551 = vmatpush1.bf16.msra.mxu1 %v33550_v32  ;;  %5295 = vmatprep.mubr.f32.mxu1 %v41088_v1 }
  0xfc   : > { %33553 = vmatprep.subr.bf16.mxu1 %v36721_v60 }
 0x100   : > { %4801 = vmatmul.mubr.f32.vlgmr.msra.gmra.mrb[0].mxu0 %v36228_v4 }
 0x101   : > { %33531 = vmatpush1.bf16.msra.mxu0 %v36740_v11  ;;  %4875 = vmatprep.mubr.f32.mxu0 %v41088_v1 }
 0x102   : > { %5298 = vmatmul.mubr.f32.vlgmr.msra.gmra.mrb[0].mxu1 %v36228_v4  ;;  %33533 = vmatprep.subr.bf16.mxu0 %v33532_v33  ;;  %v33596_v33 = vpack.c.bf16 %v36813_v52, %v36811_v46  ;;  %v36922_v46 = vsub.f32 %v33253_v38, %v6544_v44 }
 0x103   : > { %33555 = vmatpush1.bf16.msra.mxu1 %v36748_v14  ;;  %5372 = vmatprep.mubr.f32.mxu1 %v41088_v1 }
 0x104   : > { %33557 = vmatprep.subr.bf16.mxu1 %v33556_v35  ;;  %v33574_v35 = vpack.c.bf16 %v36826_v62, %v36824_v55  ;;  %v6626_v58 = vand.u32 4294901760, %v36922_v46 }
 0x106   : > { %v6627_v0 = vsub.f32 %v36922_v46, %v6626_v58 }
 0x108   : > { %4879 = vmatmul.mubr.f32.vlgmr.msra.gmra.mrb[0].mxu0 %v36241_v8  ;;  %v6628_v15 = vand.u32 4294901760, %v6627_v0 }
 0x109   : > { %33535 = vmatpush1.bf16.msra.mxu0 %v33534_v45  ;;  %4961 = vmatprep.mubr.f32.mxu0 %v41088_v1 }
 0x10a   : > { %5376 = vmatmul.mubr.f32.vlgmr.msra.gmra.mrb[0].mxu1 %v36241_v8  ;;  %33537 = vmatprep.subr.bf16.mxu0 %v36708_v18  ;;  %v36828_v18 = vpack.c.bf16 %v5553_v40, %v5549_v39  ;;  %v33255_v39 = vld [vmem:[%s36235_s4 + $0xd8] sm:$0xff]  ;;  %v33580_v40 = vpack.c.bf16 %v5643_v51, %v5631_v54  ;;  %v7039_v54 = vmul.f32 %v33254_v47, %v33254_v47 }
 0x10b   : > { %33559 = vmatpush1.bf16.msra.mxu1 %v33558_v48  ;;  %5458 = vmatprep.mubr.f32.mxu1 %v41088_v1  ;;  %v7040_v43 = vmul.f32 %v33255_v39, %v33255_v39  ;;  %v6548_v45 = vand.u32 4294901760, %v33255_v39  ;;  %v7041_v48 = vand.u32 4294901760, %v7038_v42 }
 0x10c   : > { %33561 = vmatprep.subr.bf16.mxu1 %v36721_v60  ;;  %v36838_v60 = vsub.f32 %v6044_v50, %v6052_v34  ;;  %v33582_v50 = vpack.c.bf16 %v5649_v7, %v5637_v5  ;;  %v6546_v34 = vand.u32 4294901760, %v33252_v30  ;;  %v7047_v59 = vand.u32 4294901760, %v7039_v54 }
 0x10d   : > { %v7045_v49 = vand.u32 4294901760, %v7040_v43  ;;  %v36924_v52 = vsub.f32 %v33255_v39, %v6548_v45  ;;  %v36931_v51 = vsub.f32 %v7038_v42, %v7041_v48 }
 0x10e   : > { %v33598_v36 = vpack.c.bf16 %v36838_v60, %v36836_v63 }
 0x10f   : > { %v36933_v57 = vsub.f32 %v7040_v43, %v7045_v49  ;;  %v6638_v55 = vand.u32 4294901760, %v36924_v52  ;;  %v7123_v61 = vand.u32 4294901760, %v36931_v51  ;;  %v36961_v10 = vpack.c.bf16 %v7045_v49, %v7041_v48  ;;  %v33257_v43 = vld [vmem:[%s36235_s4 + $0xe8] sm:$0xff] }
 0x110   : > { %4963 = vmatmul.mubr.f32.vlgmr.msra.gmra.mrb[0].mxu0 %v36224_v3  ;;  %v33620_v38 = vpack.c.bf16 %v36924_v52, %v36922_v46  ;;  %v8033_v47 = vmul.f32 %v33257_v43, %v33257_v43  ;;  %v7539_v49 = vand.u32 4294901760, %v33257_v43  ;;  %v33256_v46 = vld [vmem:[%s36235_s4 + $0xe0] sm:$0xff] }
 0x111   : > { %33539 = vmatpush1.bf16.msra.mxu0 %v36740_v11  ;;  %5037 = vmatprep.mubr.f32.mxu0 %v41088_v1  ;;  %v6146_v11 = vand.u32 4294901760, %v36838_v60  ;;  %v7135_v63 = vand.u32 4294901760, %v36933_v57  ;;  %v6639_v5 = vsub.f32 %v36924_v52, %v6638_v55  ;;  %v7124_v12 = vsub.f32 %v36931_v51, %v7123_v61  ;;  %v33258_v52 = vld [vmem:[%s36235_s4 + $0xf0] sm:$0xff] }
 0x112   : > { %5460 = vmatmul.mubr.f32.vlgmr.msra.gmra.mrb[0].mxu1 %v36224_v3  ;;  %33565 = vmatprep.subr.bf16.mxu0 %v36828_v18 }
 0x113   : > { %33563 = vmatpush1.bf16.msra.mxu1 %v36748_v14  ;;  %5534 = vmatprep.mubr.f32.mxu1 %v41088_v1  ;;  %v5650_v14 = vsub.f32 %v36826_v62, %v5649_v7  ;;  %v6147_v25 = vsub.f32 %v36838_v60, %v6146_v11  ;;  %v33606_v53 = vpack.c.bf16 %v6146_v11, %v6134_v9  ;;  %v7043_v62 = vand.u32 4294901760, %v7037_v22 }
 0x114   : > { %33589 = vmatprep.subr.bf16.mxu1 %v36841_v2  ;;  %v36944_v60 = vsub.f32 %v33252_v30, %v6546_v34  ;;  %v7136_v9 = vsub.f32 %v36933_v57, %v7135_v63  ;;  %v6640_v17 = vand.u32 4294901760, %v6639_v5  ;;  %v33652_v30 = vpack.c.bf16 %v7135_v63, %v7123_v61 }
 0x115   : > { %v5651_v28 = vand.u32 4294901760, %v5650_v14  ;;  %v6148_v31 = vand.u32 4294901760, %v6147_v25  ;;  %v36956_v7 = vsub.f32 %v7037_v22, %v7043_v62  ;;  %v36980_v25 = vpack.c.bf16 %v6550_v56, %v6546_v34 }
 0x116   : > { %v6632_v11 = vand.u32 4294901760, %v36944_v60  ;;  %v7137_v24 = vand.u32 4294901760, %v7136_v9  ;;  %v8032_v56 = vmul.f32 %v33256_v46, %v33256_v46  ;;  %v7545_v61 = vand.u32 4294901760, %v33258_v52 }
 0x117   : > { %v33570_v32 = vpack.c.bf16 %v5651_v28, %v5639_v27  ;;  %v33594_v23 = vpack.c.bf16 %v6148_v31, %v6136_v29  ;;  %v7129_v14 = vand.u32 4294901760, %v36956_v7  ;;  %v33616_v27 = vpack.c.bf16 %v6640_v17, %v6628_v15 }
 0x118   : > { %5039 = vmatmul.mubr.f32.vlgmr.msra.gmra.mrb[0].mxu0 %v36224_v3  ;;  %v36988_v28 = vpack.c.bf16 %v7047_v59, %v7043_v62 }
 0x119   : > { %33567 = vmatpush1.bf16.msra.mxu0 %v36860_v16  ;;  %5617 = vmatprep.mubr.f32.mxu0 %v41088_v1  ;;  %v7130_v29 = vsub.f32 %v36956_v7, %v7129_v14 }
 0x11a   : > { %5536 = vmatmul.mubr.f32.vlgmr.msra.gmra.mrb[0].mxu1 %v36224_v3  ;;  %33569 = vmatprep.subr.bf16.mxu0 %v33568_v19  ;;  %v7125_v19 = vand.u32 4294901760, %v7124_v12  ;;  %v37066_v12 = vsub.f32 %v33258_v52, %v7545_v61 }
 0x11b   : > { %33591 = vmatpush1.bf16.msra.mxu1 %v36868_v20  ;;  %6114 = vmatprep.mubr.f32.mxu1 %v41088_v1 }
 0x11c   : > { %33593 = vmatprep.subr.bf16.mxu1 %v33592_v26  ;;  %v6633_v26 = vsub.f32 %v36944_v60, %v6632_v11 }
 0x120   : > { %5623 = vmatmul.mubr.f32.vlgmr.msra.gmra.mrb[0].mxu0 %v36270_v37 }
 0x121   : > { %33571 = vmatpush1.bf16.msra.mxu0 %v33570_v32  ;;  %5713 = vmatprep.mubr.f32.mxu0 %v41088_v1  ;;  %v33640_v32 = vpack.c.bf16 %v7137_v24, %v7125_v19  ;;  %v7639_v19 = vand.u32 4294901760, %v37066_v12 }
 0x122   : > { %6120 = vmatmul.mubr.f32.vlgmr.msra.gmra.mrb[0].mxu1 %v36270_v37  ;;  %33573 = vmatprep.subr.bf16.mxu0 %v33572_v21  ;;  %v6634_v21 = vand.u32 4294901760, %v6633_v26 }
 0x123   : > { %33595 = vmatpush1.bf16.msra.mxu1 %v33594_v23  ;;  %6210 = vmatprep.mubr.f32.mxu1 %v41088_v1 }
 0x124   : > { %33597 = vmatprep.subr.bf16.mxu1 %v33596_v33  ;;  %v7131_v33 = vand.u32 4294901760, %v7130_v29 }
 0x128   : > { %5715 = vmatmul.mubr.f32.vlgmr.msra.gmra.mrb[0].mxu0 %v36224_v3 }
 0x129   : > { %33575 = vmatpush1.bf16.msra.mxu0 %v33574_v35  ;;  %5793 = vmatprep.mubr.f32.mxu0 %v41088_v1 }
 0x12a   : > { %6212 = vmatmul.mubr.f32.vlgmr.msra.gmra.mrb[0].mxu1 %v36224_v3  ;;  %33577 = vmatprep.subr.bf16.mxu0 %v36828_v18 }
 0x12b   : > { %33599 = vmatpush1.bf16.msra.mxu1 %v33598_v36  ;;  %6290 = vmatprep.mubr.f32.mxu1 %v41088_v1 }
 0x12c   : > { %33601 = vmatprep.subr.bf16.mxu1 %v36841_v2 }
 0x130   : > { %5796 = vmatmul.mubr.f32.vlgmr.msra.gmra.mrb[0].mxu0 %v36228_v4 }
 0x131   : > { %33579 = vmatpush1.bf16.msra.mxu0 %v36860_v16  ;;  %5870 = vmatprep.mubr.f32.mxu0 %v41088_v1 }
 0x132   : > { %6293 = vmatmul.mubr.f32.vlgmr.msra.gmra.mrb[0].mxu1 %v36228_v4  ;;  %33581 = vmatprep.subr.bf16.mxu0 %v33580_v40  ;;  %v33644_v40 = vpack.c.bf16 %v36933_v57, %v36931_v51  ;;  %v37042_v51 = vsub.f32 %v33257_v43, %v7539_v49 }
 0x133   : > { %33603 = vmatpush1.bf16.msra.mxu1 %v36868_v20  ;;  %6367 = vmatprep.mubr.f32.mxu1 %v41088_v1 }
 0x134   : > { %33605 = vmatprep.subr.bf16.mxu1 %v33604_v41  ;;  %v33622_v41 = vpack.c.bf16 %v36946_v6, %v36944_v60  ;;  %v7621_v63 = vand.u32 4294901760, %v37042_v51 }
 0x136   : > { %v7622_v9 = vsub.f32 %v37042_v51, %v7621_v63 }
 0x138   : > { %5874 = vmatmul.mubr.f32.vlgmr.msra.gmra.mrb[0].mxu0 %v36241_v8  ;;  %v7623_v24 = vand.u32 4294901760, %v7622_v9  ;;  %v33291_v9 = vld [vmem:[%s37174_s21 + $0x98] sm:$0xff] }
 0x139   : > { %33583 = vmatpush1.bf16.msra.mxu0 %v33582_v50  ;;  %5956 = vmatprep.mubr.f32.mxu0 %v41088_v1 }
 0x13a   : > { %6371 = vmatmul.mubr.f32.vlgmr.msra.gmra.mrb[0].mxu1 %v36241_v8  ;;  %33585 = vmatprep.subr.bf16.mxu0 %v36828_v18  ;;  %v36948_v18 = vpack.c.bf16 %v6548_v45, %v6544_v44  ;;  %v33259_v44 = vld [vmem:[%s36235_s4 + $0xf8] sm:$0xff]  ;;  %v33628_v45 = vpack.c.bf16 %v6638_v55, %v6626_v58  ;;  %v8034_v58 = vmul.f32 %v33258_v52, %v33258_v52  ;;  %v9607_v52 = vld [vmem:[%s41062_s3] sm:$0xff] }
 0x13b   : > { %33607 = vmatpush1.bf16.msra.mxu1 %v33606_v53  ;;  %6453 = vmatprep.mubr.f32.mxu1 %v41088_v1  ;;  %v8035_v48 = vmul.f32 %v33259_v44, %v33259_v44  ;;  %v7543_v50 = vand.u32 4294901760, %v33259_v44  ;;  %v8036_v53 = vand.u32 4294901760, %v8033_v47 }
 0x13c   : > { %33609 = vmatprep.subr.bf16.mxu1 %v36841_v2  ;;  %v36958_v2 = vsub.f32 %v7039_v54, %v7047_v59  ;;  %v33630_v54 = vpack.c.bf16 %v6644_v13, %v6632_v11  ;;  %v7541_v59 = vand.u32 4294901760, %v33256_v46  ;;  %v8042_v0 = vand.u32 4294901760, %v8034_v58 }
 0x13d   : > { %v8040_v22 = vand.u32 4294901760, %v8035_v48  ;;  %v37044_v57 = vsub.f32 %v33259_v44, %v7543_v50  ;;  %v37051_v55 = vsub.f32 %v8033_v47, %v8036_v53 }
 0x13e   : > { %v33646_v42 = vpack.c.bf16 %v36958_v2, %v36956_v7 }
 0x13f   : > { %v37053_v62 = vsub.f32 %v8035_v48, %v8040_v22  ;;  %v7633_v60 = vand.u32 4294901760, %v37044_v57  ;;  %v8118_v5 = vand.u32 4294901760, %v37051_v55  ;;  %v37081_v15 = vpack.c.bf16 %v8040_v22, %v8036_v53  ;;  %v9608_v53 = vld [vmem:[%s41062_s3 + $0x8] sm:$0xff]  ;;  %v9659_v22 = vld [vmem:[%s37174_s21 + $0x10] sm:$0xff] }
 0x140   : > { %5958 = vmatmul.mubr.f32.vlgmr.msra.gmra.mrb[0].mxu0 %v36224_v3  ;;  %v33668_v43 = vpack.c.bf16 %v37044_v57, %v37042_v51  ;;  %v9632_v51 = vld [vmem:[%s41067_s8] sm:$0xf] }
 0x141   : > { %33587 = vmatpush1.bf16.msra.mxu0 %v36860_v16  ;;  %6032 = vmatprep.mubr.f32.mxu0 %v41088_v1  ;;  %v7141_v16 = vand.u32 4294901760, %v36958_v2  ;;  %v8130_v7 = vand.u32 4294901760, %v37053_v62  ;;  %v7634_v11 = vsub.f32 %v37044_v57, %v7633_v60  ;;  %v8119_v17 = vsub.f32 %v37051_v55, %v8118_v5  ;;  %v9660_v57 = vld [vmem:[%s37174_s21 + $0x18] sm:$0xff] }
 0x142   : > { %6455 = vmatmul.mubr.f32.vlgmr.msra.gmra.mrb[0].mxu1 %v36224_v3  ;;  %33613 = vmatprep.subr.bf16.mxu0 %v36948_v18 }
 0x143   : > { %33611 = vmatpush1.bf16.msra.mxu1 %v36868_v20  ;;  %6529 = vmatprep.mubr.f32.mxu1 %v41088_v1  ;;  %v6645_v20 = vsub.f32 %v36946_v6, %v6644_v13  ;;  %v7142_v31 = vsub.f32 %v36958_v2, %v7141_v16  ;;  %v33654_v34 = vpack.c.bf16 %v7141_v16, %v7129_v14  ;;  %v8038_v6 = vand.u32 4294901760, %v8032_v56 }
 0x144   : > { %33637 = vmatprep.subr.bf16.mxu1 %v36961_v10  ;;  %v37064_v2 = vsub.f32 %v33256_v46, %v7541_v59  ;;  %v8131_v14 = vsub.f32 %v37053_v62, %v8130_v7  ;;  %v7635_v26 = vand.u32 4294901760, %v7634_v11  ;;  %v33700_v48 = vpack.c.bf16 %v8130_v7, %v8118_v5  ;;  %v9592_v46 = vld [vmem:[%s41061_s2 + $0x8] sm:$0xff]  ;;  %v33282_v5 = vld [vmem:[%s37174_s21 + $0x70] sm:$0xff] }
 0x145   : > { %v6646_v23 = vand.u32 4294901760, %v6645_v20  ;;  %v7143_v35 = vand.u32 4294901760, %v7142_v31  ;;  %v37076_v13 = vsub.f32 %v8032_v56, %v8038_v6  ;;  %v33662_v31 = vpack.c.bf16 %v7545_v61, %v7541_v59  ;;  %v33264_v56 = vld [vmem:[%s37174_s21 + $0x20] sm:$0xff]  ;;  %v33275_v61 = vld [vmem:[%s37174_s21 + $0x58] sm:$0xff]  ;;  %v33289_v7 = vld [vmem:[%s37174_s21 + $0x88] sm:$0xff] }
 0x146   : > { %v7627_v16 = vand.u32 4294901760, %v37064_v2  ;;  %v8132_v29 = vand.u32 4294901760, %v8131_v14  ;;  %v33272_v59 = vld [vmem:[%s37174_s21 + $0x40] sm:$0xff]  ;;  %v33290_v11 = vld [vmem:[%s37174_s21 + $0x90] sm:$0xff] }
 0x147   : > { %v33618_v36 = vpack.c.bf16 %v6646_v23, %v6634_v21  ;;  %v33642_v39 = vpack.c.bf16 %v7143_v35, %v7131_v33  ;;  %v8124_v20 = vand.u32 4294901760, %v37076_v13  ;;  %v7640_v21 = vsub.f32 %v37066_v12, %v7639_v19  ;;  %v33296_v14 = vld [vmem:[%s37174_s21 + $0xa0] sm:$0xff] }
 0x148   : > { %6034 = vmatmul.mubr.f32.vlgmr.msra.gmra.mrb[0].mxu0 %v36224_v3  ;;  %v33686_v23 = vpack.c.bf16 %v8042_v0, %v8038_v6  ;;  %v33280_v6 = vld [vmem:[%s37174_s21 + $0x60] sm:$0xff] }
 0x149   : > { %33615 = vmatpush1.bf16.msra.mxu0 %v36980_v25  ;;  %6612 = vmatprep.mubr.f32.mxu0 %v41088_v1  ;;  %v8125_v33 = vsub.f32 %v37076_v13, %v8124_v20 }
 0x14a   : > { %6531 = vmatmul.mubr.f32.vlgmr.msra.gmra.mrb[0].mxu1 %v36224_v3  ;;  %33617 = vmatprep.subr.bf16.mxu0 %v33616_v27  ;;  %v8120_v27 = vand.u32 4294901760, %v8119_v17  ;;  %v33297_v17 = vld [vmem:[%s37174_s21 + $0xa8] sm:$0xff] }
 0x14b   : > { %33639 = vmatpush1.bf16.msra.mxu1 %v36988_v28  ;;  %7109 = vmatprep.mubr.f32.mxu1 %v41088_v1 }
 0x14c   : > { %33641 = vmatprep.subr.bf16.mxu1 %v33640_v32  ;;  %v7628_v32 = vsub.f32 %v37064_v2, %v7627_v16 }
 0x150   : > { %6618 = vmatmul.mubr.f32.vlgmr.msra.gmra.mrb[0].mxu0 %v36270_v37 }
 0x151   : > { %33619 = vmatpush1.bf16.msra.mxu0 %v33618_v36  ;;  %6708 = vmatprep.mubr.f32.mxu0 %v41088_v1  ;;  %v33688_v36 = vpack.c.bf16 %v8132_v29, %v8120_v27  ;;  %v33305_v27 = vld [vmem:[%s37174_s21 + $0xc8] sm:$0xff]  ;;  %v33304_v29 = vld [vmem:[%s37174_s21 + $0xc0] sm:$0xff] }
 0x152   : > { %7115 = vmatmul.mubr.f32.vlgmr.msra.gmra.mrb[0].mxu1 %v36270_v37  ;;  %33621 = vmatprep.subr.bf16.mxu0 %v33620_v38  ;;  %v7629_v38 = vand.u32 4294901760, %v7628_v32 }
 0x153   : > { %33643 = vmatpush1.bf16.msra.mxu1 %v33642_v39  ;;  %7205 = vmatprep.mubr.f32.mxu1 %v41088_v1  ;;  %v7641_v39 = vand.u32 4294901760, %v7640_v21 }
 0x154   : > { %33645 = vmatprep.subr.bf16.mxu1 %v33644_v40  ;;  %v8126_v40 = vand.u32 4294901760, %v8125_v33 }
 0x158   : > { %6710 = vmatmul.mubr.f32.vlgmr.msra.gmra.mrb[0].mxu0 %v36224_v3 }
 0x159   : > { %33623 = vmatpush1.bf16.msra.mxu0 %v33622_v41  ;;  %6788 = vmatprep.mubr.f32.mxu0 %v41088_v1 }
 0x15a   : > { %7207 = vmatmul.mubr.f32.vlgmr.msra.gmra.mrb[0].mxu1 %v36224_v3  ;;  %33625 = vmatprep.subr.bf16.mxu0 %v36948_v18 }
 0x15b   : > { %33647 = vmatpush1.bf16.msra.mxu1 %v33646_v42  ;;  %7285 = vmatprep.mubr.f32.mxu1 %v41088_v1  ;;  %v33666_v42 = vpack.c.bf16 %v7641_v39, %v7629_v38  ;;  %v33306_v38 = vld [vmem:[%s37174_s21 + $0xd0] sm:$0xff] }
 0x15c   : > { %33649 = vmatprep.subr.bf16.mxu1 %v36961_v10 }
 0x160   : > { %6791 = vmatmul.mubr.f32.vlgmr.msra.gmra.mrb[0].mxu0 %v36228_v4 }
 0x161   : > { %33627 = vmatpush1.bf16.msra.mxu0 %v36980_v25  ;;  %6865 = vmatprep.mubr.f32.mxu0 %v41088_v1 }
 0x162   : > { %7288 = vmatmul.mubr.f32.vlgmr.msra.gmra.mrb[0].mxu1 %v36228_v4  ;;  %33629 = vmatprep.subr.bf16.mxu0 %v33628_v45  ;;  %v33692_v45 = vpack.c.bf16 %v37053_v62, %v37051_v55  ;;  %v33266_v55 = vld [vmem:[%s37174_s21 + $0x30] sm:$0xff]  ;;  %v33273_v62 = vld [vmem:[%s37174_s21 + $0x48] sm:$0xff] }
 0x163   : > { %33651 = vmatpush1.bf16.msra.mxu1 %v36988_v28  ;;  %7362 = vmatprep.mubr.f32.mxu1 %v41088_v1 }
 0x164   : > { %33653 = vmatprep.subr.bf16.mxu1 %v33652_v30  ;;  %v33670_v30 = vpack.c.bf16 %v37066_v12, %v37064_v2  ;;  %v33288_v2 = vld [vmem:[%s37174_s21 + $0x80] sm:$0xff] }
 0x165   : > { %v572_v12 = vld [vmem:[%s41064_s5] sm:$0xff] }
 0x168   : > { %6869 = vmatmul.mubr.f32.vlgmr.msra.gmra.mrb[0].mxu0 %v36241_v8 }
 0x169   : > { %33631 = vmatpush1.bf16.msra.mxu0 %v33630_v54  ;;  %6951 = vmatprep.mubr.f32.mxu0 %v41088_v1  ;;  %v9658_v54 = vld [vmem:[%s37174_s21 + $0x8] sm:$0xff] }
 0x16a   : > { %7366 = vmatmul.mubr.f32.vlgmr.msra.gmra.mrb[0].mxu1 %v36241_v8  ;;  %33633 = vmatprep.subr.bf16.mxu0 %v36948_v18  ;;  %v37068_v18 = vpack.c.bf16 %v7543_v50, %v7539_v49  ;;  %v33678_v49 = vpack.c.bf16 %v7639_v19, %v7627_v16 }
 0x16b   : > { %33655 = vmatpush1.bf16.msra.mxu1 %v33654_v34  ;;  %7448 = vmatprep.mubr.f32.mxu1 %v41088_v1  ;;  %v33265_v34 = vld [vmem:[%s37174_s21 + $0x28] sm:$0xff] }
 0x16c   : > { %33657 = vmatprep.subr.bf16.mxu1 %v36961_v10  ;;  %v37078_v10 = vsub.f32 %v8034_v58, %v8042_v0  ;;  %v33267_v58 = vld [vmem:[%s37174_s21 + $0x38] sm:$0xff] }
 0x16d   : > { %v33283_v0 = vld [vmem:[%s37174_s21 + $0x78] sm:$0xff] }
 0x16e   : > { %v33694_v47 = vpack.c.bf16 %v37078_v10, %v37076_v13  ;;  %v573_v13 = vld [vmem:[%s41064_s5 + $0x8] sm:$0xff] }
 0x170   : > { %6953 = vmatmul.mubr.f32.vlgmr.msra.gmra.mrb[0].mxu0 %v36224_v3 }
 0x171   : > { %33635 = vmatpush1.bf16.msra.mxu0 %v36980_v25  ;;  %7027 = vmatprep.mubr.f32.mxu0 %v41088_v1  ;;  %v8136_v25 = vand.u32 4294901760, %v37078_v10 }
 0x172   : > { %7450 = vmatmul.mubr.f32.vlgmr.msra.gmra.mrb[0].mxu1 %v36224_v3  ;;  %33661 = vmatprep.subr.bf16.mxu0 %v37068_v18 }
 0x173   : > { %33659 = vmatpush1.bf16.msra.mxu1 %v36988_v28  ;;  %7524 = vmatprep.mubr.f32.mxu1 %v41088_v1  ;;  %v33664_v28 = vpack.c.bf16 %v7635_v26, %v7623_v24  ;;  %v8137_v35 = vsub.f32 %v37078_v10, %v8136_v25  ;;  %v33702_v50 = vpack.c.bf16 %v8136_v25, %v8124_v20  ;;  %v33299_v24 = vld [vmem:[%s37174_s21 + $0xb8] sm:$0xff]  ;;  %v33298_v26 = vld [vmem:[%s37174_s21 + $0xb0] sm:$0xff] }
 0x174   : > { %33685 = vmatprep.subr.bf16.mxu1 %v37081_v15 }
 0x175   : > { %v8138_v41 = vand.u32 4294901760, %v8137_v35 }
 0x177   : > { %v33690_v44 = vpack.c.bf16 %v8138_v41, %v8126_v40 }
 0x178   : > { %7029 = vmatmul.mubr.f32.vlgmr.msra.gmra.mrb[0].mxu0 %v36224_v3 }
 0x179   : > { %33663 = vmatpush1.bf16.msra.mxu0 %v33662_v31  ;;  %7607 = vmatprep.mubr.f32.mxu0 %v41088_v1 }
 0x17a   : > { %7526 = vmatmul.mubr.f32.vlgmr.msra.gmra.mrb[0].mxu1 %v36224_v3  ;;  %33665 = vmatprep.subr.bf16.mxu0 %v33664_v28 }
 0x17b   : > { %33687 = vmatpush1.bf16.msra.mxu1 %v33686_v23  ;;  %8104 = vmatprep.mubr.f32.mxu1 %v41088_v1 }
 0x17c   : > { %33689 = vmatprep.subr.bf16.mxu1 %v33688_v36  ;;  %v33307_v36 = vld [vmem:[%s37174_s21 + $0xd8] sm:$0xff] }
 0x180   : > { %7613 = vmatmul.mubr.f32.vlgmr.msra.gmra.mrb[0].mxu0 %v36270_v37 }
 0x181   : > { %33667 = vmatpush1.bf16.msra.mxu0 %v33666_v42  ;;  %7703 = vmatprep.mubr.f32.mxu0 %v41088_v1 }
 0x182   : > { %8110 = vmatmul.mubr.f32.vlgmr.msra.gmra.mrb[0].mxu1 %v36270_v37  ;;  %33669 = vmatprep.subr.bf16.mxu0 %v33668_v43  ;;  %v33676_v37 = vpack.c.bf16 %v7633_v60, %v7621_v63  ;;  %v33274_v63 = vld [vmem:[%s37174_s21 + $0x50] sm:$0xff]  ;;  %v33281_v60 = vld [vmem:[%s37174_s21 + $0x68] sm:$0xff] }
 0x183   : > { %33691 = vmatpush1.bf16.msra.mxu1 %v33690_v44  ;;  %8200 = vmatprep.mubr.f32.mxu1 %v41088_v1 }
 0x184   : > { %33693 = vmatprep.subr.bf16.mxu1 %v33692_v45 }
 0x188   : > { %7705 = vmatmul.mubr.f32.vlgmr.msra.gmra.mrb[0].mxu0 %v36224_v3 }
 0x189   : > { %33671 = vmatpush1.bf16.msra.mxu0 %v33670_v30  ;;  %7783 = vmatprep.mubr.f32.mxu0 %v41088_v1 }
 0x18a   : > { %8202 = vmatmul.mubr.f32.vlgmr.msra.gmra.mrb[0].mxu1 %v36224_v3  ;;  %33673 = vmatprep.subr.bf16.mxu0 %v37068_v18 }
 0x18b   : > { %33695 = vmatpush1.bf16.msra.mxu1 %v33694_v47  ;;  %8280 = vmatprep.mubr.f32.mxu1 %v41088_v1 }
 0x18c   : > { %33697 = vmatprep.subr.bf16.mxu1 %v37081_v15 }
 0x190   : > { %7786 = vmatmul.mubr.f32.vlgmr.msra.gmra.mrb[0].mxu0 %v36228_v4 }
 0x191   : > { %33675 = vmatpush1.bf16.msra.mxu0 %v33662_v31  ;;  %7860 = vmatprep.mubr.f32.mxu0 %v41088_v1 }
 0x192   : > { %8283 = vmatmul.mubr.f32.vlgmr.msra.gmra.mrb[0].mxu1 %v36228_v4  ;;  %33677 = vmatprep.subr.bf16.mxu0 %v33676_v37  ;;  %v36070_v4 = vmov 0  }
 0x193   : > { %33699 = vmatpush1.bf16.msra.mxu1 %v33686_v23  ;;  %8357 = vmatprep.mubr.f32.mxu1 %v41088_v1 }
 0x194   : > { %33701 = vmatprep.subr.bf16.mxu1 %v33700_v48  ;;  %35911 = vset.pattern.permute.xlu0 %v36070_v4 }
 0x195   : > { %35912 = vset.pattern.permute.xlu1 %v36070_v4 }
 0x196   : > { %9615 = vperm.xlu1 %35912, %v9607_v52  }
 0x198   : > { %7864 = vmatmul.mubr.f32.vlgmr.msra.gmra.mrb[0].mxu0 %v36241_v8 }
 0x199   : > { %33679 = vmatpush1.bf16.msra.mxu0 %v33678_v49  ;;  %7946 = vmatprep.mubr.f32.mxu0 %v41088_v1 }
 0x19a   : > { %8361 = vmatmul.mubr.f32.vlgmr.msra.gmra.mrb[0].mxu1 %v36241_v8  ;;  %33681 = vmatprep.subr.bf16.mxu0 %v37068_v18  ;;  %v9591_v8 = vld [vmem:[%s41061_s2] sm:$0xff]  ;;  %v8545_v18 = vsel %vm8543_vm1, %v572_v12, 0 }
 0x19b   : > { %33703 = vmatpush1.bf16.msra.mxu1 %v33702_v50  ;;  %8443 = vmatprep.mubr.f32.mxu1 %v41088_v1  ;;  %v37209_v10 = vand.u32 4294901760, %v8545_v18 }
 0x19c   : > { %33705 = vmatprep.subr.bf16.mxu1 %v37081_v15  ;;  %9595 = vperm.xlu0 %35911, %v9591_v8   ;;  %v8548_v15 = vsel %vm8543_vm1, %v573_v13, 0  ;;  %v33313_v8 = vld [vmem:[%s37174_s21 + $0xe8] sm:$0xff] }
 0x19d   : > { %9620 = vperm.xlu1 %35912, %v9608_v53   ;;  %v37215_v16 = vsub.f32 %v8545_v18, %v37209_v10  ;;  %v37217_v19 = vand.u32 4294901760, %v8548_v15 }
 0x19f   : > { %v37222_v20 = vand.u32 4294901760, %v37215_v16  ;;  %v37225_v25 = vsub.f32 %v8548_v15, %v37217_v19 }
 0x1a0   : > { %7948 = vmatmul.mubr.f32.vlgmr.msra.gmra.mrb[0].mxu0 %v36224_v3  ;;  %9600 = vperm.xlu0 %35911, %v9592_v46  }
 0x1a1   : > { %33683 = vmatpush1.bf16.msra.mxu0 %v33662_v31  ;;  %8022 = vmatprep.mubr.f32.mxu0 %v41088_v1  ;;  %v8627_v28 = vsub.f32 %v37215_v16, %v37222_v20 }
 0x1a2   : > { %8445 = vmatmul.mubr.f32.vlgmr.msra.gmra.mrb[0].mxu1 %v36224_v3  ;;  %9668 = vperm.xlu1 %35912, %v9658_v54  }
 0x1a3   : > { %33707 = vmatpush1.bf16.msra.mxu1 %v33686_v23  ;;  %8519 = vmatprep.mubr.f32.mxu1 %v41088_v1  ;;  %v37232_v23 = vand.u32 4294901760, %v37225_v25  ;;  %v37242_v48 = vand.u32 4294901760, %v8627_v28  ;;  %v9628_v28 = vld [vmem:[%s41065_s6 + $0x8] sm:$0xff] }
 0x1a5   : > { %v8638_v49 = vsub.f32 %v37225_v25, %v37232_v23 }
 0x1a6   : > { %9678 = vperm.xlu1 %35912, %v9660_v57  }
 0x1a7   : > { %v8639_v57 = vand.u32 4294901760, %v8638_v49 }
 0x1a8   : > { %8024 = vmatmul.mubr.f32.vlgmr.msra.gmra.mrb[0].mxu0 %v36224_v3 }
 0x1a9   : > { %8720 = vmatprep.mubr.f32.mxu0 %v41088_v1 }
 0x1aa   : > { %8521 = vmatmul.mubr.f32.vlgmr.msra.gmra.mrb[0].mxu1 %v36224_v3  ;;  %v9657_v3 = vld [vmem:[%s37174_s21] sm:$0xff]  ;;  %12206 = vperm.xlu1 %35912, %v33264_v56  }
 0x1ab   : > { %8623 = vmatprep.mubr.f32.mxu1 %v41088_v1  ;;  %9663 = vperm.xlu0 %35911, %v9657_v3   ;;  %v33312_v3 = vld [vmem:[%s37174_s21 + $0xe0] sm:$0xff] }
 0x1ae   : > { %12216 = vperm.xlu1 %35912, %v33266_v55  }
 0x1af   : > { %9673 = vperm.xlu0 %35911, %v9659_v22  }
 0x1b2   : > { %14718 = vperm.xlu1 %35912, %v33272_v59  }
 0x1b3   : > { %10333 = vperm.xlu0 %35911, %v9632_v51  }
 0x1b6   : > { %14728 = vperm.xlu1 %35912, %v33274_v63   ;;  %v30412_v63 = vld [vmem:[%s41070_s11 + $0x8] sm:$0xff] }
 0x1b7   : > { %12211 = vperm.xlu0 %35911, %v33265_v34  }
 0x1ba   : > { %17230 = vperm.xlu1 %35912, %v33280_v6   ;;  %v33080_v6 = vld [vmem:[%s41073_s14 + $0x8] sm:$0xff] }
 0x1bb   : > { %12221 = vperm.xlu0 %35911, %v33267_v58   ;;  %v33315_v58 = vld [vmem:[%s37174_s21 + $0xf8] sm:$0xff] }
 0x1be   : > { %17240 = vperm.xlu1 %35912, %v33282_v5   ;;  %v33079_v5 = vld [vmem:[%s41073_s14] sm:$0xff] }
 0x1bf   : > { %14723 = vperm.xlu0 %35911, %v33273_v62   ;;  %v33314_v62 = vld [vmem:[%s37174_s21 + $0xf0] sm:$0xff]  ;;  %s35995_s21 = scalar_lea.vmem %s35994_s17, 1024 }
 0x1c2   : > { %19742 = vperm.xlu1 %35912, %v33288_v2  }
 0x1c3   : > { %14733 = vperm.xlu0 %35911, %v33275_v61  }
 0x1c6   : > { %19752 = vperm.xlu1 %35912, %v33290_v11  }
 0x1c7   : > { %17235 = vperm.xlu0 %35911, %v33281_v60   ;;  %v30411_v60 = vld [vmem:[%s41070_s11] sm:$0xff] }
 0x1ca   : > { %22254 = vperm.xlu1 %35912, %v33296_v14  }
 0x1cb   : > { %17245 = vperm.xlu0 %35911, %v33283_v0  }
 0x1ce   : > { %22264 = vperm.xlu1 %35912, %v33298_v26  }
 0x1cf   : > { %19747 = vperm.xlu0 %35911, %v33289_v7  }
 0x1d2   : > { %24766 = vperm.xlu1 %35912, %v33304_v29  }
 0x1d3   : > { %19757 = vperm.xlu0 %35911, %v33291_v9  }
 0x1d6   : > { %24776 = vperm.xlu1 %35912, %v33306_v38   ;;  %v9685_v38 = vsel %vm587_vm0, %v9628_v28, 0 }
 0x1d7   : > { %22259 = vperm.xlu0 %35911, %v33297_v17   ;;  %v33096_v17 = vld [vmem:[%s41074_s15 + $0x8] sm:$0xff] }
 0x1da   : > { %27278 = vperm.xlu1 %35912, %v33312_v3  }
 0x1db   : > { %22269 = vperm.xlu0 %35911, %v33299_v24   ;;  %v33095_v24 = vld [vmem:[%s41074_s15] sm:$0xff] }
 0x1de   : > { %27288 = vperm.xlu1 %35912, %v33314_v62  }
 0x1df   : > { %24771 = vperm.xlu0 %35911, %v33305_v27  }
 0x1e2   : > { %30415 = vperm.xlu1 %35912, %v30411_v60   ;;  %v33261_v60 = vld [vmem:[%s36235_s4 + $0x28] sm:$0xff] }
 0x1e3   : > { %24781 = vperm.xlu0 %35911, %v33307_v36  }
 0x1e6   : > { %33083 = vperm.xlu1 %35912, %v33079_v5  }
 0x1e7   : > { %27283 = vperm.xlu0 %35911, %v33313_v8  }
 0x1ea   : > { %33099 = vperm.xlu1 %35912, %v33095_v24   ;;  %v33284_v24 = vld [vmem:[%s36235_s4 + $0x80] sm:$0xff] }
 0x1eb   : > { %27293 = vperm.xlu0 %35911, %v33315_v58   ;;  %v33260_v58 = vld [vmem:[%s36235_s4 + $0x20] sm:$0xff] }
 0x1ef   : > { %30420 = vperm.xlu0 %35911, %v30412_v63  }
 0x1f3   : > { %33088 = vperm.xlu0 %35911, %v33080_v6   ;;  %v33269_v6 = vld [vmem:[%s36235_s4 + $0x48] sm:$0xff] }
 0x1f7   : > { %33104 = vperm.xlu0 %35911, %v33096_v17  }
 0x27b   : > { %v8025_v31 = vpop.f32.mrb[0].mxu0 }
 0x27c   : > { %v8529_v32 = vmul.f32 0.03125, %v8025_v31  ;;  %v8027_v21 = vpop.f32.mrb[1].mxu0 }
 0x27d   : > { %v8530_v33 = vmul.f32 0.03125, %v8027_v21  ;;  %v8522_v35 = vpop.f32.mrb[0].mxu1  ;;  %v9627_v21 = vld [vmem:[%s41065_s6] sm:$0xff] }
 0x27e   : > { %v8533_v39 = vmul.f32 %v8529_v32, %v8529_v32  ;;  %v8552_v40 = vsel %vm8550_vm2, %v8529_v32, 0  ;;  %v8531_v41 = vmul.f32 0.03125, %v8522_v35  ;;  %v8524_v42 = vpop.f32.mrb[1].mxu1  ;;  %v9682_v35 = vsel %vm587_vm0, %v9627_v21, 0 }
 0x27f   : > { %v37237_v43 = vand.u32 4294901760, %v8552_v40  ;;  %v8534_v44 = vmul.f32 %v8530_v33, %v8530_v33  ;;  %v8555_v45 = vsel %vm8550_vm2, %v8530_v33, 0  ;;  %v8532_v30 = vmul.f32 0.03125, %v8524_v42 }
 0x280   : > { %v37240_v47 = vand.u32 4294901760, %v8555_v45  ;;  %v8535_v37 = vsub.f32 %v8531_v41, %v8533_v39  ;;  %v37354_v42 = vand.u32 4294901760, %v9682_v35 }
 0x281   : > { %v37247_v50 = vsub.f32 %v8552_v40, %v37237_v43  ;;  %v8536_v4 = vsub.f32 %v8532_v30, %v8534_v44  ;;  %v9630_v40 = vld [vmem:[%s41065_s6 + $0x18] sm:$0xff] }
 0x282   : > { %v8647_v46 = vsub.f32 %v8555_v45, %v37240_v47  ;;  %v8537_v52 = vmax.f32 %v8535_v37, 0.0  ;;  %8558 = vmatprep.subr.mxu1 %v37240_v47  ;;  %41256 = vst [vmem:[#allocation12_spill] sm:$0xff] %v37354_v42  ;;  %v37356_v45 = vand.u32 4294901760, %v9685_v38  ;;  %v9691_v37 = vsel %vm587_vm0, %v9630_v40, 0 }
 0x283   : > { %v8654_v53 = vand.u32 4294901760, %v37247_v50  ;;  %v8538_v22 = vmax.f32 %v8536_v4, 0.0  ;;  %8560 = vmatpush1.msra.mxu1 %v37237_v43  ;;  %v37372_v4 = vand.u32 4294901760, %v9691_v37 }
 0x284   : > { %v8539_v54 = vadd.f32 1e-05, %v8537_v52  ;;  %v8648_v51 = vand.u32 4294901760, %v8647_v46  ;;  %8629 = vmatmul.mubr.f32.vlgmr.msra.gmra.mrb[2].mxu1 %v37242_v48  ;;  %41257 = vst [vmem:[#allocation13_spill] sm:$0xff] %v37356_v45  ;;  %v37367_v49 = vsub.f32 %v9685_v38, %v37356_v45 }
 0x285   : > { %v8540_v34 = vadd.f32 1e-05, %v8538_v22  ;;  %v8655_v56 = vsub.f32 %v37247_v50, %v8654_v53  ;;  %8634 = vmatprep.mubr.f32.mxu1 %v41088_v1  ;;  %41262 = vst [vmem:[#allocation18_spill] sm:$0xff] %v37372_v4  ;;  %v37384_v3 = vsub.f32 %v9691_v37, %v37372_v4  ;;  %v9596_v22 = vpop.permute.xlu0 %9595 }
 0x286   : > { %35913 = vrsqrt.f32 %v8539_v54  ;;  %v8649_v55 = vsub.f32 %v8647_v46, %v8648_v51  ;;  %41260 = vst [vmem:[#allocation16_spill] sm:$0xff] %v37367_v49 }
 0x287   : > { %35915 = vrsqrt.f32 %v8540_v34  ;;  %v8656_v61 = vand.u32 4294901760, %v8655_v56  ;;  %41266 = vst [vmem:[#allocation22_spill] sm:$0xff] %v37384_v3  ;;  %v9645_v56 = vld [vmem:[%s36235_s4] sm:$0xff] }
 0x288   : > { %v8650_v59 = vand.u32 4294901760, %v8649_v55  ;;  %8640 = vmatmul.mubr.f32.gmra.mrb[4].mxu1 %v8639_v57  ;;  %v33268_v55 = vld [vmem:[%s36235_s4 + $0x40] sm:$0xff] }
 0x289   : > { %9143 = vmatprep.mubr.f32.mxu1 %v41088_v1 }
 0x28a   : > { %8651 = vmatprep.subr.mxu0 %v8650_v59 }
 0x28b   : > { %8657 = vmatpush1.msra.mxu0 %v8656_v61  ;;  %v9646_v61 = vld [vmem:[%s36235_s4 + $0x8] sm:$0xff] }
 0x28c   : > { %8722 = vmatmul.mubr.f32.vlgmr.msra.gmra.mrb[2].mxu0 %v37209_v10  ;;  %8737 = vmatprep.subr.mxu0 %v8647_v46  ;;  %v37378_v46 = vand.u32 4294901760, %v37367_v49 }
 0x28d   : > { %8740 = vmatpush1.msra.mxu0 %v37247_v50  ;;  %8727 = vmatprep.mubr.f32.mxu0 %v41088_v1 }
 0x28e   : > { %8821 = vmatprep.subr.mxu0 %v37240_v47  ;;  %41264 = vst [vmem:[#allocation20_spill] sm:$0xff] %v37378_v46  ;;  %v9776_v54 = vsub.f32 %v37367_v49, %v37378_v46 }
 0x290   : > { %v35914_v0 = vpop.eup %35913  ;;  %8729 = vmatmul.mubr.f32.gmra.mrb[4].mxu0 %v37217_v19 }
 0x291   : > { %v35916_v7 = vpop.eup %35915  ;;  %8803 = vmatprep.mubr.f32.mxu0 %v41088_v1  ;;  %v9072_v2 = vsel %vm8550_vm2, %v35914_v0, 0  ;;  %v9616_v0 = vpop.permute.xlu1 %9615 }
 0x292   : > { %v9075_v12 = vsel %vm8550_vm2, %v35916_v7, 0  ;;  %v37283_v18 = vand.u32 4294901760, %v9072_v2  ;;  %v37407_v7 = vand.u32 4294901760, %v9776_v54 }
 0x293   : > { %v9077_v9 = vand.u32 4294901760, %v9075_v12 }
 0x294   : > { %8806 = vmatmul.mubr.f32.vlgmr.msra.gmra.mrb[2].mxu0 %v37215_v16  ;;  %v9173_v11 = vsub.f32 %v9072_v2, %v37283_v18 }
 0x295   : > { %8823 = vmatpush1.msra.mxu0 %v37237_v43  ;;  %9078 = vmatprep.subr.mxu1 %v9077_v9  ;;  %v9167_v13 = vsub.f32 %v9075_v12, %v9077_v9  ;;  %v9621_v54 = vpop.permute.xlu1 %9620 }
 0x296   : > { %8908 = vmatprep.subr.mxu0 %v8648_v51  ;;  %9080 = vmatpush1.msra.mxu1 %v37283_v18  ;;  %v9174_v15 = vand.u32 4294901760, %v9173_v11 }
 0x297   : > { %8811 = vmatprep.mubr.f32.mxu0 %v41088_v1  ;;  %9149 = vmatmul.mubr.f32.vlgmr.msra.gmra.mrb[6].mxu1 %v37242_v48  ;;  %v9168_v14 = vand.u32 4294901760, %v9167_v13  ;;  %v37364_v48 = vsub.f32 %v9682_v35, %v37354_v42 }
 0x298   : > { %8814 = vmatmul.mubr.f32.gmra.mrb[4].mxu0 %v37225_v25  ;;  %9154 = vmatprep.mubr.f32.mxu1 %v41088_v1  ;;  %v9175_v26 = vsub.f32 %v9173_v11, %v9174_v15 }
 0x299   : > { %8886 = vmatprep.mubr.f32.mxu0 %v41088_v1  ;;  %v9169_v27 = vsub.f32 %v9167_v13, %v9168_v14  ;;  %41259 = vst [vmem:[#allocation15_spill] sm:$0xff] %v37364_v48  ;;  %v37375_v8 = vand.u32 4294901760, %v37364_v48 }
 0x29a   : > { %v9176_v31 = vand.u32 4294901760, %v9175_v26  ;;  %v9601_v26 = vpop.permute.xlu0 %9600 }
 0x29b   : > { %9160 = vmatmul.mubr.f32.gmra.mrb[8].mxu1 %v8639_v57  ;;  %v9170_v29 = vand.u32 4294901760, %v9169_v27  ;;  %41263 = vst [vmem:[#allocation19_spill] sm:$0xff] %v37375_v8  ;;  %v37393_v57 = vand.u32 4294901760, %v37384_v3 }
 0x29c   : > { %8890 = vmatmul.mubr.f32.vlgmr.msra.gmra.mrb[2].mxu0 %v37222_v20  ;;  %9240 = vmatprep.mubr.f32.mxu1 %v41088_v1 }
 0x29d   : > { %8912 = vmatpush1.msra.mxu0 %v8654_v53  ;;  %9171 = vmatprep.subr.mxu1 %v9170_v29  ;;  %v9765_v53 = vsub.f32 %v37364_v48, %v37375_v8  ;;  %41267 = vst [vmem:[#allocation23_spill] sm:$0xff] %v37393_v57 }
 0x29e   : > { %8991 = vmatprep.subr.mxu0 %v37240_v47  ;;  %9177 = vmatpush1.msra.mxu1 %v9176_v31 }
 0x29f   : > { %8895 = vmatprep.mubr.f32.mxu0 %v41088_v1  ;;  %9242 = vmatmul.mubr.f32.vlgmr.msra.gmra.mrb[6].mxu1 %v37209_v10  ;;  %v37401_v63 = vand.u32 4294901760, %v9765_v53 }
 0x2a0   : > { %9257 = vmatprep.subr.mxu1 %v9167_v13  ;;  %8899 = vmatmul.mubr.f32.gmra.mrb[4].mxu0 %v37232_v23 }
 0x2a1   : > { %9260 = vmatpush1.msra.mxu1 %v9173_v11  ;;  %9247 = vmatprep.mubr.f32.mxu1 %v41088_v1  ;;  %41268 = vst [vmem:[#allocation24_spill] sm:$0xff] %v37401_v63 }
 0x2a2   : > { %9341 = vmatprep.subr.mxu1 %v9077_v9  ;;  %8975 = vmatprep.mubr.f32.mxu0 %v41088_v1 }
 0x2a3   : > { %9249 = vmatmul.mubr.f32.gmra.mrb[8].mxu1 %v37217_v19 }
 0x2a4   : > { %8977 = vmatmul.mubr.f32.vlgmr.msra.gmra.mrb[2].mxu0 %v37209_v10  ;;  %9323 = vmatprep.mubr.f32.mxu1 %v41088_v1 }
 0x2a5   : > { %8993 = vmatpush1.msra.mxu0 %v37237_v43  ;;  %8982 = vmatprep.mubr.f32.mxu0 %v41088_v1 }
 0x2a7   : > { %9326 = vmatmul.mubr.f32.vlgmr.msra.gmra.mrb[6].mxu1 %v37215_v16 }
 0x2a8   : > { %9343 = vmatpush1.msra.mxu1 %v37283_v18  ;;  %8984 = vmatmul.mubr.f32.gmra.mrb[4].mxu0 %v37217_v19 }
 0x2a9   : > { %9428 = vmatprep.subr.mxu1 %v9168_v14  ;;  %9331 = vmatprep.mubr.f32.mxu1 %v41088_v1  ;;  %v33285_v14 = vld [vmem:[%s36235_s4 + $0x88] sm:$0xff] }
 0x2aa   : > { %9056 = vmatprep.mubr.f32.mxu0 %v41088_v1 }
 0x2ab   : > { %9334 = vmatmul.mubr.f32.gmra.mrb[8].mxu1 %v37225_v25 }
 0x2ac   : > { %9058 = vmatmul.mubr.f32.vlgmr.msra.gmra.mrb[2].mxu0 %v37209_v10  ;;  %9406 = vmatprep.mubr.f32.mxu1 %v41088_v1 }
 0x2ad   : > { %9063 = vmatprep.mubr.f32.mxu0 %v41088_v1 }
 0x2af   : > { %9410 = vmatmul.mubr.f32.vlgmr.msra.gmra.mrb[6].mxu1 %v37222_v20 }
 0x2b0   : > { %9432 = vmatpush1.msra.mxu1 %v9174_v15  ;;  %9065 = vmatmul.mubr.f32.gmra.mrb[4].mxu0 %v37217_v19 }
 0x2b1   : > { %9511 = vmatprep.subr.mxu1 %v9077_v9  ;;  %9415 = vmatprep.mubr.f32.mxu1 %v41088_v1  ;;  %v33276_v9 = vld [vmem:[%s36235_s4 + $0x60] sm:$0xff] }
 0x2b2   : > { %9890 = vmatprep.mubr.f32.mxu0 %v41088_v1 }
 0x2b3   : > { %9419 = vmatmul.mubr.f32.gmra.mrb[8].mxu1 %v37232_v23 }
 0x2b4   : > { %9495 = vmatprep.mubr.f32.mxu1 %v41088_v1 }
 0x2b7   : > { %9497 = vmatmul.mubr.f32.vlgmr.msra.gmra.mrb[6].mxu1 %v37209_v10 }
 0x2b8   : > { %9513 = vmatpush1.msra.mxu1 %v37283_v18  ;;  %9502 = vmatprep.mubr.f32.mxu1 %v41088_v1  ;;  %v33277_v18 = vld [vmem:[%s36235_s4 + $0x68] sm:$0xff] }
 0x2bb   : > { %9504 = vmatmul.mubr.f32.gmra.mrb[8].mxu1 %v37217_v19 }
 0x2bc   : > { %9576 = vmatprep.mubr.f32.mxu1 %v41088_v1 }
 0x2bf   : > { %9578 = vmatmul.mubr.f32.vlgmr.msra.gmra.mrb[6].mxu1 %v37209_v10  ;;  %v9629_v10 = vld [vmem:[%s41065_s6 + $0x10] sm:$0xff] }
 0x2c0   : > { %9583 = vmatprep.mubr.f32.mxu1 %v41088_v1  ;;  %v9688_v39 = vsel %vm587_vm0, %v9629_v10, 0 }
 0x2c1   : > { %v37358_v30 = vand.u32 4294901760, %v9688_v39 }
 0x2c3   : > { %9585 = vmatmul.mubr.f32.gmra.mrb[8].mxu1 %v37217_v19  ;;  %41258 = vst [vmem:[#allocation14_spill] sm:$0xff] %v37358_v30  ;;  %v37370_v50 = vsub.f32 %v9688_v39, %v37358_v30 }
 0x2c4   : > { %9761 = vmatprep.mubr.f32.mxu1 %v41088_v1 }
 0x2c5   : > { %41261 = vst [vmem:[#allocation17_spill] sm:$0xff] %v37370_v50  ;;  %v37381_v52 = vand.u32 4294901760, %v37370_v50 }
 0x2c7   : > { %41265 = vst [vmem:[#allocation21_spill] sm:$0xff] %v37381_v52  ;;  %v9787_v51 = vsub.f32 %v37370_v50, %v37381_v52 }
 0x2c9   : > { %v37409_v2 = vand.u32 4294901760, %v9787_v51 }
 0x2cb   : > { %41269 = vst [vmem:[#allocation25_spill] sm:$0xff] %v37409_v2 }
 0x357   : > { %v8630_v16 = vpop.f32.mrb[2].mxu1 }
 0x358   : > { %v8632_v20 = vpop.f32.mrb[3].mxu1 }
 0x35b   : > { %v8641_v25 = vpop.f32.mrb[4].mxu1 }
 0x35c   : > { %v8643_v32 = vpop.f32.mrb[5].mxu1 }
 0x37f   : > { %v9059_v23 = vpop.f32.mrb[2].mxu0 }
 0x380   : > { %v34380_v19 = vadd.f32 %v9059_v23, %v8630_v16  ;;  %v9061_v33 = vpop.f32.mrb[3].mxu0  ;;  %v9647_v16 = vld [vmem:[%s36235_s4 + $0x10] sm:$0xff]  ;;  %v9648_v23 = vld [vmem:[%s36235_s4 + $0x18] sm:$0xff] }
 0x381   : > { %v34381_v36 = vadd.f32 %v9061_v33, %v8632_v20 }
 0x383   : > { %v9066_v41 = vpop.f32.mrb[4].mxu0 }
 0x384   : > { %v34382_v43 = vadd.f32 %v9066_v41, %v8641_v25  ;;  %v9068_v44 = vpop.f32.mrb[5].mxu0  ;;  %v33262_v25 = vld [vmem:[%s36235_s4 + $0x30] sm:$0xff] }
 0x385   : > { %v37360_v47 = vadd.f32 %v9068_v44, %v8643_v32 }
 0x392   : > { %v9579_v34 = vpop.f32.mrb[6].mxu1 }
 0x393   : > { %v37398_v62 = vmul.f32 %v9596_v22, %v9579_v34  ;;  %v9581_v59 = vpop.f32.mrb[7].mxu1 }
 0x394   : > { %v37405_v5 = vmul.f32 %v9596_v22, %v9581_v59  ;;  %v33271_v22 = vld [vmem:[%s36235_s4 + $0x58] sm:$0xff] }
 0x395   : > { %v9609_v11 = vmul.f32 %v34380_v19, %v37398_v62  ;;  %v9649_v13 = vmul.f32 %v9645_v56, %v37398_v62  ;;  %v12191_v15 = vmul.f32 %v33260_v58, %v37398_v62  ;;  %v37419_v17 = vmul.f32 %v33268_v55, %v37398_v62  ;;  %v33263_v19 = vld [vmem:[%s36235_s4 + $0x38] sm:$0xff] }
 0x396   : > { %v9610_v27 = vmul.f32 %v34381_v36, %v37405_v5  ;;  %v9586_v29 = vpop.f32.mrb[8].mxu1  ;;  %v9650_v31 = vmul.f32 %v9646_v61, %v37405_v5  ;;  %v12192_v20 = vmul.f32 %v33261_v60, %v37405_v5  ;;  %v14704_v32 = vmul.f32 %v33269_v6, %v37405_v5 }
 0x397   : > { %v37429_v21 = vsub.f32 %v9616_v0, %v9609_v11  ;;  %v37431_v28 = vmul.f32 %v9601_v26, %v9586_v29  ;;  %v9588_v10 = vpop.f32.mrb[9].mxu1  ;;  %v37436_v33 = vmul.f32 %v33277_v18, %v37405_v5  ;;  %v37439_v35 = vmul.f32 %v33276_v9, %v37398_v62 }
 0x398   : > { %v37441_v36 = vmul.f32 %v9601_v26, %v9588_v10  ;;  %v37443_v38 = vsub.f32 %v9616_v0, %v9610_v27  ;;  %v37446_v39 = vmul.f32 %v33285_v14, %v37405_v5  ;;  %v37449_v40 = vmul.f32 %v33284_v24, %v37398_v62 }
 0x399   : > { %v9611_v41 = vmul.f32 %v34382_v43, %v37431_v28  ;;  %v9651_v44 = vmul.f32 %v9647_v16, %v37431_v28  ;;  %v9653_v37 = vadd.f32 %v9649_v13, %v37429_v21  ;;  %v12193_v53 = vmul.f32 %v33262_v25, %v37431_v28 }
 0x39a   : > { %v9612_v51 = vmul.f32 %v37360_v47, %v37441_v36  ;;  %v9652_v34 = vmul.f32 %v9648_v23, %v37441_v36  ;;  %v9654_v56 = vadd.f32 %v9650_v31, %v37443_v38  ;;  %v12194_v58 = vmul.f32 %v33263_v19, %v37441_v36 }
 0x39b   : > { %v37461_v55 = vsub.f32 %v9621_v54, %v9611_v41  ;;  %v9695_v43 = vand.u32 4294901760, %v9653_v37  ;;  %v12196_v59 = vadd.f32 %v12192_v20, %v37443_v38  ;;  %v12195_v61 = vadd.f32 %v12191_v15, %v37429_v21 }
 0x39c   : > { %v37465_v60 = vsub.f32 %v9621_v54, %v9612_v51  ;;  %v9693_v6 = vand.u32 4294901760, %v9654_v56  ;;  %v37468_v0 = vmul.f32 %v33271_v22, %v37441_v36  ;;  %v37471_v47 = vadd.f32 %v14704_v32, %v37443_v38 }
 0x39d   : > { %v9655_v18 = vadd.f32 %v9651_v44, %v37461_v55  ;;  %v37474_v9 = vsub.f32 %v9653_v37, %v9695_v43  ;;  %v12224_v11 = vand.u32 4294901760, %v12196_v59  ;;  %v12197_v13 = vadd.f32 %v12193_v53, %v37461_v55 }
 0x39e   : > { %v9656_v14 = vadd.f32 %v9652_v34, %v37465_v60  ;;  %v37478_v24 = vsub.f32 %v9654_v56, %v9693_v6  ;;  %v12198_v15 = vadd.f32 %v12194_v58, %v37465_v60  ;;  %v12226_v26 = vand.u32 4294901760, %v12195_v61 }
 0x39f   : > { %v9699_v27 = vand.u32 4294901760, %v9655_v18  ;;  %v9814_v29 = vand.u32 4294901760, %v37474_v9  ;;  %v37482_v31 = vsub.f32 %v12196_v59, %v12224_v11  ;;  %v12230_v16 = vand.u32 4294901760, %v12197_v13 }
 0x3a0   : > { %v9697_v20 = vand.u32 4294901760, %v9656_v14  ;;  %v9808_v25 = vand.u32 4294901760, %v37478_v24  ;;  %v12228_v32 = vand.u32 4294901760, %v12198_v15  ;;  %v37485_v10 = vsub.f32 %v12195_v61, %v12226_v26 }
 0x3a1   : > { %41270 = vst [vmem:[#allocation26_spill] sm:$0xff] %v37482_v31  ;;  %v37487_v23 = vpack.c.bf16 %v9699_v27, %v9695_v43  ;;  %v37489_v19 = vsub.f32 %v9655_v18, %v9699_v27  ;;  %v9815_v41 = vsub.f32 %v37474_v9, %v9814_v29  ;;  %v37492_v44 = vpack.c.bf16 %v12230_v16, %v12226_v26 }
 0x3a2   : > { %41271 = vst [vmem:[#allocation27_spill] sm:$0xff] %v37485_v10  ;;  %v37494_v37 = vpack.c.bf16 %v9697_v20, %v9693_v6  ;;  %v9819_v53 = vsub.f32 %v9656_v14, %v9697_v20  ;;  %v9809_v22 = vsub.f32 %v37478_v24, %v9808_v25  ;;  %v37497_v54 = vpack.c.bf16 %v12228_v32, %v12224_v11 }
 0x3a3   : > { %41272 = vst [vmem:[#allocation28_spill] sm:$0xff] %v37492_v44  ;;  %v9816_v51 = vand.u32 4294901760, %v9815_v41  ;;  %v9826_v34 = vand.u32 4294901760, %v37489_v19  ;;  %v37502_v58 = vsub.f32 %v12198_v15, %v12228_v32  ;;  %v37506_v6 = vsub.f32 %v12197_v13, %v12230_v16 }
 0x3a4   : > { %33709 = vmatprep.subr.bf16.mxu1 %v37494_v37  ;;  %v9810_v43 = vand.u32 4294901760, %v9809_v22  ;;  %v9820_v59 = vand.u32 4294901760, %v9819_v53  ;;  %v33716_v61 = vpack.c.bf16 %v9819_v53, %v37478_v24  ;;  %v12339_v14 = vand.u32 4294901760, %v37482_v31 }
 0x3a5   : > { %41273 = vst [vmem:[#allocation29_spill] sm:$0xff] %v37502_v58  ;;  %33711 = vmatpush1.bf16.msra.mxu1 %v37487_v23  ;;  %v9827_v18 = vsub.f32 %v37489_v19, %v9826_v34  ;;  %v37510_v11 = vpack.c.bf16 %v9826_v34, %v9814_v29  ;;  %v12351_v15 = vand.u32 4294901760, %v37502_v58  ;;  %v12345_v20 = vand.u32 4294901760, %v37485_v10  ;;  %v33270_v34 = vld [vmem:[%s36235_s4 + $0x50] sm:$0xff]  ;;  %v33279_v29 = vld [vmem:[%s36235_s4 + $0x78] sm:$0xff] }
 0x3a6   : > { %v9821_v26 = vsub.f32 %v9819_v53, %v9820_v59  ;;  %v37514_v27 = vpack.c.bf16 %v9820_v59, %v9808_v25  ;;  %v12357_v24 = vand.u32 4294901760, %v37506_v6  ;;  %v12340_v16 = vsub.f32 %v37482_v31, %v12339_v14 }
 0x3a7   : > { %v9828_v13 = vand.u32 4294901760, %v9827_v18  ;;  %v12352_v32 = vsub.f32 %v37502_v58, %v12351_v15  ;;  %v12346_v53 = vsub.f32 %v37485_v10, %v12345_v20  ;;  %v37529_v12 = vpack.c.bf16 %v12351_v15, %v12339_v14 }
 0x3a8   : > { %9767 = vmatmul.mubr.f32.vlgmr.msra.gmra.mrb[10].mxu1 %v37401_v63  ;;  %v9822_v41 = vand.u32 4294901760, %v9821_v26  ;;  %v12358_v25 = vsub.f32 %v37506_v6, %v12357_v24  ;;  %v12341_v18 = vand.u32 4294901760, %v12340_v16  ;;  %v37532_v63 = vpack.c.bf16 %v12357_v24, %v12345_v20 }
 0x3a9   : > { %9772 = vmatprep.mubr.f32.mxu1 %v41088_v1  ;;  %v33714_v59 = vpack.c.bf16 %v9828_v13, %v9816_v51  ;;  %v12353_v56 = vand.u32 4294901760, %v12352_v32  ;;  %v12347_v58 = vand.u32 4294901760, %v12346_v53  ;;  %v14710_v22 = vadd.f32 %v37468_v0, %v37465_v60  ;;  %v33278_v51 = vld [vmem:[%s36235_s4 + $0x70] sm:$0xff] }
 0x3aa   : > { %v33712_v31 = vpack.c.bf16 %v9822_v41, %v9810_v43  ;;  %v12359_v26 = vand.u32 4294901760, %v12358_v25  ;;  %v14736_v10 = vand.u32 4294901760, %v37471_v47  ;;  %v14705_v1 = vmul.f32 %v33270_v34, %v37431_v28 }
 0x3ab   : > { %v37534_v44 = vpack.c.bf16 %v12353_v56, %v12341_v18  ;;  %v41274_v43 = vsub.f32 %v37384_v3, %v37393_v57  ;;  %v14707_v56 = vadd.f32 %v37419_v17, %v37429_v21  ;;  %v17218_v0 = vmul.f32 %v33279_v29, %v37441_v36 }
 0x3ac   : > { %9778 = vmatmul.mubr.f32.gmra.mrb[12].mxu1 %v37407_v7  ;;  %33713 = vmatprep.subr.bf16.mxu0 %v33712_v31  ;;  %v37547_v15 = vpack.c.bf16 %v12359_v26, %v12347_v58  ;;  %v41276_v20 = vmov 0.0   ;;  %v14740_v24 = vand.u32 4294901760, %v14710_v22  ;;  %v37554_v13 = vsub.f32 %v37471_v47, %v14736_v10 }
 0x3ad   : > { %v37545_v14 = vand.u32 4294901760, %v41274_v43  ;;  %33715 = vmatpush1.bf16.msra.mxu0 %v33714_v59  ;;  %9783 = vmatprep.mubr.f32.mxu1 %v41276_v20  ;;  %v14709_v31 = vadd.f32 %v14705_v1, %v37461_v55  ;;  %v17220_v16 = vadd.f32 %v37436_v33, %v37443_v38  ;;  %v14738_v58 = vand.u32 4294901760, %v14707_v56 }
 0x3ae   : > { %41277 = vst [vmem:[#allocation31_spill] sm:$0xff] %v37554_v13  ;;  %33717 = vmatprep.subr.bf16.mxu0 %v33716_v61  ;;  %v17222_v32 = vadd.f32 %v17218_v0, %v37465_v60  ;;  %v17217_v17 = vmul.f32 %v33278_v51, %v37431_v28  ;;  %v17219_v29 = vadd.f32 %v37439_v35, %v37429_v21  ;;  %v14851_v25 = vand.u32 4294901760, %v37554_v13 }
 0x3af   : > { %41275 = vst [vmem:[#allocation30_spill] sm:$0xff] %v37545_v14  ;;  %v37563_v41 = vpack.c.bf16 %v14740_v24, %v14736_v10  ;;  %v37565_v53 = vsub.f32 %v14710_v22, %v14740_v24  ;;  %v14742_v47 = vand.u32 4294901760, %v14709_v31  ;;  %v37570_v1 = vsub.f32 %v14707_v56, %v14738_v58 }
 0x3b0   : > { %9789 = vmatmul.mubr.f32.gmra.mrb[14].mxu1 %v37409_v2  ;;  %9892 = vmatmul.mubr.f32.vlgmr.msra.gmra.mrb[6].mxu0 %v37354_v42  ;;  %v17248_v33 = vand.u32 4294901760, %v17220_v16  ;;  %v17252_v61 = vand.u32 4294901760, %v17222_v32  ;;  %v17221_v34 = vadd.f32 %v17217_v17, %v37461_v55  ;;  %v41281_v35 = vpack.c.bf16 %v37489_v19, %v37474_v9 }
 0x3b1   : > { %41278 = vst [vmem:[#allocation32_spill] sm:$0xff] %v37563_v41  ;;  %41279 = vst [vmem:[#allocation33_spill] sm:$0xff] %v37565_v53  ;;  %9794 = vmatprep.mubr.f32.mxu1 %v41276_v20  ;;  %v37577_v10 = vpack.c.bf16 %v14742_v47, %v14738_v58  ;;  %v37579_v22 = vsub.f32 %v14709_v31, %v14742_v47  ;;  %v14852_v59 = vsub.f32 %v37554_v13, %v14851_v25 }
 0x3b2   : > { %41280 = vst [vmem:[#allocation34_spill] sm:$0xff] %v37570_v1  ;;  %33719 = vmatpush1.bf16.msra.mxu0 %v41281_v35  ;;  %v14863_v18 = vand.u32 4294901760, %v37565_v53  ;;  %9897 = vmatprep.mubr.f32.mxu0 %v41276_v20  ;;  %v14857_v26 = vand.u32 4294901760, %v37570_v1  ;;  %v37588_v19 = vpack.c.bf16 %v17252_v61, %v17248_v33  ;;  %v37590_v51 = vsub.f32 %v17220_v16, %v17248_v33 }
 0x3b3   : > { %41282 = vst [vmem:[#allocation35_spill] sm:$0xff] %v37577_v10  ;;  %41283 = vst [vmem:[#allocation36_spill] sm:$0xff] %v37579_v22  ;;  %33721 = vmatprep.subr.bf16.mxu0 %v37494_v37  ;;  %v14853_v43 = vand.u32 4294901760, %v14852_v59  ;;  %v14869_v0 = vand.u32 4294901760, %v37579_v22  ;;  %v37601_v17 = vsub.f32 %v17222_v32, %v17252_v61  ;;  %v17250_v16 = vand.u32 4294901760, %v17219_v29 }
 0x3b4   : > { %41284 = vst [vmem:[#allocation37_spill] sm:$0xff] %v37588_v19  ;;  %41285 = vst [vmem:[#allocation38_spill] sm:$0xff] %v37590_v51  ;;  %v14864_v56 = vsub.f32 %v37565_v53, %v14863_v18  ;;  %9800 = vmatmul.mubr.f32.gmra.mrb[16].mxu1 %v37545_v14  ;;  %9899 = vmatmul.mubr.f32.gmra.mrb[8].mxu0 %v37356_v45  ;;  %v14858_v31 = vsub.f32 %v37570_v1, %v14857_v26  ;;  %v17254_v59 = vand.u32 4294901760, %v17221_v34 }
 0x3b5   : > { %v37599_v58 = vpack.c.bf16 %v14863_v18, %v14851_v25  ;;  %41287 = vst [vmem:[#allocation40_spill] sm:$0xff] %v37601_v17  ;;  %9904 = vmatprep.mubr.f32.mxu0 %v41276_v20  ;;  %10412 = vmatprep.mubr.f32.mxu1 %v41276_v20  ;;  %v14870_v33 = vsub.f32 %v37579_v22, %v14869_v0  ;;  %v17363_v25 = vand.u32 4294901760, %v37590_v51  ;;  %v17375_v32 = vand.u32 4294901760, %v37601_v17  ;;  %v33295_v22 = vld [vmem:[%s36235_s4 + $0xb8] sm:$0xff] }
 0x3b6   : > { %v14865_v47 = vand.u32 4294901760, %v14864_v56  ;;  %v37606_v35 = vpack.c.bf16 %v14869_v0, %v14857_v26  ;;  %v14859_v24 = vand.u32 4294901760, %v14858_v31  ;;  %v37608_v9 = vsub.f32 %v17219_v29, %v17250_v16  ;;  %v33287_v56 = vld [vmem:[%s36235_s4 + $0x98] sm:$0xff] }
 0x3b7   : > { %41286 = vst [vmem:[#allocation39_spill] sm:$0xff] %v37599_v58  ;;  %v14871_v18 = vand.u32 4294901760, %v14870_v33  ;;  %v37614_v19 = vpack.c.bf16 %v17254_v59, %v17250_v16  ;;  %v37616_v58 = vsub.f32 %v17221_v34, %v17254_v59  ;;  %v17364_v26 = vsub.f32 %v37590_v51, %v17363_v25  ;;  %v33293_v51 = vld [vmem:[%s36235_s4 + $0xa8] sm:$0xff] }
 0x3b8   : > { %41288 = vst [vmem:[#allocation41_spill] sm:$0xff] %v37606_v35  ;;  %41289 = vst [vmem:[#allocation42_spill] sm:$0xff] %v37608_v9  ;;  %v37612_v61 = vpack.c.bf16 %v14865_v47, %v14853_v43  ;;  %9906 = vmatmul.mubr.f32.gmra.mrb[10].mxu0 %v37358_v30  ;;  %v17376_v29 = vsub.f32 %v37601_v17, %v17375_v32  ;;  %v17369_v0 = vand.u32 4294901760, %v37608_v9  ;;  %v33286_v43 = vld [vmem:[%s36235_s4 + $0x90] sm:$0xff]  ;;  %v33292_v47 = vld [vmem:[%s36235_s4 + $0xa0] sm:$0xff] }
 0x3b9   : > { %41291 = vst [vmem:[#allocation44_spill] sm:$0xff] %v37614_v19  ;;  %41292 = vst [vmem:[#allocation45_spill] sm:$0xff] %v37616_v58  ;;  %9911 = vmatprep.mubr.f32.mxu0 %v41276_v20  ;;  %v37627_v34 = vpack.c.bf16 %v14871_v18, %v14859_v24  ;;  %v17381_v16 = vand.u32 4294901760, %v37616_v58  ;;  %v37632_v33 = vpack.c.bf16 %v17375_v32, %v17363_v25  ;;  %v17365_v59 = vand.u32 4294901760, %v17364_v26 }
 0x3ba   : > { %41290 = vst [vmem:[#allocation43_spill] sm:$0xff] %v37612_v61  ;;  %v17377_v19 = vand.u32 4294901760, %v17376_v29  ;;  %v17370_v35 = vsub.f32 %v37608_v9, %v17369_v0  ;;  %v19730_v31 = vmul.f32 %v33287_v56, %v37441_v36  ;;  %v19732_v24 = vadd.f32 %v37446_v39, %v37443_v38 }
 0x3bb   : > { %41293 = vst [vmem:[#allocation46_spill] sm:$0xff] %v37627_v34  ;;  %41294 = vst [vmem:[#allocation47_spill] sm:$0xff] %v37632_v33  ;;  %v17382_v17 = vsub.f32 %v37616_v58, %v17381_v16  ;;  %v37638_v1 = vpack.c.bf16 %v17381_v16, %v17369_v0  ;;  %v19729_v18 = vmul.f32 %v33286_v43, %v37431_v28  ;;  %v33301_v58 = vld [vmem:[%s36235_s4 + $0xc8] sm:$0xff] }
 0x3bc   : > { %9913 = vmatmul.mubr.f32.gmra.mrb[12].mxu0 %v37372_v4  ;;  %v37646_v25 = vpack.c.bf16 %v17377_v19, %v17365_v59  ;;  %v17371_v32 = vand.u32 4294901760, %v17370_v35  ;;  %v19734_v26 = vadd.f32 %v19730_v31, %v37465_v60  ;;  %v19731_v56 = vadd.f32 %v37449_v40, %v37429_v21 }
 0x3bd   : > { %41295 = vst [vmem:[#allocation48_spill] sm:$0xff] %v37638_v1  ;;  %9991 = vmatprep.mubr.f32.mxu0 %v41276_v20  ;;  %v17383_v29 = vand.u32 4294901760, %v17382_v17  ;;  %v19760_v0 = vand.u32 4294901760, %v19732_v24  ;;  %v19733_v39 = vadd.f32 %v19729_v18, %v37461_v55  ;;  %v22240_v43 = vmul.f32 %v33293_v51, %v37405_v5 }
 0x3be   : > { %41296 = vst [vmem:[#allocation49_spill] sm:$0xff] %v37646_v25  ;;  %v19764_v16 = vand.u32 4294901760, %v19734_v26  ;;  %v19762_v1 = vand.u32 4294901760, %v19731_v56  ;;  %v22242_v33 = vmul.f32 %v33295_v22, %v37441_v36  ;;  %v22239_v19 = vmul.f32 %v33292_v47, %v37398_v62 }
 0x3bf   : > { %v37656_v35 = vpack.c.bf16 %v17383_v29, %v17371_v32  ;;  %v37658_v31 = vsub.f32 %v19732_v24, %v19760_v0  ;;  %v19766_v59 = vand.u32 4294901760, %v19733_v39  ;;  %v22244_v40 = vadd.f32 %v22240_v43, %v37443_v38 }
 0x3c0   : > { %9994 = vmatmul.mubr.f32.vlgmr.msra.gmra.mrb[6].mxu0 %v37364_v48  ;;  %v37662_v17 = vpack.c.bf16 %v19764_v16, %v19760_v0  ;;  %v37664_v18 = vsub.f32 %v19734_v26, %v19764_v16  ;;  %v37666_v51 = vsub.f32 %v19731_v56, %v19762_v1  ;;  %v22246_v9 = vadd.f32 %v22242_v33, %v37465_v60  ;;  %v33294_v16 = vld [vmem:[%s36235_s4 + $0xb0] sm:$0xff] }
 0x3c1   : > { %41297 = vst [vmem:[#allocation50_spill] sm:$0xff] %v37656_v35  ;;  %41298 = vst [vmem:[#allocation51_spill] sm:$0xff] %v37658_v31  ;;  %33723 = vmatpush1.bf16.msra.mxu0 %v37487_v23  ;;  %9999 = vmatprep.mubr.f32.mxu0 %v41276_v20  ;;  %v37671_v22 = vpack.c.bf16 %v19766_v59, %v19762_v1  ;;  %v37673_v47 = vsub.f32 %v19733_v39, %v19766_v59  ;;  %v19875_v24 = vand.u32 4294901760, %v37658_v31 }
 0x3c2   : > { %41299 = vst [vmem:[#allocation52_spill] sm:$0xff] %v37662_v17  ;;  %41300 = vst [vmem:[#allocation53_spill] sm:$0xff] %v37664_v18  ;;  %v22272_v32 = vand.u32 4294901760, %v22244_v40  ;;  %33725 = vmatprep.subr.bf16.mxu0 %v37514_v27  ;;  %v19887_v26 = vand.u32 4294901760, %v37664_v18  ;;  %v19881_v56 = vand.u32 4294901760, %v37666_v51  ;;  %v22276_v29 = vand.u32 4294901760, %v22246_v9 }
 0x3c3   : > { %41301 = vst [vmem:[#allocation54_spill] sm:$0xff] %v37666_v51  ;;  %41302 = vst [vmem:[#allocation55_spill] sm:$0xff] %v37671_v22  ;;  %v19876_v0 = vsub.f32 %v37658_v31, %v19875_v24  ;;  %v19893_v1 = vand.u32 4294901760, %v37673_v47 }
 0x3c4   : > { %41303 = vst [vmem:[#allocation56_spill] sm:$0xff] %v37673_v47  ;;  %v37685_v43 = vsub.f32 %v22244_v40, %v22272_v32  ;;  %10002 = vmatmul.mubr.f32.gmra.mrb[8].mxu0 %v37367_v49  ;;  %v19888_v27 = vsub.f32 %v37664_v18, %v19887_v26  ;;  %v19882_v59 = vsub.f32 %v37666_v51, %v19881_v56 }
 0x3c5   : > { %v37691_v22 = vpack.c.bf16 %v19887_v26, %v19875_v24  ;;  %v37693_v33 = vpack.c.bf16 %v22276_v29, %v22272_v32  ;;  %10007 = vmatprep.mubr.f32.mxu0 %v41276_v20  ;;  %v19877_v31 = vand.u32 4294901760, %v19876_v0  ;;  %v19894_v17 = vsub.f32 %v37673_v47, %v19893_v1 }
 0x3c6   : > { %41304 = vst [vmem:[#allocation57_spill] sm:$0xff] %v37685_v43  ;;  %v37697_v39 = vpack.c.bf16 %v19893_v1, %v19881_v56  ;;  %v37699_v40 = vsub.f32 %v22246_v9, %v22276_v29  ;;  %v19889_v18 = vand.u32 4294901760, %v19888_v27  ;;  %v19883_v35 = vand.u32 4294901760, %v19882_v59  ;;  %v33303_v1 = vld [vmem:[%s36235_s4 + $0xd8] sm:$0xff]  ;;  %v33300_v59 = vld [vmem:[%s36235_s4 + $0xc0] sm:$0xff] }
 0x3c7   : > { %41305 = vst [vmem:[#allocation58_spill] sm:$0xff] %v37691_v22  ;;  %41306 = vst [vmem:[#allocation59_spill] sm:$0xff] %v37693_v33  ;;  %v22241_v24 = vmul.f32 %v33294_v16, %v37431_v28  ;;  %v22243_v26 = vadd.f32 %v22239_v19, %v37429_v21  ;;  %v19895_v32 = vand.u32 4294901760, %v19894_v17  ;;  %v22387_v33 = vand.u32 4294901760, %v37685_v43  ;;  %v33302_v19 = vld [vmem:[%s36235_s4 + $0xd0] sm:$0xff] }
 0x3c8   : > { %41307 = vst [vmem:[#allocation60_spill] sm:$0xff] %v37697_v39  ;;  %41308 = vst [vmem:[#allocation61_spill] sm:$0xff] %v37699_v40  ;;  %v22399_v0 = vand.u32 4294901760, %v37699_v40  ;;  %10010 = vmatmul.mubr.f32.gmra.mrb[10].mxu0 %v37370_v50  ;;  %v37710_v9 = vpack.c.bf16 %v19889_v18, %v19877_v31  ;;  %v24752_v16 = vmul.f32 %v33301_v58, %v37405_v5 }
 0x3c9   : > { %v22245_v29 = vadd.f32 %v22241_v24, %v37461_v55  ;;  %v22274_v27 = vand.u32 4294901760, %v22243_v26  ;;  %10015 = vmatprep.mubr.f32.mxu0 %v41276_v20  ;;  %v37717_v17 = vpack.c.bf16 %v19895_v32, %v19883_v35  ;;  %v22388_v39 = vsub.f32 %v37685_v43, %v22387_v33 }
 0x3ca   : > { %41309 = vst [vmem:[#allocation62_spill] sm:$0xff] %v37710_v9  ;;  %v22400_v56 = vsub.f32 %v37699_v40, %v22399_v0  ;;  %v37721_v22 = vpack.c.bf16 %v22399_v0, %v22387_v33  ;;  %v24754_v24 = vmul.f32 %v33303_v1, %v37441_v36  ;;  %v24756_v58 = vadd.f32 %v24752_v16, %v37443_v38  ;;  %v33309_v0 = vld [vmem:[%s36235_s4 + $0xe8] sm:$0xff]  ;;  %v33311_v40 = vld [vmem:[%s36235_s4 + $0xf8] sm:$0xff] }
 0x3cb   : > { %41310 = vst [vmem:[#allocation63_spill] sm:$0xff] %v37717_v17  ;;  %v22278_v31 = vand.u32 4294901760, %v22245_v29  ;;  %v37723_v18 = vsub.f32 %v22243_v26, %v22274_v27  ;;  %v22389_v51 = vand.u32 4294901760, %v22388_v39  ;;  %v24751_v9 = vmul.f32 %v33300_v59, %v37398_v62 }
 0x3cc   : > { %41311 = vst [vmem:[#allocation64_spill] sm:$0xff] %v37721_v22  ;;  %v22401_v47 = vand.u32 4294901760, %v22400_v56  ;;  %v24753_v35 = vmul.f32 %v33302_v19, %v37431_v28  ;;  %10018 = vmatmul.mubr.f32.gmra.mrb[12].mxu0 %v37384_v3  ;;  %v24758_v26 = vadd.f32 %v24754_v24, %v37465_v60  ;;  %v24784_v56 = vand.u32 4294901760, %v24756_v58 }
 0x3cd   : > { %41312 = vst [vmem:[#allocation65_spill] sm:$0xff] %v37723_v18  ;;  %v37730_v32 = vpack.c.bf16 %v22278_v31, %v22274_v27  ;;  %v37732_v43 = vsub.f32 %v22245_v29, %v22278_v31  ;;  %v22393_v33 = vand.u32 4294901760, %v37723_v18  ;;  %10092 = vmatprep.mubr.f32.mxu0 %v41276_v20  ;;  %v24755_v1 = vadd.f32 %v24751_v9, %v37429_v21 }
 0x3ce   : > { %v37738_v39 = vpack.c.bf16 %v22401_v47, %v22389_v51  ;;  %v24757_v16 = vadd.f32 %v24753_v35, %v37461_v55  ;;  %v24788_v19 = vand.u32 4294901760, %v24758_v26  ;;  %v37746_v31 = vsub.f32 %v24756_v58, %v24784_v56 }
 0x3cf   : > { %41313 = vst [vmem:[#allocation66_spill] sm:$0xff] %v37730_v32  ;;  %41314 = vst [vmem:[#allocation67_spill] sm:$0xff] %v37732_v43  ;;  %v22394_v27 = vsub.f32 %v37723_v18, %v22393_v33  ;;  %v22405_v29 = vand.u32 4294901760, %v37732_v43  ;;  %v24786_v24 = vand.u32 4294901760, %v24755_v1  ;;  %v27264_v51 = vmul.f32 %v33309_v0, %v37405_v5 }
 0x3d0   : > { %41315 = vst [vmem:[#allocation68_spill] sm:$0xff] %v37738_v39  ;;  %41316 = vst [vmem:[#allocation69_spill] sm:$0xff] %v37746_v31  ;;  %v24790_v22 = vand.u32 4294901760, %v24757_v16  ;;  %10096 = vmatmul.mubr.f32.vlgmr.msra.gmra.mrb[6].mxu0 %v37375_v8  ;;  %v37754_v39 = vpack.c.bf16 %v24788_v19, %v24784_v56  ;;  %v37758_v58 = vsub.f32 %v24758_v26, %v24788_v19  ;;  %v24899_v5 = vand.u32 4294901760, %v37746_v31 }
 0x3d1   : > { %v22395_v47 = vand.u32 4294901760, %v22394_v27  ;;  %v22406_v9 = vsub.f32 %v37732_v43, %v22405_v29  ;;  %v37752_v35 = vpack.c.bf16 %v22405_v29, %v22393_v33  ;;  %33727 = vmatpush1.bf16.msra.mxu0 %v37510_v11  ;;  %10101 = vmatprep.mubr.f32.mxu0 %v41276_v20  ;;  %v37762_v18 = vsub.f32 %v24755_v1, %v24786_v24 }
 0x3d2   : > { %41318 = vst [vmem:[#allocation71_spill] sm:$0xff] %v37754_v39  ;;  %41319 = vst [vmem:[#allocation72_spill] sm:$0xff] %v37758_v58  ;;  %v37760_v59 = vpack.c.bf16 %v24790_v22, %v24786_v24  ;;  %33729 = vmatprep.subr.bf16.mxu0 %v37494_v37  ;;  %v37766_v0 = vsub.f32 %v24757_v16, %v24790_v22  ;;  %v27266_v56 = vmul.f32 %v33311_v40, %v37441_v36  ;;  %v33308_v22 = vld [vmem:[%s36235_s4 + $0xe0] sm:$0xff]  ;;  %v33310_v40 = vld [vmem:[%s36235_s4 + $0xf0] sm:$0xff]  ;;  %s33323_s4 = sshll.u32 %s36059_s24, 9  ;;  %s35989_s24 = scalar_lea.vmem %s41004_s18, 512 }
 0x3d3   : > { %41317 = vst [vmem:[#allocation70_spill] sm:$0xff] %v37752_v35  ;;  %41321 = vst [vmem:[#allocation74_spill] sm:$0xff] %v37762_v18  ;;  %v22407_v33 = vand.u32 4294901760, %v22406_v9  ;;  %v27268_v11 = vadd.f32 %v27264_v51, %v37443_v38  ;;  %v24900_v26 = vsub.f32 %v37746_v31, %v24899_v5  ;;  %v24911_v27 = vand.u32 4294901760, %v37758_v58  ;;  %s41009_s20 = scalar_lea.hbm %s41075_s16, %s33323_s4  ;;  %p35990_p12 = scmp.ne.s32.totalorder %s41004_s18, %s35989_s24 }
 0x3d4   : > { %41320 = vst [vmem:[#allocation73_spill] sm:$0xff] %v37760_v59  ;;  %41322 = vst [vmem:[#allocation75_spill] sm:$0xff] %v37766_v0  ;;  %v24905_v1 = vand.u32 4294901760, %v37762_v18  ;;  %10105 = vmatmul.mubr.f32.gmra.mrb[8].mxu0 %v37378_v46  ;;  %v24917_v37 = vand.u32 4294901760, %v37766_v0  ;;  %v27270_v38 = vadd.f32 %v27266_v56, %v37465_v60  ;;  %v27263_v60 = vmul.f32 %v33308_v22, %v37398_v62  ;;  %p35997_p2 = scmp.lt.s32.totalorder %s35995_s21, %s35989_s24 }
 0x3d5   : > { %v37776_v19 = vpack.c.bf16 %v22407_v33, %v22395_v47  ;;  %10110 = vmatprep.mubr.f32.mxu0 %v41276_v20  ;;  %v24901_v16 = vand.u32 4294901760, %v24900_v26  ;;  %v24912_v24 = vsub.f32 %v37758_v58, %v24911_v27  ;;  %v37787_v9 = vpack.c.bf16 %v24911_v27, %v24899_v5  ;;  %p35991_p13 = pnand %p35990_p12, %p36199_p4 }
 0x3d6   : > { %v24906_v51 = vsub.f32 %v37762_v18, %v24905_v1  ;;  %v24918_v47 = vsub.f32 %v37766_v0, %v24917_v37  ;;  %v37790_v33 = vpack.c.bf16 %v24917_v37, %v24905_v1  ;;  %v27296_v29 = vand.u32 4294901760, %v27268_v11  ;;  %p35998_p3 = por %p35997_p2, %p35996_p1 }
 0x3d7   : > { %41323 = vst [vmem:[#allocation76_spill] sm:$0xff] %v37776_v19  ;;  %41324 = vst [vmem:[#allocation77_spill] sm:$0xff] %v37787_v9  ;;  %v27300_v31 = vand.u32 4294901760, %v27270_v38  ;;  %v24913_v36 = vand.u32 4294901760, %v24912_v24  ;;  %v27265_v56 = vmul.f32 %v33310_v40, %v37431_v28  ;;  %v27267_v1 = vadd.f32 %v27263_v60, %v37429_v21  ;;  %p35992_p0 = pneg %p35991_p13 }
 0x3d8   : > { %41325 = vst [vmem:[#allocation78_spill] sm:$0xff] %v37790_v33  ;;  %v24907_v59 = vand.u32 4294901760, %v24906_v51  ;;  %10114 = vmatmul.mubr.f32.gmra.mrb[10].mxu0 %v37381_v52  ;;  %v24919_v26 = vand.u32 4294901760, %v24918_v47  ;;  %v37797_v18 = vsub.f32 %v27268_v11, %v27296_v29 }
 0x3d9   : > { %v37795_v58 = vpack.c.bf16 %v27300_v31, %v27296_v29  ;;  %v37799_v5 = vsub.f32 %v27270_v38, %v27300_v31  ;;  %10119 = vmatprep.mubr.f32.mxu0 %v41276_v20  ;;  %v37802_v27 = vpack.c.bf16 %v24913_v36, %v24901_v16  ;;  %v27269_v37 = vadd.f32 %v27265_v56, %v37461_v55  ;;  %p35999_p5 = pnand %p35998_p3, %p35992_p0 }
 0x3da   : > { %41327 = vst [vmem:[#allocation80_spill] sm:$0xff] %v37797_v18  ;;  %v37806_v62 = vpack.c.bf16 %v24919_v26, %v24907_v59  ;;  %v27411_v28 = vand.u32 4294901760, %v37797_v18  ;;  %v27298_v29 = vand.u32 4294901760, %v27267_v1 }
 0x3db   : > { %41326 = vst [vmem:[#allocation79_spill] sm:$0xff] %v37795_v58  ;;  %41328 = vst [vmem:[#allocation81_spill] sm:$0xff] %v37799_v5  ;;  %v27423_v22 = vand.u32 4294901760, %v37799_v5  ;;  %v27302_v31 = vand.u32 4294901760, %v27269_v37 }
 0x3dc   : > { %41329 = vst [vmem:[#allocation82_spill] sm:$0xff] %v37802_v27  ;;  %41330 = vst [vmem:[#allocation83_spill] sm:$0xff] %v37806_v62  ;;  %10123 = vmatmul.mubr.f32.gmra.mrb[12].mxu0 %v37393_v57  ;;  %v27412_v36 = vsub.f32 %v37797_v18, %v27411_v28  ;;  %v37820_v59 = vsub.f32 %v27267_v1, %v27298_v29 }
 0x3dd   : > { %v27424_v38 = vsub.f32 %v37799_v5, %v27423_v22  ;;  %v37815_v21 = vpack.c.bf16 %v27423_v22, %v27411_v28  ;;  %10205 = vmatprep.mubr.f32.mxu0 %v41276_v20  ;;  %v37818_v55 = vpack.c.bf16 %v27302_v31, %v27298_v29  ;;  %v37822_v40 = vsub.f32 %v27269_v37, %v27302_v31 }
 0x3de   : > { %41333 = vst [vmem:[#allocation86_spill] sm:$0xff] %v37820_v59  ;;  %v27413_v16 = vand.u32 4294901760, %v27412_v36  ;;  %v27417_v51 = vand.u32 4294901760, %v37820_v59 }
 0x3df   : > { %41331 = vst [vmem:[#allocation84_spill] sm:$0xff] %v37815_v21  ;;  %41332 = vst [vmem:[#allocation85_spill] sm:$0xff] %v37818_v55  ;;  %v27425_v24 = vand.u32 4294901760, %v27424_v38  ;;  %v27429_v47 = vand.u32 4294901760, %v37822_v40 }
 0x3e0   : > { %41334 = vst [vmem:[#allocation87_spill] sm:$0xff] %v37822_v40  ;;  %10207 = vmatmul.mubr.f32.vlgmr.msra.gmra.mrb[6].mxu0 %v37354_v42  ;;  %v27418_v26 = vsub.f32 %v37820_v59, %v27417_v51  ;;  %v9669_v59 = vpop.permute.xlu1 %9668 }
 0x3e1   : > { %v37829_v56 = vpack.c.bf16 %v27425_v24, %v27413_v16  ;;  %33731 = vmatpush1.bf16.msra.mxu0 %v37487_v23  ;;  %10212 = vmatprep.mubr.f32.mxu0 %v41276_v20  ;;  %v27430_v1 = vsub.f32 %v37822_v40, %v27429_v47  ;;  %v37835_v37 = vpack.c.bf16 %v27429_v47, %v27417_v51 }
 0x3e2   : > { %v27419_v28 = vand.u32 4294901760, %v27418_v26  ;;  %v9664_v26 = vpop.permute.xlu0 %9663 }
 0x3e3   : > { %41335 = vst [vmem:[#allocation88_spill] sm:$0xff] %v37829_v56  ;;  %41336 = vst [vmem:[#allocation89_spill] sm:$0xff] %v37835_v37  ;;  %v27431_v22 = vand.u32 4294901760, %v27430_v1  ;;  %v9631_v1 = vld [vmem:[%s41066_s7] sm:$0xf] }
 0x3e4   : > { %10214 = vmatmul.mubr.f32.gmra.mrb[8].mxu0 %v37356_v45  ;;  %v10338_v21 = vsel %vm10336_vm3, %v9631_v1, 0 }
 0x3e5   : > { %10219 = vmatprep.mubr.f32.mxu0 %v41276_v20  ;;  %v37839_v29 = vpack.c.bf16 %v27431_v22, %v27419_v28  ;;  %v37862_v55 = vand.u32 4294901760, %v10338_v21 }
 0x3e7   : > { %41337 = vst [vmem:[#allocation90_spill] sm:$0xff] %v37839_v29 }
 0x3e8   : > { %10221 = vmatmul.mubr.f32.gmra.mrb[10].mxu0 %v37358_v30 }
 0x3e9   : > { %10226 = vmatprep.mubr.f32.mxu0 %v41276_v20 }
 0x3ec   : > { %10228 = vmatmul.mubr.f32.gmra.mrb[12].mxu0 %v37372_v4 }
 0x3ed   : > { %10302 = vmatprep.mubr.f32.mxu0 %v41276_v20 }
 0x3f0   : > { %10304 = vmatmul.mubr.f32.vlgmr.msra.gmra.mrb[6].mxu0 %v37354_v42 }
 0x3f1   : > { %10309 = vmatprep.mubr.f32.mxu0 %v41276_v20 }
 0x3f4   : > { %10311 = vmatmul.mubr.f32.gmra.mrb[8].mxu0 %v37356_v45 }
 0x3f5   : > { %10316 = vmatprep.mubr.f32.mxu0 %v41276_v20 }
 0x3f8   : > { %10318 = vmatmul.mubr.f32.gmra.mrb[10].mxu0 %v37358_v30 }
 0x3f9   : > { %10323 = vmatprep.mubr.f32.mxu0 %v41276_v20 }
 0x3fc   : > { %10325 = vmatmul.mubr.f32.gmra.mrb[12].mxu0 %v37372_v4 }
 0x3fd   : > { %11601 = vmatprep.mubr.f32.mxu0 %v41276_v20 }
 0x47b   : > { %v9768_v23 = vpop.f32.mrb[10].mxu1 }
 0x47c   : > { %v9770_v31 = vpop.f32.mrb[11].mxu1  ;;  %v9769_v28 = vadd.f32 %v9768_v23, %v9664_v26 }
 0x47d   : > { %v9771_v22 = vadd.f32 %v9770_v31, %v9664_v26 }
 0x47f   : > { %v9779_v36 = vpop.f32.mrb[12].mxu1 }
 0x480   : > { %v9781_v38 = vpop.f32.mrb[13].mxu1  ;;  %v9780_v18 = vadd.f32 %v9779_v36, %v9669_v59 }
 0x481   : > { %v9782_v5 = vadd.f32 %v9781_v38, %v9669_v59 }
 0x483   : > { %v9790_v16 = vpop.f32.mrb[14].mxu1 }
 0x484   : > { %v9792_v24 = vpop.f32.mrb[15].mxu1 }
 0x487   : > { %v9801_v51 = vpop.f32.mrb[16].mxu1 }
 0x488   : > { %v9803_v47 = vpop.f32.mrb[17].mxu1 }
 0x4c3   : > { %v10305_v60 = vpop.f32.mrb[6].mxu0 }
 0x4c4   : > { %v37856_v11 = vadd.f32 %v10305_v60, %v9769_v28  ;;  %v10307_v37 = vpop.f32.mrb[7].mxu0  ;;  %v9674_v60 = vpop.permute.xlu0 %9673 }
 0x4c5   : > { %v37859_v40 = vadd.f32 %v10307_v37, %v9771_v22  ;;  %v9791_v37 = vadd.f32 %v9790_v16, %v9674_v60  ;;  %v9793_v59 = vadd.f32 %v9792_v24, %v9674_v60  ;;  %v37875_v22 = vsub.f32 %v10338_v21, %v37862_v55 }
 0x4c6   : > { %v10342_v58 = vand.u32 4294901760, %v37856_v11 }
 0x4c7   : > { %v10340_v29 = vand.u32 4294901760, %v37859_v40  ;;  %v10312_v56 = vpop.f32.mrb[8].mxu0 }
 0x4c8   : > { %v37865_v23 = vadd.f32 %v10312_v56, %v9780_v18  ;;  %v10314_v31 = vpop.f32.mrb[9].mxu0  ;;  %v37878_v18 = vsub.f32 %v37856_v11, %v10342_v58 }
 0x4c9   : > { %v37868_v26 = vsub.f32 %v37859_v40, %v10340_v29  ;;  %v37870_v1 = vadd.f32 %v10314_v31, %v9782_v5  ;;  %v9679_v31 = vpop.permute.xlu1 %9678 }
 0x4ca   : > { %v10346_v36 = vand.u32 4294901760, %v37865_v23  ;;  %v9802_v9 = vadd.f32 %v9801_v51, %v9679_v31 }
 0x4cb   : > { %v10344_v38 = vand.u32 4294901760, %v37870_v1  ;;  %v10319_v28 = vpop.f32.mrb[10].mxu0  ;;  %v41121_v21 = vand.u32 4294901760, %v37868_v26 }
 0x4cc   : > { %v37881_v56 = vsub.f32 %v37865_v23, %v10346_v36  ;;  %v37883_v33 = vadd.f32 %v10319_v28, %v9791_v37  ;;  %v10321_v5 = vpop.f32.mrb[11].mxu0  ;;  %v37893_v0 = vpack.c.bf16 %v10346_v36, %v10342_v58  ;;  %v9804_v37 = vadd.f32 %v9803_v47, %v9679_v31 }
 0x4cd   : > { %v37886_v16 = vsub.f32 %v37870_v1, %v10344_v38  ;;  %v37888_v24 = vadd.f32 %v10321_v5, %v9793_v59  ;;  %v37890_v60 = vpack.c.bf16 %v10344_v38, %v10340_v29  ;;  %v37901_v29 = vand.u32 4294901760, %v37875_v22 }
 0x4ce   : > { %41338 = vst [vmem:[#allocation91_spill] sm:$0xff] %v37883_v33  ;;  %v41124_v62 = vand.u32 4294901760, %v37881_v56  ;;  %v10350_v27 = vand.u32 4294901760, %v37883_v33  ;;  %v10427_v31 = vsub.f32 %v37868_v26, %v41121_v21  ;;  %v41342_v21 = vand.u32 4294901760, %v37878_v18 }
 0x4cf   : > { %41339 = vst [vmem:[#allocation92_spill] sm:$0xff] %v37888_v24  ;;  %v10348_v28 = vand.u32 4294901760, %v37888_v24  ;;  %v10326_v39 = vpop.f32.mrb[12].mxu0  ;;  %33733 = vmatprep.subr.bf16.mxu1 %v37890_v60  ;;  %v41122_v59 = vand.u32 4294901760, %v37886_v16 }
 0x4d0   : > { %v37905_v58 = vsub.f32 %v37883_v33, %v10350_v27  ;;  %v37907_v51 = vadd.f32 %v10326_v39, %v9802_v9  ;;  %v10328_v36 = vpop.f32.mrb[13].mxu0  ;;  %33735 = vmatpush1.bf16.msra.mxu1 %v37893_v0  ;;  %v10445_v39 = vsub.f32 %v37881_v56, %v41124_v62  ;;  %v10433_v19 = vsub.f32 %v37878_v18, %v41342_v21 }
 0x4d1   : > { %v37911_v47 = vsub.f32 %v37888_v24, %v10348_v28  ;;  %v37913_v5 = vadd.f32 %v10328_v36, %v9804_v37  ;;  %v10439_v38 = vsub.f32 %v37886_v16, %v41122_v59  ;;  %v10416_v37 = vsub.f32 %v37875_v22, %v37901_v29 }
 0x4d2   : > { %41340 = vst [vmem:[#allocation93_spill] sm:$0xff] %v37907_v51  ;;  %v10354_v9 = vand.u32 4294901760, %v37907_v51  ;;  %v10456_v59 = vand.u32 4294901760, %v37905_v58  ;;  %v10428_v25 = vand.u32 4294901760, %v10427_v31  ;;  %v10434_v33 = vand.u32 4294901760, %v10433_v19 }
 0x4d3   : > { %41341 = vst [vmem:[#allocation94_spill] sm:$0xff] %v37913_v5  ;;  %v10352_v35 = vand.u32 4294901760, %v37913_v5  ;;  %v10440_v43 = vand.u32 4294901760, %v10439_v38  ;;  %v10450_v36 = vand.u32 4294901760, %v37911_v47  ;;  %v10446_v38 = vand.u32 4294901760, %v10445_v39 }
 0x4d4   : > { %v10467_v32 = vsub.f32 %v37907_v51, %v10354_v9  ;;  %v33738_v13 = vpack.c.bf16 %v10354_v9, %v10350_v27  ;;  %v37935_v61 = vand.u32 4294901760, %v10416_v37  ;;  %v10457_v21 = vsub.f32 %v37905_v58, %v10456_v59 }
 0x4d5   : > { %v10461_v62 = vsub.f32 %v37913_v5, %v10352_v35  ;;  %v33736_v17 = vpack.c.bf16 %v10352_v35, %v10348_v28  ;;  %v33740_v34 = vpack.c.bf16 %v10440_v43, %v10428_v25  ;;  %v10451_v10 = vsub.f32 %v37911_v47, %v10450_v36 }
 0x4d6   : > { %v10468_v53 = vand.u32 4294901760, %v10467_v32  ;;  %v33742_v5 = vpack.c.bf16 %v10446_v38, %v10434_v33  ;;  %v10458_v25 = vand.u32 4294901760, %v10457_v21  ;;  %v33748_v39 = vpack.c.bf16 %v37886_v16, %v37868_v26 }
 0x4d7   : > { %33737 = vmatprep.subr.bf16.mxu1 %v33736_v17  ;;  %v10462_v41 = vand.u32 4294901760, %v10461_v62  ;;  %v10452_v27 = vand.u32 4294901760, %v10451_v10  ;;  %v33752_v10 = vpack.c.bf16 %v10461_v62, %v37911_v47  ;;  %v33754_v19 = vpack.c.bf16 %v10467_v32, %v37905_v58 }
 0x4d8   : > { %v10469_v24 = vsub.f32 %v10467_v32, %v10468_v53  ;;  %33739 = vmatpush1.bf16.msra.mxu1 %v33738_v13  ;;  %v41343_v33 = vand.u32 4294901760, %v37868_v26  ;;  %v41346_v32 = vand.u32 4294901760, %v37881_v56  ;;  %v37973_v26 = vpop.permute.xlu0 %10333 }
 0x4d9   : > { %33741 = vmatprep.subr.bf16.mxu1 %v33740_v34  ;;  %v10463_v51 = vsub.f32 %v10461_v62, %v10462_v41  ;;  %v33750_v34 = vpack.c.bf16 %v37881_v56, %v37878_v18  ;;  %v41344_v62 = vand.u32 4294901760, %v37886_v16  ;;  %v33768_v47 = vpack.c.bf16 %v10462_v41, %v10450_v36  ;;  %v9633_v41 = vld [vmem:[%s41068_s9] sm:$0xff]  ;;  %41347 = vst [vmem:[#allocation95_spill] sm:$0xff] %v37973_v26  ;;  %v9635_v36 = vld [vmem:[%s41068_s9 + $0x10] sm:$0xff] }
 0x4da   : > { %v10470_v35 = vand.u32 4294901760, %v10469_v24 }
 0x4db   : > { %10418 = vmatmul.mubr.f32.vlgmr.msra.gmra.mrb[18].mxu1 %v37935_v61  ;;  %v10464_v28 = vand.u32 4294901760, %v10463_v51  ;;  %v33764_v24 = vpack.c.bf16 %v41344_v62, %v41343_v33  ;;  %v41345_v51 = vand.u32 4294901760, %v37878_v18 }
 0x4dc   : > { %33743 = vmatpush1.bf16.msra.mxu1 %v33742_v5  ;;  %10528 = vmatprep.mubr.f32.mxu1 %v41276_v20  ;;  %v33746_v31 = vpack.c.bf16 %v10470_v35, %v10458_v25  ;;  %v33770_v5 = vpack.c.bf16 %v10468_v53, %v10456_v59  ;;  %v10900_v53 = vsel %vm8543_vm1, %v9633_v41, 0 }
 0x4dd   : > { %v33744_v43 = vpack.c.bf16 %v10464_v28, %v10452_v27  ;;  %v33766_v58 = vpack.c.bf16 %v41346_v32, %v41345_v51  ;;  %v37984_v16 = vand.u32 4294901760, %v10900_v53 }
 0x4df   : > { %33745 = vmatprep.subr.bf16.mxu1 %v33744_v43  ;;  %v37997_v25 = vsub.f32 %v10900_v53, %v37984_v16  ;;  %v9636_v43 = vld [vmem:[%s41068_s9 + $0x18] sm:$0xff] }
 0x4e0   : > { %33747 = vmatpush1.bf16.msra.mxu1 %v33746_v31  ;;  %v10906_v31 = vsel %vm8543_vm1, %v9635_v36, 0 }
 0x4e1   : > { %33749 = vmatprep.subr.bf16.mxu1 %v33748_v39 }
 0x4e3   : > { %10530 = vmatmul.mubr.f32.vlgmr.msra.gmra.mrb[18].mxu1 %v37862_v55 }
 0x4e4   : > { %33751 = vmatpush1.bf16.msra.mxu1 %v33750_v34  ;;  %10616 = vmatprep.mubr.f32.mxu1 %v41276_v20  ;;  %v10909_v34 = vsel %vm8543_vm1, %v9636_v43, 0 }
 0x4e5   : > { %33753 = vmatprep.subr.bf16.mxu1 %v33752_v10  ;;  %v38007_v10 = vand.u32 4294901760, %v37997_v25  ;;  %v38014_v62 = vand.u32 4294901760, %v10909_v34 }
 0x4e7   : > { %v10987_v51 = vsub.f32 %v37997_v25, %v38007_v10 }
 0x4e8   : > { %33755 = vmatpush1.bf16.msra.mxu1 %v33754_v19  ;;  %v38009_v19 = vand.u32 4294901760, %v10906_v31 }
 0x4e9   : > { %33757 = vmatprep.subr.bf16.mxu1 %v37890_v60 }
 0x4eb   : > { %10619 = vmatmul.mubr.f32.vlgmr.msra.gmra.mrb[18].mxu1 %v37875_v22 }
 0x4ec   : > { %33759 = vmatpush1.bf16.msra.mxu1 %v37893_v0  ;;  %10697 = vmatprep.mubr.f32.mxu1 %v41276_v20 }
 0x4ed   : > { %33761 = vmatprep.subr.bf16.mxu1 %v33736_v17 }
 0x4f0   : > { %33763 = vmatpush1.bf16.msra.mxu1 %v33738_v13 }
 0x4f1   : > { %33765 = vmatprep.subr.bf16.mxu1 %v33764_v24  ;;  %v38017_v24 = vsub.f32 %v10906_v31, %v38009_v19 }
 0x4f3   : > { %10701 = vmatmul.mubr.f32.vlgmr.msra.gmra.mrb[18].mxu1 %v37901_v29 }
 0x4f4   : > { %33767 = vmatpush1.bf16.msra.mxu1 %v33766_v58  ;;  %10795 = vmatprep.mubr.f32.mxu1 %v41276_v20 }
 0x4f5   : > { %33769 = vmatprep.subr.bf16.mxu1 %v33768_v47 }
 0x4f8   : > { %33771 = vmatpush1.bf16.msra.mxu1 %v33770_v5  ;;  %v38025_v5 = vsub.f32 %v10909_v34, %v38014_v62 }
 0x4f9   : > { %33773 = vmatprep.subr.bf16.mxu1 %v37890_v60 }
 0x4fb   : > { %10797 = vmatmul.mubr.f32.vlgmr.msra.gmra.mrb[18].mxu1 %v37862_v55 }
 0x4fc   : > { %33775 = vmatpush1.bf16.msra.mxu1 %v37893_v0  ;;  %10875 = vmatprep.mubr.f32.mxu1 %v41276_v20 }
 0x4fd   : > { %33777 = vmatprep.subr.bf16.mxu1 %v33736_v17 }
 0x500   : > { %33779 = vmatpush1.bf16.msra.mxu1 %v33738_v13  ;;  %v9634_v13 = vld [vmem:[%s41068_s9 + $0x8] sm:$0xff] }
 0x501   : > { %v10903_v35 = vsel %vm8543_vm1, %v9634_v13, 0 }
 0x502   : > { %v38003_v39 = vand.u32 4294901760, %v10903_v35 }
 0x503   : > { %10877 = vmatmul.mubr.f32.vlgmr.msra.gmra.mrb[18].mxu1 %v37862_v55 }
 0x504   : > { %10983 = vmatprep.mubr.f32.mxu1 %v41276_v20  ;;  %v38012_v33 = vsub.f32 %v10903_v35, %v38003_v39 }
 0x506   : > { %v38022_v58 = vand.u32 4294901760, %v38012_v33 }
 0x508   : > { %v10998_v43 = vsub.f32 %v38012_v33, %v38022_v58 }
 0x5d6   : > { %v10878_v18 = vpop.f32.mrb[18].mxu1 }
 0x5d7   : > { %v37976_v56 = vadd.f32 %v10878_v18, %v37973_v26  ;;  %v10880_v0 = vpop.f32.mrb[19].mxu1 }
 0x5d8   : > { %v37979_v17 = vadd.f32 %v10880_v0, %v37973_v26  ;;  %v38029_v0 = vand.u32 4294901760, %v38017_v24 }
 0x5d9   : > { %41348 = vst [vmem:[#allocation96_spill] sm:$0xff] %v37976_v56  ;;  %v10883_v60 = vsub.f32 -inf, %v37976_v56  ;;  %v10889_v59 = vsub.f32 %v37976_v56, %v37976_v56 }
 0x5da   : > { %41349 = vst [vmem:[#allocation97_spill] sm:$0xff] %v37979_v17  ;;  %v10884_v9 = vsub.f32 -inf, %v37979_v17  ;;  %v10890_v37 = vsub.f32 %v37979_v17, %v37979_v17 }
 0x5db   : > { %v10885_v38 = vmul.f32 1.442695, %v10883_v60  ;;  %v10891_v21 = vmul.f32 1.442695, %v10889_v59  ;;  %v38034_v59 = vand.u32 4294901760, %v10987_v51 }
 0x5dc   : > { %v10887_v27 = vmul.f32 1.442695, %v10884_v9  ;;  %v10893_v28 = vmul.f32 1.442695, %v10890_v37 }
 0x5dd   : > { %35917 = vpow2.f32 %v10885_v38  ;;  %41350 = vst [vmem:[#allocation98_spill] sm:$0xff] %v38034_v59 }
 0x5de   : > { %35919 = vpow2.f32 %v10891_v21 }
 0x5df   : > { %35921 = vpow2.f32 %v10887_v27 }
 0x5e0   : > { %35923 = vpow2.f32 %v10893_v28 }
 0x5e7   : > { %v35918_v32 = vpop.eup %35917 }
 0x5e8   : > { %v35920_v47 = vpop.eup %35919  ;;  %v10912_v41 = vsel %vm8550_vm2, %v35918_v32, 0  ;;  %v10895_v53 = vmul.f32 0.0, %v35918_v32 }
 0x5e9   : > { %v35922_v18 = vpop.eup %35921  ;;  %v38031_v13 = vand.u32 4294901760, %v10912_v41  ;;  %v11530_v60 = vsel %vm8550_vm2, %v35920_v47, 0 }
 0x5ea   : > { %v35924_v9 = vpop.eup %35923  ;;  %v10915_v37 = vsel %vm8550_vm2, %v35922_v18, 0  ;;  %v38037_v36 = vand.u32 4294901760, %v11530_v60  ;;  %v38039_v38 = vadd.f32 %v35920_v47, %v10895_v53  ;;  %v10896_v21 = vmul.f32 0.0, %v35922_v18 }
 0x5eb   : > { %v38041_v35 = vand.u32 4294901760, %v10915_v37  ;;  %v11533_v27 = vsel %vm8550_vm2, %v35924_v9, 0  ;;  %v38045_v28 = vsub.f32 %v10912_v41, %v38031_v13  ;;  %v38068_v18 = vand.u32 4294901760, %v38025_v5 }
 0x5ec   : > { %41351 = vst [vmem:[#allocation99_spill] sm:$0xff] %v38039_v38  ;;  %v38049_v31 = vand.u32 4294901760, %v11533_v27  ;;  %v38052_v34 = vsub.f32 %v11530_v60, %v38037_v36  ;;  %v38054_v51 = vadd.f32 %v35924_v9, %v10896_v21  ;;  %v38072_v60 = vand.u32 4294901760, %v10998_v43 }
 0x5ed   : > { %10918 = vmatprep.subr.mxu1 %v38041_v35  ;;  %v38058_v32 = vsub.f32 %v10915_v37, %v38041_v35  ;;  %v41139_v47 = vand.u32 4294901760, %v38045_v28  ;;  %v11009_v37 = vsub.f32 %v38017_v24, %v38029_v0  ;;  %v11020_v56 = vsub.f32 %v38025_v5, %v38068_v18 }
 0x5ee   : > { %41352 = vst [vmem:[#allocation100_spill] sm:$0xff] %v38054_v51  ;;  %11536 = vmatprep.subr.mxu0 %v38049_v31  ;;  %10920 = vmatpush1.msra.mxu1 %v38031_v13  ;;  %v38064_v41 = vsub.f32 %v11533_v27, %v38049_v31  ;;  %v41142_v53 = vand.u32 4294901760, %v38052_v34 }
 0x5ef   : > { %11538 = vmatpush1.msra.mxu0 %v38037_v36  ;;  %10989 = vmatmul.mubr.f32.vlgmr.msra.gmra.mrb[20].mxu1 %v38034_v59  ;;  %v11030_v9 = vand.u32 4294901760, %v38058_v32  ;;  %v11037_v27 = vsub.f32 %v38045_v28, %v41139_v47  ;;  %v38090_v17 = vand.u32 4294901760, %v11009_v37  ;;  %v38098_v37 = vand.u32 4294901760, %v11020_v56 }
 0x5f0   : > { %11607 = vmatmul.mubr.f32.vlgmr.msra.gmra.mrb[14].mxu0 %v38034_v59  ;;  %10994 = vmatprep.mubr.f32.mxu1 %v41276_v20  ;;  %v11648_v21 = vand.u32 4294901760, %v38064_v41  ;;  %v11655_v51 = vsub.f32 %v38052_v34, %v41142_v53  ;;  %v41354_v56 = vand.u32 4294901760, %v38052_v34 }
 0x5f1   : > { %11612 = vmatprep.mubr.f32.mxu0 %v41276_v20  ;;  %v11031_v43 = vsub.f32 %v38058_v32, %v11030_v9  ;;  %v11038_v26 = vand.u32 4294901760, %v11037_v27 }
 0x5f2   : > { %v11649_v38 = vsub.f32 %v38064_v41, %v11648_v21  ;;  %v11656_v53 = vand.u32 4294901760, %v11655_v51 }
 0x5f3   : > { %11000 = vmatmul.mubr.f32.gmra.mrb[22].mxu1 %v38072_v60  ;;  %v11032_v59 = vand.u32 4294901760, %v11031_v43 }
 0x5f4   : > { %11618 = vmatmul.mubr.f32.gmra.mrb[16].mxu0 %v38072_v60  ;;  %v11650_v47 = vand.u32 4294901760, %v11649_v38  ;;  %11005 = vmatprep.mubr.f32.mxu1 %v41276_v20 }
 0x5f5   : > { %11033 = vmatprep.subr.mxu1 %v11032_v59  ;;  %11623 = vmatprep.mubr.f32.mxu0 %v41276_v20  ;;  %v41357_v59 = vld [vmem:[#allocation29_spill] sm:$0xff] }
 0x5f6   : > { %11651 = vmatprep.subr.mxu0 %v11650_v47  ;;  %11039 = vmatpush1.msra.mxu1 %v11038_v26  ;;  %v41353_v26 = vand.u32 4294901760, %v38045_v28 }
 0x5f7   : > { %11657 = vmatpush1.msra.mxu0 %v11656_v53  ;;  %11011 = vmatmul.mubr.f32.gmra.mrb[24].mxu1 %v38090_v17 }
 0x5f8   : > { %11133 = vmatprep.subr.mxu1 %v38058_v32  ;;  %11629 = vmatmul.mubr.f32.gmra.mrb[18].mxu0 %v38090_v17 }
 0x5f9   : > { %11751 = vmatprep.subr.mxu0 %v38064_v41  ;;  %11016 = vmatprep.mubr.f32.mxu1 %v41276_v20 }
 0x5fa   : > { %11634 = vmatprep.mubr.f32.mxu0 %v41276_v20 }
 0x5fb   : > { %11022 = vmatmul.mubr.f32.gmra.mrb[26].mxu1 %v38098_v37 }
 0x5fc   : > { %11640 = vmatmul.mubr.f32.gmra.mrb[20].mxu0 %v38098_v37  ;;  %11102 = vmatprep.mubr.f32.mxu1 %v41276_v20 }
 0x5fd   : > { %11720 = vmatprep.mubr.f32.mxu0 %v41276_v20 }
 0x5ff   : > { %11104 = vmatmul.mubr.f32.vlgmr.msra.gmra.mrb[20].mxu1 %v37984_v16 }
 0x600   : > { %11136 = vmatpush1.msra.mxu1 %v38045_v28  ;;  %11722 = vmatmul.mubr.f32.vlgmr.msra.gmra.mrb[14].mxu0 %v37984_v16 }
 0x601   : > { %11754 = vmatpush1.msra.mxu0 %v38052_v34  ;;  %11233 = vmatprep.subr.mxu1 %v38041_v35 }
 0x602   : > { %11851 = vmatprep.subr.mxu0 %v38049_v31  ;;  %11109 = vmatprep.mubr.f32.mxu1 %v41276_v20 }
 0x603   : > { %11727 = vmatprep.mubr.f32.mxu0 %v41276_v20  ;;  %11111 = vmatmul.mubr.f32.gmra.mrb[22].mxu1 %v38003_v39 }
 0x604   : > { %11729 = vmatmul.mubr.f32.gmra.mrb[16].mxu0 %v38003_v39  ;;  %11116 = vmatprep.mubr.f32.mxu1 %v41276_v20 }
 0x605   : > { %11734 = vmatprep.mubr.f32.mxu0 %v41276_v20 }
 0x607   : > { %11118 = vmatmul.mubr.f32.gmra.mrb[24].mxu1 %v38009_v19 }
 0x608   : > { %11736 = vmatmul.mubr.f32.gmra.mrb[18].mxu0 %v38009_v19  ;;  %11123 = vmatprep.mubr.f32.mxu1 %v41276_v20 }
 0x609   : > { %11741 = vmatprep.mubr.f32.mxu0 %v41276_v20 }
 0x60b   : > { %11125 = vmatmul.mubr.f32.gmra.mrb[26].mxu1 %v38014_v62 }
 0x60c   : > { %11743 = vmatmul.mubr.f32.gmra.mrb[20].mxu0 %v38014_v62  ;;  %11199 = vmatprep.mubr.f32.mxu1 %v41276_v20 }
 0x60d   : > { %11817 = vmatprep.mubr.f32.mxu0 %v41276_v20 }
 0x60f   : > { %11202 = vmatmul.mubr.f32.vlgmr.msra.gmra.mrb[20].mxu1 %v37997_v25 }
 0x610   : > { %11235 = vmatpush1.msra.mxu1 %v38031_v13  ;;  %11820 = vmatmul.mubr.f32.vlgmr.msra.gmra.mrb[14].mxu0 %v37997_v25 }
 0x611   : > { %11853 = vmatpush1.msra.mxu0 %v38037_v36  ;;  %11338 = vmatprep.subr.mxu1 %v11030_v9 }
 0x612   : > { %11956 = vmatprep.subr.mxu0 %v11648_v21  ;;  %11207 = vmatprep.mubr.f32.mxu1 %v41276_v20 }
 0x613   : > { %11825 = vmatprep.mubr.f32.mxu0 %v41276_v20  ;;  %11210 = vmatmul.mubr.f32.gmra.mrb[22].mxu1 %v38012_v33 }
 0x614   : > { %11828 = vmatmul.mubr.f32.gmra.mrb[16].mxu0 %v38012_v33  ;;  %11215 = vmatprep.mubr.f32.mxu1 %v41276_v20 }
 0x615   : > { %11833 = vmatprep.mubr.f32.mxu0 %v41276_v20 }
 0x617   : > { %11218 = vmatmul.mubr.f32.gmra.mrb[24].mxu1 %v38017_v24 }
 0x618   : > { %11836 = vmatmul.mubr.f32.gmra.mrb[18].mxu0 %v38017_v24  ;;  %11223 = vmatprep.mubr.f32.mxu1 %v41276_v20 }
 0x619   : > { %11841 = vmatprep.mubr.f32.mxu0 %v41276_v20 }
 0x61b   : > { %11226 = vmatmul.mubr.f32.gmra.mrb[26].mxu1 %v38025_v5 }
 0x61c   : > { %11844 = vmatmul.mubr.f32.gmra.mrb[20].mxu0 %v38025_v5  ;;  %11298 = vmatprep.mubr.f32.mxu1 %v41276_v20 }
 0x61d   : > { %11916 = vmatprep.mubr.f32.mxu0 %v41276_v20 }
 0x61f   : > { %11302 = vmatmul.mubr.f32.vlgmr.msra.gmra.mrb[20].mxu1 %v38007_v10 }
 0x620   : > { %11342 = vmatpush1.msra.mxu1 %v41353_v26  ;;  %11920 = vmatmul.mubr.f32.vlgmr.msra.gmra.mrb[14].mxu0 %v38007_v10 }
 0x621   : > { %11960 = vmatpush1.msra.mxu0 %v41354_v56  ;;  %11435 = vmatprep.subr.mxu1 %v38041_v35 }
 0x622   : > { %12053 = vmatprep.subr.mxu0 %v38049_v31  ;;  %11307 = vmatprep.mubr.f32.mxu1 %v41276_v20 }
 0x623   : > { %11925 = vmatprep.mubr.f32.mxu0 %v41276_v20  ;;  %11311 = vmatmul.mubr.f32.gmra.mrb[22].mxu1 %v38022_v58 }
 0x624   : > { %11929 = vmatmul.mubr.f32.gmra.mrb[16].mxu0 %v38022_v58  ;;  %11316 = vmatprep.mubr.f32.mxu1 %v41276_v20 }
 0x625   : > { %11934 = vmatprep.mubr.f32.mxu0 %v41276_v20 }
 0x627   : > { %11320 = vmatmul.mubr.f32.gmra.mrb[24].mxu1 %v38029_v0 }
 0x628   : > { %11938 = vmatmul.mubr.f32.gmra.mrb[18].mxu0 %v38029_v0  ;;  %11325 = vmatprep.mubr.f32.mxu1 %v41276_v20 }
 0x629   : > { %11943 = vmatprep.mubr.f32.mxu0 %v41276_v20 }
 0x62b   : > { %11329 = vmatmul.mubr.f32.gmra.mrb[26].mxu1 %v38068_v18 }
 0x62c   : > { %11947 = vmatmul.mubr.f32.gmra.mrb[20].mxu0 %v38068_v18  ;;  %11405 = vmatprep.mubr.f32.mxu1 %v41276_v20 }
 0x62d   : > { %12023 = vmatprep.mubr.f32.mxu0 %v41276_v20 }
 0x62f   : > { %11407 = vmatmul.mubr.f32.vlgmr.msra.gmra.mrb[20].mxu1 %v37984_v16 }
 0x630   : > { %11437 = vmatpush1.msra.mxu1 %v38031_v13  ;;  %12025 = vmatmul.mubr.f32.vlgmr.msra.gmra.mrb[14].mxu0 %v37984_v16  ;;  %v41355_v13 = vld [vmem:[#allocation28_spill] sm:$0xff] }
 0x631   : > { %12055 = vmatpush1.msra.mxu0 %v38037_v36  ;;  %33781 = vmatprep.subr.bf16.mxu1 %v37497_v54  ;;  %v41358_v36 = vld [vmem:[#allocation26_spill] sm:$0xff] }
 0x632   : > { %11412 = vmatprep.mubr.f32.mxu1 %v41276_v20  ;;  %12030 = vmatprep.mubr.f32.mxu0 %v41276_v20  ;;  %v41359_v38 = vpack.c.bf16 %v41357_v59, %v41358_v36 }
 0x633   : > { %11414 = vmatmul.mubr.f32.gmra.mrb[22].mxu1 %v38003_v39 }
 0x634   : > { %12032 = vmatmul.mubr.f32.gmra.mrb[16].mxu0 %v38003_v39  ;;  %11419 = vmatprep.mubr.f32.mxu1 %v41276_v20 }
 0x635   : > { %12037 = vmatprep.mubr.f32.mxu0 %v41276_v20 }
 0x637   : > { %11421 = vmatmul.mubr.f32.gmra.mrb[24].mxu1 %v38009_v19 }
 0x638   : > { %12039 = vmatmul.mubr.f32.gmra.mrb[18].mxu0 %v38009_v19  ;;  %11426 = vmatprep.mubr.f32.mxu1 %v41276_v20 }
 0x639   : > { %12044 = vmatprep.mubr.f32.mxu0 %v41276_v20 }
 0x63b   : > { %11428 = vmatmul.mubr.f32.gmra.mrb[26].mxu1 %v38014_v62 }
 0x63c   : > { %12046 = vmatmul.mubr.f32.gmra.mrb[20].mxu0 %v38014_v62  ;;  %11500 = vmatprep.mubr.f32.mxu1 %v41276_v20 }
 0x63d   : > { %12118 = vmatprep.mubr.f32.mxu0 %v41276_v20 }
 0x63f   : > { %11502 = vmatmul.mubr.f32.vlgmr.msra.gmra.mrb[20].mxu1 %v37984_v16 }
 0x640   : > { %12120 = vmatmul.mubr.f32.vlgmr.msra.gmra.mrb[14].mxu0 %v37984_v16  ;;  %33783 = vmatpush1.bf16.msra.mxu1 %v41355_v13 }
 0x641   : > { %33785 = vmatprep.subr.bf16.mxu1 %v37534_v44  ;;  %11507 = vmatprep.mubr.f32.mxu1 %v41276_v20  ;;  %v41356_v44 = vld [vmem:[#allocation24_spill] sm:$0xff] }
 0x642   : > { %12125 = vmatprep.mubr.f32.mxu0 %v41276_v20 }
 0x643   : > { %11509 = vmatmul.mubr.f32.gmra.mrb[22].mxu1 %v38003_v39 }
 0x644   : > { %12127 = vmatmul.mubr.f32.gmra.mrb[16].mxu0 %v38003_v39  ;;  %11514 = vmatprep.mubr.f32.mxu1 %v41276_v20 }
 0x645   : > { %12132 = vmatprep.mubr.f32.mxu0 %v41276_v20 }
 0x647   : > { %11516 = vmatmul.mubr.f32.gmra.mrb[24].mxu1 %v38009_v19 }
 0x648   : > { %12134 = vmatmul.mubr.f32.gmra.mrb[18].mxu0 %v38009_v19  ;;  %11521 = vmatprep.mubr.f32.mxu1 %v41276_v20 }
 0x649   : > { %12139 = vmatprep.mubr.f32.mxu0 %v41276_v20 }
 0x64b   : > { %11523 = vmatmul.mubr.f32.gmra.mrb[26].mxu1 %v38014_v62 }
 0x64c   : > { %12141 = vmatmul.mubr.f32.gmra.mrb[20].mxu0 %v38014_v62  ;;  %12292 = vmatprep.mubr.f32.mxu1 %v41276_v20 }
 0x64d   : > { %12934 = vmatprep.mubr.f32.mxu0 %v41276_v20 }
 0x64f   : > { %12298 = vmatmul.mubr.f32.vlgmr.msra.gmra.mrb[28].mxu1 %v41356_v44 }
 0x650   : > { %33787 = vmatpush1.bf16.msra.mxu1 %v37547_v15  ;;  %12303 = vmatprep.mubr.f32.mxu1 %v41276_v20  ;;  %v41360_v15 = vld [vmem:[#allocation27_spill] sm:$0xff] }
 0x651   : > { %33789 = vmatprep.subr.bf16.mxu1 %v41359_v38  ;;  %v41361_v35 = vpack.c.bf16 %v37506_v6, %v41360_v15  ;;  %v41366_v15 = vld [vmem:[#allocation91_spill] sm:$0xff] }
 0x653   : > { %12309 = vmatmul.mubr.f32.gmra.mrb[30].mxu1 %v37407_v7 }
 0x654   : > { %12314 = vmatprep.mubr.f32.mxu1 %v41276_v20 }
 0x657   : > { %12320 = vmatmul.mubr.f32.gmra.mrb[32].mxu1 %v37409_v2 }
 0x658   : > { %12325 = vmatprep.mubr.f32.mxu1 %v41276_v20 }
 0x65b   : > { %12331 = vmatmul.mubr.f32.gmra.mrb[34].mxu1 %v37545_v14 }
 0x65c   : > { %12421 = vmatprep.mubr.f32.mxu1 %v41276_v20 }
 0x65f   : > { %12423 = vmatmul.mubr.f32.vlgmr.msra.gmra.mrb[28].mxu1 %v37354_v42 }
 0x660   : > { %33791 = vmatpush1.bf16.msra.mxu1 %v41361_v35  ;;  %12428 = vmatprep.mubr.f32.mxu1 %v41276_v20 }
 0x661   : > { %33793 = vmatprep.subr.bf16.mxu1 %v37497_v54 }
 0x663   : > { %12430 = vmatmul.mubr.f32.gmra.mrb[30].mxu1 %v37356_v45 }
 0x664   : > { %12435 = vmatprep.mubr.f32.mxu1 %v41276_v20 }
 0x667   : > { %12437 = vmatmul.mubr.f32.gmra.mrb[32].mxu1 %v37358_v30 }
 0x668   : > { %12442 = vmatprep.mubr.f32.mxu1 %v41276_v20 }
 0x66b   : > { %12444 = vmatmul.mubr.f32.gmra.mrb[34].mxu1 %v37372_v4 }
 0x66c   : > { %12522 = vmatprep.mubr.f32.mxu1 %v41276_v20 }
 0x66f   : > { %12525 = vmatmul.mubr.f32.vlgmr.msra.gmra.mrb[28].mxu1 %v37364_v48 }
 0x670   : > { %33795 = vmatpush1.bf16.msra.mxu1 %v41355_v13  ;;  %12530 = vmatprep.mubr.f32.mxu1 %v41276_v20 }
 0x671   : > { %33797 = vmatprep.subr.bf16.mxu1 %v37529_v12 }
 0x673   : > { %12533 = vmatmul.mubr.f32.gmra.mrb[30].mxu1 %v37367_v49 }
 0x674   : > { %12538 = vmatprep.mubr.f32.mxu1 %v41276_v20 }
 0x677   : > { %12541 = vmatmul.mubr.f32.gmra.mrb[32].mxu1 %v37370_v50 }
 0x678   : > { %12546 = vmatprep.mubr.f32.mxu1 %v41276_v20 }
 0x67b   : > { %12549 = vmatmul.mubr.f32.gmra.mrb[34].mxu1 %v37384_v3 }
 0x67c   : > { %12623 = vmatprep.mubr.f32.mxu1 %v41276_v20 }
 0x67f   : > { %12627 = vmatmul.mubr.f32.vlgmr.msra.gmra.mrb[28].mxu1 %v37375_v8 }
 0x680   : > { %33799 = vmatpush1.bf16.msra.mxu1 %v37532_v63  ;;  %12632 = vmatprep.mubr.f32.mxu1 %v41276_v20 }
 0x681   : > { %33801 = vmatprep.subr.bf16.mxu1 %v37497_v54 }
 0x683   : > { %12636 = vmatmul.mubr.f32.gmra.mrb[30].mxu1 %v37378_v46 }
 0x684   : > { %12641 = vmatprep.mubr.f32.mxu1 %v41276_v20 }
 0x687   : > { %12645 = vmatmul.mubr.f32.gmra.mrb[32].mxu1 %v37381_v52 }
 0x688   : > { %12650 = vmatprep.mubr.f32.mxu1 %v41276_v20 }
 0x68b   : > { %12654 = vmatmul.mubr.f32.gmra.mrb[34].mxu1 %v37393_v57 }
 0x68c   : > { %12736 = vmatprep.mubr.f32.mxu1 %v41276_v20 }
 0x68f   : > { %12738 = vmatmul.mubr.f32.vlgmr.msra.gmra.mrb[28].mxu1 %v37354_v42 }
 0x690   : > { %33803 = vmatpush1.bf16.msra.mxu1 %v41355_v13  ;;  %12743 = vmatprep.mubr.f32.mxu1 %v41276_v20 }
 0x693   : > { %12745 = vmatmul.mubr.f32.gmra.mrb[30].mxu1 %v37356_v45 }
 0x694   : > { %12750 = vmatprep.mubr.f32.mxu1 %v41276_v20 }
 0x697   : > { %12752 = vmatmul.mubr.f32.gmra.mrb[32].mxu1 %v37358_v30 }
 0x698   : > { %12757 = vmatprep.mubr.f32.mxu1 %v41276_v20 }
 0x69b   : > { %12759 = vmatmul.mubr.f32.gmra.mrb[34].mxu1 %v37372_v4 }
 0x69c   : > { %12833 = vmatprep.mubr.f32.mxu1 %v41276_v20 }
 0x69f   : > { %12835 = vmatmul.mubr.f32.vlgmr.msra.gmra.mrb[28].mxu1 %v37354_v42 }
 0x6a0   : > { %12840 = vmatprep.mubr.f32.mxu1 %v41276_v20 }
 0x6a3   : > { %12842 = vmatmul.mubr.f32.gmra.mrb[30].mxu1 %v37356_v45 }
 0x6a4   : > { %12847 = vmatprep.mubr.f32.mxu1 %v41276_v20 }
 0x6a7   : > { %12849 = vmatmul.mubr.f32.gmra.mrb[32].mxu1 %v37358_v30 }
 0x6a8   : > { %12854 = vmatprep.mubr.f32.mxu1 %v41276_v20 }
 0x6ab   : > { %12856 = vmatmul.mubr.f32.gmra.mrb[34].mxu1 %v37372_v4 }
 0x6ac   : > { %14113 = vmatprep.mubr.f32.mxu1 %v41276_v20 }
 0x712   : > { %v11503_v63 = vpop.f32.mrb[20].mxu1 }
 0x713   : > { %v12155_v12 = vmul.f32 0.0, %v11503_v63  ;;  %v12121_v54 = vpop.f32.mrb[14].mxu0  ;;  %v11505_v6 = vpop.f32.mrb[21].mxu1 }
 0x714   : > { %v12163_v28 = vmul.f32 %v37856_v11, %v12121_v54  ;;  %v12156_v31 = vmul.f32 0.0, %v11505_v6  ;;  %v12123_v34 = vpop.f32.mrb[15].mxu0  ;;  %v41367_v54 = vld [vmem:[#allocation92_spill] sm:$0xff] }
 0x715   : > { %v12164_v51 = vmul.f32 %v37859_v40, %v12123_v34 }
 0x716   : > { %v11510_v32 = vpop.f32.mrb[22].mxu1  ;;  %v38269_v47 = vadd.f32 %v12163_v28, %v12155_v12 }
 0x717   : > { %v12157_v41 = vmul.f32 0.0, %v11510_v32  ;;  %v12128_v53 = vpop.f32.mrb[16].mxu0  ;;  %v11512_v9 = vpop.f32.mrb[23].mxu1  ;;  %v38271_v21 = vadd.f32 %v12164_v51, %v12156_v31  ;;  %v41370_v32 = vld [vmem:[#allocation93_spill] sm:$0xff] }
 0x718   : > { %41362 = vst [vmem:[#allocation28_spill] sm:$0xff] %v38269_v47  ;;  %v12165_v27 = vmul.f32 %v37865_v23, %v12128_v53  ;;  %v12158_v43 = vmul.f32 0.0, %v11512_v9  ;;  %v12130_v26 = vpop.f32.mrb[17].mxu0 }
 0x719   : > { %41363 = vst [vmem:[#allocation24_spill] sm:$0xff] %v38271_v21  ;;  %v12166_v56 = vmul.f32 %v37870_v1, %v12130_v26 }
 0x71a   : > { %v11517_v13 = vpop.f32.mrb[24].mxu1  ;;  %v38275_v11 = vadd.f32 %v12165_v27, %v12157_v41  ;;  %v41371_v27 = vld [vmem:[#allocation94_spill] sm:$0xff] }
 0x71b   : > { %v12159_v59 = vmul.f32 0.0, %v11517_v13  ;;  %v12135_v36 = vpop.f32.mrb[18].mxu0  ;;  %v11519_v40 = vpop.f32.mrb[25].mxu1  ;;  %v38277_v38 = vadd.f32 %v12166_v56, %v12158_v43 }
 0x71c   : > { %41364 = vst [vmem:[#allocation29_spill] sm:$0xff] %v38275_v11  ;;  %v12167_v35 = vmul.f32 %v41366_v15, %v12135_v36  ;;  %v12160_v63 = vmul.f32 0.0, %v11519_v40  ;;  %v12137_v12 = vpop.f32.mrb[19].mxu0  ;;  %v12207_v13 = vpop.permute.xlu1 %12206 }
 0x71d   : > { %41365 = vst [vmem:[#allocation26_spill] sm:$0xff] %v38277_v38  ;;  %v12168_v6 = vmul.f32 %v41367_v54, %v12137_v12 }
 0x71e   : > { %v11524_v28 = vpop.f32.mrb[26].mxu1  ;;  %v38281_v23 = vadd.f32 %v12167_v35, %v12159_v59  ;;  %v12212_v35 = vpop.permute.xlu0 %12211 }
 0x71f   : > { %v12161_v31 = vmul.f32 0.0, %v11524_v28  ;;  %v12142_v34 = vpop.f32.mrb[20].mxu0  ;;  %v11526_v1 = vpop.f32.mrb[27].mxu1  ;;  %v38283_v51 = vadd.f32 %v12168_v6, %v12160_v63 }
 0x720   : > { %41368 = vst [vmem:[#allocation27_spill] sm:$0xff] %v38281_v23  ;;  %v12169_v41 = vmul.f32 %v41370_v32, %v12142_v34  ;;  %v12162_v53 = vmul.f32 0.0, %v11526_v1  ;;  %v12144_v9 = vpop.f32.mrb[21].mxu0  ;;  %v12217_v32 = vpop.permute.xlu1 %12216 }
 0x721   : > { %41369 = vst [vmem:[#allocation91_spill] sm:$0xff] %v38283_v51  ;;  %v12170_v43 = vmul.f32 %v41371_v27, %v12144_v9 }
 0x722   : > { %v38287_v26 = vadd.f32 %v12169_v41, %v12161_v31  ;;  %v12222_v51 = vpop.permute.xlu0 %12221 }
 0x723   : > { %v38289_v56 = vadd.f32 %v12170_v43, %v12162_v53 }
 0x724   : > { %41372 = vst [vmem:[#allocation92_spill] sm:$0xff] %v38287_v26 }
 0x725   : > { %41373 = vst [vmem:[#allocation93_spill] sm:$0xff] %v38289_v56 }
 0x772   : > { %v12836_v36 = vpop.f32.mrb[28].mxu1 }
 0x773   : > { %v38291_v40 = vadd.f32 %v12836_v36, %v12207_v13  ;;  %v12838_v59 = vpop.f32.mrb[29].mxu1 }
 0x774   : > { %v38293_v15 = vadd.f32 %v12838_v59, %v12207_v13 }
 0x775   : > { %41374 = vst [vmem:[#allocation94_spill] sm:$0xff] %v38291_v40  ;;  %v12864_v54 = vand.u32 4294901760, %v38291_v40 }
 0x776   : > { %41375 = vst [vmem:[#allocation101_spill] sm:$0xff] %v38293_v15  ;;  %v12862_v63 = vand.u32 4294901760, %v38293_v15  ;;  %v12843_v12 = vpop.f32.mrb[30].mxu1 }
 0x777   : > { %v38297_v6 = vadd.f32 %v12843_v12, %v12212_v35  ;;  %v12845_v28 = vpop.f32.mrb[31].mxu1  ;;  %v38307_v9 = vsub.f32 %v38291_v40, %v12864_v54 }
 0x778   : > { %v38300_v31 = vsub.f32 %v38293_v15, %v12862_v63  ;;  %v38302_v34 = vadd.f32 %v12845_v28, %v12212_v35 }
 0x779   : > { %41376 = vst [vmem:[#allocation102_spill] sm:$0xff] %v38297_v6  ;;  %v12868_v1 = vand.u32 4294901760, %v38297_v6 }
 0x77a   : > { %41377 = vst [vmem:[#allocation103_spill] sm:$0xff] %v38302_v34  ;;  %v12866_v41 = vand.u32 4294901760, %v38302_v34  ;;  %v12850_v53 = vpop.f32.mrb[32].mxu1  ;;  %v41148_v12 = vand.u32 4294901760, %v38300_v31 }
 0x77b   : > { %v38310_v27 = vsub.f32 %v38297_v6, %v12868_v1  ;;  %v38312_v43 = vadd.f32 %v12850_v53, %v12217_v32  ;;  %v12852_v13 = vpop.f32.mrb[33].mxu1  ;;  %v38322_v28 = vpack.c.bf16 %v12868_v1, %v12864_v54 }
 0x77c   : > { %v38315_v36 = vsub.f32 %v38302_v34, %v12866_v41  ;;  %v38317_v59 = vadd.f32 %v12852_v13, %v12217_v32  ;;  %v38319_v35 = vpack.c.bf16 %v12866_v41, %v12862_v63  ;;  %v12949_v56 = vsub.f32 %v38300_v31, %v41148_v12 }
 0x77d   : > { %41378 = vst [vmem:[#allocation104_spill] sm:$0xff] %v38312_v43  ;;  %v12872_v26 = vand.u32 4294901760, %v38312_v43  ;;  %v41381_v32 = vand.u32 4294901760, %v38310_v27 }
 0x77e   : > { %41379 = vst [vmem:[#allocation105_spill] sm:$0xff] %v38317_v59  ;;  %v12870_v53 = vand.u32 4294901760, %v38317_v59  ;;  %v12857_v23 = vpop.f32.mrb[34].mxu1  ;;  %33805 = vmatprep.subr.bf16.mxu0 %v38319_v35  ;;  %v12960_v34 = vand.u32 4294901760, %v38315_v36  ;;  %v12950_v47 = vand.u32 4294901760, %v12949_v56 }
 0x77f   : > { %v38331_v63 = vsub.f32 %v38312_v43, %v12872_v26  ;;  %v38333_v41 = vadd.f32 %v12857_v23, %v12222_v51  ;;  %v12859_v54 = vpop.f32.mrb[35].mxu1  ;;  %33807 = vmatpush1.bf16.msra.mxu0 %v38322_v28  ;;  %v12967_v43 = vsub.f32 %v38310_v27, %v41381_v32 }
 0x780   : > { %v12971_v1 = vsub.f32 %v38317_v59, %v12870_v53  ;;  %v38337_v13 = vadd.f32 %v12859_v54, %v12222_v51  ;;  %v12961_v38 = vsub.f32 %v38315_v36, %v12960_v34  ;;  %v41382_v59 = vand.u32 4294901760, %v38307_v9 }
 0x781   : > { %41380 = vst [vmem:[#allocation106_spill] sm:$0xff] %v38333_v41  ;;  %v12876_v23 = vand.u32 4294901760, %v38333_v41  ;;  %v12978_v54 = vand.u32 4294901760, %v38331_v63  ;;  %v12968_v52 = vand.u32 4294901760, %v12967_v43  ;;  %v33820_v43 = vpack.c.bf16 %v38315_v36, %v38300_v31 }
 0x782   : > { %v12874_v6 = vand.u32 4294901760, %v38337_v13  ;;  %v12962_v11 = vand.u32 4294901760, %v12961_v38  ;;  %v12972_v15 = vand.u32 4294901760, %v12971_v1  ;;  %v12955_v51 = vsub.f32 %v38307_v9, %v41382_v59 }
 0x783   : > { %v12989_v12 = vsub.f32 %v38333_v41, %v12876_v23  ;;  %v33810_v57 = vpack.c.bf16 %v12876_v23, %v12872_v26  ;;  %v12979_v3 = vsub.f32 %v38331_v63, %v12978_v54 }
 0x784   : > { %v12983_v21 = vsub.f32 %v38337_v13, %v12874_v6  ;;  %v33808_v40 = vpack.c.bf16 %v12874_v6, %v12870_v53  ;;  %v33812_v46 = vpack.c.bf16 %v12962_v11, %v12950_v47  ;;  %v12973_v8 = vsub.f32 %v12971_v1, %v12972_v15  ;;  %v41387_v53 = vld [vmem:[#allocation96_spill] sm:$0xff] }
 0x785   : > { %v12990_v32 = vand.u32 4294901760, %v12989_v12  ;;  %v12956_v59 = vand.u32 4294901760, %v12955_v51  ;;  %v12980_v26 = vand.u32 4294901760, %v12979_v3  ;;  %v41385_v3 = vand.u32 4294901760, %v38310_v27 }
 0x786   : > { %33809 = vmatprep.subr.bf16.mxu0 %v33808_v40  ;;  %v12984_v38 = vand.u32 4294901760, %v12983_v21  ;;  %v12974_v6 = vand.u32 4294901760, %v12973_v8 }
 0x787   : > { %v12991_v50 = vsub.f32 %v12989_v12, %v12990_v32  ;;  %33811 = vmatpush1.bf16.msra.mxu0 %v33810_v57  ;;  %v33814_v48 = vpack.c.bf16 %v12968_v52, %v12956_v59  ;;  %v41384_v52 = vand.u32 4294901760, %v38307_v9 }
 0x788   : > { %33813 = vmatprep.subr.bf16.mxu0 %v33812_v46  ;;  %v12985_v49 = vsub.f32 %v12983_v21, %v12984_v38  ;;  %v33822_v46 = vpack.c.bf16 %v38310_v27, %v38307_v9  ;;  %v33840_v36 = vpack.c.bf16 %v12984_v38, %v12972_v15 }
 0x789   : > { %v12992_v41 = vand.u32 4294901760, %v12991_v50  ;;  %v33824_v50 = vpack.c.bf16 %v12983_v21, %v12971_v1  ;;  %v33838_v21 = vpack.c.bf16 %v41385_v3, %v41384_v52 }
 0x78a   : > { %12940 = vmatmul.mubr.f32.vlgmr.msra.gmra.mrb[22].mxu0 %v37935_v61  ;;  %v12986_v56 = vand.u32 4294901760, %v12985_v49  ;;  %v41383_v49 = vand.u32 4294901760, %v38300_v31  ;;  %v41386_v31 = vld [vmem:[#allocation95_spill] sm:$0xff] }
 0x78b   : > { %33815 = vmatpush1.bf16.msra.mxu0 %v33814_v48  ;;  %13050 = vmatprep.mubr.f32.mxu0 %v41276_v20  ;;  %v33818_v11 = vpack.c.bf16 %v12992_v41, %v12980_v26  ;;  %v33826_v48 = vpack.c.bf16 %v12989_v12, %v38331_v63  ;;  %v33842_v12 = vpack.c.bf16 %v12990_v32, %v12978_v54  ;;  %v41388_v63 = vld [vmem:[#allocation97_spill] sm:$0xff] }
 0x78c   : > { %v33816_v47 = vpack.c.bf16 %v12986_v56, %v12974_v6  ;;  %v33836_v8 = vpack.c.bf16 %v12960_v34, %v41383_v49  ;;  %v41389_v6 = vld [vmem:[#allocation99_spill] sm:$0xff] }
 0x78e   : > { %33817 = vmatprep.subr.bf16.mxu0 %v33816_v47 }
 0x78f   : > { %33819 = vmatpush1.bf16.msra.mxu0 %v33818_v11 }
 0x790   : > { %33821 = vmatprep.subr.bf16.mxu0 %v33820_v43 }
 0x792   : > { %13052 = vmatmul.mubr.f32.vlgmr.msra.gmra.mrb[22].mxu0 %v37862_v55 }
 0x793   : > { %33823 = vmatpush1.bf16.msra.mxu0 %v33822_v46  ;;  %13138 = vmatprep.mubr.f32.mxu0 %v41276_v20 }
 0x794   : > { %33825 = vmatprep.subr.bf16.mxu0 %v33824_v50 }
 0x797   : > { %33827 = vmatpush1.bf16.msra.mxu0 %v33826_v48  ;;  %v41390_v48 = vld [vmem:[#allocation100_spill] sm:$0xff] }
 0x798   : > { %33829 = vmatprep.subr.bf16.mxu0 %v38319_v35 }
 0x79a   : > { %13141 = vmatmul.mubr.f32.vlgmr.msra.gmra.mrb[22].mxu0 %v37875_v22 }
 0x79b   : > { %33831 = vmatpush1.bf16.msra.mxu0 %v38322_v28  ;;  %13219 = vmatprep.mubr.f32.mxu0 %v41276_v20 }
 0x79c   : > { %33833 = vmatprep.subr.bf16.mxu0 %v33808_v40 }
 0x79f   : > { %33835 = vmatpush1.bf16.msra.mxu0 %v33810_v57 }
 0x7a0   : > { %33837 = vmatprep.subr.bf16.mxu0 %v33836_v8 }
 0x7a2   : > { %13223 = vmatmul.mubr.f32.vlgmr.msra.gmra.mrb[22].mxu0 %v37901_v29 }
 0x7a3   : > { %33839 = vmatpush1.bf16.msra.mxu0 %v33838_v21  ;;  %13317 = vmatprep.mubr.f32.mxu0 %v41276_v20 }
 0x7a4   : > { %33841 = vmatprep.subr.bf16.mxu0 %v33840_v36 }
 0x7a7   : > { %33843 = vmatpush1.bf16.msra.mxu0 %v33842_v12 }
 0x7a8   : > { %33845 = vmatprep.subr.bf16.mxu0 %v38319_v35 }
 0x7aa   : > { %13319 = vmatmul.mubr.f32.vlgmr.msra.gmra.mrb[22].mxu0 %v37862_v55 }
 0x7ab   : > { %33847 = vmatpush1.bf16.msra.mxu0 %v38322_v28  ;;  %13397 = vmatprep.mubr.f32.mxu0 %v41276_v20 }
 0x7ac   : > { %33849 = vmatprep.subr.bf16.mxu0 %v33808_v40 }
 0x7af   : > { %33851 = vmatpush1.bf16.msra.mxu0 %v33810_v57 }
 0x7b2   : > { %13399 = vmatmul.mubr.f32.vlgmr.msra.gmra.mrb[22].mxu0 %v37862_v55 }
 0x7b3   : > { %13495 = vmatprep.mubr.f32.mxu0 %v41276_v20 }
 0x885   : > { %v13400_v15 = vpop.f32.mrb[22].mxu0 }
 0x886   : > { %v34410_v34 = vadd.f32 %v13400_v15, %v41386_v31  ;;  %v13402_v9 = vpop.f32.mrb[23].mxu0 }
 0x887   : > { %v34411_v27 = vadd.f32 %v13402_v9, %v41386_v31 }
 0x888   : > { %v38385_v35 = vmax.f32 %v41387_v53, %v34410_v34 }
 0x889   : > { %v38388_v41 = vmax.f32 %v41388_v63, %v34411_v27 }
 0x88a   : > { %v13407_v40 = vsub.f32 %v41387_v53, %v38385_v35  ;;  %v13413_v57 = vsub.f32 %v34410_v34, %v38385_v35 }
 0x88b   : > { %v13408_v28 = vsub.f32 %v41388_v63, %v38388_v41  ;;  %v13414_v1 = vsub.f32 %v34411_v27, %v38388_v41 }
 0x88c   : > { %v13409_v23 = vmul.f32 1.442695, %v13407_v40  ;;  %v13415_v51 = vmul.f32 1.442695, %v13413_v57  ;;  %v41391_v40 = vld [vmem:[#allocation98_spill] sm:$0xff] }
 0x88d   : > { %v13411_v54 = vmul.f32 1.442695, %v13408_v28  ;;  %v13417_v32 = vmul.f32 1.442695, %v13414_v1 }
 0x88e   : > { %35925 = vpow2.f32 %v13409_v23 }
 0x88f   : > { %35927 = vpow2.f32 %v13415_v51 }
 0x890   : > { %35929 = vpow2.f32 %v13411_v54 }
 0x891   : > { %35931 = vpow2.f32 %v13417_v32 }
 0x898   : > { %v35926_v38 = vpop.eup %35925 }
 0x899   : > { %v35928_v59 = vpop.eup %35927  ;;  %v13419_v56 = vmul.f32 %v35926_v38, %v41389_v6  ;;  %v13424_v26 = vsel %vm8550_vm2, %v35926_v38, 0 }
 0x89a   : > { %v35930_v47 = vpop.eup %35929  ;;  %v38398_v11 = vand.u32 4294901760, %v13424_v26  ;;  %v14042_v43 = vsel %vm8550_vm2, %v35928_v59, 0 }
 0x89b   : > { %v35932_v46 = vpop.eup %35931  ;;  %v38401_v50 = vadd.f32 %v35928_v59, %v13419_v56  ;;  %v13420_v49 = vmul.f32 %v35930_v47, %v41390_v48  ;;  %v13427_v8 = vsel %vm8550_vm2, %v35930_v47, 0  ;;  %v38405_v52 = vand.u32 4294901760, %v14042_v43  ;;  %v41392_v56 = vld [vmem:[#allocation32_spill] sm:$0xff]  ;;  %v41394_v47 = vld [vmem:[#allocation43_spill] sm:$0xff] }
 0x89c   : > { %v38407_v3 = vand.u32 4294901760, %v13427_v8  ;;  %v14045_v21 = vsel %vm8550_vm2, %v35932_v46, 0  ;;  %v38411_v36 = vsub.f32 %v13424_v26, %v38398_v11  ;;  %v41393_v26 = vld [vmem:[#allocation35_spill] sm:$0xff] }
 0x89d   : > { %v38413_v12 = vadd.f32 %v35932_v46, %v13420_v49  ;;  %v38415_v15 = vand.u32 4294901760, %v14045_v21  ;;  %v38418_v34 = vsub.f32 %v14042_v43, %v38405_v52  ;;  %v41396_v43 = vld [vmem:[#allocation33_spill] sm:$0xff]  ;;  %v41397_v46 = vld [vmem:[#allocation31_spill] sm:$0xff]  ;;  %v41399_v49 = vld [vmem:[#allocation36_spill] sm:$0xff] }
 0x89e   : > { %13430 = vmatprep.subr.mxu0 %v38407_v3  ;;  %v38422_v9 = vsub.f32 %v13427_v8, %v38407_v3  ;;  %v13548_v27 = vand.u32 4294901760, %v38411_v36  ;;  %v41398_v48 = vpack.c.bf16 %v41396_v43, %v41397_v46  ;;  %v41400_v8 = vld [vmem:[#allocation34_spill] sm:$0xff]  ;;  %v41417_v46 = vld [vmem:[#allocation29_spill] sm:$0xff] }
 0x89f   : > { %14048 = vmatprep.subr.mxu1 %v38415_v15  ;;  %13432 = vmatpush1.msra.mxu0 %v38398_v11  ;;  %v14159_v53 = vsub.f32 %v14045_v21, %v38415_v15  ;;  %v14166_v63 = vand.u32 4294901760, %v38418_v34  ;;  %v41403_v21 = vld [vmem:[#allocation39_spill] sm:$0xff] }
 0x8a0   : > { %14050 = vmatpush1.msra.mxu1 %v38405_v52  ;;  %13501 = vmatmul.mubr.f32.vlgmr.msra.gmra.mrb[24].mxu0 %v41391_v40  ;;  %v13542_v57 = vand.u32 4294901760, %v38422_v9  ;;  %v13549_v1 = vsub.f32 %v38411_v36, %v13548_v27 }
 0x8a1   : > { %14119 = vmatmul.mubr.f32.vlgmr.msra.gmra.mrb[36].mxu1 %v41391_v40  ;;  %13506 = vmatprep.mubr.f32.mxu0 %v41276_v20  ;;  %v14160_v28 = vand.u32 4294901760, %v14159_v53  ;;  %v14167_v51 = vsub.f32 %v38418_v34, %v14166_v63 }
 0x8a2   : > { %14124 = vmatprep.mubr.f32.mxu1 %v41276_v20  ;;  %v13543_v23 = vsub.f32 %v38422_v9, %v13542_v57  ;;  %v13550_v59 = vand.u32 4294901760, %v13549_v1  ;;  %v41412_v1 = vld [vmem:[#allocation28_spill] sm:$0xff] }
 0x8a3   : > { %v14161_v54 = vsub.f32 %v14159_v53, %v14160_v28  ;;  %v14168_v6 = vand.u32 4294901760, %v14167_v51 }
 0x8a4   : > { %13512 = vmatmul.mubr.f32.gmra.mrb[26].mxu0 %v38072_v60  ;;  %v13544_v32 = vand.u32 4294901760, %v13543_v23 }
 0x8a5   : > { %14130 = vmatmul.mubr.f32.gmra.mrb[38].mxu1 %v38072_v60  ;;  %v14162_v38 = vand.u32 4294901760, %v14161_v54  ;;  %13517 = vmatprep.mubr.f32.mxu0 %v41276_v20 }
 0x8a6   : > { %13545 = vmatprep.subr.mxu0 %v13544_v32  ;;  %14135 = vmatprep.mubr.f32.mxu1 %v41276_v20  ;;  %v41413_v32 = vld [vmem:[#allocation94_spill] sm:$0xff] }
 0x8a7   : > { %14163 = vmatprep.subr.mxu1 %v14162_v38  ;;  %13551 = vmatpush1.msra.mxu0 %v13550_v59  ;;  %v41414_v59 = vld [vmem:[#allocation24_spill] sm:$0xff] }
 0x8a8   : > { %14169 = vmatpush1.msra.mxu1 %v14168_v6  ;;  %13523 = vmatmul.mubr.f32.gmra.mrb[28].mxu0 %v38090_v17 }
 0x8a9   : > { %13645 = vmatprep.subr.mxu0 %v38422_v9  ;;  %14141 = vmatmul.mubr.f32.gmra.mrb[40].mxu1 %v38090_v17  ;;  %v41407_v9 = vld [vmem:[#allocation19_spill] sm:$0xff] }
 0x8aa   : > { %14263 = vmatprep.subr.mxu1 %v14159_v53  ;;  %13528 = vmatprep.mubr.f32.mxu0 %v41276_v20  ;;  %v41409_v53 = vld [vmem:[#allocation20_spill] sm:$0xff] }
 0x8ab   : > { %14146 = vmatprep.mubr.f32.mxu1 %v41276_v20 }
 0x8ac   : > { %13534 = vmatmul.mubr.f32.gmra.mrb[30].mxu0 %v38098_v37 }
 0x8ad   : > { %14152 = vmatmul.mubr.f32.gmra.mrb[42].mxu1 %v38098_v37  ;;  %13614 = vmatprep.mubr.f32.mxu0 %v41276_v20 }
 0x8ae   : > { %14232 = vmatprep.mubr.f32.mxu1 %v41276_v20 }
 0x8b0   : > { %13616 = vmatmul.mubr.f32.vlgmr.msra.gmra.mrb[24].mxu0 %v37984_v16 }
 0x8b1   : > { %13648 = vmatpush1.msra.mxu0 %v38411_v36  ;;  %14234 = vmatmul.mubr.f32.vlgmr.msra.gmra.mrb[36].mxu1 %v37984_v16  ;;  %v41404_v36 = vld [vmem:[#allocation16_spill] sm:$0xff] }
 0x8b2   : > { %14266 = vmatpush1.msra.mxu1 %v38418_v34  ;;  %13745 = vmatprep.subr.mxu0 %v38407_v3  ;;  %v41406_v34 = vld [vmem:[#allocation22_spill] sm:$0xff] }
 0x8b3   : > { %14363 = vmatprep.subr.mxu1 %v38415_v15  ;;  %13621 = vmatprep.mubr.f32.mxu0 %v41276_v20 }
 0x8b4   : > { %14239 = vmatprep.mubr.f32.mxu1 %v41276_v20  ;;  %13623 = vmatmul.mubr.f32.gmra.mrb[26].mxu0 %v38003_v39 }
 0x8b5   : > { %14241 = vmatmul.mubr.f32.gmra.mrb[38].mxu1 %v38003_v39  ;;  %13628 = vmatprep.mubr.f32.mxu0 %v41276_v20 }
 0x8b6   : > { %14246 = vmatprep.mubr.f32.mxu1 %v41276_v20 }
 0x8b8   : > { %13630 = vmatmul.mubr.f32.gmra.mrb[28].mxu0 %v38009_v19 }
 0x8b9   : > { %14248 = vmatmul.mubr.f32.gmra.mrb[40].mxu1 %v38009_v19  ;;  %13635 = vmatprep.mubr.f32.mxu0 %v41276_v20 }
 0x8ba   : > { %14253 = vmatprep.mubr.f32.mxu1 %v41276_v20 }
 0x8bc   : > { %13637 = vmatmul.mubr.f32.gmra.mrb[30].mxu0 %v38014_v62 }
 0x8bd   : > { %14255 = vmatmul.mubr.f32.gmra.mrb[42].mxu1 %v38014_v62  ;;  %13711 = vmatprep.mubr.f32.mxu0 %v41276_v20 }
 0x8be   : > { %14329 = vmatprep.mubr.f32.mxu1 %v41276_v20 }
 0x8c0   : > { %13714 = vmatmul.mubr.f32.vlgmr.msra.gmra.mrb[24].mxu0 %v37997_v25 }
 0x8c1   : > { %13747 = vmatpush1.msra.mxu0 %v38398_v11  ;;  %14332 = vmatmul.mubr.f32.vlgmr.msra.gmra.mrb[36].mxu1 %v37997_v25 }
 0x8c2   : > { %14365 = vmatpush1.msra.mxu1 %v38405_v52  ;;  %13850 = vmatprep.subr.mxu0 %v13542_v57  ;;  %v41411_v57 = vld [vmem:[#allocation23_spill] sm:$0xff] }
 0x8c3   : > { %14468 = vmatprep.subr.mxu1 %v14160_v28  ;;  %13719 = vmatprep.mubr.f32.mxu0 %v41276_v20 }
 0x8c4   : > { %14337 = vmatprep.mubr.f32.mxu1 %v41276_v20  ;;  %13722 = vmatmul.mubr.f32.gmra.mrb[26].mxu0 %v38012_v33 }
 0x8c5   : > { %14340 = vmatmul.mubr.f32.gmra.mrb[38].mxu1 %v38012_v33  ;;  %13727 = vmatprep.mubr.f32.mxu0 %v41276_v20 }
 0x8c6   : > { %14345 = vmatprep.mubr.f32.mxu1 %v41276_v20 }
 0x8c8   : > { %13730 = vmatmul.mubr.f32.gmra.mrb[28].mxu0 %v38017_v24 }
 0x8c9   : > { %14348 = vmatmul.mubr.f32.gmra.mrb[40].mxu1 %v38017_v24  ;;  %13735 = vmatprep.mubr.f32.mxu0 %v41276_v20 }
 0x8ca   : > { %14353 = vmatprep.mubr.f32.mxu1 %v41276_v20 }
 0x8cc   : > { %13738 = vmatmul.mubr.f32.gmra.mrb[30].mxu0 %v38025_v5 }
 0x8cd   : > { %14356 = vmatmul.mubr.f32.gmra.mrb[42].mxu1 %v38025_v5  ;;  %13810 = vmatprep.mubr.f32.mxu0 %v41276_v20 }
 0x8ce   : > { %14428 = vmatprep.mubr.f32.mxu1 %v41276_v20 }
 0x8d0   : > { %13814 = vmatmul.mubr.f32.vlgmr.msra.gmra.mrb[24].mxu0 %v38007_v10 }
 0x8d1   : > { %13854 = vmatpush1.msra.mxu0 %v13548_v27  ;;  %14432 = vmatmul.mubr.f32.vlgmr.msra.gmra.mrb[36].mxu1 %v38007_v10  ;;  %v41408_v27 = vld [vmem:[#allocation41_spill] sm:$0xff] }
 0x8d2   : > { %14472 = vmatpush1.msra.mxu1 %v14166_v63  ;;  %13947 = vmatprep.subr.mxu0 %v38407_v3  ;;  %v41402_v3 = vld [vmem:[#allocation15_spill] sm:$0xff]  ;;  %v41410_v63 = vld [vmem:[#allocation21_spill] sm:$0xff] }
 0x8d3   : > { %14565 = vmatprep.subr.mxu1 %v38415_v15  ;;  %13819 = vmatprep.mubr.f32.mxu0 %v41276_v20  ;;  %v41405_v15 = vld [vmem:[#allocation17_spill] sm:$0xff] }
 0x8d4   : > { %14437 = vmatprep.mubr.f32.mxu1 %v41276_v20  ;;  %13823 = vmatmul.mubr.f32.gmra.mrb[26].mxu0 %v38022_v58 }
 0x8d5   : > { %14441 = vmatmul.mubr.f32.gmra.mrb[38].mxu1 %v38022_v58  ;;  %13828 = vmatprep.mubr.f32.mxu0 %v41276_v20 }
 0x8d6   : > { %14446 = vmatprep.mubr.f32.mxu1 %v41276_v20 }
 0x8d8   : > { %13832 = vmatmul.mubr.f32.gmra.mrb[28].mxu0 %v38029_v0 }
 0x8d9   : > { %14450 = vmatmul.mubr.f32.gmra.mrb[40].mxu1 %v38029_v0  ;;  %13837 = vmatprep.mubr.f32.mxu0 %v41276_v20 }
 0x8da   : > { %14455 = vmatprep.mubr.f32.mxu1 %v41276_v20 }
 0x8dc   : > { %13841 = vmatmul.mubr.f32.gmra.mrb[30].mxu0 %v38068_v18 }
 0x8dd   : > { %14459 = vmatmul.mubr.f32.gmra.mrb[42].mxu1 %v38068_v18  ;;  %13917 = vmatprep.mubr.f32.mxu0 %v41276_v20 }
 0x8de   : > { %14535 = vmatprep.mubr.f32.mxu1 %v41276_v20 }
 0x8e0   : > { %13919 = vmatmul.mubr.f32.vlgmr.msra.gmra.mrb[24].mxu0 %v37984_v16 }
 0x8e1   : > { %13949 = vmatpush1.msra.mxu0 %v38398_v11  ;;  %14537 = vmatmul.mubr.f32.vlgmr.msra.gmra.mrb[36].mxu1 %v37984_v16  ;;  %v41395_v11 = vld [vmem:[#allocation46_spill] sm:$0xff] }
 0x8e2   : > { %14567 = vmatpush1.msra.mxu1 %v38405_v52  ;;  %33853 = vmatprep.subr.bf16.mxu0 %v41392_v56  ;;  %v41401_v52 = vpack.c.bf16 %v41399_v49, %v41400_v8 }
 0x8e3   : > { %13924 = vmatprep.mubr.f32.mxu0 %v41276_v20  ;;  %14542 = vmatprep.mubr.f32.mxu1 %v41276_v20 }
 0x8e4   : > { %13926 = vmatmul.mubr.f32.gmra.mrb[26].mxu0 %v38003_v39 }
 0x8e5   : > { %14544 = vmatmul.mubr.f32.gmra.mrb[38].mxu1 %v38003_v39  ;;  %13931 = vmatprep.mubr.f32.mxu0 %v41276_v20 }
 0x8e6   : > { %14549 = vmatprep.mubr.f32.mxu1 %v41276_v20 }
 0x8e8   : > { %13933 = vmatmul.mubr.f32.gmra.mrb[28].mxu0 %v38009_v19 }
 0x8e9   : > { %14551 = vmatmul.mubr.f32.gmra.mrb[40].mxu1 %v38009_v19  ;;  %13938 = vmatprep.mubr.f32.mxu0 %v41276_v20 }
 0x8ea   : > { %14556 = vmatprep.mubr.f32.mxu1 %v41276_v20 }
 0x8ec   : > { %13940 = vmatmul.mubr.f32.gmra.mrb[30].mxu0 %v38014_v62 }
 0x8ed   : > { %14558 = vmatmul.mubr.f32.gmra.mrb[42].mxu1 %v38014_v62  ;;  %14012 = vmatprep.mubr.f32.mxu0 %v41276_v20 }
 0x8ee   : > { %14630 = vmatprep.mubr.f32.mxu1 %v41276_v20 }
 0x8f0   : > { %14014 = vmatmul.mubr.f32.vlgmr.msra.gmra.mrb[24].mxu0 %v37984_v16 }
 0x8f1   : > { %14632 = vmatmul.mubr.f32.vlgmr.msra.gmra.mrb[36].mxu1 %v37984_v16  ;;  %33855 = vmatpush1.bf16.msra.mxu0 %v41393_v26 }
 0x8f2   : > { %33857 = vmatprep.subr.bf16.mxu0 %v41394_v47  ;;  %14019 = vmatprep.mubr.f32.mxu0 %v41276_v20 }
 0x8f3   : > { %14637 = vmatprep.mubr.f32.mxu1 %v41276_v20 }
 0x8f4   : > { %14021 = vmatmul.mubr.f32.gmra.mrb[26].mxu0 %v38003_v39 }
 0x8f5   : > { %14639 = vmatmul.mubr.f32.gmra.mrb[38].mxu1 %v38003_v39  ;;  %14026 = vmatprep.mubr.f32.mxu0 %v41276_v20 }
 0x8f6   : > { %14644 = vmatprep.mubr.f32.mxu1 %v41276_v20 }
 0x8f8   : > { %14028 = vmatmul.mubr.f32.gmra.mrb[28].mxu0 %v38009_v19 }
 0x8f9   : > { %14646 = vmatmul.mubr.f32.gmra.mrb[40].mxu1 %v38009_v19  ;;  %14033 = vmatprep.mubr.f32.mxu0 %v41276_v20 }
 0x8fa   : > { %14651 = vmatprep.mubr.f32.mxu1 %v41276_v20 }
 0x8fc   : > { %14035 = vmatmul.mubr.f32.gmra.mrb[30].mxu0 %v38014_v62 }
 0x8fd   : > { %14653 = vmatmul.mubr.f32.gmra.mrb[42].mxu1 %v38014_v62  ;;  %14804 = vmatprep.mubr.f32.mxu0 %v41276_v20 }
 0x8fe   : > { %15446 = vmatprep.mubr.f32.mxu1 %v41276_v20 }
 0x900   : > { %14810 = vmatmul.mubr.f32.vlgmr.msra.gmra.mrb[32].mxu0 %v41356_v44 }
 0x901   : > { %33859 = vmatpush1.bf16.msra.mxu0 %v41395_v11  ;;  %14815 = vmatprep.mubr.f32.mxu0 %v41276_v20 }
 0x902   : > { %33861 = vmatprep.subr.bf16.mxu0 %v41398_v48 }
 0x904   : > { %14821 = vmatmul.mubr.f32.gmra.mrb[34].mxu0 %v37407_v7 }
 0x905   : > { %14826 = vmatprep.mubr.f32.mxu0 %v41276_v20 }
 0x908   : > { %14832 = vmatmul.mubr.f32.gmra.mrb[36].mxu0 %v37409_v2 }
 0x909   : > { %14837 = vmatprep.mubr.f32.mxu0 %v41276_v20 }
 0x90c   : > { %14843 = vmatmul.mubr.f32.gmra.mrb[38].mxu0 %v37545_v14 }
 0x90d   : > { %14933 = vmatprep.mubr.f32.mxu0 %v41276_v20 }
 0x910   : > { %14935 = vmatmul.mubr.f32.vlgmr.msra.gmra.mrb[32].mxu0 %v37354_v42 }
 0x911   : > { %33863 = vmatpush1.bf16.msra.mxu0 %v41401_v52  ;;  %14940 = vmatprep.mubr.f32.mxu0 %v41276_v20 }
 0x912   : > { %33865 = vmatprep.subr.bf16.mxu0 %v41392_v56 }
 0x914   : > { %14942 = vmatmul.mubr.f32.gmra.mrb[34].mxu0 %v37356_v45 }
 0x915   : > { %14947 = vmatprep.mubr.f32.mxu0 %v41276_v20 }
 0x918   : > { %14949 = vmatmul.mubr.f32.gmra.mrb[36].mxu0 %v37358_v30 }
 0x919   : > { %14954 = vmatprep.mubr.f32.mxu0 %v41276_v20 }
 0x91c   : > { %14956 = vmatmul.mubr.f32.gmra.mrb[38].mxu0 %v37372_v4 }
 0x91d   : > { %15034 = vmatprep.mubr.f32.mxu0 %v41276_v20 }
 0x920   : > { %15037 = vmatmul.mubr.f32.vlgmr.msra.gmra.mrb[32].mxu0 %v41402_v3 }
 0x921   : > { %33867 = vmatpush1.bf16.msra.mxu0 %v41393_v26  ;;  %15042 = vmatprep.mubr.f32.mxu0 %v41276_v20 }
 0x922   : > { %33869 = vmatprep.subr.bf16.mxu0 %v41403_v21  ;;  %v41419_v21 = vld [vmem:[#allocation102_spill] sm:$0xff] }
 0x924   : > { %15045 = vmatmul.mubr.f32.gmra.mrb[34].mxu0 %v41404_v36 }
 0x925   : > { %15050 = vmatprep.mubr.f32.mxu0 %v41276_v20 }
 0x928   : > { %15053 = vmatmul.mubr.f32.gmra.mrb[36].mxu0 %v41405_v15 }
 0x929   : > { %15058 = vmatprep.mubr.f32.mxu0 %v41276_v20 }
 0x92c   : > { %15061 = vmatmul.mubr.f32.gmra.mrb[38].mxu0 %v41406_v34 }
 0x92d   : > { %15135 = vmatprep.mubr.f32.mxu0 %v41276_v20 }
 0x930   : > { %15139 = vmatmul.mubr.f32.vlgmr.msra.gmra.mrb[32].mxu0 %v41407_v9 }
 0x931   : > { %33871 = vmatpush1.bf16.msra.mxu0 %v41408_v27  ;;  %15144 = vmatprep.mubr.f32.mxu0 %v41276_v20 }
 0x932   : > { %33873 = vmatprep.subr.bf16.mxu0 %v41392_v56 }
 0x934   : > { %15148 = vmatmul.mubr.f32.gmra.mrb[34].mxu0 %v41409_v53 }
 0x935   : > { %15153 = vmatprep.mubr.f32.mxu0 %v41276_v20 }
 0x938   : > { %15157 = vmatmul.mubr.f32.gmra.mrb[36].mxu0 %v41410_v63 }
 0x939   : > { %15162 = vmatprep.mubr.f32.mxu0 %v41276_v20 }
 0x93c   : > { %15166 = vmatmul.mubr.f32.gmra.mrb[38].mxu0 %v41411_v57 }
 0x93d   : > { %15248 = vmatprep.mubr.f32.mxu0 %v41276_v20 }
 0x940   : > { %15250 = vmatmul.mubr.f32.vlgmr.msra.gmra.mrb[32].mxu0 %v37354_v42 }
 0x941   : > { %33875 = vmatpush1.bf16.msra.mxu0 %v41393_v26  ;;  %15255 = vmatprep.mubr.f32.mxu0 %v41276_v20  ;;  %v41415_v26 = vld [vmem:[#allocation101_spill] sm:$0xff] }
 0x944   : > { %15257 = vmatmul.mubr.f32.gmra.mrb[34].mxu0 %v37356_v45 }
 0x945   : > { %15262 = vmatprep.mubr.f32.mxu0 %v41276_v20 }
 0x948   : > { %15264 = vmatmul.mubr.f32.gmra.mrb[36].mxu0 %v37358_v30 }
 0x949   : > { %15269 = vmatprep.mubr.f32.mxu0 %v41276_v20 }
 0x94c   : > { %15271 = vmatmul.mubr.f32.gmra.mrb[38].mxu0 %v37372_v4 }
 0x94d   : > { %15345 = vmatprep.mubr.f32.mxu0 %v41276_v20 }
 0x950   : > { %15347 = vmatmul.mubr.f32.vlgmr.msra.gmra.mrb[32].mxu0 %v37354_v42 }
 0x951   : > { %15352 = vmatprep.mubr.f32.mxu0 %v41276_v20 }
 0x954   : > { %15354 = vmatmul.mubr.f32.gmra.mrb[34].mxu0 %v37356_v45 }
 0x955   : > { %15359 = vmatprep.mubr.f32.mxu0 %v41276_v20 }
 0x958   : > { %15361 = vmatmul.mubr.f32.gmra.mrb[36].mxu0 %v37358_v30 }
 0x959   : > { %15366 = vmatprep.mubr.f32.mxu0 %v41276_v20 }
 0x95c   : > { %15368 = vmatmul.mubr.f32.gmra.mrb[38].mxu0 %v37372_v4 }
 0x95d   : > { %16625 = vmatprep.mubr.f32.mxu0 %v41276_v20 }
 0x9c3   : > { %v14015_v28 = vpop.f32.mrb[24].mxu0 }
 0x9c4   : > { %v14667_v23 = vmul.f32 %v14015_v28, %v41412_v1  ;;  %v14633_v51 = vpop.f32.mrb[36].mxu1  ;;  %v14017_v54 = vpop.f32.mrb[25].mxu0  ;;  %v41420_v28 = vld [vmem:[#allocation26_spill] sm:$0xff] }
 0x9c5   : > { %v14675_v38 = vmul.f32 %v41413_v32, %v14633_v51  ;;  %v14668_v6 = vmul.f32 %v14017_v54, %v41414_v59  ;;  %v14635_v56 = vpop.f32.mrb[37].mxu1  ;;  %v41421_v51 = vld [vmem:[#allocation103_spill] sm:$0xff] }
 0x9c6   : > { %v14676_v47 = vmul.f32 %v41415_v26, %v14635_v56  ;;  %v41423_v56 = vld [vmem:[#allocation27_spill] sm:$0xff] }
 0x9c7   : > { %v14022_v11 = vpop.f32.mrb[26].mxu0  ;;  %v38617_v43 = vadd.f32 %v14675_v38, %v14667_v23 }
 0x9c8   : > { %v14669_v48 = vmul.f32 %v14022_v11, %v41417_v46  ;;  %v14640_v49 = vpop.f32.mrb[38].mxu1  ;;  %v14024_v8 = vpop.f32.mrb[27].mxu0  ;;  %v38620_v52 = vadd.f32 %v14676_v47, %v14668_v6  ;;  %v41425_v11 = vld [vmem:[#allocation104_spill] sm:$0xff]  ;;  %v41426_v6 = vld [vmem:[#allocation91_spill] sm:$0xff] }
 0x9c9   : > { %41416 = vst [vmem:[#allocation95_spill] sm:$0xff] %v38617_v43  ;;  %v14677_v27 = vmul.f32 %v41419_v21, %v14640_v49  ;;  %v14670_v1 = vmul.f32 %v14024_v8, %v41420_v28  ;;  %v14642_v57 = vpop.f32.mrb[39].mxu1  ;;  %v41427_v49 = vld [vmem:[#allocation105_spill] sm:$0xff] }
 0x9ca   : > { %41418 = vst [vmem:[#allocation96_spill] sm:$0xff] %v38620_v52  ;;  %v14678_v32 = vmul.f32 %v41421_v51, %v14642_v57  ;;  %v41429_v57 = vld [vmem:[#allocation92_spill] sm:$0xff] }
 0x9cb   : > { %v14029_v54 = vpop.f32.mrb[28].mxu0  ;;  %v38625_v59 = vadd.f32 %v14677_v27, %v14669_v48 }
 0x9cc   : > { %v14671_v26 = vmul.f32 %v14029_v54, %v41423_v56  ;;  %v14647_v23 = vpop.f32.mrb[40].mxu1  ;;  %v14031_v38 = vpop.f32.mrb[29].mxu0  ;;  %v38628_v43 = vadd.f32 %v14678_v32, %v14670_v1  ;;  %v41431_v54 = vld [vmem:[#allocation106_spill] sm:$0xff]  ;;  %v41432_v1 = vld [vmem:[#allocation93_spill] sm:$0xff] }
 0x9cd   : > { %41422 = vst [vmem:[#allocation97_spill] sm:$0xff] %v38625_v59  ;;  %v14679_v46 = vmul.f32 %v41425_v11, %v14647_v23  ;;  %v14672_v47 = vmul.f32 %v14031_v38, %v41426_v6  ;;  %v14649_v52 = vpop.f32.mrb[41].mxu1 }
 0x9ce   : > { %41424 = vst [vmem:[#allocation99_spill] sm:$0xff] %v38628_v43  ;;  %v14680_v21 = vmul.f32 %v41427_v49, %v14649_v52  ;;  %v14719_v52 = vpop.permute.xlu1 %14718 }
 0x9cf   : > { %v14036_v8 = vpop.f32.mrb[30].mxu0  ;;  %v38633_v28 = vadd.f32 %v14679_v46, %v14671_v26 }
 0x9d0   : > { %v14673_v51 = vmul.f32 %v14036_v8, %v41429_v57  ;;  %v14654_v48 = vpop.f32.mrb[42].mxu1  ;;  %v14038_v27 = vpop.f32.mrb[31].mxu0  ;;  %v38636_v59 = vadd.f32 %v14680_v21, %v14672_v47 }
 0x9d1   : > { %41428 = vst [vmem:[#allocation100_spill] sm:$0xff] %v38633_v28  ;;  %v14681_v56 = vmul.f32 %v41431_v54, %v14654_v48  ;;  %v14674_v32 = vmul.f32 %v14038_v27, %v41432_v1  ;;  %v14656_v43 = vpop.f32.mrb[43].mxu1  ;;  %v14724_v47 = vpop.permute.xlu0 %14723 }
 0x9d2   : > { %41430 = vst [vmem:[#allocation98_spill] sm:$0xff] %v38636_v59  ;;  %v14682_v23 = vmul.f32 %v38337_v13, %v14656_v43  ;;  %v14729_v54 = vpop.permute.xlu1 %14728 }
 0x9d3   : > { %v38641_v38 = vadd.f32 %v14681_v56, %v14673_v51 }
 0x9d4   : > { %v38643_v11 = vadd.f32 %v14682_v23, %v14674_v32 }
 0x9d5   : > { %41433 = vst [vmem:[#allocation32_spill] sm:$0xff] %v38641_v38  ;;  %v14734_v28 = vpop.permute.xlu0 %14733 }
 0x9d6   : > { %41434 = vst [vmem:[#allocation35_spill] sm:$0xff] %v38643_v11 }
 0xa23   : > { %v15348_v26 = vpop.f32.mrb[32].mxu0 }
 0xa24   : > { %v38645_v46 = vadd.f32 %v15348_v26, %v14719_v52  ;;  %v15350_v6 = vpop.f32.mrb[33].mxu0 }
 0xa25   : > { %v38647_v49 = vadd.f32 %v15350_v6, %v14719_v52 }
 0xa26   : > { %41435 = vst [vmem:[#allocation43_spill] sm:$0xff] %v38645_v46  ;;  %v15376_v57 = vand.u32 4294901760, %v38645_v46 }
 0xa27   : > { %41436 = vst [vmem:[#allocation46_spill] sm:$0xff] %v38647_v49  ;;  %v15374_v21 = vand.u32 4294901760, %v38647_v49  ;;  %v15355_v8 = vpop.f32.mrb[34].mxu0 }
 0xa28   : > { %v38651_v48 = vadd.f32 %v15355_v8, %v14724_v47  ;;  %v15357_v13 = vpop.f32.mrb[35].mxu0  ;;  %v38661_v32 = vsub.f32 %v38645_v46, %v15376_v57 }
 0xa29   : > { %v38654_v43 = vsub.f32 %v38647_v49, %v15374_v21  ;;  %v38656_v51 = vadd.f32 %v15357_v13, %v14724_v47 }
 0xa2a   : > { %41437 = vst [vmem:[#allocation33_spill] sm:$0xff] %v38651_v48  ;;  %v15380_v27 = vand.u32 4294901760, %v38651_v48 }
 0xa2b   : > { %41438 = vst [vmem:[#allocation31_spill] sm:$0xff] %v38656_v51  ;;  %v15378_v56 = vand.u32 4294901760, %v38656_v51  ;;  %v15362_v1 = vpop.f32.mrb[36].mxu0  ;;  %v41173_v13 = vand.u32 4294901760, %v38654_v43 }
 0xa2c   : > { %v38664_v23 = vsub.f32 %v38651_v48, %v15380_v27  ;;  %v38666_v52 = vadd.f32 %v15362_v1, %v14729_v54  ;;  %v15364_v26 = vpop.f32.mrb[37].mxu0  ;;  %v38676_v11 = vpack.c.bf16 %v15380_v27, %v15376_v57 }
 0xa2d   : > { %v38669_v6 = vsub.f32 %v38656_v51, %v15378_v56  ;;  %v38671_v47 = vadd.f32 %v15364_v26, %v14729_v54  ;;  %v38673_v8 = vpack.c.bf16 %v15378_v56, %v15374_v21  ;;  %v15461_v38 = vsub.f32 %v38654_v43, %v41173_v13 }
 0xa2e   : > { %41439 = vst [vmem:[#allocation36_spill] sm:$0xff] %v38666_v52  ;;  %v15384_v59 = vand.u32 4294901760, %v38666_v52  ;;  %v41442_v54 = vand.u32 4294901760, %v38664_v23 }
 0xa2f   : > { %41440 = vst [vmem:[#allocation34_spill] sm:$0xff] %v38671_v47  ;;  %v15382_v1 = vand.u32 4294901760, %v38671_v47  ;;  %v15369_v48 = vpop.f32.mrb[38].mxu0  ;;  %33877 = vmatprep.subr.bf16.mxu1 %v38673_v8  ;;  %v15472_v51 = vand.u32 4294901760, %v38669_v6  ;;  %v15462_v15 = vand.u32 4294901760, %v15461_v38 }
 0xa30   : > { %v38685_v21 = vsub.f32 %v38666_v52, %v15384_v59  ;;  %v38687_v56 = vadd.f32 %v15369_v48, %v14734_v28  ;;  %v15371_v57 = vpop.f32.mrb[39].mxu0  ;;  %33879 = vmatpush1.bf16.msra.mxu1 %v38676_v11  ;;  %v15479_v52 = vsub.f32 %v38664_v23, %v41442_v54 }
 0xa31   : > { %v15483_v27 = vsub.f32 %v38671_v47, %v15382_v1  ;;  %v38691_v26 = vadd.f32 %v15371_v57, %v14734_v28  ;;  %v15473_v49 = vsub.f32 %v38669_v6, %v15472_v51  ;;  %v41443_v47 = vand.u32 4294901760, %v38661_v32 }
 0xa32   : > { %41441 = vst [vmem:[#allocation39_spill] sm:$0xff] %v38687_v56  ;;  %v15388_v48 = vand.u32 4294901760, %v38687_v56  ;;  %v15490_v57 = vand.u32 4294901760, %v38685_v21  ;;  %v15480_v3 = vand.u32 4294901760, %v15479_v52  ;;  %v33892_v52 = vpack.c.bf16 %v38669_v6, %v38654_v43 }
 0xa33   : > { %v15386_v46 = vand.u32 4294901760, %v38691_v26  ;;  %v15474_v63 = vand.u32 4294901760, %v15473_v49  ;;  %v15484_v53 = vand.u32 4294901760, %v15483_v27  ;;  %v15467_v28 = vsub.f32 %v38661_v32, %v41443_v47 }
 0xa34   : > { %v15501_v13 = vsub.f32 %v38687_v56, %v15388_v48  ;;  %v33882_v36 = vpack.c.bf16 %v15388_v48, %v15384_v59  ;;  %v15491_v45 = vsub.f32 %v38685_v21, %v15490_v57 }
 0xa35   : > { %v15495_v9 = vsub.f32 %v38691_v26, %v15386_v46  ;;  %v33880_v34 = vpack.c.bf16 %v15386_v46, %v15382_v1  ;;  %v33884_v4 = vpack.c.bf16 %v15474_v63, %v15462_v15  ;;  %v15485_v30 = vsub.f32 %v15483_v27, %v15484_v53 }
 0xa36   : > { %v15502_v54 = vand.u32 4294901760, %v15501_v13  ;;  %v15468_v47 = vand.u32 4294901760, %v15467_v28  ;;  %v15492_v59 = vand.u32 4294901760, %v15491_v45  ;;  %v33898_v45 = vpack.c.bf16 %v15501_v13, %v38685_v21 }
 0xa37   : > { %33881 = vmatprep.subr.bf16.mxu1 %v33880_v34  ;;  %v15496_v49 = vand.u32 4294901760, %v15495_v9  ;;  %v15486_v46 = vand.u32 4294901760, %v15485_v30  ;;  %v41444_v30 = vand.u32 4294901760, %v38654_v43 }
 0xa38   : > { %v15503_v42 = vsub.f32 %v15501_v13, %v15502_v54  ;;  %33883 = vmatpush1.bf16.msra.mxu1 %v33882_v36  ;;  %v33886_v2 = vpack.c.bf16 %v15480_v3, %v15468_v47  ;;  %v41446_v3 = vand.u32 4294901760, %v38664_v23  ;;  %v33914_v13 = vpack.c.bf16 %v15502_v54, %v15490_v57 }
 0xa39   : > { %33885 = vmatprep.subr.bf16.mxu1 %v33884_v4  ;;  %v15497_v14 = vsub.f32 %v15495_v9, %v15496_v49  ;;  %v33894_v4 = vpack.c.bf16 %v38664_v23, %v38661_v32  ;;  %v33912_v6 = vpack.c.bf16 %v15496_v49, %v15484_v53 }
 0xa3a   : > { %v15504_v56 = vand.u32 4294901760, %v15503_v42  ;;  %v33896_v42 = vpack.c.bf16 %v15495_v9, %v15483_v27 }
 0xa3b   : > { %15452 = vmatmul.mubr.f32.vlgmr.msra.gmra.mrb[44].mxu1 %v37935_v61  ;;  %v15498_v38 = vand.u32 4294901760, %v15497_v14  ;;  %v41445_v14 = vand.u32 4294901760, %v38661_v32 }
 0xa3c   : > { %33887 = vmatpush1.bf16.msra.mxu1 %v33886_v2  ;;  %15562 = vmatprep.mubr.f32.mxu1 %v41276_v20  ;;  %v33890_v63 = vpack.c.bf16 %v15504_v56, %v15492_v59  ;;  %v33908_v2 = vpack.c.bf16 %v15472_v51, %v41444_v30 }
 0xa3d   : > { %v33888_v15 = vpack.c.bf16 %v15498_v38, %v15486_v46  ;;  %v33910_v9 = vpack.c.bf16 %v41446_v3, %v41445_v14 }
 0xa3f   : > { %33889 = vmatprep.subr.bf16.mxu1 %v33888_v15 }
 0xa40   : > { %33891 = vmatpush1.bf16.msra.mxu1 %v33890_v63 }
 0xa41   : > { %33893 = vmatprep.subr.bf16.mxu1 %v33892_v52 }
 0xa43   : > { %15564 = vmatmul.mubr.f32.vlgmr.msra.gmra.mrb[44].mxu1 %v37862_v55 }
 0xa44   : > { %33895 = vmatpush1.bf16.msra.mxu1 %v33894_v4  ;;  %15650 = vmatprep.mubr.f32.mxu1 %v41276_v20 }
 0xa45   : > { %33897 = vmatprep.subr.bf16.mxu1 %v33896_v42 }
 0xa48   : > { %33899 = vmatpush1.bf16.msra.mxu1 %v33898_v45 }
 0xa49   : > { %33901 = vmatprep.subr.bf16.mxu1 %v38673_v8 }
 0xa4b   : > { %15653 = vmatmul.mubr.f32.vlgmr.msra.gmra.mrb[44].mxu1 %v37875_v22 }
 0xa4c   : > { %33903 = vmatpush1.bf16.msra.mxu1 %v38676_v11  ;;  %15731 = vmatprep.mubr.f32.mxu1 %v41276_v20 }
 0xa4d   : > { %33905 = vmatprep.subr.bf16.mxu1 %v33880_v34 }
 0xa50   : > { %33907 = vmatpush1.bf16.msra.mxu1 %v33882_v36 }
 0xa51   : > { %33909 = vmatprep.subr.bf16.mxu1 %v33908_v2 }
 0xa53   : > { %15735 = vmatmul.mubr.f32.vlgmr.msra.gmra.mrb[44].mxu1 %v37901_v29 }
 0xa54   : > { %33911 = vmatpush1.bf16.msra.mxu1 %v33910_v9  ;;  %15829 = vmatprep.mubr.f32.mxu1 %v41276_v20 }
 0xa55   : > { %33913 = vmatprep.subr.bf16.mxu1 %v33912_v6 }
 0xa58   : > { %33915 = vmatpush1.bf16.msra.mxu1 %v33914_v13 }
 0xa59   : > { %33917 = vmatprep.subr.bf16.mxu1 %v38673_v8 }
 0xa5b   : > { %15831 = vmatmul.mubr.f32.vlgmr.msra.gmra.mrb[44].mxu1 %v37862_v55 }
 0xa5c   : > { %33919 = vmatpush1.bf16.msra.mxu1 %v38676_v11  ;;  %15909 = vmatprep.mubr.f32.mxu1 %v41276_v20 }
 0xa5d   : > { %33921 = vmatprep.subr.bf16.mxu1 %v33880_v34 }
 0xa60   : > { %33923 = vmatpush1.bf16.msra.mxu1 %v33882_v36 }
 0xa63   : > { %15911 = vmatmul.mubr.f32.vlgmr.msra.gmra.mrb[44].mxu1 %v37862_v55 }
 0xa64   : > { %16007 = vmatprep.mubr.f32.mxu1 %v41276_v20 }
 0xb36   : > { %v15912_v53 = vpop.f32.mrb[44].mxu1 }
 0xb37   : > { %v34420_v43 = vadd.f32 %v15912_v53, %v41386_v31  ;;  %v15914_v51 = vpop.f32.mrb[45].mxu1 }
 0xb38   : > { %v34421_v32 = vadd.f32 %v15914_v51, %v41386_v31 }
 0xb39   : > { %v38739_v23 = vmax.f32 %v38385_v35, %v34420_v43 }
 0xb3a   : > { %v38742_v8 = vmax.f32 %v38388_v41, %v34421_v32 }
 0xb3b   : > { %v15919_v34 = vsub.f32 %v38385_v35, %v38739_v23  ;;  %v15925_v36 = vsub.f32 %v34420_v43, %v38739_v23 }
 0xb3c   : > { %v15920_v11 = vsub.f32 %v38388_v41, %v38742_v8  ;;  %v15926_v1 = vsub.f32 %v34421_v32, %v38742_v8 }
 0xb3d   : > { %v15921_v21 = vmul.f32 1.442695, %v15919_v34  ;;  %v15927_v56 = vmul.f32 1.442695, %v15925_v36 }
 0xb3e   : > { %v15923_v27 = vmul.f32 1.442695, %v15920_v11  ;;  %v15929_v48 = vmul.f32 1.442695, %v15926_v1  ;;  %v41447_v1 = vld [vmem:[#allocation37_spill] sm:$0xff] }
 0xb3f   : > { %35933 = vpow2.f32 %v15921_v21  ;;  %v41448_v21 = vld [vmem:[#allocation44_spill] sm:$0xff] }
 0xb40   : > { %35935 = vpow2.f32 %v15927_v56  ;;  %v41449_v56 = vld [vmem:[#allocation49_spill] sm:$0xff] }
 0xb41   : > { %35937 = vpow2.f32 %v15923_v27  ;;  %v41450_v27 = vld [vmem:[#allocation50_spill] sm:$0xff] }
 0xb42   : > { %35939 = vpow2.f32 %v15929_v48  ;;  %v41451_v48 = vld [vmem:[#allocation40_spill] sm:$0xff] }
 0xb49   : > { %v35934_v28 = vpop.eup %35933 }
 0xb4a   : > { %v35936_v57 = vpop.eup %35935  ;;  %v15931_v54 = vmul.f32 %v35934_v28, %v38401_v50  ;;  %v15936_v35 = vsel %vm8550_vm2, %v35934_v28, 0  ;;  %v41452_v28 = vld [vmem:[#allocation38_spill] sm:$0xff] }
 0xb4b   : > { %v35938_v49 = vpop.eup %35937  ;;  %v38752_v47 = vand.u32 4294901760, %v15936_v35  ;;  %v16554_v41 = vsel %vm8550_vm2, %v35936_v57, 0 }
 0xb4c   : > { %v35940_v46 = vpop.eup %35939  ;;  %v38755_v38 = vadd.f32 %v35936_v57, %v15931_v54  ;;  %v15932_v59 = vmul.f32 %v35938_v49, %v38413_v12  ;;  %v15939_v15 = vsel %vm8550_vm2, %v35938_v49, 0  ;;  %v38759_v63 = vand.u32 4294901760, %v16554_v41  ;;  %v41454_v54 = vld [vmem:[#allocation25_spill] sm:$0xff]  ;;  %v41456_v49 = vld [vmem:[#allocation12_spill] sm:$0xff] }
 0xb4d   : > { %v38761_v52 = vand.u32 4294901760, %v15939_v15  ;;  %v16557_v50 = vsel %vm8550_vm2, %v35940_v46, 0  ;;  %v38765_v4 = vsub.f32 %v15936_v35, %v38752_v47  ;;  %v41453_v57 = vpack.c.bf16 %v41451_v48, %v41452_v28  ;;  %v41455_v35 = vld [vmem:[#allocation30_spill] sm:$0xff]  ;;  %v41478_v28 = vld [vmem:[#allocation97_spill] sm:$0xff] }
 0xb4e   : > { %v38767_v42 = vadd.f32 %v35940_v46, %v15932_v59  ;;  %v38769_v45 = vand.u32 4294901760, %v16557_v50  ;;  %v38772_v30 = vsub.f32 %v16554_v41, %v38759_v63  ;;  %v41458_v41 = vld [vmem:[#allocation42_spill] sm:$0xff]  ;;  %v41460_v59 = vld [vmem:[#allocation13_spill] sm:$0xff] }
 0xb4f   : > { %15942 = vmatprep.subr.mxu1 %v38761_v52  ;;  %v38776_v12 = vsub.f32 %v15939_v15, %v38761_v52  ;;  %v16060_v2 = vand.u32 4294901760, %v38765_v4  ;;  %v41461_v15 = vld [vmem:[#allocation14_spill] sm:$0xff] }
 0xb50   : > { %16560 = vmatprep.subr.mxu0 %v38769_v45  ;;  %15944 = vmatpush1.msra.mxu1 %v38752_v47  ;;  %v16671_v14 = vsub.f32 %v16557_v50, %v38769_v45  ;;  %v16678_v3 = vand.u32 4294901760, %v38772_v30  ;;  %v41464_v50 = vld [vmem:[#allocation47_spill] sm:$0xff] }
 0xb51   : > { %16562 = vmatpush1.msra.mxu0 %v38759_v63  ;;  %16013 = vmatmul.mubr.f32.vlgmr.msra.gmra.mrb[46].mxu1 %v41391_v40  ;;  %v16054_v9 = vand.u32 4294901760, %v38776_v12  ;;  %v16061_v13 = vsub.f32 %v38765_v4, %v16060_v2 }
 0xb52   : > { %16631 = vmatmul.mubr.f32.vlgmr.msra.gmra.mrb[40].mxu0 %v41391_v40  ;;  %16018 = vmatprep.mubr.f32.mxu1 %v41276_v20  ;;  %v16672_v6 = vand.u32 4294901760, %v16671_v14  ;;  %v16679_v43 = vsub.f32 %v38772_v30, %v16678_v3 }
 0xb53   : > { %16636 = vmatprep.mubr.f32.mxu0 %v41276_v20  ;;  %v16055_v53 = vsub.f32 %v38776_v12, %v16054_v9  ;;  %v16062_v36 = vand.u32 4294901760, %v16061_v13  ;;  %v41473_v13 = vld [vmem:[#allocation95_spill] sm:$0xff] }
 0xb54   : > { %v16673_v51 = vsub.f32 %v16671_v14, %v16672_v6  ;;  %v16680_v11 = vand.u32 4294901760, %v16679_v43 }
 0xb55   : > { %16024 = vmatmul.mubr.f32.gmra.mrb[48].mxu1 %v38072_v60  ;;  %v16056_v32 = vand.u32 4294901760, %v16055_v53 }
 0xb56   : > { %16642 = vmatmul.mubr.f32.gmra.mrb[42].mxu0 %v38072_v60  ;;  %v16674_v34 = vand.u32 4294901760, %v16673_v51  ;;  %16029 = vmatprep.mubr.f32.mxu1 %v41276_v20 }
 0xb57   : > { %16057 = vmatprep.subr.mxu1 %v16056_v32  ;;  %16647 = vmatprep.mubr.f32.mxu0 %v41276_v20  ;;  %v41474_v32 = vld [vmem:[#allocation43_spill] sm:$0xff] }
 0xb58   : > { %16675 = vmatprep.subr.mxu0 %v16674_v34  ;;  %16063 = vmatpush1.msra.mxu1 %v16062_v36  ;;  %v41475_v36 = vld [vmem:[#allocation96_spill] sm:$0xff] }
 0xb59   : > { %16681 = vmatpush1.msra.mxu0 %v16680_v11  ;;  %16035 = vmatmul.mubr.f32.gmra.mrb[50].mxu1 %v38090_v17 }
 0xb5a   : > { %16157 = vmatprep.subr.mxu1 %v38776_v12  ;;  %16653 = vmatmul.mubr.f32.gmra.mrb[44].mxu0 %v38090_v17  ;;  %v41468_v12 = vld [vmem:[#allocation19_spill] sm:$0xff] }
 0xb5b   : > { %16775 = vmatprep.subr.mxu0 %v16671_v14  ;;  %16040 = vmatprep.mubr.f32.mxu1 %v41276_v20  ;;  %v41470_v14 = vld [vmem:[#allocation20_spill] sm:$0xff] }
 0xb5c   : > { %16658 = vmatprep.mubr.f32.mxu0 %v41276_v20 }
 0xb5d   : > { %16046 = vmatmul.mubr.f32.gmra.mrb[52].mxu1 %v38098_v37 }
 0xb5e   : > { %16664 = vmatmul.mubr.f32.gmra.mrb[46].mxu0 %v38098_v37  ;;  %16126 = vmatprep.mubr.f32.mxu1 %v41276_v20 }
 0xb5f   : > { %16744 = vmatprep.mubr.f32.mxu0 %v41276_v20 }
 0xb61   : > { %16128 = vmatmul.mubr.f32.vlgmr.msra.gmra.mrb[46].mxu1 %v37984_v16 }
 0xb62   : > { %16160 = vmatpush1.msra.mxu1 %v38765_v4  ;;  %16746 = vmatmul.mubr.f32.vlgmr.msra.gmra.mrb[40].mxu0 %v37984_v16  ;;  %v41465_v4 = vld [vmem:[#allocation16_spill] sm:$0xff] }
 0xb63   : > { %16778 = vmatpush1.msra.mxu0 %v38772_v30  ;;  %16257 = vmatprep.subr.mxu1 %v38761_v52  ;;  %v41467_v30 = vld [vmem:[#allocation22_spill] sm:$0xff] }
 0xb64   : > { %16875 = vmatprep.subr.mxu0 %v38769_v45  ;;  %16133 = vmatprep.mubr.f32.mxu1 %v41276_v20 }
 0xb65   : > { %16751 = vmatprep.mubr.f32.mxu0 %v41276_v20  ;;  %16135 = vmatmul.mubr.f32.gmra.mrb[48].mxu1 %v38003_v39 }
 0xb66   : > { %16753 = vmatmul.mubr.f32.gmra.mrb[42].mxu0 %v38003_v39  ;;  %16140 = vmatprep.mubr.f32.mxu1 %v41276_v20 }
 0xb67   : > { %16758 = vmatprep.mubr.f32.mxu0 %v41276_v20 }
 0xb69   : > { %16142 = vmatmul.mubr.f32.gmra.mrb[50].mxu1 %v38009_v19 }
 0xb6a   : > { %16760 = vmatmul.mubr.f32.gmra.mrb[44].mxu0 %v38009_v19  ;;  %16147 = vmatprep.mubr.f32.mxu1 %v41276_v20 }
 0xb6b   : > { %16765 = vmatprep.mubr.f32.mxu0 %v41276_v20 }
 0xb6d   : > { %16149 = vmatmul.mubr.f32.gmra.mrb[52].mxu1 %v38014_v62 }
 0xb6e   : > { %16767 = vmatmul.mubr.f32.gmra.mrb[46].mxu0 %v38014_v62  ;;  %16223 = vmatprep.mubr.f32.mxu1 %v41276_v20 }
 0xb6f   : > { %16841 = vmatprep.mubr.f32.mxu0 %v41276_v20 }
 0xb71   : > { %16226 = vmatmul.mubr.f32.vlgmr.msra.gmra.mrb[46].mxu1 %v37997_v25 }
 0xb72   : > { %16259 = vmatpush1.msra.mxu1 %v38752_v47  ;;  %16844 = vmatmul.mubr.f32.vlgmr.msra.gmra.mrb[40].mxu0 %v37997_v25 }
 0xb73   : > { %16877 = vmatpush1.msra.mxu0 %v38759_v63  ;;  %16362 = vmatprep.subr.mxu1 %v16054_v9  ;;  %v41472_v9 = vld [vmem:[#allocation23_spill] sm:$0xff] }
 0xb74   : > { %16980 = vmatprep.subr.mxu0 %v16672_v6  ;;  %16231 = vmatprep.mubr.f32.mxu1 %v41276_v20 }
 0xb75   : > { %16849 = vmatprep.mubr.f32.mxu0 %v41276_v20  ;;  %16234 = vmatmul.mubr.f32.gmra.mrb[48].mxu1 %v38012_v33 }
 0xb76   : > { %16852 = vmatmul.mubr.f32.gmra.mrb[42].mxu0 %v38012_v33  ;;  %16239 = vmatprep.mubr.f32.mxu1 %v41276_v20 }
 0xb77   : > { %16857 = vmatprep.mubr.f32.mxu0 %v41276_v20 }
 0xb79   : > { %16242 = vmatmul.mubr.f32.gmra.mrb[50].mxu1 %v38017_v24 }
 0xb7a   : > { %16860 = vmatmul.mubr.f32.gmra.mrb[44].mxu0 %v38017_v24  ;;  %16247 = vmatprep.mubr.f32.mxu1 %v41276_v20 }
 0xb7b   : > { %16865 = vmatprep.mubr.f32.mxu0 %v41276_v20 }
 0xb7d   : > { %16250 = vmatmul.mubr.f32.gmra.mrb[52].mxu1 %v38025_v5 }
 0xb7e   : > { %16868 = vmatmul.mubr.f32.gmra.mrb[46].mxu0 %v38025_v5  ;;  %16322 = vmatprep.mubr.f32.mxu1 %v41276_v20 }
 0xb7f   : > { %16940 = vmatprep.mubr.f32.mxu0 %v41276_v20 }
 0xb81   : > { %16326 = vmatmul.mubr.f32.vlgmr.msra.gmra.mrb[46].mxu1 %v38007_v10 }
 0xb82   : > { %16366 = vmatpush1.msra.mxu1 %v16060_v2  ;;  %16944 = vmatmul.mubr.f32.vlgmr.msra.gmra.mrb[40].mxu0 %v38007_v10  ;;  %v41469_v2 = vld [vmem:[#allocation48_spill] sm:$0xff] }
 0xb83   : > { %16984 = vmatpush1.msra.mxu0 %v16678_v3  ;;  %16459 = vmatprep.subr.mxu1 %v38761_v52  ;;  %v41463_v52 = vld [vmem:[#allocation15_spill] sm:$0xff]  ;;  %v41471_v3 = vld [vmem:[#allocation21_spill] sm:$0xff] }
 0xb84   : > { %17077 = vmatprep.subr.mxu0 %v38769_v45  ;;  %16331 = vmatprep.mubr.f32.mxu1 %v41276_v20  ;;  %v41466_v45 = vld [vmem:[#allocation17_spill] sm:$0xff] }
 0xb85   : > { %16949 = vmatprep.mubr.f32.mxu0 %v41276_v20  ;;  %16335 = vmatmul.mubr.f32.gmra.mrb[48].mxu1 %v38022_v58 }
 0xb86   : > { %16953 = vmatmul.mubr.f32.gmra.mrb[42].mxu0 %v38022_v58  ;;  %16340 = vmatprep.mubr.f32.mxu1 %v41276_v20 }
 0xb87   : > { %16958 = vmatprep.mubr.f32.mxu0 %v41276_v20 }
 0xb89   : > { %16344 = vmatmul.mubr.f32.gmra.mrb[50].mxu1 %v38029_v0 }
 0xb8a   : > { %16962 = vmatmul.mubr.f32.gmra.mrb[44].mxu0 %v38029_v0  ;;  %16349 = vmatprep.mubr.f32.mxu1 %v41276_v20 }
 0xb8b   : > { %16967 = vmatprep.mubr.f32.mxu0 %v41276_v20 }
 0xb8d   : > { %16353 = vmatmul.mubr.f32.gmra.mrb[52].mxu1 %v38068_v18 }
 0xb8e   : > { %16971 = vmatmul.mubr.f32.gmra.mrb[46].mxu0 %v38068_v18  ;;  %16429 = vmatprep.mubr.f32.mxu1 %v41276_v20 }
 0xb8f   : > { %17047 = vmatprep.mubr.f32.mxu0 %v41276_v20 }
 0xb91   : > { %16431 = vmatmul.mubr.f32.vlgmr.msra.gmra.mrb[46].mxu1 %v37984_v16 }
 0xb92   : > { %16461 = vmatpush1.msra.mxu1 %v38752_v47  ;;  %17049 = vmatmul.mubr.f32.vlgmr.msra.gmra.mrb[40].mxu0 %v37984_v16  ;;  %v41457_v47 = vld [vmem:[#allocation45_spill] sm:$0xff] }
 0xb93   : > { %17079 = vmatpush1.msra.mxu0 %v38759_v63  ;;  %33925 = vmatprep.subr.bf16.mxu1 %v41447_v1  ;;  %v41459_v46 = vpack.c.bf16 %v41457_v47, %v41458_v41  ;;  %v41462_v63 = vld [vmem:[#allocation18_spill] sm:$0xff] }
 0xb94   : > { %16436 = vmatprep.mubr.f32.mxu1 %v41276_v20  ;;  %17054 = vmatprep.mubr.f32.mxu0 %v41276_v20 }
 0xb95   : > { %16438 = vmatmul.mubr.f32.gmra.mrb[48].mxu1 %v38003_v39 }
 0xb96   : > { %17056 = vmatmul.mubr.f32.gmra.mrb[42].mxu0 %v38003_v39  ;;  %16443 = vmatprep.mubr.f32.mxu1 %v41276_v20 }
 0xb97   : > { %17061 = vmatprep.mubr.f32.mxu0 %v41276_v20 }
 0xb99   : > { %16445 = vmatmul.mubr.f32.gmra.mrb[50].mxu1 %v38009_v19 }
 0xb9a   : > { %17063 = vmatmul.mubr.f32.gmra.mrb[44].mxu0 %v38009_v19  ;;  %16450 = vmatprep.mubr.f32.mxu1 %v41276_v20 }
 0xb9b   : > { %17068 = vmatprep.mubr.f32.mxu0 %v41276_v20 }
 0xb9d   : > { %16452 = vmatmul.mubr.f32.gmra.mrb[52].mxu1 %v38014_v62 }
 0xb9e   : > { %17070 = vmatmul.mubr.f32.gmra.mrb[46].mxu0 %v38014_v62  ;;  %16524 = vmatprep.mubr.f32.mxu1 %v41276_v20 }
 0xb9f   : > { %17142 = vmatprep.mubr.f32.mxu0 %v41276_v20 }
 0xba1   : > { %16526 = vmatmul.mubr.f32.vlgmr.msra.gmra.mrb[46].mxu1 %v37984_v16 }
 0xba2   : > { %17144 = vmatmul.mubr.f32.vlgmr.msra.gmra.mrb[40].mxu0 %v37984_v16  ;;  %33927 = vmatpush1.bf16.msra.mxu1 %v41448_v21 }
 0xba3   : > { %33929 = vmatprep.subr.bf16.mxu1 %v41449_v56  ;;  %16531 = vmatprep.mubr.f32.mxu1 %v41276_v20 }
 0xba4   : > { %17149 = vmatprep.mubr.f32.mxu0 %v41276_v20 }
 0xba5   : > { %16533 = vmatmul.mubr.f32.gmra.mrb[48].mxu1 %v38003_v39 }
 0xba6   : > { %17151 = vmatmul.mubr.f32.gmra.mrb[42].mxu0 %v38003_v39  ;;  %16538 = vmatprep.mubr.f32.mxu1 %v41276_v20 }
 0xba7   : > { %17156 = vmatprep.mubr.f32.mxu0 %v41276_v20 }
 0xba9   : > { %16540 = vmatmul.mubr.f32.gmra.mrb[50].mxu1 %v38009_v19 }
 0xbaa   : > { %17158 = vmatmul.mubr.f32.gmra.mrb[44].mxu0 %v38009_v19  ;;  %16545 = vmatprep.mubr.f32.mxu1 %v41276_v20 }
 0xbab   : > { %17163 = vmatprep.mubr.f32.mxu0 %v41276_v20 }
 0xbad   : > { %16547 = vmatmul.mubr.f32.gmra.mrb[52].mxu1 %v38014_v62 }
 0xbae   : > { %17165 = vmatmul.mubr.f32.gmra.mrb[46].mxu0 %v38014_v62  ;;  %17316 = vmatprep.mubr.f32.mxu1 %v41276_v20 }
 0xbaf   : > { %17958 = vmatprep.mubr.f32.mxu0 %v41276_v20 }
 0xbb1   : > { %17322 = vmatmul.mubr.f32.vlgmr.msra.gmra.mrb[54].mxu1 %v41356_v44 }
 0xbb2   : > { %33931 = vmatpush1.bf16.msra.mxu1 %v41450_v27  ;;  %17327 = vmatprep.mubr.f32.mxu1 %v41276_v20 }
 0xbb3   : > { %33933 = vmatprep.subr.bf16.mxu1 %v41453_v57 }
 0xbb5   : > { %17333 = vmatmul.mubr.f32.gmra.mrb[56].mxu1 %v37407_v7 }
 0xbb6   : > { %17338 = vmatprep.mubr.f32.mxu1 %v41276_v20 }
 0xbb9   : > { %17344 = vmatmul.mubr.f32.gmra.mrb[58].mxu1 %v41454_v54 }
 0xbba   : > { %17349 = vmatprep.mubr.f32.mxu1 %v41276_v20 }
 0xbbd   : > { %17355 = vmatmul.mubr.f32.gmra.mrb[60].mxu1 %v41455_v35 }
 0xbbe   : > { %17445 = vmatprep.mubr.f32.mxu1 %v41276_v20 }
 0xbc1   : > { %17447 = vmatmul.mubr.f32.vlgmr.msra.gmra.mrb[54].mxu1 %v41456_v49 }
 0xbc2   : > { %33935 = vmatpush1.bf16.msra.mxu1 %v41459_v46  ;;  %17452 = vmatprep.mubr.f32.mxu1 %v41276_v20 }
 0xbc3   : > { %33937 = vmatprep.subr.bf16.mxu1 %v41447_v1 }
 0xbc5   : > { %17454 = vmatmul.mubr.f32.gmra.mrb[56].mxu1 %v41460_v59 }
 0xbc6   : > { %17459 = vmatprep.mubr.f32.mxu1 %v41276_v20 }
 0xbc9   : > { %17461 = vmatmul.mubr.f32.gmra.mrb[58].mxu1 %v41461_v15 }
 0xbca   : > { %17466 = vmatprep.mubr.f32.mxu1 %v41276_v20 }
 0xbcd   : > { %17468 = vmatmul.mubr.f32.gmra.mrb[60].mxu1 %v41462_v63 }
 0xbce   : > { %17546 = vmatprep.mubr.f32.mxu1 %v41276_v20 }
 0xbd1   : > { %17549 = vmatmul.mubr.f32.vlgmr.msra.gmra.mrb[54].mxu1 %v41463_v52 }
 0xbd2   : > { %33939 = vmatpush1.bf16.msra.mxu1 %v41448_v21  ;;  %17554 = vmatprep.mubr.f32.mxu1 %v41276_v20 }
 0xbd3   : > { %33941 = vmatprep.subr.bf16.mxu1 %v41464_v50  ;;  %v41480_v50 = vld [vmem:[#allocation33_spill] sm:$0xff] }
 0xbd5   : > { %17557 = vmatmul.mubr.f32.gmra.mrb[56].mxu1 %v41465_v4 }
 0xbd6   : > { %17562 = vmatprep.mubr.f32.mxu1 %v41276_v20 }
 0xbd9   : > { %17565 = vmatmul.mubr.f32.gmra.mrb[58].mxu1 %v41466_v45 }
 0xbda   : > { %17570 = vmatprep.mubr.f32.mxu1 %v41276_v20 }
 0xbdd   : > { %17573 = vmatmul.mubr.f32.gmra.mrb[60].mxu1 %v41467_v30 }
 0xbde   : > { %17647 = vmatprep.mubr.f32.mxu1 %v41276_v20 }
 0xbe1   : > { %17651 = vmatmul.mubr.f32.vlgmr.msra.gmra.mrb[54].mxu1 %v41468_v12 }
 0xbe2   : > { %33943 = vmatpush1.bf16.msra.mxu1 %v41469_v2  ;;  %17656 = vmatprep.mubr.f32.mxu1 %v41276_v20 }
 0xbe3   : > { %33945 = vmatprep.subr.bf16.mxu1 %v41447_v1 }
 0xbe5   : > { %17660 = vmatmul.mubr.f32.gmra.mrb[56].mxu1 %v41470_v14 }
 0xbe6   : > { %17665 = vmatprep.mubr.f32.mxu1 %v41276_v20 }
 0xbe9   : > { %17669 = vmatmul.mubr.f32.gmra.mrb[58].mxu1 %v41471_v3 }
 0xbea   : > { %17674 = vmatprep.mubr.f32.mxu1 %v41276_v20 }
 0xbed   : > { %17678 = vmatmul.mubr.f32.gmra.mrb[60].mxu1 %v41472_v9 }
 0xbee   : > { %17760 = vmatprep.mubr.f32.mxu1 %v41276_v20 }
 0xbf1   : > { %17762 = vmatmul.mubr.f32.vlgmr.msra.gmra.mrb[54].mxu1 %v41456_v49 }
 0xbf2   : > { %33947 = vmatpush1.bf16.msra.mxu1 %v41448_v21  ;;  %17767 = vmatprep.mubr.f32.mxu1 %v41276_v20  ;;  %v41476_v21 = vld [vmem:[#allocation46_spill] sm:$0xff] }
 0xbf5   : > { %17769 = vmatmul.mubr.f32.gmra.mrb[56].mxu1 %v41460_v59 }
 0xbf6   : > { %17774 = vmatprep.mubr.f32.mxu1 %v41276_v20 }
 0xbf9   : > { %17776 = vmatmul.mubr.f32.gmra.mrb[58].mxu1 %v41461_v15 }
 0xbfa   : > { %17781 = vmatprep.mubr.f32.mxu1 %v41276_v20 }
 0xbfd   : > { %17783 = vmatmul.mubr.f32.gmra.mrb[60].mxu1 %v41462_v63 }
 0xbfe   : > { %17857 = vmatprep.mubr.f32.mxu1 %v41276_v20 }
 0xc01   : > { %17859 = vmatmul.mubr.f32.vlgmr.msra.gmra.mrb[54].mxu1 %v41456_v49 }
 0xc02   : > { %17864 = vmatprep.mubr.f32.mxu1 %v41276_v20 }
 0xc05   : > { %17866 = vmatmul.mubr.f32.gmra.mrb[56].mxu1 %v41460_v59 }
 0xc06   : > { %17871 = vmatprep.mubr.f32.mxu1 %v41276_v20 }
 0xc09   : > { %17873 = vmatmul.mubr.f32.gmra.mrb[58].mxu1 %v41461_v15 }
 0xc0a   : > { %17878 = vmatprep.mubr.f32.mxu1 %v41276_v20 }
 0xc0d   : > { %17880 = vmatmul.mubr.f32.gmra.mrb[60].mxu1 %v41462_v63 }
 0xc0e   : > { %19137 = vmatprep.mubr.f32.mxu1 %v41276_v20 }
 0xc74   : > { %v16527_v6 = vpop.f32.mrb[46].mxu1 }
 0xc75   : > { %v17179_v53 = vmul.f32 %v16527_v6, %v41473_v13  ;;  %v17145_v43 = vpop.f32.mrb[40].mxu0  ;;  %v16529_v51 = vpop.f32.mrb[47].mxu1  ;;  %v41481_v6 = vld [vmem:[#allocation99_spill] sm:$0xff] }
 0xc76   : > { %v17187_v34 = vmul.f32 %v41474_v32, %v17145_v43  ;;  %v17180_v11 = vmul.f32 %v16529_v51, %v41475_v36  ;;  %v17147_v1 = vpop.f32.mrb[41].mxu0  ;;  %v41482_v43 = vld [vmem:[#allocation31_spill] sm:$0xff] }
 0xc77   : > { %v17188_v56 = vmul.f32 %v41476_v21, %v17147_v1  ;;  %v41484_v1 = vld [vmem:[#allocation100_spill] sm:$0xff] }
 0xc78   : > { %v16534_v27 = vpop.f32.mrb[48].mxu1  ;;  %v38971_v48 = vadd.f32 %v17187_v34, %v17179_v53 }
 0xc79   : > { %v17181_v57 = vmul.f32 %v16534_v27, %v41478_v28  ;;  %v17152_v47 = vpop.f32.mrb[42].mxu0  ;;  %v16536_v41 = vpop.f32.mrb[49].mxu1  ;;  %v38974_v46 = vadd.f32 %v17188_v56, %v17180_v11  ;;  %v41486_v27 = vld [vmem:[#allocation36_spill] sm:$0xff]  ;;  %v41487_v11 = vld [vmem:[#allocation98_spill] sm:$0xff] }
 0xc7a   : > { %41477 = vst [vmem:[#allocation41_spill] sm:$0xff] %v38971_v48  ;;  %v17189_v2 = vmul.f32 %v41480_v50, %v17152_v47  ;;  %v17182_v13 = vmul.f32 %v16536_v41, %v41481_v6  ;;  %v17154_v9 = vpop.f32.mrb[43].mxu0  ;;  %v41488_v47 = vld [vmem:[#allocation34_spill] sm:$0xff] }
 0xc7b   : > { %41479 = vst [vmem:[#allocation28_spill] sm:$0xff] %v38974_v46  ;;  %v17190_v32 = vmul.f32 %v41482_v43, %v17154_v9  ;;  %v41490_v9 = vld [vmem:[#allocation32_spill] sm:$0xff] }
 0xc7c   : > { %v16541_v51 = vpop.f32.mrb[50].mxu1  ;;  %v38979_v36 = vadd.f32 %v17189_v2, %v17181_v57 }
 0xc7d   : > { %v17183_v21 = vmul.f32 %v16541_v51, %v41484_v1  ;;  %v17159_v53 = vpop.f32.mrb[44].mxu0  ;;  %v16543_v34 = vpop.f32.mrb[51].mxu1  ;;  %v38982_v48 = vadd.f32 %v17190_v32, %v17182_v13  ;;  %v41492_v51 = vld [vmem:[#allocation39_spill] sm:$0xff] }
 0xc7e   : > { %41483 = vst [vmem:[#allocation94_spill] sm:$0xff] %v38979_v36  ;;  %v17191_v28 = vmul.f32 %v41486_v27, %v17159_v53  ;;  %v17184_v56 = vmul.f32 %v16543_v34, %v41487_v11  ;;  %v17161_v46 = vpop.f32.mrb[45].mxu0  ;;  %v41493_v13 = vld [vmem:[#allocation35_spill] sm:$0xff] }
 0xc7f   : > { %41485 = vst [vmem:[#allocation24_spill] sm:$0xff] %v38982_v48  ;;  %v17192_v50 = vmul.f32 %v41488_v47, %v17161_v46  ;;  %v17231_v46 = vpop.permute.xlu1 %17230 }
 0xc80   : > { %v16548_v41 = vpop.f32.mrb[52].mxu1  ;;  %v38987_v6 = vadd.f32 %v17191_v28, %v17183_v21 }
 0xc81   : > { %v17185_v43 = vmul.f32 %v16548_v41, %v41490_v9  ;;  %v17166_v57 = vpop.f32.mrb[46].mxu0  ;;  %v16550_v2 = vpop.f32.mrb[53].mxu1  ;;  %v38990_v36 = vadd.f32 %v17192_v50, %v17184_v56 }
 0xc82   : > { %41489 = vst [vmem:[#allocation101_spill] sm:$0xff] %v38987_v6  ;;  %v17193_v1 = vmul.f32 %v41492_v51, %v17166_v57  ;;  %v17186_v32 = vmul.f32 %v16550_v2, %v41493_v13  ;;  %v17168_v48 = vpop.f32.mrb[47].mxu0  ;;  %v17236_v56 = vpop.permute.xlu0 %17235 }
 0xc83   : > { %41491 = vst [vmem:[#allocation29_spill] sm:$0xff] %v38990_v36  ;;  %v17194_v53 = vmul.f32 %v38691_v26, %v17168_v48  ;;  %v17241_v51 = vpop.permute.xlu1 %17240 }
 0xc84   : > { %v38995_v34 = vadd.f32 %v17193_v1, %v17185_v43 }
 0xc85   : > { %v38997_v27 = vadd.f32 %v17194_v53, %v17186_v32 }
 0xc86   : > { %41494 = vst [vmem:[#allocation102_spill] sm:$0xff] %v38995_v34  ;;  %v17246_v6 = vpop.permute.xlu0 %17245 }
 0xc87   : > { %41495 = vst [vmem:[#allocation26_spill] sm:$0xff] %v38997_v27 }
 0xcd4   : > { %v17860_v21 = vpop.f32.mrb[54].mxu1 }
 0xcd5   : > { %v38999_v28 = vadd.f32 %v17860_v21, %v17231_v46  ;;  %v17862_v11 = vpop.f32.mrb[55].mxu1 }
 0xcd6   : > { %v39001_v47 = vadd.f32 %v17862_v11, %v17231_v46 }
 0xcd7   : > { %41496 = vst [vmem:[#allocation103_spill] sm:$0xff] %v38999_v28  ;;  %v17888_v9 = vand.u32 4294901760, %v38999_v28 }
 0xcd8   : > { %41497 = vst [vmem:[#allocation27_spill] sm:$0xff] %v39001_v47  ;;  %v17886_v50 = vand.u32 4294901760, %v39001_v47  ;;  %v17867_v41 = vpop.f32.mrb[56].mxu1 }
 0xcd9   : > { %v39005_v57 = vadd.f32 %v17867_v41, %v17236_v56  ;;  %v17869_v26 = vpop.f32.mrb[57].mxu1  ;;  %v39015_v32 = vsub.f32 %v38999_v28, %v17888_v9 }
 0xcda   : > { %v39008_v48 = vsub.f32 %v39001_v47, %v17886_v50  ;;  %v39010_v43 = vadd.f32 %v17869_v26, %v17236_v56 }
 0xcdb   : > { %41498 = vst [vmem:[#allocation104_spill] sm:$0xff] %v39005_v57  ;;  %v17892_v2 = vand.u32 4294901760, %v39005_v57 }
 0xcdc   : > { %41499 = vst [vmem:[#allocation91_spill] sm:$0xff] %v39010_v43  ;;  %v17890_v1 = vand.u32 4294901760, %v39010_v43  ;;  %v17874_v13 = vpop.f32.mrb[58].mxu1  ;;  %v41193_v26 = vand.u32 4294901760, %v39008_v48 }
 0xcdd   : > { %v39018_v53 = vsub.f32 %v39005_v57, %v17892_v2  ;;  %v39020_v46 = vadd.f32 %v17874_v13, %v17241_v51  ;;  %v17876_v21 = vpop.f32.mrb[59].mxu1  ;;  %v39030_v27 = vpack.c.bf16 %v17892_v2, %v17888_v9 }
 0xcde   : > { %v39023_v11 = vsub.f32 %v39010_v43, %v17890_v1  ;;  %v39025_v56 = vadd.f32 %v17876_v21, %v17241_v51  ;;  %v39027_v41 = vpack.c.bf16 %v17890_v1, %v17886_v50  ;;  %v17973_v34 = vsub.f32 %v39008_v48, %v41193_v26 }
 0xcdf   : > { %41500 = vst [vmem:[#allocation105_spill] sm:$0xff] %v39020_v46  ;;  %v17896_v36 = vand.u32 4294901760, %v39020_v46  ;;  %v41503_v51 = vand.u32 4294901760, %v39018_v53 }
 0xce0   : > { %41501 = vst [vmem:[#allocation92_spill] sm:$0xff] %v39025_v56  ;;  %v17894_v13 = vand.u32 4294901760, %v39025_v56  ;;  %v17881_v57 = vpop.f32.mrb[60].mxu1  ;;  %33949 = vmatprep.subr.bf16.mxu0 %v39027_v41  ;;  %v17984_v43 = vand.u32 4294901760, %v39023_v11  ;;  %v17974_v45 = vand.u32 4294901760, %v17973_v34 }
 0xce1   : > { %v39039_v50 = vsub.f32 %v39020_v46, %v17896_v36  ;;  %v39041_v1 = vadd.f32 %v17881_v57, %v17246_v6  ;;  %v17883_v9 = vpop.f32.mrb[61].mxu1  ;;  %33951 = vmatpush1.bf16.msra.mxu0 %v39030_v27  ;;  %v17991_v46 = vsub.f32 %v39018_v53, %v41503_v51 }
 0xce2   : > { %v17995_v2 = vsub.f32 %v39025_v56, %v17894_v13  ;;  %v39045_v21 = vadd.f32 %v17883_v9, %v17246_v6  ;;  %v17985_v47 = vsub.f32 %v39023_v11, %v17984_v43  ;;  %v41504_v56 = vand.u32 4294901760, %v39015_v32 }
 0xce3   : > { %41502 = vst [vmem:[#allocation106_spill] sm:$0xff] %v39041_v1  ;;  %v17900_v57 = vand.u32 4294901760, %v39041_v1  ;;  %v18002_v9 = vand.u32 4294901760, %v39039_v50  ;;  %v17992_v52 = vand.u32 4294901760, %v17991_v46  ;;  %v33964_v46 = vpack.c.bf16 %v39023_v11, %v39008_v48 }
 0xce4   : > { %v17898_v28 = vand.u32 4294901760, %v39045_v21  ;;  %v17986_v3 = vand.u32 4294901760, %v17985_v47  ;;  %v17996_v14 = vand.u32 4294901760, %v17995_v2  ;;  %v17979_v6 = vsub.f32 %v39015_v32, %v41504_v56 }
 0xce5   : > { %v18013_v26 = vsub.f32 %v39041_v1, %v17900_v57  ;;  %v33954_v4 = vpack.c.bf16 %v17900_v57, %v17896_v36  ;;  %v18003_v59 = vsub.f32 %v39039_v50, %v18002_v9 }
 0xce6   : > { %v18007_v12 = vsub.f32 %v39045_v21, %v17898_v28  ;;  %v33952_v30 = vpack.c.bf16 %v17898_v28, %v17894_v13  ;;  %v33956_v63 = vpack.c.bf16 %v17986_v3, %v17974_v45  ;;  %v17997_v15 = vsub.f32 %v17995_v2, %v17996_v14 }
 0xce7   : > { %v18014_v51 = vand.u32 4294901760, %v18013_v26  ;;  %v17980_v56 = vand.u32 4294901760, %v17979_v6  ;;  %v18004_v36 = vand.u32 4294901760, %v18003_v59 }
 0xce8   : > { %33953 = vmatprep.subr.bf16.mxu0 %v33952_v30  ;;  %v18008_v47 = vand.u32 4294901760, %v18007_v12  ;;  %v17998_v28 = vand.u32 4294901760, %v17997_v15  ;;  %v41506_v15 = vand.u32 4294901760, %v39015_v32 }
 0xce9   : > { %v18015_v49 = vsub.f32 %v18013_v26, %v18014_v51  ;;  %33955 = vmatpush1.bf16.msra.mxu0 %v33954_v4  ;;  %v33958_v54 = vpack.c.bf16 %v17992_v52, %v17980_v56  ;;  %v41507_v52 = vand.u32 4294901760, %v39018_v53 }
 0xcea   : > { %33957 = vmatprep.subr.bf16.mxu0 %v33956_v63  ;;  %v18009_v35 = vsub.f32 %v18007_v12, %v18008_v47  ;;  %v33966_v63 = vpack.c.bf16 %v39018_v53, %v39015_v32  ;;  %v33984_v11 = vpack.c.bf16 %v18008_v47, %v17996_v14 }
 0xceb   : > { %v18016_v1 = vand.u32 4294901760, %v18015_v49  ;;  %v33968_v49 = vpack.c.bf16 %v18007_v12, %v17995_v2  ;;  %v33982_v12 = vpack.c.bf16 %v41507_v52, %v41506_v15 }
 0xcec   : > { %17964 = vmatmul.mubr.f32.vlgmr.msra.gmra.mrb[48].mxu0 %v37935_v61  ;;  %v18010_v34 = vand.u32 4294901760, %v18009_v35  ;;  %v41505_v35 = vand.u32 4294901760, %v39008_v48 }
 0xced   : > { %33959 = vmatpush1.bf16.msra.mxu0 %v33958_v54  ;;  %18074 = vmatprep.mubr.f32.mxu0 %v41276_v20  ;;  %v33962_v3 = vpack.c.bf16 %v18016_v1, %v18004_v36  ;;  %v33970_v54 = vpack.c.bf16 %v18013_v26, %v39039_v50  ;;  %v33986_v26 = vpack.c.bf16 %v18014_v51, %v18002_v9 }
 0xcee   : > { %v33960_v45 = vpack.c.bf16 %v18010_v34, %v17998_v28  ;;  %v33980_v59 = vpack.c.bf16 %v17984_v43, %v41505_v35 }
 0xcf0   : > { %33961 = vmatprep.subr.bf16.mxu0 %v33960_v45 }
 0xcf1   : > { %33963 = vmatpush1.bf16.msra.mxu0 %v33962_v3 }
 0xcf2   : > { %33965 = vmatprep.subr.bf16.mxu0 %v33964_v46 }
 0xcf4   : > { %18076 = vmatmul.mubr.f32.vlgmr.msra.gmra.mrb[48].mxu0 %v37862_v55 }
 0xcf5   : > { %33967 = vmatpush1.bf16.msra.mxu0 %v33966_v63  ;;  %18162 = vmatprep.mubr.f32.mxu0 %v41276_v20 }
 0xcf6   : > { %33969 = vmatprep.subr.bf16.mxu0 %v33968_v49 }
 0xcf9   : > { %33971 = vmatpush1.bf16.msra.mxu0 %v33970_v54 }
 0xcfa   : > { %33973 = vmatprep.subr.bf16.mxu0 %v39027_v41 }
 0xcfc   : > { %18165 = vmatmul.mubr.f32.vlgmr.msra.gmra.mrb[48].mxu0 %v37875_v22 }
 0xcfd   : > { %33975 = vmatpush1.bf16.msra.mxu0 %v39030_v27  ;;  %18243 = vmatprep.mubr.f32.mxu0 %v41276_v20 }
 0xcfe   : > { %33977 = vmatprep.subr.bf16.mxu0 %v33952_v30 }
 0xd01   : > { %33979 = vmatpush1.bf16.msra.mxu0 %v33954_v4 }
 0xd02   : > { %33981 = vmatprep.subr.bf16.mxu0 %v33980_v59 }
 0xd04   : > { %18247 = vmatmul.mubr.f32.vlgmr.msra.gmra.mrb[48].mxu0 %v37901_v29 }
 0xd05   : > { %33983 = vmatpush1.bf16.msra.mxu0 %v33982_v12  ;;  %18341 = vmatprep.mubr.f32.mxu0 %v41276_v20 }
 0xd06   : > { %33985 = vmatprep.subr.bf16.mxu0 %v33984_v11 }
 0xd09   : > { %33987 = vmatpush1.bf16.msra.mxu0 %v33986_v26 }
 0xd0a   : > { %33989 = vmatprep.subr.bf16.mxu0 %v39027_v41 }
 0xd0c   : > { %18343 = vmatmul.mubr.f32.vlgmr.msra.gmra.mrb[48].mxu0 %v37862_v55 }
 0xd0d   : > { %33991 = vmatpush1.bf16.msra.mxu0 %v39030_v27  ;;  %18421 = vmatprep.mubr.f32.mxu0 %v41276_v20 }
 0xd0e   : > { %33993 = vmatprep.subr.bf16.mxu0 %v33952_v30 }
 0xd11   : > { %33995 = vmatpush1.bf16.msra.mxu0 %v33954_v4 }
 0xd14   : > { %18423 = vmatmul.mubr.f32.vlgmr.msra.gmra.mrb[48].mxu0 %v37862_v55 }
 0xd15   : > { %18519 = vmatprep.mubr.f32.mxu0 %v41276_v20 }
 0xde7   : > { %v18424_v14 = vpop.f32.mrb[48].mxu0 }
 0xde8   : > { %v34430_v48 = vadd.f32 %v18424_v14, %v41386_v31  ;;  %v18426_v43 = vpop.f32.mrb[49].mxu0 }
 0xde9   : > { %v34431_v32 = vadd.f32 %v18426_v43, %v41386_v31 }
 0xdea   : > { %v39093_v53 = vmax.f32 %v38739_v23, %v34430_v48 }
 0xdeb   : > { %v39096_v41 = vmax.f32 %v38742_v8, %v34431_v32 }
 0xdec   : > { %v18431_v30 = vsub.f32 %v38739_v23, %v39093_v53  ;;  %v18437_v4 = vsub.f32 %v34430_v48, %v39093_v53 }
 0xded   : > { %v18432_v27 = vsub.f32 %v38742_v8, %v39096_v41  ;;  %v18438_v13 = vsub.f32 %v34431_v32, %v39096_v41 }
 0xdee   : > { %v18433_v50 = vmul.f32 1.442695, %v18431_v30  ;;  %v18439_v1 = vmul.f32 1.442695, %v18437_v4 }
 0xdef   : > { %v18435_v2 = vmul.f32 1.442695, %v18432_v27  ;;  %v18441_v57 = vmul.f32 1.442695, %v18438_v13  ;;  %v41508_v13 = vld [vmem:[#allocation52_spill] sm:$0xff] }
 0xdf0   : > { %35941 = vpow2.f32 %v18433_v50  ;;  %v41509_v50 = vld [vmem:[#allocation55_spill] sm:$0xff] }
 0xdf1   : > { %35943 = vpow2.f32 %v18439_v1  ;;  %v41510_v1 = vld [vmem:[#allocation62_spill] sm:$0xff] }
 0xdf2   : > { %35945 = vpow2.f32 %v18435_v2  ;;  %v41511_v2 = vld [vmem:[#allocation63_spill] sm:$0xff] }
 0xdf3   : > { %35947 = vpow2.f32 %v18441_v57  ;;  %v41512_v57 = vld [vmem:[#allocation53_spill] sm:$0xff] }
 0xdfa   : > { %v35942_v6 = vpop.eup %35941 }
 0xdfb   : > { %v35944_v9 = vpop.eup %35943  ;;  %v18443_v51 = vmul.f32 %v35942_v6, %v38755_v38  ;;  %v18448_v23 = vsel %vm8550_vm2, %v35942_v6, 0  ;;  %v41513_v6 = vld [vmem:[#allocation51_spill] sm:$0xff] }
 0xdfc   : > { %v35946_v47 = vpop.eup %35945  ;;  %v39106_v56 = vand.u32 4294901760, %v18448_v23  ;;  %v19066_v8 = vsel %vm8550_vm2, %v35944_v9, 0 }
 0xdfd   : > { %v35948_v28 = vpop.eup %35947  ;;  %v39109_v34 = vadd.f32 %v35944_v9, %v18443_v51  ;;  %v18444_v36 = vmul.f32 %v35946_v47, %v38767_v42  ;;  %v18451_v45 = vsel %vm8550_vm2, %v35946_v47, 0  ;;  %v39113_v3 = vand.u32 4294901760, %v19066_v8  ;;  %v41515_v51 = vld [vmem:[#allocation25_spill] sm:$0xff]  ;;  %v41517_v47 = vld [vmem:[#allocation12_spill] sm:$0xff] }
 0xdfe   : > { %v39115_v46 = vand.u32 4294901760, %v18451_v45  ;;  %v19069_v38 = vsel %vm8550_vm2, %v35948_v28, 0  ;;  %v39119_v63 = vsub.f32 %v18448_v23, %v39106_v56  ;;  %v41514_v9 = vpack.c.bf16 %v41512_v57, %v41513_v6  ;;  %v41516_v23 = vld [vmem:[#allocation30_spill] sm:$0xff] }
 0xdff   : > { %v39121_v49 = vadd.f32 %v35948_v28, %v18444_v36  ;;  %v39123_v54 = vand.u32 4294901760, %v19069_v38  ;;  %v39126_v35 = vsub.f32 %v19066_v8, %v39113_v3  ;;  %v41519_v8 = vld [vmem:[#allocation54_spill] sm:$0xff]  ;;  %v41521_v36 = vld [vmem:[#allocation13_spill] sm:$0xff] }
 0xe00   : > { %18454 = vmatprep.subr.mxu0 %v39115_v46  ;;  %v39130_v42 = vsub.f32 %v18451_v45, %v39115_v46  ;;  %v18572_v59 = vand.u32 4294901760, %v39119_v63  ;;  %v41522_v45 = vld [vmem:[#allocation14_spill] sm:$0xff] }
 0xe01   : > { %19072 = vmatprep.subr.mxu1 %v39123_v54  ;;  %18456 = vmatpush1.msra.mxu0 %v39106_v56  ;;  %v19183_v15 = vsub.f32 %v19069_v38, %v39123_v54  ;;  %v19190_v52 = vand.u32 4294901760, %v39126_v35  ;;  %v41525_v38 = vld [vmem:[#allocation58_spill] sm:$0xff] }
 0xe02   : > { %19074 = vmatpush1.msra.mxu1 %v39113_v3  ;;  %18525 = vmatmul.mubr.f32.vlgmr.msra.gmra.mrb[50].mxu0 %v41391_v40  ;;  %v18566_v12 = vand.u32 4294901760, %v39130_v42  ;;  %v18573_v26 = vsub.f32 %v39119_v63, %v18572_v59  ;;  %v41539_v6 = vld [vmem:[#allocation94_spill] sm:$0xff] }
 0xe03   : > { %19143 = vmatmul.mubr.f32.vlgmr.msra.gmra.mrb[62].mxu1 %v41391_v40  ;;  %18530 = vmatprep.mubr.f32.mxu0 %v41276_v20  ;;  %v19184_v11 = vand.u32 4294901760, %v19183_v15  ;;  %v19191_v48 = vsub.f32 %v39126_v35, %v19190_v52 }
 0xe04   : > { %19148 = vmatprep.mubr.f32.mxu1 %v41276_v20  ;;  %v18567_v14 = vsub.f32 %v39130_v42, %v18566_v12  ;;  %v18574_v4 = vand.u32 4294901760, %v18573_v26  ;;  %v41534_v26 = vld [vmem:[#allocation41_spill] sm:$0xff] }
 0xe05   : > { %v19185_v43 = vsub.f32 %v19183_v15, %v19184_v11  ;;  %v19192_v27 = vand.u32 4294901760, %v19191_v48 }
 0xe06   : > { %18536 = vmatmul.mubr.f32.gmra.mrb[52].mxu0 %v38072_v60  ;;  %v18568_v32 = vand.u32 4294901760, %v18567_v14 }
 0xe07   : > { %19154 = vmatmul.mubr.f32.gmra.mrb[64].mxu1 %v38072_v60  ;;  %v19186_v30 = vand.u32 4294901760, %v19185_v43  ;;  %18541 = vmatprep.mubr.f32.mxu0 %v41276_v20 }
 0xe08   : > { %18569 = vmatprep.subr.mxu0 %v18568_v32  ;;  %19159 = vmatprep.mubr.f32.mxu1 %v41276_v20  ;;  %v41535_v32 = vld [vmem:[#allocation103_spill] sm:$0xff] }
 0xe09   : > { %19187 = vmatprep.subr.mxu1 %v19186_v30  ;;  %18575 = vmatpush1.msra.mxu0 %v18574_v4  ;;  %v41536_v4 = vld [vmem:[#allocation28_spill] sm:$0xff] }
 0xe0a   : > { %19193 = vmatpush1.msra.mxu1 %v19192_v27  ;;  %18547 = vmatmul.mubr.f32.gmra.mrb[54].mxu0 %v38090_v17 }
 0xe0b   : > { %18669 = vmatprep.subr.mxu0 %v39130_v42  ;;  %19165 = vmatmul.mubr.f32.gmra.mrb[66].mxu1 %v38090_v17  ;;  %v41529_v42 = vld [vmem:[#allocation19_spill] sm:$0xff] }
 0xe0c   : > { %19287 = vmatprep.subr.mxu1 %v19183_v15  ;;  %18552 = vmatprep.mubr.f32.mxu0 %v41276_v20  ;;  %v41531_v15 = vld [vmem:[#allocation20_spill] sm:$0xff] }
 0xe0d   : > { %19170 = vmatprep.mubr.f32.mxu1 %v41276_v20 }
 0xe0e   : > { %18558 = vmatmul.mubr.f32.gmra.mrb[56].mxu0 %v38098_v37 }
 0xe0f   : > { %19176 = vmatmul.mubr.f32.gmra.mrb[68].mxu1 %v38098_v37  ;;  %18638 = vmatprep.mubr.f32.mxu0 %v41276_v20 }
 0xe10   : > { %19256 = vmatprep.mubr.f32.mxu1 %v41276_v20 }
 0xe12   : > { %18640 = vmatmul.mubr.f32.vlgmr.msra.gmra.mrb[50].mxu0 %v37984_v16 }
 0xe13   : > { %18672 = vmatpush1.msra.mxu0 %v39119_v63  ;;  %19258 = vmatmul.mubr.f32.vlgmr.msra.gmra.mrb[62].mxu1 %v37984_v16  ;;  %v41526_v63 = vld [vmem:[#allocation16_spill] sm:$0xff] }
 0xe14   : > { %19290 = vmatpush1.msra.mxu1 %v39126_v35  ;;  %18769 = vmatprep.subr.mxu0 %v39115_v46  ;;  %v41528_v35 = vld [vmem:[#allocation22_spill] sm:$0xff] }
 0xe15   : > { %19387 = vmatprep.subr.mxu1 %v39123_v54  ;;  %18645 = vmatprep.mubr.f32.mxu0 %v41276_v20 }
 0xe16   : > { %19263 = vmatprep.mubr.f32.mxu1 %v41276_v20  ;;  %18647 = vmatmul.mubr.f32.gmra.mrb[52].mxu0 %v38003_v39 }
 0xe17   : > { %19265 = vmatmul.mubr.f32.gmra.mrb[64].mxu1 %v38003_v39  ;;  %18652 = vmatprep.mubr.f32.mxu0 %v41276_v20 }
 0xe18   : > { %19270 = vmatprep.mubr.f32.mxu1 %v41276_v20 }
 0xe1a   : > { %18654 = vmatmul.mubr.f32.gmra.mrb[54].mxu0 %v38009_v19 }
 0xe1b   : > { %19272 = vmatmul.mubr.f32.gmra.mrb[66].mxu1 %v38009_v19  ;;  %18659 = vmatprep.mubr.f32.mxu0 %v41276_v20 }
 0xe1c   : > { %19277 = vmatprep.mubr.f32.mxu1 %v41276_v20 }
 0xe1e   : > { %18661 = vmatmul.mubr.f32.gmra.mrb[56].mxu0 %v38014_v62 }
 0xe1f   : > { %19279 = vmatmul.mubr.f32.gmra.mrb[68].mxu1 %v38014_v62  ;;  %18735 = vmatprep.mubr.f32.mxu0 %v41276_v20 }
 0xe20   : > { %19353 = vmatprep.mubr.f32.mxu1 %v41276_v20 }
 0xe22   : > { %18738 = vmatmul.mubr.f32.vlgmr.msra.gmra.mrb[50].mxu0 %v37997_v25 }
 0xe23   : > { %18771 = vmatpush1.msra.mxu0 %v39106_v56  ;;  %19356 = vmatmul.mubr.f32.vlgmr.msra.gmra.mrb[62].mxu1 %v37997_v25 }
 0xe24   : > { %19389 = vmatpush1.msra.mxu1 %v39113_v3  ;;  %18874 = vmatprep.subr.mxu0 %v18566_v12  ;;  %v41533_v12 = vld [vmem:[#allocation23_spill] sm:$0xff] }
 0xe25   : > { %19492 = vmatprep.subr.mxu1 %v19184_v11  ;;  %18743 = vmatprep.mubr.f32.mxu0 %v41276_v20 }
 0xe26   : > { %19361 = vmatprep.mubr.f32.mxu1 %v41276_v20  ;;  %18746 = vmatmul.mubr.f32.gmra.mrb[52].mxu0 %v38012_v33 }
 0xe27   : > { %19364 = vmatmul.mubr.f32.gmra.mrb[64].mxu1 %v38012_v33  ;;  %18751 = vmatprep.mubr.f32.mxu0 %v41276_v20 }
 0xe28   : > { %19369 = vmatprep.mubr.f32.mxu1 %v41276_v20 }
 0xe2a   : > { %18754 = vmatmul.mubr.f32.gmra.mrb[54].mxu0 %v38017_v24 }
 0xe2b   : > { %19372 = vmatmul.mubr.f32.gmra.mrb[66].mxu1 %v38017_v24  ;;  %18759 = vmatprep.mubr.f32.mxu0 %v41276_v20 }
 0xe2c   : > { %19377 = vmatprep.mubr.f32.mxu1 %v41276_v20 }
 0xe2e   : > { %18762 = vmatmul.mubr.f32.gmra.mrb[56].mxu0 %v38025_v5 }
 0xe2f   : > { %19380 = vmatmul.mubr.f32.gmra.mrb[68].mxu1 %v38025_v5  ;;  %18834 = vmatprep.mubr.f32.mxu0 %v41276_v20 }
 0xe30   : > { %19452 = vmatprep.mubr.f32.mxu1 %v41276_v20 }
 0xe32   : > { %18838 = vmatmul.mubr.f32.vlgmr.msra.gmra.mrb[50].mxu0 %v38007_v10 }
 0xe33   : > { %18878 = vmatpush1.msra.mxu0 %v18572_v59  ;;  %19456 = vmatmul.mubr.f32.vlgmr.msra.gmra.mrb[62].mxu1 %v38007_v10  ;;  %v41530_v59 = vld [vmem:[#allocation60_spill] sm:$0xff] }
 0xe34   : > { %19496 = vmatpush1.msra.mxu1 %v19190_v52  ;;  %18971 = vmatprep.subr.mxu0 %v39115_v46  ;;  %v41524_v46 = vld [vmem:[#allocation15_spill] sm:$0xff]  ;;  %v41532_v52 = vld [vmem:[#allocation21_spill] sm:$0xff] }
 0xe35   : > { %19589 = vmatprep.subr.mxu1 %v39123_v54  ;;  %18843 = vmatprep.mubr.f32.mxu0 %v41276_v20  ;;  %v41527_v54 = vld [vmem:[#allocation17_spill] sm:$0xff] }
 0xe36   : > { %19461 = vmatprep.mubr.f32.mxu1 %v41276_v20  ;;  %18847 = vmatmul.mubr.f32.gmra.mrb[52].mxu0 %v38022_v58 }
 0xe37   : > { %19465 = vmatmul.mubr.f32.gmra.mrb[64].mxu1 %v38022_v58  ;;  %18852 = vmatprep.mubr.f32.mxu0 %v41276_v20 }
 0xe38   : > { %19470 = vmatprep.mubr.f32.mxu1 %v41276_v20 }
 0xe3a   : > { %18856 = vmatmul.mubr.f32.gmra.mrb[54].mxu0 %v38029_v0 }
 0xe3b   : > { %19474 = vmatmul.mubr.f32.gmra.mrb[66].mxu1 %v38029_v0  ;;  %18861 = vmatprep.mubr.f32.mxu0 %v41276_v20 }
 0xe3c   : > { %19479 = vmatprep.mubr.f32.mxu1 %v41276_v20 }
 0xe3e   : > { %18865 = vmatmul.mubr.f32.gmra.mrb[56].mxu0 %v38068_v18 }
 0xe3f   : > { %19483 = vmatmul.mubr.f32.gmra.mrb[68].mxu1 %v38068_v18  ;;  %18941 = vmatprep.mubr.f32.mxu0 %v41276_v20 }
 0xe40   : > { %19559 = vmatprep.mubr.f32.mxu1 %v41276_v20 }
 0xe42   : > { %18943 = vmatmul.mubr.f32.vlgmr.msra.gmra.mrb[50].mxu0 %v37984_v16 }
 0xe43   : > { %18973 = vmatpush1.msra.mxu0 %v39106_v56  ;;  %19561 = vmatmul.mubr.f32.vlgmr.msra.gmra.mrb[62].mxu1 %v37984_v16  ;;  %v41518_v56 = vld [vmem:[#allocation56_spill] sm:$0xff] }
 0xe44   : > { %19591 = vmatpush1.msra.mxu1 %v39113_v3  ;;  %33997 = vmatprep.subr.bf16.mxu0 %v41508_v13  ;;  %v41520_v28 = vpack.c.bf16 %v41518_v56, %v41519_v8  ;;  %v41523_v3 = vld [vmem:[#allocation18_spill] sm:$0xff] }
 0xe45   : > { %18948 = vmatprep.mubr.f32.mxu0 %v41276_v20  ;;  %19566 = vmatprep.mubr.f32.mxu1 %v41276_v20 }
 0xe46   : > { %18950 = vmatmul.mubr.f32.gmra.mrb[52].mxu0 %v38003_v39 }
 0xe47   : > { %19568 = vmatmul.mubr.f32.gmra.mrb[64].mxu1 %v38003_v39  ;;  %18955 = vmatprep.mubr.f32.mxu0 %v41276_v20 }
 0xe48   : > { %19573 = vmatprep.mubr.f32.mxu1 %v41276_v20 }
 0xe4a   : > { %18957 = vmatmul.mubr.f32.gmra.mrb[54].mxu0 %v38009_v19 }
 0xe4b   : > { %19575 = vmatmul.mubr.f32.gmra.mrb[66].mxu1 %v38009_v19  ;;  %18962 = vmatprep.mubr.f32.mxu0 %v41276_v20 }
 0xe4c   : > { %19580 = vmatprep.mubr.f32.mxu1 %v41276_v20 }
 0xe4e   : > { %18964 = vmatmul.mubr.f32.gmra.mrb[56].mxu0 %v38014_v62 }
 0xe4f   : > { %19582 = vmatmul.mubr.f32.gmra.mrb[68].mxu1 %v38014_v62  ;;  %19036 = vmatprep.mubr.f32.mxu0 %v41276_v20 }
 0xe50   : > { %19654 = vmatprep.mubr.f32.mxu1 %v41276_v20 }
 0xe52   : > { %19038 = vmatmul.mubr.f32.vlgmr.msra.gmra.mrb[50].mxu0 %v37984_v16 }
 0xe53   : > { %19656 = vmatmul.mubr.f32.vlgmr.msra.gmra.mrb[62].mxu1 %v37984_v16  ;;  %33999 = vmatpush1.bf16.msra.mxu0 %v41509_v50 }
 0xe54   : > { %34001 = vmatprep.subr.bf16.mxu0 %v41510_v1  ;;  %19043 = vmatprep.mubr.f32.mxu0 %v41276_v20 }
 0xe55   : > { %19661 = vmatprep.mubr.f32.mxu1 %v41276_v20 }
 0xe56   : > { %19045 = vmatmul.mubr.f32.gmra.mrb[52].mxu0 %v38003_v39 }
 0xe57   : > { %19663 = vmatmul.mubr.f32.gmra.mrb[64].mxu1 %v38003_v39  ;;  %19050 = vmatprep.mubr.f32.mxu0 %v41276_v20 }
 0xe58   : > { %19668 = vmatprep.mubr.f32.mxu1 %v41276_v20 }
 0xe5a   : > { %19052 = vmatmul.mubr.f32.gmra.mrb[54].mxu0 %v38009_v19 }
 0xe5b   : > { %19670 = vmatmul.mubr.f32.gmra.mrb[66].mxu1 %v38009_v19  ;;  %19057 = vmatprep.mubr.f32.mxu0 %v41276_v20 }
 0xe5c   : > { %19675 = vmatprep.mubr.f32.mxu1 %v41276_v20 }
 0xe5e   : > { %19059 = vmatmul.mubr.f32.gmra.mrb[56].mxu0 %v38014_v62 }
 0xe5f   : > { %19677 = vmatmul.mubr.f32.gmra.mrb[68].mxu1 %v38014_v62  ;;  %19828 = vmatprep.mubr.f32.mxu0 %v41276_v20 }
 0xe60   : > { %20470 = vmatprep.mubr.f32.mxu1 %v41276_v20 }
 0xe62   : > { %19834 = vmatmul.mubr.f32.vlgmr.msra.gmra.mrb[58].mxu0 %v41356_v44 }
 0xe63   : > { %34003 = vmatpush1.bf16.msra.mxu0 %v41511_v2  ;;  %19839 = vmatprep.mubr.f32.mxu0 %v41276_v20 }
 0xe64   : > { %34005 = vmatprep.subr.bf16.mxu0 %v41514_v9 }
 0xe66   : > { %19845 = vmatmul.mubr.f32.gmra.mrb[60].mxu0 %v37407_v7 }
 0xe67   : > { %19850 = vmatprep.mubr.f32.mxu0 %v41276_v20 }
 0xe6a   : > { %19856 = vmatmul.mubr.f32.gmra.mrb[62].mxu0 %v41515_v51 }
 0xe6b   : > { %19861 = vmatprep.mubr.f32.mxu0 %v41276_v20 }
 0xe6e   : > { %19867 = vmatmul.mubr.f32.gmra.mrb[64].mxu0 %v41516_v23 }
 0xe6f   : > { %19957 = vmatprep.mubr.f32.mxu0 %v41276_v20 }
 0xe72   : > { %19959 = vmatmul.mubr.f32.vlgmr.msra.gmra.mrb[58].mxu0 %v41517_v47 }
 0xe73   : > { %34007 = vmatpush1.bf16.msra.mxu0 %v41520_v28  ;;  %19964 = vmatprep.mubr.f32.mxu0 %v41276_v20 }
 0xe74   : > { %34009 = vmatprep.subr.bf16.mxu0 %v41508_v13 }
 0xe76   : > { %19966 = vmatmul.mubr.f32.gmra.mrb[60].mxu0 %v41521_v36 }
 0xe77   : > { %19971 = vmatprep.mubr.f32.mxu0 %v41276_v20 }
 0xe7a   : > { %19973 = vmatmul.mubr.f32.gmra.mrb[62].mxu0 %v41522_v45 }
 0xe7b   : > { %19978 = vmatprep.mubr.f32.mxu0 %v41276_v20 }
 0xe7e   : > { %19980 = vmatmul.mubr.f32.gmra.mrb[64].mxu0 %v41523_v3 }
 0xe7f   : > { %20058 = vmatprep.mubr.f32.mxu0 %v41276_v20 }
 0xe82   : > { %20061 = vmatmul.mubr.f32.vlgmr.msra.gmra.mrb[58].mxu0 %v41524_v46 }
 0xe83   : > { %34011 = vmatpush1.bf16.msra.mxu0 %v41509_v50  ;;  %20066 = vmatprep.mubr.f32.mxu0 %v41276_v20 }
 0xe84   : > { %34013 = vmatprep.subr.bf16.mxu0 %v41525_v38  ;;  %v41541_v38 = vld [vmem:[#allocation104_spill] sm:$0xff] }
 0xe86   : > { %20069 = vmatmul.mubr.f32.gmra.mrb[60].mxu0 %v41526_v63 }
 0xe87   : > { %20074 = vmatprep.mubr.f32.mxu0 %v41276_v20 }
 0xe8a   : > { %20077 = vmatmul.mubr.f32.gmra.mrb[62].mxu0 %v41527_v54 }
 0xe8b   : > { %20082 = vmatprep.mubr.f32.mxu0 %v41276_v20 }
 0xe8e   : > { %20085 = vmatmul.mubr.f32.gmra.mrb[64].mxu0 %v41528_v35 }
 0xe8f   : > { %20159 = vmatprep.mubr.f32.mxu0 %v41276_v20 }
 0xe92   : > { %20163 = vmatmul.mubr.f32.vlgmr.msra.gmra.mrb[58].mxu0 %v41529_v42 }
 0xe93   : > { %34015 = vmatpush1.bf16.msra.mxu0 %v41530_v59  ;;  %20168 = vmatprep.mubr.f32.mxu0 %v41276_v20 }
 0xe94   : > { %34017 = vmatprep.subr.bf16.mxu0 %v41508_v13 }
 0xe96   : > { %20172 = vmatmul.mubr.f32.gmra.mrb[60].mxu0 %v41531_v15 }
 0xe97   : > { %20177 = vmatprep.mubr.f32.mxu0 %v41276_v20 }
 0xe9a   : > { %20181 = vmatmul.mubr.f32.gmra.mrb[62].mxu0 %v41532_v52 }
 0xe9b   : > { %20186 = vmatprep.mubr.f32.mxu0 %v41276_v20 }
 0xe9e   : > { %20190 = vmatmul.mubr.f32.gmra.mrb[64].mxu0 %v41533_v12 }
 0xe9f   : > { %20272 = vmatprep.mubr.f32.mxu0 %v41276_v20 }
 0xea2   : > { %20274 = vmatmul.mubr.f32.vlgmr.msra.gmra.mrb[58].mxu0 %v41517_v47 }
 0xea3   : > { %34019 = vmatpush1.bf16.msra.mxu0 %v41509_v50  ;;  %20279 = vmatprep.mubr.f32.mxu0 %v41276_v20  ;;  %v41537_v50 = vld [vmem:[#allocation27_spill] sm:$0xff] }
 0xea6   : > { %20281 = vmatmul.mubr.f32.gmra.mrb[60].mxu0 %v41521_v36 }
 0xea7   : > { %20286 = vmatprep.mubr.f32.mxu0 %v41276_v20 }
 0xeaa   : > { %20288 = vmatmul.mubr.f32.gmra.mrb[62].mxu0 %v41522_v45 }
 0xeab   : > { %20293 = vmatprep.mubr.f32.mxu0 %v41276_v20 }
 0xeae   : > { %20295 = vmatmul.mubr.f32.gmra.mrb[64].mxu0 %v41523_v3 }
 0xeaf   : > { %20369 = vmatprep.mubr.f32.mxu0 %v41276_v20 }
 0xeb2   : > { %20371 = vmatmul.mubr.f32.vlgmr.msra.gmra.mrb[58].mxu0 %v41517_v47 }
 0xeb3   : > { %20376 = vmatprep.mubr.f32.mxu0 %v41276_v20 }
 0xeb6   : > { %20378 = vmatmul.mubr.f32.gmra.mrb[60].mxu0 %v41521_v36 }
 0xeb7   : > { %20383 = vmatprep.mubr.f32.mxu0 %v41276_v20 }
 0xeba   : > { %20385 = vmatmul.mubr.f32.gmra.mrb[62].mxu0 %v41522_v45 }
 0xebb   : > { %20390 = vmatprep.mubr.f32.mxu0 %v41276_v20 }
 0xebe   : > { %20392 = vmatmul.mubr.f32.gmra.mrb[64].mxu0 %v41523_v3 }
 0xebf   : > { %21649 = vmatprep.mubr.f32.mxu0 %v41276_v20 }
 0xf25   : > { %v19039_v11 = vpop.f32.mrb[50].mxu0 }
 0xf26   : > { %v19691_v14 = vmul.f32 %v19039_v11, %v41534_v26  ;;  %v19657_v48 = vpop.f32.mrb[62].mxu1  ;;  %v19041_v43 = vpop.f32.mrb[51].mxu0  ;;  %v41542_v11 = vld [vmem:[#allocation24_spill] sm:$0xff] }
 0xf27   : > { %v19699_v30 = vmul.f32 %v41535_v32, %v19657_v48  ;;  %v19692_v27 = vmul.f32 %v19041_v43, %v41536_v4  ;;  %v19659_v13 = vpop.f32.mrb[63].mxu1  ;;  %v41543_v48 = vld [vmem:[#allocation91_spill] sm:$0xff] }
 0xf28   : > { %v19700_v1 = vmul.f32 %v41537_v50, %v19659_v13  ;;  %v41545_v13 = vld [vmem:[#allocation101_spill] sm:$0xff] }
 0xf29   : > { %v19046_v2 = vpop.f32.mrb[52].mxu0  ;;  %v39325_v57 = vadd.f32 %v19699_v30, %v19691_v14 }
 0xf2a   : > { %v19693_v9 = vmul.f32 %v19046_v2, %v41539_v6  ;;  %v19664_v56 = vpop.f32.mrb[64].mxu1  ;;  %v19048_v8 = vpop.f32.mrb[53].mxu0  ;;  %v39328_v28 = vadd.f32 %v19700_v1, %v19692_v27  ;;  %v41547_v2 = vld [vmem:[#allocation105_spill] sm:$0xff] }
 0xf2b   : > { %41538 = vst [vmem:[#allocation93_spill] sm:$0xff] %v39325_v57  ;;  %v19701_v59 = vmul.f32 %v41541_v38, %v19664_v56  ;;  %v19694_v26 = vmul.f32 %v19048_v8, %v41542_v11  ;;  %v19666_v12 = vpop.f32.mrb[65].mxu1  ;;  %v41548_v27 = vld [vmem:[#allocation29_spill] sm:$0xff]  ;;  %v41549_v56 = vld [vmem:[#allocation92_spill] sm:$0xff] }
 0xf2c   : > { %41540 = vst [vmem:[#allocation37_spill] sm:$0xff] %v39328_v28  ;;  %v19702_v32 = vmul.f32 %v41543_v48, %v19666_v12  ;;  %v41551_v12 = vld [vmem:[#allocation102_spill] sm:$0xff] }
 0xf2d   : > { %v19053_v43 = vpop.f32.mrb[54].mxu0  ;;  %v39333_v4 = vadd.f32 %v19701_v59, %v19693_v9 }
 0xf2e   : > { %v19695_v50 = vmul.f32 %v19053_v43, %v41545_v13  ;;  %v19671_v14 = vpop.f32.mrb[66].mxu1  ;;  %v19055_v30 = vpop.f32.mrb[55].mxu0  ;;  %v39336_v57 = vadd.f32 %v19702_v32, %v19694_v26  ;;  %v41553_v43 = vld [vmem:[#allocation106_spill] sm:$0xff] }
 0xf2f   : > { %41544 = vst [vmem:[#allocation44_spill] sm:$0xff] %v39333_v4  ;;  %v19703_v6 = vmul.f32 %v41547_v2, %v19671_v14  ;;  %v19696_v1 = vmul.f32 %v19055_v30, %v41548_v27  ;;  %v19673_v28 = vpop.f32.mrb[67].mxu1  ;;  %v41554_v26 = vld [vmem:[#allocation26_spill] sm:$0xff] }
 0xf30   : > { %41546 = vst [vmem:[#allocation49_spill] sm:$0xff] %v39336_v57  ;;  %v19704_v38 = vmul.f32 %v41549_v56, %v19673_v28  ;;  %v19743_v28 = vpop.permute.xlu1 %19742 }
 0xf31   : > { %v19060_v8 = vpop.f32.mrb[56].mxu0  ;;  %v39341_v11 = vadd.f32 %v19703_v6, %v19695_v50 }
 0xf32   : > { %v19697_v48 = vmul.f32 %v19060_v8, %v41551_v12  ;;  %v19678_v9 = vpop.f32.mrb[68].mxu1  ;;  %v19062_v59 = vpop.f32.mrb[57].mxu0  ;;  %v39344_v4 = vadd.f32 %v19704_v38, %v19696_v1 }
 0xf33   : > { %41550 = vst [vmem:[#allocation50_spill] sm:$0xff] %v39341_v11  ;;  %v19705_v13 = vmul.f32 %v41553_v43, %v19678_v9  ;;  %v19698_v32 = vmul.f32 %v19062_v59, %v41554_v26  ;;  %v19680_v57 = vpop.f32.mrb[69].mxu1  ;;  %v19748_v1 = vpop.permute.xlu0 %19747 }
 0xf34   : > { %41552 = vst [vmem:[#allocation40_spill] sm:$0xff] %v39344_v4  ;;  %v19706_v14 = vmul.f32 %v39045_v21, %v19680_v57  ;;  %v19753_v43 = vpop.permute.xlu1 %19752 }
 0xf35   : > { %v39349_v30 = vadd.f32 %v19705_v13, %v19697_v48 }
 0xf36   : > { %v39351_v2 = vadd.f32 %v19706_v14, %v19698_v32 }
 0xf37   : > { %41555 = vst [vmem:[#allocation38_spill] sm:$0xff] %v39349_v30  ;;  %v19758_v11 = vpop.permute.xlu0 %19757 }
 0xf38   : > { %41556 = vst [vmem:[#allocation45_spill] sm:$0xff] %v39351_v2 }
 0xf85   : > { %v20372_v50 = vpop.f32.mrb[58].mxu0 }
 0xf86   : > { %v39353_v6 = vadd.f32 %v20372_v50, %v19743_v28  ;;  %v20374_v27 = vpop.f32.mrb[59].mxu0 }
 0xf87   : > { %v39355_v56 = vadd.f32 %v20374_v27, %v19743_v28 }
 0xf88   : > { %41557 = vst [vmem:[#allocation42_spill] sm:$0xff] %v39353_v6  ;;  %v20400_v12 = vand.u32 4294901760, %v39353_v6 }
 0xf89   : > { %41558 = vst [vmem:[#allocation47_spill] sm:$0xff] %v39355_v56  ;;  %v20398_v38 = vand.u32 4294901760, %v39355_v56  ;;  %v20379_v8 = vpop.f32.mrb[60].mxu0 }
 0xf8a   : > { %v39359_v9 = vadd.f32 %v20379_v8, %v19748_v1  ;;  %v20381_v21 = vpop.f32.mrb[61].mxu0  ;;  %v39369_v32 = vsub.f32 %v39353_v6, %v20400_v12 }
 0xf8b   : > { %v39362_v57 = vsub.f32 %v39355_v56, %v20398_v38  ;;  %v39364_v48 = vadd.f32 %v20381_v21, %v19748_v1 }
 0xf8c   : > { %41559 = vst [vmem:[#allocation48_spill] sm:$0xff] %v39359_v9  ;;  %v20404_v59 = vand.u32 4294901760, %v39359_v9 }
 0xf8d   : > { %41560 = vst [vmem:[#allocation95_spill] sm:$0xff] %v39364_v48  ;;  %v20402_v13 = vand.u32 4294901760, %v39364_v48  ;;  %v20386_v26 = vpop.f32.mrb[62].mxu0  ;;  %v41205_v21 = vand.u32 4294901760, %v39362_v57 }
 0xf8e   : > { %v39372_v14 = vsub.f32 %v39359_v9, %v20404_v59  ;;  %v39374_v28 = vadd.f32 %v20386_v26, %v19753_v43  ;;  %v20388_v50 = vpop.f32.mrb[63].mxu0  ;;  %v39384_v2 = vpack.c.bf16 %v20404_v59, %v20400_v12 }
 0xf8f   : > { %v39377_v27 = vsub.f32 %v39364_v48, %v20402_v13  ;;  %v39379_v1 = vadd.f32 %v20388_v50, %v19753_v43  ;;  %v39381_v8 = vpack.c.bf16 %v20402_v13, %v20398_v38  ;;  %v20485_v30 = vsub.f32 %v39362_v57, %v41205_v21 }
 0xf90   : > { %41561 = vst [vmem:[#allocation43_spill] sm:$0xff] %v39374_v28  ;;  %v20408_v4 = vand.u32 4294901760, %v39374_v28  ;;  %v41564_v43 = vand.u32 4294901760, %v39372_v14 }
 0xf91   : > { %41562 = vst [vmem:[#allocation96_spill] sm:$0xff] %v39379_v1  ;;  %v20406_v26 = vand.u32 4294901760, %v39379_v1  ;;  %v20393_v9 = vpop.f32.mrb[64].mxu0  ;;  %34021 = vmatprep.subr.bf16.mxu1 %v39381_v8  ;;  %v20496_v48 = vand.u32 4294901760, %v39377_v27  ;;  %v20486_v54 = vand.u32 4294901760, %v20485_v30 }
 0xf92   : > { %v39393_v38 = vsub.f32 %v39374_v28, %v20408_v4  ;;  %v39395_v13 = vadd.f32 %v20393_v9, %v19758_v11  ;;  %v20395_v12 = vpop.f32.mrb[65].mxu0  ;;  %34023 = vmatpush1.bf16.msra.mxu1 %v39384_v2  ;;  %v20503_v28 = vsub.f32 %v39372_v14, %v41564_v43 }
 0xf93   : > { %v20507_v59 = vsub.f32 %v39379_v1, %v20406_v26  ;;  %v39399_v50 = vadd.f32 %v20395_v12, %v19758_v11  ;;  %v20497_v56 = vsub.f32 %v39377_v27, %v20496_v48  ;;  %v41565_v1 = vand.u32 4294901760, %v39369_v32 }
 0xf94   : > { %41563 = vst [vmem:[#allocation46_spill] sm:$0xff] %v39395_v13  ;;  %v20412_v9 = vand.u32 4294901760, %v39395_v13  ;;  %v20514_v12 = vand.u32 4294901760, %v39393_v38  ;;  %v20504_v46 = vand.u32 4294901760, %v20503_v28  ;;  %v34036_v28 = vpack.c.bf16 %v39377_v27, %v39362_v57 }
 0xf95   : > { %v20410_v6 = vand.u32 4294901760, %v39399_v50  ;;  %v20498_v52 = vand.u32 4294901760, %v20497_v56  ;;  %v20508_v15 = vand.u32 4294901760, %v20507_v59  ;;  %v20491_v11 = vsub.f32 %v39369_v32, %v41565_v1 }
 0xf96   : > { %v20525_v21 = vsub.f32 %v39395_v13, %v20412_v9  ;;  %v34026_v63 = vpack.c.bf16 %v20412_v9, %v20408_v4  ;;  %v20515_v36 = vsub.f32 %v39393_v38, %v20514_v12 }
 0xf97   : > { %v20519_v42 = vsub.f32 %v39399_v50, %v20410_v6  ;;  %v34024_v35 = vpack.c.bf16 %v20410_v6, %v20406_v26  ;;  %v34028_v3 = vpack.c.bf16 %v20498_v52, %v20486_v54  ;;  %v20509_v45 = vsub.f32 %v20507_v59, %v20508_v15 }
 0xf98   : > { %v20526_v43 = vand.u32 4294901760, %v20525_v21  ;;  %v20492_v1 = vand.u32 4294901760, %v20491_v11  ;;  %v20516_v4 = vand.u32 4294901760, %v20515_v36 }
 0xf99   : > { %34025 = vmatprep.subr.bf16.mxu1 %v34024_v35  ;;  %v20520_v56 = vand.u32 4294901760, %v20519_v42  ;;  %v20510_v6 = vand.u32 4294901760, %v20509_v45  ;;  %v41567_v45 = vand.u32 4294901760, %v39369_v32 }
 0xf9a   : > { %v20527_v47 = vsub.f32 %v20525_v21, %v20526_v43  ;;  %34027 = vmatpush1.bf16.msra.mxu1 %v34026_v63  ;;  %v34030_v51 = vpack.c.bf16 %v20504_v46, %v20492_v1  ;;  %v41568_v46 = vand.u32 4294901760, %v39372_v14 }
 0xf9b   : > { %34029 = vmatprep.subr.bf16.mxu1 %v34028_v3  ;;  %v20521_v23 = vsub.f32 %v20519_v42, %v20520_v56  ;;  %v34038_v3 = vpack.c.bf16 %v39372_v14, %v39369_v32  ;;  %v34056_v27 = vpack.c.bf16 %v20520_v56, %v20508_v15 }
 0xf9c   : > { %v20528_v13 = vand.u32 4294901760, %v20527_v47  ;;  %v34040_v47 = vpack.c.bf16 %v20519_v42, %v20507_v59  ;;  %v34054_v42 = vpack.c.bf16 %v41568_v46, %v41567_v45 }
 0xf9d   : > { %20476 = vmatmul.mubr.f32.vlgmr.msra.gmra.mrb[70].mxu1 %v37935_v61  ;;  %v20522_v30 = vand.u32 4294901760, %v20521_v23  ;;  %v41566_v23 = vand.u32 4294901760, %v39362_v57 }
 0xf9e   : > { %34031 = vmatpush1.bf16.msra.mxu1 %v34030_v51  ;;  %20586 = vmatprep.mubr.f32.mxu1 %v41276_v20  ;;  %v34034_v52 = vpack.c.bf16 %v20528_v13, %v20516_v4  ;;  %v34042_v51 = vpack.c.bf16 %v20525_v21, %v39393_v38  ;;  %v34058_v21 = vpack.c.bf16 %v20526_v43, %v20514_v12 }
 0xf9f   : > { %v34032_v54 = vpack.c.bf16 %v20522_v30, %v20510_v6  ;;  %v34052_v36 = vpack.c.bf16 %v20496_v48, %v41566_v23 }
 0xfa1   : > { %34033 = vmatprep.subr.bf16.mxu1 %v34032_v54 }
 0xfa2   : > { %34035 = vmatpush1.bf16.msra.mxu1 %v34034_v52 }
 0xfa3   : > { %34037 = vmatprep.subr.bf16.mxu1 %v34036_v28 }
 0xfa5   : > { %20588 = vmatmul.mubr.f32.vlgmr.msra.gmra.mrb[70].mxu1 %v37862_v55 }
 0xfa6   : > { %34039 = vmatpush1.bf16.msra.mxu1 %v34038_v3  ;;  %20674 = vmatprep.mubr.f32.mxu1 %v41276_v20 }
 0xfa7   : > { %34041 = vmatprep.subr.bf16.mxu1 %v34040_v47 }
 0xfaa   : > { %34043 = vmatpush1.bf16.msra.mxu1 %v34042_v51 }
 0xfab   : > { %34045 = vmatprep.subr.bf16.mxu1 %v39381_v8 }
 0xfad   : > { %20677 = vmatmul.mubr.f32.vlgmr.msra.gmra.mrb[70].mxu1 %v37875_v22 }
 0xfae   : > { %34047 = vmatpush1.bf16.msra.mxu1 %v39384_v2  ;;  %20755 = vmatprep.mubr.f32.mxu1 %v41276_v20 }
 0xfaf   : > { %34049 = vmatprep.subr.bf16.mxu1 %v34024_v35 }
 0xfb2   : > { %34051 = vmatpush1.bf16.msra.mxu1 %v34026_v63 }
 0xfb3   : > { %34053 = vmatprep.subr.bf16.mxu1 %v34052_v36 }
 0xfb5   : > { %20759 = vmatmul.mubr.f32.vlgmr.msra.gmra.mrb[70].mxu1 %v37901_v29 }
 0xfb6   : > { %34055 = vmatpush1.bf16.msra.mxu1 %v34054_v42  ;;  %20853 = vmatprep.mubr.f32.mxu1 %v41276_v20 }
 0xfb7   : > { %34057 = vmatprep.subr.bf16.mxu1 %v34056_v27 }
 0xfba   : > { %34059 = vmatpush1.bf16.msra.mxu1 %v34058_v21 }
 0xfbb   : > { %34061 = vmatprep.subr.bf16.mxu1 %v39381_v8 }
 0xfbd   : > { %20855 = vmatmul.mubr.f32.vlgmr.msra.gmra.mrb[70].mxu1 %v37862_v55 }
 0xfbe   : > { %34063 = vmatpush1.bf16.msra.mxu1 %v39384_v2  ;;  %20933 = vmatprep.mubr.f32.mxu1 %v41276_v20 }
 0xfbf   : > { %34065 = vmatprep.subr.bf16.mxu1 %v34024_v35 }
 0xfc2   : > { %34067 = vmatpush1.bf16.msra.mxu1 %v34026_v63 }
 0xfc5   : > { %20935 = vmatmul.mubr.f32.vlgmr.msra.gmra.mrb[70].mxu1 %v37862_v55 }
 0xfc6   : > { %21031 = vmatprep.mubr.f32.mxu1 %v41276_v20 }
0x1098   : > { %v20936_v15 = vpop.f32.mrb[70].mxu1 }
0x1099   : > { %v34440_v57 = vadd.f32 %v20936_v15, %v41386_v31  ;;  %v20938_v48 = vpop.f32.mrb[71].mxu1 }
0x109a   : > { %v34441_v32 = vadd.f32 %v20938_v48, %v41386_v31 }
0x109b   : > { %v39447_v14 = vmax.f32 %v39093_v53, %v34440_v57 }
0x109c   : > { %v39450_v8 = vmax.f32 %v39096_v41, %v34441_v32 }
0x109d   : > { %v20943_v35 = vsub.f32 %v39093_v53, %v39447_v14  ;;  %v20949_v63 = vsub.f32 %v34440_v57, %v39447_v14 }
0x109e   : > { %v20944_v2 = vsub.f32 %v39096_v41, %v39450_v8  ;;  %v20950_v26 = vsub.f32 %v34441_v32, %v39450_v8 }
0x109f   : > { %v20945_v38 = vmul.f32 1.442695, %v20943_v35  ;;  %v20951_v13 = vmul.f32 1.442695, %v20949_v63 }
0x10a0   : > { %v20947_v59 = vmul.f32 1.442695, %v20944_v2  ;;  %v20953_v9 = vmul.f32 1.442695, %v20950_v26  ;;  %v41569_v26 = vld [vmem:[#allocation59_spill] sm:$0xff] }
0x10a1   : > { %35949 = vpow2.f32 %v20945_v38  ;;  %v41570_v38 = vld [vmem:[#allocation66_spill] sm:$0xff] }
0x10a2   : > { %35951 = vpow2.f32 %v20951_v13  ;;  %v41571_v13 = vld [vmem:[#allocation68_spill] sm:$0xff] }
0x10a3   : > { %35953 = vpow2.f32 %v20947_v59  ;;  %v41572_v59 = vld [vmem:[#allocation76_spill] sm:$0xff] }
0x10a4   : > { %35955 = vpow2.f32 %v20953_v9  ;;  %v41573_v9 = vld [vmem:[#allocation61_spill] sm:$0xff] }
0x10ab   : > { %v35950_v11 = vpop.eup %35949 }
0x10ac   : > { %v35952_v12 = vpop.eup %35951  ;;  %v20955_v43 = vmul.f32 %v35950_v11, %v39109_v34  ;;  %v20960_v53 = vsel %vm8550_vm2, %v35950_v11, 0  ;;  %v41574_v11 = vld [vmem:[#allocation57_spill] sm:$0xff] }
0x10ad   : > { %v35954_v56 = vpop.eup %35953  ;;  %v39460_v1 = vand.u32 4294901760, %v20960_v53  ;;  %v21578_v41 = vsel %vm8550_vm2, %v35952_v12, 0 }
0x10ae   : > { %v35956_v6 = vpop.eup %35955  ;;  %v39463_v30 = vadd.f32 %v35952_v12, %v20955_v43  ;;  %v20956_v4 = vmul.f32 %v35954_v56, %v39121_v49  ;;  %v20963_v54 = vsel %vm8550_vm2, %v35954_v56, 0  ;;  %v39467_v52 = vand.u32 4294901760, %v21578_v41  ;;  %v41576_v43 = vld [vmem:[#allocation25_spill] sm:$0xff]  ;;  %v41578_v56 = vld [vmem:[#allocation12_spill] sm:$0xff] }
0x10af   : > { %v39469_v28 = vand.u32 4294901760, %v20963_v54  ;;  %v21581_v34 = vsel %vm8550_vm2, %v35956_v6, 0  ;;  %v39473_v3 = vsub.f32 %v20960_v53, %v39460_v1  ;;  %v41575_v12 = vpack.c.bf16 %v41573_v9, %v41574_v11  ;;  %v41577_v53 = vld [vmem:[#allocation30_spill] sm:$0xff]  ;;  %v41600_v11 = vld [vmem:[#allocation44_spill] sm:$0xff] }
0x10b0   : > { %v39475_v47 = vadd.f32 %v35956_v6, %v20956_v4  ;;  %v39477_v51 = vand.u32 4294901760, %v21581_v34  ;;  %v39480_v23 = vsub.f32 %v21578_v41, %v39467_v52  ;;  %v41580_v41 = vld [vmem:[#allocation65_spill] sm:$0xff] }
0x10b1   : > { %20966 = vmatprep.subr.mxu1 %v39469_v28  ;;  %v39484_v49 = vsub.f32 %v20963_v54, %v39469_v28  ;;  %v21084_v36 = vand.u32 4294901760, %v39473_v3  ;;  %v41582_v4 = vld [vmem:[#allocation13_spill] sm:$0xff]  ;;  %v41583_v54 = vld [vmem:[#allocation14_spill] sm:$0xff] }
0x10b2   : > { %21584 = vmatprep.subr.mxu0 %v39477_v51  ;;  %20968 = vmatpush1.msra.mxu1 %v39460_v1  ;;  %v21695_v45 = vsub.f32 %v21581_v34, %v39477_v51  ;;  %v21702_v46 = vand.u32 4294901760, %v39480_v23  ;;  %v41586_v34 = vld [vmem:[#allocation64_spill] sm:$0xff] }
0x10b3   : > { %21586 = vmatpush1.msra.mxu0 %v39467_v52  ;;  %21037 = vmatmul.mubr.f32.vlgmr.msra.gmra.mrb[72].mxu1 %v41391_v40  ;;  %v21078_v42 = vand.u32 4294901760, %v39484_v49  ;;  %v21085_v21 = vsub.f32 %v39473_v3, %v21084_v36 }
0x10b4   : > { %21655 = vmatmul.mubr.f32.vlgmr.msra.gmra.mrb[66].mxu0 %v41391_v40  ;;  %21042 = vmatprep.mubr.f32.mxu1 %v41276_v20  ;;  %v21696_v27 = vand.u32 4294901760, %v21695_v45  ;;  %v21703_v57 = vsub.f32 %v39480_v23, %v21702_v46 }
0x10b5   : > { %21660 = vmatprep.mubr.f32.mxu0 %v41276_v20  ;;  %v21079_v15 = vsub.f32 %v39484_v49, %v21078_v42  ;;  %v21086_v63 = vand.u32 4294901760, %v21085_v21  ;;  %v41595_v21 = vld [vmem:[#allocation93_spill] sm:$0xff] }
0x10b6   : > { %v21697_v48 = vsub.f32 %v21695_v45, %v21696_v27  ;;  %v21704_v2 = vand.u32 4294901760, %v21703_v57 }
0x10b7   : > { %21048 = vmatmul.mubr.f32.gmra.mrb[74].mxu1 %v38072_v60  ;;  %v21080_v32 = vand.u32 4294901760, %v21079_v15 }
0x10b8   : > { %21666 = vmatmul.mubr.f32.gmra.mrb[68].mxu0 %v38072_v60  ;;  %v21698_v35 = vand.u32 4294901760, %v21697_v48  ;;  %21053 = vmatprep.mubr.f32.mxu1 %v41276_v20 }
0x10b9   : > { %21081 = vmatprep.subr.mxu1 %v21080_v32  ;;  %21671 = vmatprep.mubr.f32.mxu0 %v41276_v20  ;;  %v41596_v32 = vld [vmem:[#allocation42_spill] sm:$0xff] }
0x10ba   : > { %21699 = vmatprep.subr.mxu0 %v21698_v35  ;;  %21087 = vmatpush1.msra.mxu1 %v21086_v63  ;;  %v41597_v63 = vld [vmem:[#allocation37_spill] sm:$0xff] }
0x10bb   : > { %21705 = vmatpush1.msra.mxu0 %v21704_v2  ;;  %21059 = vmatmul.mubr.f32.gmra.mrb[76].mxu1 %v38090_v17 }
0x10bc   : > { %21181 = vmatprep.subr.mxu1 %v39484_v49  ;;  %21677 = vmatmul.mubr.f32.gmra.mrb[70].mxu0 %v38090_v17  ;;  %v41590_v49 = vld [vmem:[#allocation19_spill] sm:$0xff] }
0x10bd   : > { %21799 = vmatprep.subr.mxu0 %v21695_v45  ;;  %21064 = vmatprep.mubr.f32.mxu1 %v41276_v20  ;;  %v41592_v45 = vld [vmem:[#allocation20_spill] sm:$0xff] }
0x10be   : > { %21682 = vmatprep.mubr.f32.mxu0 %v41276_v20 }
0x10bf   : > { %21070 = vmatmul.mubr.f32.gmra.mrb[78].mxu1 %v38098_v37 }
0x10c0   : > { %21688 = vmatmul.mubr.f32.gmra.mrb[72].mxu0 %v38098_v37  ;;  %21150 = vmatprep.mubr.f32.mxu1 %v41276_v20 }
0x10c1   : > { %21768 = vmatprep.mubr.f32.mxu0 %v41276_v20 }
0x10c3   : > { %21152 = vmatmul.mubr.f32.vlgmr.msra.gmra.mrb[72].mxu1 %v37984_v16 }
0x10c4   : > { %21184 = vmatpush1.msra.mxu1 %v39473_v3  ;;  %21770 = vmatmul.mubr.f32.vlgmr.msra.gmra.mrb[66].mxu0 %v37984_v16  ;;  %v41587_v3 = vld [vmem:[#allocation16_spill] sm:$0xff] }
0x10c5   : > { %21802 = vmatpush1.msra.mxu0 %v39480_v23  ;;  %21281 = vmatprep.subr.mxu1 %v39469_v28  ;;  %v41589_v23 = vld [vmem:[#allocation22_spill] sm:$0xff] }
0x10c6   : > { %21899 = vmatprep.subr.mxu0 %v39477_v51  ;;  %21157 = vmatprep.mubr.f32.mxu1 %v41276_v20 }
0x10c7   : > { %21775 = vmatprep.mubr.f32.mxu0 %v41276_v20  ;;  %21159 = vmatmul.mubr.f32.gmra.mrb[74].mxu1 %v38003_v39 }
0x10c8   : > { %21777 = vmatmul.mubr.f32.gmra.mrb[68].mxu0 %v38003_v39  ;;  %21164 = vmatprep.mubr.f32.mxu1 %v41276_v20 }
0x10c9   : > { %21782 = vmatprep.mubr.f32.mxu0 %v41276_v20 }
0x10cb   : > { %21166 = vmatmul.mubr.f32.gmra.mrb[76].mxu1 %v38009_v19 }
0x10cc   : > { %21784 = vmatmul.mubr.f32.gmra.mrb[70].mxu0 %v38009_v19  ;;  %21171 = vmatprep.mubr.f32.mxu1 %v41276_v20 }
0x10cd   : > { %21789 = vmatprep.mubr.f32.mxu0 %v41276_v20 }
0x10cf   : > { %21173 = vmatmul.mubr.f32.gmra.mrb[78].mxu1 %v38014_v62 }
0x10d0   : > { %21791 = vmatmul.mubr.f32.gmra.mrb[72].mxu0 %v38014_v62  ;;  %21247 = vmatprep.mubr.f32.mxu1 %v41276_v20 }
0x10d1   : > { %21865 = vmatprep.mubr.f32.mxu0 %v41276_v20 }
0x10d3   : > { %21250 = vmatmul.mubr.f32.vlgmr.msra.gmra.mrb[72].mxu1 %v37997_v25 }
0x10d4   : > { %21283 = vmatpush1.msra.mxu1 %v39460_v1  ;;  %21868 = vmatmul.mubr.f32.vlgmr.msra.gmra.mrb[66].mxu0 %v37997_v25 }
0x10d5   : > { %21901 = vmatpush1.msra.mxu0 %v39467_v52  ;;  %21386 = vmatprep.subr.mxu1 %v21078_v42  ;;  %v41594_v42 = vld [vmem:[#allocation23_spill] sm:$0xff] }
0x10d6   : > { %22004 = vmatprep.subr.mxu0 %v21696_v27  ;;  %21255 = vmatprep.mubr.f32.mxu1 %v41276_v20 }
0x10d7   : > { %21873 = vmatprep.mubr.f32.mxu0 %v41276_v20  ;;  %21258 = vmatmul.mubr.f32.gmra.mrb[74].mxu1 %v38012_v33 }
0x10d8   : > { %21876 = vmatmul.mubr.f32.gmra.mrb[68].mxu0 %v38012_v33  ;;  %21263 = vmatprep.mubr.f32.mxu1 %v41276_v20 }
0x10d9   : > { %21881 = vmatprep.mubr.f32.mxu0 %v41276_v20 }
0x10db   : > { %21266 = vmatmul.mubr.f32.gmra.mrb[76].mxu1 %v38017_v24 }
0x10dc   : > { %21884 = vmatmul.mubr.f32.gmra.mrb[70].mxu0 %v38017_v24  ;;  %21271 = vmatprep.mubr.f32.mxu1 %v41276_v20 }
0x10dd   : > { %21889 = vmatprep.mubr.f32.mxu0 %v41276_v20 }
0x10df   : > { %21274 = vmatmul.mubr.f32.gmra.mrb[78].mxu1 %v38025_v5 }
0x10e0   : > { %21892 = vmatmul.mubr.f32.gmra.mrb[72].mxu0 %v38025_v5  ;;  %21346 = vmatprep.mubr.f32.mxu1 %v41276_v20 }
0x10e1   : > { %21964 = vmatprep.mubr.f32.mxu0 %v41276_v20 }
0x10e3   : > { %21350 = vmatmul.mubr.f32.vlgmr.msra.gmra.mrb[72].mxu1 %v38007_v10 }
0x10e4   : > { %21390 = vmatpush1.msra.mxu1 %v21084_v36  ;;  %21968 = vmatmul.mubr.f32.vlgmr.msra.gmra.mrb[66].mxu0 %v38007_v10  ;;  %v41591_v36 = vld [vmem:[#allocation70_spill] sm:$0xff] }
0x10e5   : > { %22008 = vmatpush1.msra.mxu0 %v21702_v46  ;;  %21483 = vmatprep.subr.mxu1 %v39469_v28  ;;  %v41585_v28 = vld [vmem:[#allocation15_spill] sm:$0xff]  ;;  %v41593_v46 = vld [vmem:[#allocation21_spill] sm:$0xff] }
0x10e6   : > { %22101 = vmatprep.subr.mxu0 %v39477_v51  ;;  %21355 = vmatprep.mubr.f32.mxu1 %v41276_v20  ;;  %v41588_v51 = vld [vmem:[#allocation17_spill] sm:$0xff] }
0x10e7   : > { %21973 = vmatprep.mubr.f32.mxu0 %v41276_v20  ;;  %21359 = vmatmul.mubr.f32.gmra.mrb[74].mxu1 %v38022_v58 }
0x10e8   : > { %21977 = vmatmul.mubr.f32.gmra.mrb[68].mxu0 %v38022_v58  ;;  %21364 = vmatprep.mubr.f32.mxu1 %v41276_v20 }
0x10e9   : > { %21982 = vmatprep.mubr.f32.mxu0 %v41276_v20 }
0x10eb   : > { %21368 = vmatmul.mubr.f32.gmra.mrb[76].mxu1 %v38029_v0 }
0x10ec   : > { %21986 = vmatmul.mubr.f32.gmra.mrb[70].mxu0 %v38029_v0  ;;  %21373 = vmatprep.mubr.f32.mxu1 %v41276_v20 }
0x10ed   : > { %21991 = vmatprep.mubr.f32.mxu0 %v41276_v20 }
0x10ef   : > { %21377 = vmatmul.mubr.f32.gmra.mrb[78].mxu1 %v38068_v18 }
0x10f0   : > { %21995 = vmatmul.mubr.f32.gmra.mrb[72].mxu0 %v38068_v18  ;;  %21453 = vmatprep.mubr.f32.mxu1 %v41276_v20 }
0x10f1   : > { %22071 = vmatprep.mubr.f32.mxu0 %v41276_v20 }
0x10f3   : > { %21455 = vmatmul.mubr.f32.vlgmr.msra.gmra.mrb[72].mxu1 %v37984_v16 }
0x10f4   : > { %21485 = vmatpush1.msra.mxu1 %v39460_v1  ;;  %22073 = vmatmul.mubr.f32.vlgmr.msra.gmra.mrb[66].mxu0 %v37984_v16  ;;  %v41579_v1 = vld [vmem:[#allocation67_spill] sm:$0xff] }
0x10f5   : > { %22103 = vmatpush1.msra.mxu0 %v39467_v52  ;;  %34069 = vmatprep.subr.bf16.mxu1 %v41569_v26  ;;  %v41581_v6 = vpack.c.bf16 %v41579_v1, %v41580_v41  ;;  %v41584_v52 = vld [vmem:[#allocation18_spill] sm:$0xff] }
0x10f6   : > { %21460 = vmatprep.mubr.f32.mxu1 %v41276_v20  ;;  %22078 = vmatprep.mubr.f32.mxu0 %v41276_v20 }
0x10f7   : > { %21462 = vmatmul.mubr.f32.gmra.mrb[74].mxu1 %v38003_v39 }
0x10f8   : > { %22080 = vmatmul.mubr.f32.gmra.mrb[68].mxu0 %v38003_v39  ;;  %21467 = vmatprep.mubr.f32.mxu1 %v41276_v20 }
0x10f9   : > { %22085 = vmatprep.mubr.f32.mxu0 %v41276_v20 }
0x10fb   : > { %21469 = vmatmul.mubr.f32.gmra.mrb[76].mxu1 %v38009_v19 }
0x10fc   : > { %22087 = vmatmul.mubr.f32.gmra.mrb[70].mxu0 %v38009_v19  ;;  %21474 = vmatprep.mubr.f32.mxu1 %v41276_v20 }
0x10fd   : > { %22092 = vmatprep.mubr.f32.mxu0 %v41276_v20 }
0x10ff   : > { %21476 = vmatmul.mubr.f32.gmra.mrb[78].mxu1 %v38014_v62 }
0x1100   : > { %22094 = vmatmul.mubr.f32.gmra.mrb[72].mxu0 %v38014_v62  ;;  %21548 = vmatprep.mubr.f32.mxu1 %v41276_v20 }
0x1101   : > { %22166 = vmatprep.mubr.f32.mxu0 %v41276_v20 }
0x1103   : > { %21550 = vmatmul.mubr.f32.vlgmr.msra.gmra.mrb[72].mxu1 %v37984_v16 }
0x1104   : > { %22168 = vmatmul.mubr.f32.vlgmr.msra.gmra.mrb[66].mxu0 %v37984_v16  ;;  %34071 = vmatpush1.bf16.msra.mxu1 %v41570_v38 }
0x1105   : > { %34073 = vmatprep.subr.bf16.mxu1 %v41571_v13  ;;  %21555 = vmatprep.mubr.f32.mxu1 %v41276_v20 }
0x1106   : > { %22173 = vmatprep.mubr.f32.mxu0 %v41276_v20 }
0x1107   : > { %21557 = vmatmul.mubr.f32.gmra.mrb[74].mxu1 %v38003_v39 }
0x1108   : > { %22175 = vmatmul.mubr.f32.gmra.mrb[68].mxu0 %v38003_v39  ;;  %21562 = vmatprep.mubr.f32.mxu1 %v41276_v20 }
0x1109   : > { %22180 = vmatprep.mubr.f32.mxu0 %v41276_v20 }
0x110b   : > { %21564 = vmatmul.mubr.f32.gmra.mrb[76].mxu1 %v38009_v19 }
0x110c   : > { %22182 = vmatmul.mubr.f32.gmra.mrb[70].mxu0 %v38009_v19  ;;  %21569 = vmatprep.mubr.f32.mxu1 %v41276_v20 }
0x110d   : > { %22187 = vmatprep.mubr.f32.mxu0 %v41276_v20 }
0x110f   : > { %21571 = vmatmul.mubr.f32.gmra.mrb[78].mxu1 %v38014_v62 }
0x1110   : > { %22189 = vmatmul.mubr.f32.gmra.mrb[72].mxu0 %v38014_v62  ;;  %22340 = vmatprep.mubr.f32.mxu1 %v41276_v20 }
0x1111   : > { %22982 = vmatprep.mubr.f32.mxu0 %v41276_v20 }
0x1113   : > { %22346 = vmatmul.mubr.f32.vlgmr.msra.gmra.mrb[80].mxu1 %v41356_v44 }
0x1114   : > { %34075 = vmatpush1.bf16.msra.mxu1 %v41572_v59  ;;  %22351 = vmatprep.mubr.f32.mxu1 %v41276_v20 }
0x1115   : > { %34077 = vmatprep.subr.bf16.mxu1 %v41575_v12 }
0x1117   : > { %22357 = vmatmul.mubr.f32.gmra.mrb[82].mxu1 %v37407_v7 }
0x1118   : > { %22362 = vmatprep.mubr.f32.mxu1 %v41276_v20 }
0x111b   : > { %22368 = vmatmul.mubr.f32.gmra.mrb[84].mxu1 %v41576_v43 }
0x111c   : > { %22373 = vmatprep.mubr.f32.mxu1 %v41276_v20 }
0x111f   : > { %22379 = vmatmul.mubr.f32.gmra.mrb[86].mxu1 %v41577_v53 }
0x1120   : > { %22469 = vmatprep.mubr.f32.mxu1 %v41276_v20 }
0x1123   : > { %22471 = vmatmul.mubr.f32.vlgmr.msra.gmra.mrb[80].mxu1 %v41578_v56 }
0x1124   : > { %34079 = vmatpush1.bf16.msra.mxu1 %v41581_v6  ;;  %22476 = vmatprep.mubr.f32.mxu1 %v41276_v20 }
0x1125   : > { %34081 = vmatprep.subr.bf16.mxu1 %v41569_v26 }
0x1127   : > { %22478 = vmatmul.mubr.f32.gmra.mrb[82].mxu1 %v41582_v4 }
0x1128   : > { %22483 = vmatprep.mubr.f32.mxu1 %v41276_v20 }
0x112b   : > { %22485 = vmatmul.mubr.f32.gmra.mrb[84].mxu1 %v41583_v54 }
0x112c   : > { %22490 = vmatprep.mubr.f32.mxu1 %v41276_v20 }
0x112f   : > { %22492 = vmatmul.mubr.f32.gmra.mrb[86].mxu1 %v41584_v52 }
0x1130   : > { %22570 = vmatprep.mubr.f32.mxu1 %v41276_v20 }
0x1133   : > { %22573 = vmatmul.mubr.f32.vlgmr.msra.gmra.mrb[80].mxu1 %v41585_v28 }
0x1134   : > { %34083 = vmatpush1.bf16.msra.mxu1 %v41570_v38  ;;  %22578 = vmatprep.mubr.f32.mxu1 %v41276_v20 }
0x1135   : > { %34085 = vmatprep.subr.bf16.mxu1 %v41586_v34  ;;  %v41602_v34 = vld [vmem:[#allocation48_spill] sm:$0xff] }
0x1137   : > { %22581 = vmatmul.mubr.f32.gmra.mrb[82].mxu1 %v41587_v3 }
0x1138   : > { %22586 = vmatprep.mubr.f32.mxu1 %v41276_v20 }
0x113b   : > { %22589 = vmatmul.mubr.f32.gmra.mrb[84].mxu1 %v41588_v51 }
0x113c   : > { %22594 = vmatprep.mubr.f32.mxu1 %v41276_v20 }
0x113f   : > { %22597 = vmatmul.mubr.f32.gmra.mrb[86].mxu1 %v41589_v23 }
0x1140   : > { %22671 = vmatprep.mubr.f32.mxu1 %v41276_v20 }
0x1143   : > { %22675 = vmatmul.mubr.f32.vlgmr.msra.gmra.mrb[80].mxu1 %v41590_v49 }
0x1144   : > { %34087 = vmatpush1.bf16.msra.mxu1 %v41591_v36  ;;  %22680 = vmatprep.mubr.f32.mxu1 %v41276_v20 }
0x1145   : > { %34089 = vmatprep.subr.bf16.mxu1 %v41569_v26 }
0x1147   : > { %22684 = vmatmul.mubr.f32.gmra.mrb[82].mxu1 %v41592_v45 }
0x1148   : > { %22689 = vmatprep.mubr.f32.mxu1 %v41276_v20 }
0x114b   : > { %22693 = vmatmul.mubr.f32.gmra.mrb[84].mxu1 %v41593_v46 }
0x114c   : > { %22698 = vmatprep.mubr.f32.mxu1 %v41276_v20 }
0x114f   : > { %22702 = vmatmul.mubr.f32.gmra.mrb[86].mxu1 %v41594_v42 }
0x1150   : > { %22784 = vmatprep.mubr.f32.mxu1 %v41276_v20 }
0x1153   : > { %22786 = vmatmul.mubr.f32.vlgmr.msra.gmra.mrb[80].mxu1 %v41578_v56 }
0x1154   : > { %34091 = vmatpush1.bf16.msra.mxu1 %v41570_v38  ;;  %22791 = vmatprep.mubr.f32.mxu1 %v41276_v20  ;;  %v41598_v38 = vld [vmem:[#allocation47_spill] sm:$0xff] }
0x1157   : > { %22793 = vmatmul.mubr.f32.gmra.mrb[82].mxu1 %v41582_v4 }
0x1158   : > { %22798 = vmatprep.mubr.f32.mxu1 %v41276_v20 }
0x115b   : > { %22800 = vmatmul.mubr.f32.gmra.mrb[84].mxu1 %v41583_v54 }
0x115c   : > { %22805 = vmatprep.mubr.f32.mxu1 %v41276_v20 }
0x115f   : > { %22807 = vmatmul.mubr.f32.gmra.mrb[86].mxu1 %v41584_v52 }
0x1160   : > { %22881 = vmatprep.mubr.f32.mxu1 %v41276_v20 }
0x1163   : > { %22883 = vmatmul.mubr.f32.vlgmr.msra.gmra.mrb[80].mxu1 %v41578_v56 }
0x1164   : > { %22888 = vmatprep.mubr.f32.mxu1 %v41276_v20 }
0x1167   : > { %22890 = vmatmul.mubr.f32.gmra.mrb[82].mxu1 %v41582_v4 }
0x1168   : > { %22895 = vmatprep.mubr.f32.mxu1 %v41276_v20 }
0x116b   : > { %22897 = vmatmul.mubr.f32.gmra.mrb[84].mxu1 %v41583_v54 }
0x116c   : > { %22902 = vmatprep.mubr.f32.mxu1 %v41276_v20 }
0x116f   : > { %22904 = vmatmul.mubr.f32.gmra.mrb[86].mxu1 %v41584_v52 }
0x1170   : > { %24161 = vmatprep.mubr.f32.mxu1 %v41276_v20 }
0x11d6   : > { %v21551_v27 = vpop.f32.mrb[72].mxu1 }
0x11d7   : > { %v22203_v15 = vmul.f32 %v21551_v27, %v41595_v21  ;;  %v22169_v57 = vpop.f32.mrb[66].mxu0  ;;  %v21553_v48 = vpop.f32.mrb[73].mxu1  ;;  %v41603_v27 = vld [vmem:[#allocation49_spill] sm:$0xff] }
0x11d8   : > { %v22211_v35 = vmul.f32 %v41596_v32, %v22169_v57  ;;  %v22204_v2 = vmul.f32 %v21553_v48, %v41597_v63  ;;  %v22171_v26 = vpop.f32.mrb[67].mxu0  ;;  %v41604_v57 = vld [vmem:[#allocation95_spill] sm:$0xff] }
0x11d9   : > { %v22212_v13 = vmul.f32 %v41598_v38, %v22171_v26  ;;  %v41606_v26 = vld [vmem:[#allocation50_spill] sm:$0xff] }
0x11da   : > { %v21558_v59 = vpop.f32.mrb[74].mxu1  ;;  %v39679_v9 = vadd.f32 %v22211_v35, %v22203_v15 }
0x11db   : > { %v22205_v12 = vmul.f32 %v21558_v59, %v41600_v11  ;;  %v22176_v1 = vpop.f32.mrb[68].mxu0  ;;  %v21560_v41 = vpop.f32.mrb[75].mxu1  ;;  %v39682_v6 = vadd.f32 %v22212_v13, %v22204_v2  ;;  %v41608_v59 = vld [vmem:[#allocation43_spill] sm:$0xff]  ;;  %v41609_v2 = vld [vmem:[#allocation40_spill] sm:$0xff] }
0x11dc   : > { %41599 = vst [vmem:[#allocation97_spill] sm:$0xff] %v39679_v9  ;;  %v22213_v36 = vmul.f32 %v41602_v34, %v22176_v1  ;;  %v22206_v21 = vmul.f32 %v21560_v41, %v41603_v27  ;;  %v22178_v42 = vpop.f32.mrb[69].mxu0  ;;  %v41610_v1 = vld [vmem:[#allocation96_spill] sm:$0xff] }
0x11dd   : > { %41601 = vst [vmem:[#allocation33_spill] sm:$0xff] %v39682_v6  ;;  %v22214_v32 = vmul.f32 %v41604_v57, %v22178_v42  ;;  %v41612_v42 = vld [vmem:[#allocation38_spill] sm:$0xff] }
0x11de   : > { %v21565_v48 = vpop.f32.mrb[76].mxu1  ;;  %v39687_v63 = vadd.f32 %v22213_v36, %v22205_v12 }
0x11df   : > { %v22207_v38 = vmul.f32 %v21565_v48, %v41606_v26  ;;  %v22183_v15 = vpop.f32.mrb[70].mxu0  ;;  %v21567_v35 = vpop.f32.mrb[77].mxu1  ;;  %v39690_v9 = vadd.f32 %v22214_v32, %v22206_v21  ;;  %v41614_v48 = vld [vmem:[#allocation46_spill] sm:$0xff]  ;;  %v41615_v21 = vld [vmem:[#allocation45_spill] sm:$0xff] }
0x11e0   : > { %41605 = vst [vmem:[#allocation99_spill] sm:$0xff] %v39687_v63  ;;  %v22215_v11 = vmul.f32 %v41608_v59, %v22183_v15  ;;  %v22208_v13 = vmul.f32 %v21567_v35, %v41609_v2  ;;  %v22185_v6 = vpop.f32.mrb[71].mxu0 }
0x11e1   : > { %41607 = vst [vmem:[#allocation31_spill] sm:$0xff] %v39690_v9  ;;  %v22216_v34 = vmul.f32 %v41610_v1, %v22185_v6  ;;  %v22255_v6 = vpop.permute.xlu1 %22254 }
0x11e2   : > { %v21572_v41 = vpop.f32.mrb[78].mxu1  ;;  %v39695_v27 = vadd.f32 %v22215_v11, %v22207_v38 }
0x11e3   : > { %v22209_v57 = vmul.f32 %v21572_v41, %v41612_v42  ;;  %v22190_v12 = vpop.f32.mrb[72].mxu0  ;;  %v21574_v36 = vpop.f32.mrb[79].mxu1  ;;  %v39698_v63 = vadd.f32 %v22216_v34, %v22208_v13 }
0x11e4   : > { %41611 = vst [vmem:[#allocation100_spill] sm:$0xff] %v39695_v27  ;;  %v22217_v26 = vmul.f32 %v41614_v48, %v22190_v12  ;;  %v22210_v32 = vmul.f32 %v21574_v36, %v41615_v21  ;;  %v22192_v9 = vpop.f32.mrb[73].mxu0  ;;  %v22260_v13 = vpop.permute.xlu0 %22259 }
0x11e5   : > { %41613 = vst [vmem:[#allocation36_spill] sm:$0xff] %v39698_v63  ;;  %v22218_v15 = vmul.f32 %v39399_v50, %v22192_v9  ;;  %v22265_v48 = vpop.permute.xlu1 %22264 }
0x11e6   : > { %v39703_v35 = vadd.f32 %v22217_v26, %v22209_v57 }
0x11e7   : > { %v39705_v59 = vadd.f32 %v22218_v15, %v22210_v32 }
0x11e8   : > { %41616 = vst [vmem:[#allocation98_spill] sm:$0xff] %v39703_v35  ;;  %v22270_v27 = vpop.permute.xlu0 %22269 }
0x11e9   : > { %41617 = vst [vmem:[#allocation34_spill] sm:$0xff] %v39705_v59 }
0x1236   : > { %v22884_v38 = vpop.f32.mrb[80].mxu1 }
0x1237   : > { %v39707_v11 = vadd.f32 %v22884_v38, %v22255_v6  ;;  %v22886_v2 = vpop.f32.mrb[81].mxu1 }
0x1238   : > { %v39709_v1 = vadd.f32 %v22886_v2, %v22255_v6 }
0x1239   : > { %41618 = vst [vmem:[#allocation32_spill] sm:$0xff] %v39707_v11  ;;  %v22912_v42 = vand.u32 4294901760, %v39707_v11 }
0x123a   : > { %41619 = vst [vmem:[#allocation39_spill] sm:$0xff] %v39709_v1  ;;  %v22910_v34 = vand.u32 4294901760, %v39709_v1  ;;  %v22891_v41 = vpop.f32.mrb[82].mxu1 }
0x123b   : > { %v39713_v12 = vadd.f32 %v22891_v41, %v22260_v13  ;;  %v22893_v50 = vpop.f32.mrb[83].mxu1  ;;  %v39723_v32 = vsub.f32 %v39707_v11, %v22912_v42 }
0x123c   : > { %v39716_v9 = vsub.f32 %v39709_v1, %v22910_v34  ;;  %v39718_v57 = vadd.f32 %v22893_v50, %v22260_v13 }
0x123d   : > { %41620 = vst [vmem:[#allocation35_spill] sm:$0xff] %v39713_v12  ;;  %v22916_v36 = vand.u32 4294901760, %v39713_v12 }
0x123e   : > { %41621 = vst [vmem:[#allocation52_spill] sm:$0xff] %v39718_v57  ;;  %v22914_v26 = vand.u32 4294901760, %v39718_v57  ;;  %v22898_v21 = vpop.f32.mrb[84].mxu1  ;;  %v41217_v50 = vand.u32 4294901760, %v39716_v9 }
0x123f   : > { %v39726_v15 = vsub.f32 %v39713_v12, %v22916_v36  ;;  %v39728_v6 = vadd.f32 %v22898_v21, %v22265_v48  ;;  %v22900_v38 = vpop.f32.mrb[85].mxu1  ;;  %v39738_v59 = vpack.c.bf16 %v22916_v36, %v22912_v42 }
0x1240   : > { %v39731_v2 = vsub.f32 %v39718_v57, %v22914_v26  ;;  %v39733_v13 = vadd.f32 %v22900_v38, %v22265_v48  ;;  %v39735_v41 = vpack.c.bf16 %v22914_v26, %v22910_v34  ;;  %v22997_v35 = vsub.f32 %v39716_v9, %v41217_v50 }
0x1241   : > { %41622 = vst [vmem:[#allocation55_spill] sm:$0xff] %v39728_v6  ;;  %v22920_v63 = vand.u32 4294901760, %v39728_v6  ;;  %v41625_v48 = vand.u32 4294901760, %v39726_v15 }
0x1242   : > { %41623 = vst [vmem:[#allocation62_spill] sm:$0xff] %v39733_v13  ;;  %v22918_v21 = vand.u32 4294901760, %v39733_v13  ;;  %v22905_v12 = vpop.f32.mrb[86].mxu1  ;;  %34093 = vmatprep.subr.bf16.mxu0 %v39735_v41  ;;  %v23008_v57 = vand.u32 4294901760, %v39731_v2  ;;  %v22998_v51 = vand.u32 4294901760, %v22997_v35 }
0x1243   : > { %v39747_v34 = vsub.f32 %v39728_v6, %v22920_v63  ;;  %v39749_v26 = vadd.f32 %v22905_v12, %v22270_v27  ;;  %v22907_v42 = vpop.f32.mrb[87].mxu1  ;;  %34095 = vmatpush1.bf16.msra.mxu0 %v39738_v59  ;;  %v23015_v6 = vsub.f32 %v39726_v15, %v41625_v48 }
0x1244   : > { %v23019_v36 = vsub.f32 %v39733_v13, %v22918_v21  ;;  %v39753_v38 = vadd.f32 %v22907_v42, %v22270_v27  ;;  %v23009_v1 = vsub.f32 %v39731_v2, %v23008_v57  ;;  %v41626_v13 = vand.u32 4294901760, %v39723_v32 }
0x1245   : > { %41624 = vst [vmem:[#allocation63_spill] sm:$0xff] %v39749_v26  ;;  %v22924_v12 = vand.u32 4294901760, %v39749_v26  ;;  %v23026_v42 = vand.u32 4294901760, %v39747_v34  ;;  %v23016_v28 = vand.u32 4294901760, %v23015_v6  ;;  %v34108_v6 = vpack.c.bf16 %v39731_v2, %v39716_v9 }
0x1246   : > { %v22922_v11 = vand.u32 4294901760, %v39753_v38  ;;  %v23010_v46 = vand.u32 4294901760, %v23009_v1  ;;  %v23020_v45 = vand.u32 4294901760, %v23019_v36  ;;  %v23003_v27 = vsub.f32 %v39723_v32, %v41626_v13 }
0x1247   : > { %v23037_v50 = vsub.f32 %v39749_v26, %v22924_v12  ;;  %v34098_v3 = vpack.c.bf16 %v22924_v12, %v22920_v63  ;;  %v23027_v4 = vsub.f32 %v39747_v34, %v23026_v42 }
0x1248   : > { %v23031_v49 = vsub.f32 %v39753_v38, %v22922_v11  ;;  %v34096_v23 = vpack.c.bf16 %v22922_v11, %v22918_v21  ;;  %v34100_v52 = vpack.c.bf16 %v23010_v46, %v22998_v51  ;;  %v23021_v54 = vsub.f32 %v23019_v36, %v23020_v45 }
0x1249   : > { %v23038_v48 = vand.u32 4294901760, %v23037_v50  ;;  %v23004_v13 = vand.u32 4294901760, %v23003_v27  ;;  %v23028_v63 = vand.u32 4294901760, %v23027_v4 }
0x124a   : > { %34097 = vmatprep.subr.bf16.mxu0 %v34096_v23  ;;  %v23032_v1 = vand.u32 4294901760, %v23031_v49  ;;  %v23022_v11 = vand.u32 4294901760, %v23021_v54  ;;  %v41628_v54 = vand.u32 4294901760, %v39723_v32 }
0x124b   : > { %v23039_v56 = vsub.f32 %v23037_v50, %v23038_v48  ;;  %34099 = vmatpush1.bf16.msra.mxu0 %v34098_v3  ;;  %v34102_v43 = vpack.c.bf16 %v23016_v28, %v23004_v13  ;;  %v41629_v28 = vand.u32 4294901760, %v39726_v15 }
0x124c   : > { %34101 = vmatprep.subr.bf16.mxu0 %v34100_v52  ;;  %v23033_v53 = vsub.f32 %v23031_v49, %v23032_v1  ;;  %v34110_v52 = vpack.c.bf16 %v39726_v15, %v39723_v32  ;;  %v34128_v2 = vpack.c.bf16 %v23032_v1, %v23020_v45 }
0x124d   : > { %v23040_v26 = vand.u32 4294901760, %v23039_v56  ;;  %v34112_v56 = vpack.c.bf16 %v23031_v49, %v23019_v36  ;;  %v34126_v49 = vpack.c.bf16 %v41629_v28, %v41628_v54 }
0x124e   : > { %22988 = vmatmul.mubr.f32.vlgmr.msra.gmra.mrb[74].mxu0 %v37935_v61  ;;  %v23034_v35 = vand.u32 4294901760, %v23033_v53  ;;  %v41627_v53 = vand.u32 4294901760, %v39716_v9 }
0x124f   : > { %34103 = vmatpush1.bf16.msra.mxu0 %v34102_v43  ;;  %23098 = vmatprep.mubr.f32.mxu0 %v41276_v20  ;;  %v34106_v46 = vpack.c.bf16 %v23040_v26, %v23028_v63  ;;  %v34114_v43 = vpack.c.bf16 %v23037_v50, %v39747_v34  ;;  %v34130_v50 = vpack.c.bf16 %v23038_v48, %v23026_v42 }
0x1250   : > { %v34104_v51 = vpack.c.bf16 %v23034_v35, %v23022_v11  ;;  %v34124_v4 = vpack.c.bf16 %v23008_v57, %v41627_v53 }
0x1252   : > { %34105 = vmatprep.subr.bf16.mxu0 %v34104_v51 }
0x1253   : > { %34107 = vmatpush1.bf16.msra.mxu0 %v34106_v46 }
0x1254   : > { %34109 = vmatprep.subr.bf16.mxu0 %v34108_v6 }
0x1256   : > { %23100 = vmatmul.mubr.f32.vlgmr.msra.gmra.mrb[74].mxu0 %v37862_v55 }
0x1257   : > { %34111 = vmatpush1.bf16.msra.mxu0 %v34110_v52  ;;  %23186 = vmatprep.mubr.f32.mxu0 %v41276_v20 }
0x1258   : > { %34113 = vmatprep.subr.bf16.mxu0 %v34112_v56 }
0x125b   : > { %34115 = vmatpush1.bf16.msra.mxu0 %v34114_v43 }
0x125c   : > { %34117 = vmatprep.subr.bf16.mxu0 %v39735_v41 }
0x125e   : > { %23189 = vmatmul.mubr.f32.vlgmr.msra.gmra.mrb[74].mxu0 %v37875_v22 }
0x125f   : > { %34119 = vmatpush1.bf16.msra.mxu0 %v39738_v59  ;;  %23267 = vmatprep.mubr.f32.mxu0 %v41276_v20 }
0x1260   : > { %34121 = vmatprep.subr.bf16.mxu0 %v34096_v23 }
0x1263   : > { %34123 = vmatpush1.bf16.msra.mxu0 %v34098_v3 }
0x1264   : > { %34125 = vmatprep.subr.bf16.mxu0 %v34124_v4 }
0x1266   : > { %23271 = vmatmul.mubr.f32.vlgmr.msra.gmra.mrb[74].mxu0 %v37901_v29 }
0x1267   : > { %34127 = vmatpush1.bf16.msra.mxu0 %v34126_v49  ;;  %23365 = vmatprep.mubr.f32.mxu0 %v41276_v20 }
0x1268   : > { %34129 = vmatprep.subr.bf16.mxu0 %v34128_v2 }
0x126b   : > { %34131 = vmatpush1.bf16.msra.mxu0 %v34130_v50 }
0x126c   : > { %34133 = vmatprep.subr.bf16.mxu0 %v39735_v41 }
0x126e   : > { %23367 = vmatmul.mubr.f32.vlgmr.msra.gmra.mrb[74].mxu0 %v37862_v55 }
0x126f   : > { %34135 = vmatpush1.bf16.msra.mxu0 %v39738_v59  ;;  %23445 = vmatprep.mubr.f32.mxu0 %v41276_v20 }
0x1270   : > { %34137 = vmatprep.subr.bf16.mxu0 %v34096_v23 }
0x1273   : > { %34139 = vmatpush1.bf16.msra.mxu0 %v34098_v3 }
0x1276   : > { %23447 = vmatmul.mubr.f32.vlgmr.msra.gmra.mrb[74].mxu0 %v37862_v55 }
0x1277   : > { %23543 = vmatprep.mubr.f32.mxu0 %v41276_v20 }
0x1349   : > { %v23448_v45 = vpop.f32.mrb[74].mxu0 }
0x134a   : > { %v34450_v9 = vadd.f32 %v23448_v45, %v41386_v31  ;;  %v23450_v57 = vpop.f32.mrb[75].mxu0 }
0x134b   : > { %v34451_v32 = vadd.f32 %v23450_v57, %v41386_v31 }
0x134c   : > { %v39801_v15 = vmax.f32 %v39447_v14, %v34450_v9 }
0x134d   : > { %v39804_v41 = vmax.f32 %v39450_v8, %v34451_v32 }
0x134e   : > { %v23455_v23 = vsub.f32 %v39447_v14, %v39801_v15  ;;  %v23461_v3 = vsub.f32 %v34450_v9, %v39801_v15 }
0x134f   : > { %v23456_v59 = vsub.f32 %v39450_v8, %v39804_v41  ;;  %v23462_v21 = vsub.f32 %v34451_v32, %v39804_v41 }
0x1350   : > { %v23457_v34 = vmul.f32 1.442695, %v23455_v23  ;;  %v23463_v26 = vmul.f32 1.442695, %v23461_v3 }
0x1351   : > { %v23459_v36 = vmul.f32 1.442695, %v23456_v59  ;;  %v23465_v12 = vmul.f32 1.442695, %v23462_v21  ;;  %v41630_v21 = vld [vmem:[#allocation71_spill] sm:$0xff] }
0x1352   : > { %35957 = vpow2.f32 %v23457_v34  ;;  %v41631_v34 = vld [vmem:[#allocation73_spill] sm:$0xff] }
0x1353   : > { %35959 = vpow2.f32 %v23463_v26  ;;  %v41632_v26 = vld [vmem:[#allocation82_spill] sm:$0xff] }
0x1354   : > { %35961 = vpow2.f32 %v23459_v36  ;;  %v41633_v36 = vld [vmem:[#allocation83_spill] sm:$0xff] }
0x1355   : > { %35963 = vpow2.f32 %v23465_v12  ;;  %v41634_v12 = vld [vmem:[#allocation72_spill] sm:$0xff] }
0x135c   : > { %v35958_v27 = vpop.eup %35957 }
0x135d   : > { %v35960_v42 = vpop.eup %35959  ;;  %v23467_v48 = vmul.f32 %v35958_v27, %v39463_v30  ;;  %v23472_v14 = vsel %vm8550_vm2, %v35958_v27, 0  ;;  %v41635_v27 = vld [vmem:[#allocation69_spill] sm:$0xff] }
0x135e   : > { %v35962_v1 = vpop.eup %35961  ;;  %v39814_v13 = vand.u32 4294901760, %v23472_v14  ;;  %v24090_v8 = vsel %vm8550_vm2, %v35960_v42, 0 }
0x135f   : > { %v35964_v11 = vpop.eup %35963  ;;  %v39817_v35 = vadd.f32 %v35960_v42, %v23467_v48  ;;  %v23468_v63 = vmul.f32 %v35962_v1, %v39475_v47  ;;  %v23475_v51 = vsel %vm8550_vm2, %v35962_v1, 0  ;;  %v39821_v46 = vand.u32 4294901760, %v24090_v8  ;;  %v41637_v48 = vld [vmem:[#allocation25_spill] sm:$0xff]  ;;  %v41639_v1 = vld [vmem:[#allocation12_spill] sm:$0xff] }
0x1360   : > { %v39823_v6 = vand.u32 4294901760, %v23475_v51  ;;  %v24093_v30 = vsel %vm8550_vm2, %v35964_v11, 0  ;;  %v39827_v52 = vsub.f32 %v23472_v14, %v39814_v13  ;;  %v41636_v42 = vpack.c.bf16 %v41634_v12, %v41635_v27  ;;  %v41638_v14 = vld [vmem:[#allocation30_spill] sm:$0xff]  ;;  %v41661_v27 = vld [vmem:[#allocation99_spill] sm:$0xff] }
0x1361   : > { %v39829_v56 = vadd.f32 %v35964_v11, %v23468_v63  ;;  %v39831_v43 = vand.u32 4294901760, %v24093_v30  ;;  %v39834_v53 = vsub.f32 %v24090_v8, %v39821_v46  ;;  %v41641_v8 = vld [vmem:[#allocation74_spill] sm:$0xff]  ;;  %v41643_v63 = vld [vmem:[#allocation13_spill] sm:$0xff] }
0x1362   : > { %23478 = vmatprep.subr.mxu0 %v39823_v6  ;;  %v39838_v47 = vsub.f32 %v23475_v51, %v39823_v6  ;;  %v23596_v4 = vand.u32 4294901760, %v39827_v52  ;;  %v41644_v51 = vld [vmem:[#allocation14_spill] sm:$0xff] }
0x1363   : > { %24096 = vmatprep.subr.mxu1 %v39831_v43  ;;  %23480 = vmatpush1.msra.mxu0 %v39814_v13  ;;  %v24207_v54 = vsub.f32 %v24093_v30, %v39831_v43  ;;  %v24214_v28 = vand.u32 4294901760, %v39834_v53  ;;  %v41647_v30 = vld [vmem:[#allocation77_spill] sm:$0xff] }
0x1364   : > { %24098 = vmatpush1.msra.mxu1 %v39821_v46  ;;  %23549 = vmatmul.mubr.f32.vlgmr.msra.gmra.mrb[76].mxu0 %v41391_v40  ;;  %v23590_v49 = vand.u32 4294901760, %v39838_v47  ;;  %v23597_v50 = vsub.f32 %v39827_v52, %v23596_v4 }
0x1365   : > { %24167 = vmatmul.mubr.f32.vlgmr.msra.gmra.mrb[88].mxu1 %v41391_v40  ;;  %23554 = vmatprep.mubr.f32.mxu0 %v41276_v20  ;;  %v24208_v2 = vand.u32 4294901760, %v24207_v54  ;;  %v24215_v9 = vsub.f32 %v39834_v53, %v24214_v28 }
0x1366   : > { %24172 = vmatprep.mubr.f32.mxu1 %v41276_v20  ;;  %v23591_v45 = vsub.f32 %v39838_v47, %v23590_v49  ;;  %v23598_v3 = vand.u32 4294901760, %v23597_v50  ;;  %v41656_v50 = vld [vmem:[#allocation97_spill] sm:$0xff] }
0x1367   : > { %v24209_v57 = vsub.f32 %v24207_v54, %v24208_v2  ;;  %v24216_v59 = vand.u32 4294901760, %v24215_v9 }
0x1368   : > { %23560 = vmatmul.mubr.f32.gmra.mrb[78].mxu0 %v38072_v60  ;;  %v23592_v32 = vand.u32 4294901760, %v23591_v45 }
0x1369   : > { %24178 = vmatmul.mubr.f32.gmra.mrb[90].mxu1 %v38072_v60  ;;  %v24210_v23 = vand.u32 4294901760, %v24209_v57  ;;  %23565 = vmatprep.mubr.f32.mxu0 %v41276_v20 }
0x136a   : > { %23593 = vmatprep.subr.mxu0 %v23592_v32  ;;  %24183 = vmatprep.mubr.f32.mxu1 %v41276_v20  ;;  %v41657_v32 = vld [vmem:[#allocation32_spill] sm:$0xff] }
0x136b   : > { %24211 = vmatprep.subr.mxu1 %v24210_v23  ;;  %23599 = vmatpush1.msra.mxu0 %v23598_v3  ;;  %v41658_v3 = vld [vmem:[#allocation33_spill] sm:$0xff] }
0x136c   : > { %24217 = vmatpush1.msra.mxu1 %v24216_v59  ;;  %23571 = vmatmul.mubr.f32.gmra.mrb[80].mxu0 %v38090_v17 }
0x136d   : > { %23693 = vmatprep.subr.mxu0 %v39838_v47  ;;  %24189 = vmatmul.mubr.f32.gmra.mrb[92].mxu1 %v38090_v17  ;;  %v41651_v47 = vld [vmem:[#allocation19_spill] sm:$0xff] }
0x136e   : > { %24311 = vmatprep.subr.mxu1 %v24207_v54  ;;  %23576 = vmatprep.mubr.f32.mxu0 %v41276_v20  ;;  %v41653_v54 = vld [vmem:[#allocation20_spill] sm:$0xff] }
0x136f   : > { %24194 = vmatprep.mubr.f32.mxu1 %v41276_v20 }
0x1370   : > { %23582 = vmatmul.mubr.f32.gmra.mrb[82].mxu0 %v38098_v37 }
0x1371   : > { %24200 = vmatmul.mubr.f32.gmra.mrb[94].mxu1 %v38098_v37  ;;  %23662 = vmatprep.mubr.f32.mxu0 %v41276_v20 }
0x1372   : > { %24280 = vmatprep.mubr.f32.mxu1 %v41276_v20 }
0x1374   : > { %23664 = vmatmul.mubr.f32.vlgmr.msra.gmra.mrb[76].mxu0 %v37984_v16 }
0x1375   : > { %23696 = vmatpush1.msra.mxu0 %v39827_v52  ;;  %24282 = vmatmul.mubr.f32.vlgmr.msra.gmra.mrb[88].mxu1 %v37984_v16  ;;  %v41648_v52 = vld [vmem:[#allocation16_spill] sm:$0xff] }
0x1376   : > { %24314 = vmatpush1.msra.mxu1 %v39834_v53  ;;  %23793 = vmatprep.subr.mxu0 %v39823_v6  ;;  %v41650_v53 = vld [vmem:[#allocation22_spill] sm:$0xff] }
0x1377   : > { %24411 = vmatprep.subr.mxu1 %v39831_v43  ;;  %23669 = vmatprep.mubr.f32.mxu0 %v41276_v20 }
0x1378   : > { %24287 = vmatprep.mubr.f32.mxu1 %v41276_v20  ;;  %23671 = vmatmul.mubr.f32.gmra.mrb[78].mxu0 %v38003_v39 }
0x1379   : > { %24289 = vmatmul.mubr.f32.gmra.mrb[90].mxu1 %v38003_v39  ;;  %23676 = vmatprep.mubr.f32.mxu0 %v41276_v20 }
0x137a   : > { %24294 = vmatprep.mubr.f32.mxu1 %v41276_v20 }
0x137c   : > { %23678 = vmatmul.mubr.f32.gmra.mrb[80].mxu0 %v38009_v19 }
0x137d   : > { %24296 = vmatmul.mubr.f32.gmra.mrb[92].mxu1 %v38009_v19  ;;  %23683 = vmatprep.mubr.f32.mxu0 %v41276_v20 }
0x137e   : > { %24301 = vmatprep.mubr.f32.mxu1 %v41276_v20 }
0x1380   : > { %23685 = vmatmul.mubr.f32.gmra.mrb[82].mxu0 %v38014_v62 }
0x1381   : > { %24303 = vmatmul.mubr.f32.gmra.mrb[94].mxu1 %v38014_v62  ;;  %23759 = vmatprep.mubr.f32.mxu0 %v41276_v20 }
0x1382   : > { %24377 = vmatprep.mubr.f32.mxu1 %v41276_v20 }
0x1384   : > { %23762 = vmatmul.mubr.f32.vlgmr.msra.gmra.mrb[76].mxu0 %v37997_v25 }
0x1385   : > { %23795 = vmatpush1.msra.mxu0 %v39814_v13  ;;  %24380 = vmatmul.mubr.f32.vlgmr.msra.gmra.mrb[88].mxu1 %v37997_v25 }
0x1386   : > { %24413 = vmatpush1.msra.mxu1 %v39821_v46  ;;  %23898 = vmatprep.subr.mxu0 %v23590_v49  ;;  %v41655_v49 = vld [vmem:[#allocation23_spill] sm:$0xff] }
0x1387   : > { %24516 = vmatprep.subr.mxu1 %v24208_v2  ;;  %23767 = vmatprep.mubr.f32.mxu0 %v41276_v20 }
0x1388   : > { %24385 = vmatprep.mubr.f32.mxu1 %v41276_v20  ;;  %23770 = vmatmul.mubr.f32.gmra.mrb[78].mxu0 %v38012_v33 }
0x1389   : > { %24388 = vmatmul.mubr.f32.gmra.mrb[90].mxu1 %v38012_v33  ;;  %23775 = vmatprep.mubr.f32.mxu0 %v41276_v20 }
0x138a   : > { %24393 = vmatprep.mubr.f32.mxu1 %v41276_v20 }
0x138c   : > { %23778 = vmatmul.mubr.f32.gmra.mrb[80].mxu0 %v38017_v24 }
0x138d   : > { %24396 = vmatmul.mubr.f32.gmra.mrb[92].mxu1 %v38017_v24  ;;  %23783 = vmatprep.mubr.f32.mxu0 %v41276_v20 }
0x138e   : > { %24401 = vmatprep.mubr.f32.mxu1 %v41276_v20 }
0x1390   : > { %23786 = vmatmul.mubr.f32.gmra.mrb[82].mxu0 %v38025_v5 }
0x1391   : > { %24404 = vmatmul.mubr.f32.gmra.mrb[94].mxu1 %v38025_v5  ;;  %23858 = vmatprep.mubr.f32.mxu0 %v41276_v20 }
0x1392   : > { %24476 = vmatprep.mubr.f32.mxu1 %v41276_v20 }
0x1394   : > { %23862 = vmatmul.mubr.f32.vlgmr.msra.gmra.mrb[76].mxu0 %v38007_v10 }
0x1395   : > { %23902 = vmatpush1.msra.mxu0 %v23596_v4  ;;  %24480 = vmatmul.mubr.f32.vlgmr.msra.gmra.mrb[88].mxu1 %v38007_v10  ;;  %v41652_v4 = vld [vmem:[#allocation78_spill] sm:$0xff] }
0x1396   : > { %24520 = vmatpush1.msra.mxu1 %v24214_v28  ;;  %23995 = vmatprep.subr.mxu0 %v39823_v6  ;;  %v41646_v6 = vld [vmem:[#allocation15_spill] sm:$0xff]  ;;  %v41654_v28 = vld [vmem:[#allocation21_spill] sm:$0xff] }
0x1397   : > { %24613 = vmatprep.subr.mxu1 %v39831_v43  ;;  %23867 = vmatprep.mubr.f32.mxu0 %v41276_v20  ;;  %v41649_v43 = vld [vmem:[#allocation17_spill] sm:$0xff] }
0x1398   : > { %24485 = vmatprep.mubr.f32.mxu1 %v41276_v20  ;;  %23871 = vmatmul.mubr.f32.gmra.mrb[78].mxu0 %v38022_v58 }
0x1399   : > { %24489 = vmatmul.mubr.f32.gmra.mrb[90].mxu1 %v38022_v58  ;;  %23876 = vmatprep.mubr.f32.mxu0 %v41276_v20 }
0x139a   : > { %24494 = vmatprep.mubr.f32.mxu1 %v41276_v20 }
0x139c   : > { %23880 = vmatmul.mubr.f32.gmra.mrb[80].mxu0 %v38029_v0 }
0x139d   : > { %24498 = vmatmul.mubr.f32.gmra.mrb[92].mxu1 %v38029_v0  ;;  %23885 = vmatprep.mubr.f32.mxu0 %v41276_v20 }
0x139e   : > { %24503 = vmatprep.mubr.f32.mxu1 %v41276_v20 }
0x13a0   : > { %23889 = vmatmul.mubr.f32.gmra.mrb[82].mxu0 %v38068_v18 }
0x13a1   : > { %24507 = vmatmul.mubr.f32.gmra.mrb[94].mxu1 %v38068_v18  ;;  %23965 = vmatprep.mubr.f32.mxu0 %v41276_v20 }
0x13a2   : > { %24583 = vmatprep.mubr.f32.mxu1 %v41276_v20 }
0x13a4   : > { %23967 = vmatmul.mubr.f32.vlgmr.msra.gmra.mrb[76].mxu0 %v37984_v16 }
0x13a5   : > { %23997 = vmatpush1.msra.mxu0 %v39814_v13  ;;  %24585 = vmatmul.mubr.f32.vlgmr.msra.gmra.mrb[88].mxu1 %v37984_v16  ;;  %v41640_v13 = vld [vmem:[#allocation75_spill] sm:$0xff] }
0x13a6   : > { %24615 = vmatpush1.msra.mxu1 %v39821_v46  ;;  %34141 = vmatprep.subr.bf16.mxu0 %v41630_v21  ;;  %v41642_v11 = vpack.c.bf16 %v41640_v13, %v41641_v8  ;;  %v41645_v46 = vld [vmem:[#allocation18_spill] sm:$0xff] }
0x13a7   : > { %23972 = vmatprep.mubr.f32.mxu0 %v41276_v20  ;;  %24590 = vmatprep.mubr.f32.mxu1 %v41276_v20 }
0x13a8   : > { %23974 = vmatmul.mubr.f32.gmra.mrb[78].mxu0 %v38003_v39 }
0x13a9   : > { %24592 = vmatmul.mubr.f32.gmra.mrb[90].mxu1 %v38003_v39  ;;  %23979 = vmatprep.mubr.f32.mxu0 %v41276_v20 }
0x13aa   : > { %24597 = vmatprep.mubr.f32.mxu1 %v41276_v20 }
0x13ac   : > { %23981 = vmatmul.mubr.f32.gmra.mrb[80].mxu0 %v38009_v19 }
0x13ad   : > { %24599 = vmatmul.mubr.f32.gmra.mrb[92].mxu1 %v38009_v19  ;;  %23986 = vmatprep.mubr.f32.mxu0 %v41276_v20 }
0x13ae   : > { %24604 = vmatprep.mubr.f32.mxu1 %v41276_v20 }
0x13b0   : > { %23988 = vmatmul.mubr.f32.gmra.mrb[82].mxu0 %v38014_v62 }
0x13b1   : > { %24606 = vmatmul.mubr.f32.gmra.mrb[94].mxu1 %v38014_v62  ;;  %24060 = vmatprep.mubr.f32.mxu0 %v41276_v20 }
0x13b2   : > { %24678 = vmatprep.mubr.f32.mxu1 %v41276_v20 }
0x13b4   : > { %24062 = vmatmul.mubr.f32.vlgmr.msra.gmra.mrb[76].mxu0 %v37984_v16 }
0x13b5   : > { %24680 = vmatmul.mubr.f32.vlgmr.msra.gmra.mrb[88].mxu1 %v37984_v16  ;;  %34143 = vmatpush1.bf16.msra.mxu0 %v41631_v34 }
0x13b6   : > { %34145 = vmatprep.subr.bf16.mxu0 %v41632_v26  ;;  %24067 = vmatprep.mubr.f32.mxu0 %v41276_v20 }
0x13b7   : > { %24685 = vmatprep.mubr.f32.mxu1 %v41276_v20 }
0x13b8   : > { %24069 = vmatmul.mubr.f32.gmra.mrb[78].mxu0 %v38003_v39 }
0x13b9   : > { %24687 = vmatmul.mubr.f32.gmra.mrb[90].mxu1 %v38003_v39  ;;  %24074 = vmatprep.mubr.f32.mxu0 %v41276_v20 }
0x13ba   : > { %24692 = vmatprep.mubr.f32.mxu1 %v41276_v20 }
0x13bc   : > { %24076 = vmatmul.mubr.f32.gmra.mrb[80].mxu0 %v38009_v19 }
0x13bd   : > { %24694 = vmatmul.mubr.f32.gmra.mrb[92].mxu1 %v38009_v19  ;;  %24081 = vmatprep.mubr.f32.mxu0 %v41276_v20 }
0x13be   : > { %24699 = vmatprep.mubr.f32.mxu1 %v41276_v20 }
0x13c0   : > { %24083 = vmatmul.mubr.f32.gmra.mrb[82].mxu0 %v38014_v62 }
0x13c1   : > { %24701 = vmatmul.mubr.f32.gmra.mrb[94].mxu1 %v38014_v62  ;;  %24852 = vmatprep.mubr.f32.mxu0 %v41276_v20 }
0x13c2   : > { %25494 = vmatprep.mubr.f32.mxu1 %v41276_v20 }
0x13c4   : > { %24858 = vmatmul.mubr.f32.vlgmr.msra.gmra.mrb[84].mxu0 %v41356_v44 }
0x13c5   : > { %34147 = vmatpush1.bf16.msra.mxu0 %v41633_v36  ;;  %24863 = vmatprep.mubr.f32.mxu0 %v41276_v20 }
0x13c6   : > { %34149 = vmatprep.subr.bf16.mxu0 %v41636_v42 }
0x13c8   : > { %24869 = vmatmul.mubr.f32.gmra.mrb[86].mxu0 %v37407_v7 }
0x13c9   : > { %24874 = vmatprep.mubr.f32.mxu0 %v41276_v20 }
0x13cc   : > { %24880 = vmatmul.mubr.f32.gmra.mrb[88].mxu0 %v41637_v48 }
0x13cd   : > { %24885 = vmatprep.mubr.f32.mxu0 %v41276_v20 }
0x13d0   : > { %24891 = vmatmul.mubr.f32.gmra.mrb[90].mxu0 %v41638_v14 }
0x13d1   : > { %24981 = vmatprep.mubr.f32.mxu0 %v41276_v20 }
0x13d4   : > { %24983 = vmatmul.mubr.f32.vlgmr.msra.gmra.mrb[84].mxu0 %v41639_v1 }
0x13d5   : > { %34151 = vmatpush1.bf16.msra.mxu0 %v41642_v11  ;;  %24988 = vmatprep.mubr.f32.mxu0 %v41276_v20 }
0x13d6   : > { %34153 = vmatprep.subr.bf16.mxu0 %v41630_v21 }
0x13d8   : > { %24990 = vmatmul.mubr.f32.gmra.mrb[86].mxu0 %v41643_v63 }
0x13d9   : > { %24995 = vmatprep.mubr.f32.mxu0 %v41276_v20 }
0x13dc   : > { %24997 = vmatmul.mubr.f32.gmra.mrb[88].mxu0 %v41644_v51 }
0x13dd   : > { %25002 = vmatprep.mubr.f32.mxu0 %v41276_v20 }
0x13e0   : > { %25004 = vmatmul.mubr.f32.gmra.mrb[90].mxu0 %v41645_v46 }
0x13e1   : > { %25082 = vmatprep.mubr.f32.mxu0 %v41276_v20 }
0x13e4   : > { %25085 = vmatmul.mubr.f32.vlgmr.msra.gmra.mrb[84].mxu0 %v41646_v6 }
0x13e5   : > { %34155 = vmatpush1.bf16.msra.mxu0 %v41631_v34  ;;  %25090 = vmatprep.mubr.f32.mxu0 %v41276_v20 }
0x13e6   : > { %34157 = vmatprep.subr.bf16.mxu0 %v41647_v30  ;;  %v41663_v30 = vld [vmem:[#allocation35_spill] sm:$0xff] }
0x13e8   : > { %25093 = vmatmul.mubr.f32.gmra.mrb[86].mxu0 %v41648_v52 }
0x13e9   : > { %25098 = vmatprep.mubr.f32.mxu0 %v41276_v20 }
0x13ec   : > { %25101 = vmatmul.mubr.f32.gmra.mrb[88].mxu0 %v41649_v43 }
0x13ed   : > { %25106 = vmatprep.mubr.f32.mxu0 %v41276_v20 }
0x13f0   : > { %25109 = vmatmul.mubr.f32.gmra.mrb[90].mxu0 %v41650_v53 }
0x13f1   : > { %25183 = vmatprep.mubr.f32.mxu0 %v41276_v20 }
0x13f4   : > { %25187 = vmatmul.mubr.f32.vlgmr.msra.gmra.mrb[84].mxu0 %v41651_v47 }
0x13f5   : > { %34159 = vmatpush1.bf16.msra.mxu0 %v41652_v4  ;;  %25192 = vmatprep.mubr.f32.mxu0 %v41276_v20 }
0x13f6   : > { %34161 = vmatprep.subr.bf16.mxu0 %v41630_v21 }
0x13f8   : > { %25196 = vmatmul.mubr.f32.gmra.mrb[86].mxu0 %v41653_v54 }
0x13f9   : > { %25201 = vmatprep.mubr.f32.mxu0 %v41276_v20 }
0x13fc   : > { %25205 = vmatmul.mubr.f32.gmra.mrb[88].mxu0 %v41654_v28 }
0x13fd   : > { %25210 = vmatprep.mubr.f32.mxu0 %v41276_v20 }
0x1400   : > { %25214 = vmatmul.mubr.f32.gmra.mrb[90].mxu0 %v41655_v49 }
0x1401   : > { %25296 = vmatprep.mubr.f32.mxu0 %v41276_v20 }
0x1404   : > { %25298 = vmatmul.mubr.f32.vlgmr.msra.gmra.mrb[84].mxu0 %v41639_v1 }
0x1405   : > { %34163 = vmatpush1.bf16.msra.mxu0 %v41631_v34  ;;  %25303 = vmatprep.mubr.f32.mxu0 %v41276_v20  ;;  %v41659_v34 = vld [vmem:[#allocation39_spill] sm:$0xff] }
0x1408   : > { %25305 = vmatmul.mubr.f32.gmra.mrb[86].mxu0 %v41643_v63 }
0x1409   : > { %25310 = vmatprep.mubr.f32.mxu0 %v41276_v20 }
0x140c   : > { %25312 = vmatmul.mubr.f32.gmra.mrb[88].mxu0 %v41644_v51 }
0x140d   : > { %25317 = vmatprep.mubr.f32.mxu0 %v41276_v20 }
0x1410   : > { %25319 = vmatmul.mubr.f32.gmra.mrb[90].mxu0 %v41645_v46 }
0x1411   : > { %25393 = vmatprep.mubr.f32.mxu0 %v41276_v20 }
0x1414   : > { %25395 = vmatmul.mubr.f32.vlgmr.msra.gmra.mrb[84].mxu0 %v41639_v1 }
0x1415   : > { %25400 = vmatprep.mubr.f32.mxu0 %v41276_v20 }
0x1418   : > { %25402 = vmatmul.mubr.f32.gmra.mrb[86].mxu0 %v41643_v63 }
0x1419   : > { %25407 = vmatprep.mubr.f32.mxu0 %v41276_v20 }
0x141c   : > { %25409 = vmatmul.mubr.f32.gmra.mrb[88].mxu0 %v41644_v51 }
0x141d   : > { %25414 = vmatprep.mubr.f32.mxu0 %v41276_v20 }
0x1420   : > { %25416 = vmatmul.mubr.f32.gmra.mrb[90].mxu0 %v41645_v46 }
0x1421   : > { %26673 = vmatprep.mubr.f32.mxu0 %v41276_v20 }
0x1487   : > { %v24063_v2 = vpop.f32.mrb[76].mxu0 }
0x1488   : > { %v24715_v45 = vmul.f32 %v24063_v2, %v41656_v50  ;;  %v24681_v9 = vpop.f32.mrb[88].mxu1  ;;  %v24065_v57 = vpop.f32.mrb[77].mxu0  ;;  %v41664_v2 = vld [vmem:[#allocation31_spill] sm:$0xff] }
0x1489   : > { %v24723_v23 = vmul.f32 %v41657_v32, %v24681_v9  ;;  %v24716_v59 = vmul.f32 %v24065_v57, %v41658_v3  ;;  %v24683_v21 = vpop.f32.mrb[89].mxu1  ;;  %v41665_v9 = vld [vmem:[#allocation52_spill] sm:$0xff] }
0x148a   : > { %v24724_v26 = vmul.f32 %v41659_v34, %v24683_v21  ;;  %v41667_v21 = vld [vmem:[#allocation100_spill] sm:$0xff] }
0x148b   : > { %v24070_v36 = vpop.f32.mrb[78].mxu0  ;;  %v40033_v12 = vadd.f32 %v24723_v23, %v24715_v45 }
0x148c   : > { %v24717_v42 = vmul.f32 %v24070_v36, %v41661_v27  ;;  %v24688_v13 = vpop.f32.mrb[90].mxu1  ;;  %v24072_v8 = vpop.f32.mrb[79].mxu0  ;;  %v40036_v11 = vadd.f32 %v24724_v26, %v24716_v59  ;;  %v41669_v36 = vld [vmem:[#allocation55_spill] sm:$0xff]  ;;  %v41670_v59 = vld [vmem:[#allocation36_spill] sm:$0xff] }
0x148d   : > { %41660 = vst [vmem:[#allocation53_spill] sm:$0xff] %v40033_v12  ;;  %v24725_v4 = vmul.f32 %v41663_v30, %v24688_v13  ;;  %v24718_v50 = vmul.f32 %v24072_v8, %v41664_v2  ;;  %v24690_v49 = vpop.f32.mrb[91].mxu1  ;;  %v41671_v13 = vld [vmem:[#allocation62_spill] sm:$0xff] }
0x148e   : > { %41662 = vst [vmem:[#allocation51_spill] sm:$0xff] %v40036_v11  ;;  %v24726_v32 = vmul.f32 %v41665_v9, %v24690_v49  ;;  %v41673_v49 = vld [vmem:[#allocation98_spill] sm:$0xff] }
0x148f   : > { %v24077_v57 = vpop.f32.mrb[80].mxu0  ;;  %v40041_v3 = vadd.f32 %v24725_v4, %v24717_v42 }
0x1490   : > { %v24719_v34 = vmul.f32 %v24077_v57, %v41667_v21  ;;  %v24695_v45 = vpop.f32.mrb[92].mxu1  ;;  %v24079_v23 = vpop.f32.mrb[81].mxu0  ;;  %v40044_v12 = vadd.f32 %v24726_v32, %v24718_v50  ;;  %v41675_v57 = vld [vmem:[#allocation63_spill] sm:$0xff]  ;;  %v41676_v50 = vld [vmem:[#allocation34_spill] sm:$0xff] }
0x1491   : > { %41666 = vst [vmem:[#allocation56_spill] sm:$0xff] %v40041_v3  ;;  %v24727_v27 = vmul.f32 %v41669_v36, %v24695_v45  ;;  %v24720_v26 = vmul.f32 %v24079_v23, %v41670_v59  ;;  %v24697_v11 = vpop.f32.mrb[93].mxu1 }
0x1492   : > { %41668 = vst [vmem:[#allocation54_spill] sm:$0xff] %v40044_v12  ;;  %v24728_v30 = vmul.f32 %v41671_v13, %v24697_v11  ;;  %v24767_v11 = vpop.permute.xlu1 %24766 }
0x1493   : > { %v24084_v8 = vpop.f32.mrb[82].mxu0  ;;  %v40049_v2 = vadd.f32 %v24727_v27, %v24719_v34 }
0x1494   : > { %v24721_v9 = vmul.f32 %v24084_v8, %v41673_v49  ;;  %v24702_v42 = vpop.f32.mrb[94].mxu1  ;;  %v24086_v4 = vpop.f32.mrb[83].mxu0  ;;  %v40052_v3 = vadd.f32 %v24728_v30, %v24720_v26 }
0x1495   : > { %41672 = vst [vmem:[#allocation58_spill] sm:$0xff] %v40049_v2  ;;  %v24729_v21 = vmul.f32 %v41675_v57, %v24702_v42  ;;  %v24722_v32 = vmul.f32 %v24086_v4, %v41676_v50  ;;  %v24704_v12 = vpop.f32.mrb[95].mxu1  ;;  %v24772_v26 = vpop.permute.xlu0 %24771 }
0x1496   : > { %41674 = vst [vmem:[#allocation60_spill] sm:$0xff] %v40052_v3  ;;  %v24730_v45 = vmul.f32 %v39753_v38, %v24704_v12  ;;  %v24777_v57 = vpop.permute.xlu1 %24776 }
0x1497   : > { %v40057_v23 = vadd.f32 %v24729_v21, %v24721_v9 }
0x1498   : > { %v40059_v36 = vadd.f32 %v24730_v45, %v24722_v32 }
0x1499   : > { %41677 = vst [vmem:[#allocation41_spill] sm:$0xff] %v40057_v23  ;;  %v24782_v2 = vpop.permute.xlu0 %24781 }
0x149a   : > { %41678 = vst [vmem:[#allocation103_spill] sm:$0xff] %v40059_v36 }
0x14e7   : > { %v25396_v34 = vpop.f32.mrb[84].mxu0 }
0x14e8   : > { %v40061_v27 = vadd.f32 %v25396_v34, %v24767_v11  ;;  %v25398_v59 = vpop.f32.mrb[85].mxu0 }
0x14e9   : > { %v40063_v13 = vadd.f32 %v25398_v59, %v24767_v11 }
0x14ea   : > { %41679 = vst [vmem:[#allocation28_spill] sm:$0xff] %v40061_v27  ;;  %v25424_v49 = vand.u32 4294901760, %v40061_v27 }
0x14eb   : > { %41680 = vst [vmem:[#allocation27_spill] sm:$0xff] %v40063_v13  ;;  %v25422_v30 = vand.u32 4294901760, %v40063_v13  ;;  %v25403_v8 = vpop.f32.mrb[86].mxu0 }
0x14ec   : > { %v40067_v42 = vadd.f32 %v25403_v8, %v24772_v26  ;;  %v25405_v38 = vpop.f32.mrb[87].mxu0  ;;  %v40077_v32 = vsub.f32 %v40061_v27, %v25424_v49 }
0x14ed   : > { %v40070_v12 = vsub.f32 %v40063_v13, %v25422_v30  ;;  %v40072_v9 = vadd.f32 %v25405_v38, %v24772_v26 }
0x14ee   : > { %41681 = vst [vmem:[#allocation94_spill] sm:$0xff] %v40067_v42  ;;  %v25428_v4 = vand.u32 4294901760, %v40067_v42 }
0x14ef   : > { %41682 = vst [vmem:[#allocation104_spill] sm:$0xff] %v40072_v9  ;;  %v25426_v21 = vand.u32 4294901760, %v40072_v9  ;;  %v25410_v50 = vpop.f32.mrb[88].mxu0  ;;  %v41229_v38 = vand.u32 4294901760, %v40070_v12 }
0x14f0   : > { %v40080_v45 = vsub.f32 %v40067_v42, %v25428_v4  ;;  %v40082_v11 = vadd.f32 %v25410_v50, %v24777_v57  ;;  %v25412_v34 = vpop.f32.mrb[89].mxu0  ;;  %v40092_v36 = vpack.c.bf16 %v25428_v4, %v25424_v49 }
0x14f1   : > { %v40085_v59 = vsub.f32 %v40072_v9, %v25426_v21  ;;  %v40087_v26 = vadd.f32 %v25412_v34, %v24777_v57  ;;  %v40089_v8 = vpack.c.bf16 %v25426_v21, %v25422_v30  ;;  %v25509_v23 = vsub.f32 %v40070_v12, %v41229_v38 }
0x14f2   : > { %41683 = vst [vmem:[#allocation24_spill] sm:$0xff] %v40082_v11  ;;  %v25432_v3 = vand.u32 4294901760, %v40082_v11  ;;  %v41686_v57 = vand.u32 4294901760, %v40080_v45 }
0x14f3   : > { %41684 = vst [vmem:[#allocation91_spill] sm:$0xff] %v40087_v26  ;;  %v25430_v50 = vand.u32 4294901760, %v40087_v26  ;;  %v25417_v42 = vpop.f32.mrb[90].mxu0  ;;  %34165 = vmatprep.subr.bf16.mxu1 %v40089_v8  ;;  %v25520_v9 = vand.u32 4294901760, %v40085_v59  ;;  %v25510_v43 = vand.u32 4294901760, %v25509_v23 }
0x14f4   : > { %v40101_v30 = vsub.f32 %v40082_v11, %v25432_v3  ;;  %v40103_v21 = vadd.f32 %v25417_v42, %v24782_v2  ;;  %v25419_v49 = vpop.f32.mrb[91].mxu0  ;;  %34167 = vmatpush1.bf16.msra.mxu1 %v40092_v36  ;;  %v25527_v11 = vsub.f32 %v40080_v45, %v41686_v57 }
0x14f5   : > { %v25531_v4 = vsub.f32 %v40087_v26, %v25430_v50  ;;  %v40107_v34 = vadd.f32 %v25419_v49, %v24782_v2  ;;  %v25521_v13 = vsub.f32 %v40085_v59, %v25520_v9  ;;  %v41687_v26 = vand.u32 4294901760, %v40077_v32 }
0x14f6   : > { %41685 = vst [vmem:[#allocation101_spill] sm:$0xff] %v40103_v21  ;;  %v25436_v42 = vand.u32 4294901760, %v40103_v21  ;;  %v25538_v49 = vand.u32 4294901760, %v40101_v30  ;;  %v25528_v6 = vand.u32 4294901760, %v25527_v11  ;;  %v34180_v11 = vpack.c.bf16 %v40085_v59, %v40070_v12 }
0x14f7   : > { %v25434_v27 = vand.u32 4294901760, %v40107_v34  ;;  %v25522_v28 = vand.u32 4294901760, %v25521_v13  ;;  %v25532_v54 = vand.u32 4294901760, %v25531_v4  ;;  %v25515_v2 = vsub.f32 %v40077_v32, %v41687_v26 }
0x14f8   : > { %v25549_v38 = vsub.f32 %v40103_v21, %v25436_v42  ;;  %v34170_v52 = vpack.c.bf16 %v25436_v42, %v25432_v3  ;;  %v25539_v63 = vsub.f32 %v40101_v30, %v25538_v49 }
0x14f9   : > { %v25543_v47 = vsub.f32 %v40107_v34, %v25434_v27  ;;  %v34168_v53 = vpack.c.bf16 %v25434_v27, %v25430_v50  ;;  %v34172_v46 = vpack.c.bf16 %v25522_v28, %v25510_v43  ;;  %v25533_v51 = vsub.f32 %v25531_v4, %v25532_v54 }
0x14fa   : > { %v25550_v57 = vand.u32 4294901760, %v25549_v38  ;;  %v25516_v26 = vand.u32 4294901760, %v25515_v2  ;;  %v25540_v3 = vand.u32 4294901760, %v25539_v63 }
0x14fb   : > { %34169 = vmatprep.subr.bf16.mxu1 %v34168_v53  ;;  %v25544_v13 = vand.u32 4294901760, %v25543_v47  ;;  %v25534_v27 = vand.u32 4294901760, %v25533_v51  ;;  %v41689_v51 = vand.u32 4294901760, %v40077_v32 }
0x14fc   : > { %v25551_v1 = vsub.f32 %v25549_v38, %v25550_v57  ;;  %34171 = vmatpush1.bf16.msra.mxu1 %v34170_v52  ;;  %v34174_v48 = vpack.c.bf16 %v25528_v6, %v25516_v26  ;;  %v41690_v6 = vand.u32 4294901760, %v40080_v45 }
0x14fd   : > { %34173 = vmatprep.subr.bf16.mxu1 %v34172_v46  ;;  %v25545_v14 = vsub.f32 %v25543_v47, %v25544_v13  ;;  %v34182_v46 = vpack.c.bf16 %v40080_v45, %v40077_v32  ;;  %v34200_v59 = vpack.c.bf16 %v25544_v13, %v25532_v54 }
0x14fe   : > { %v25552_v21 = vand.u32 4294901760, %v25551_v1  ;;  %v34184_v1 = vpack.c.bf16 %v25543_v47, %v25531_v4  ;;  %v34198_v47 = vpack.c.bf16 %v41690_v6, %v41689_v51 }
0x14ff   : > { %25500 = vmatmul.mubr.f32.vlgmr.msra.gmra.mrb[96].mxu1 %v37935_v61  ;;  %v25546_v23 = vand.u32 4294901760, %v25545_v14  ;;  %v41688_v14 = vand.u32 4294901760, %v40070_v12 }
0x1500   : > { %34175 = vmatpush1.bf16.msra.mxu1 %v34174_v48  ;;  %25610 = vmatprep.mubr.f32.mxu1 %v41276_v20  ;;  %v34178_v28 = vpack.c.bf16 %v25552_v21, %v25540_v3  ;;  %v34186_v48 = vpack.c.bf16 %v25549_v38, %v40101_v30  ;;  %v34202_v38 = vpack.c.bf16 %v25550_v57, %v25538_v49 }
0x1501   : > { %v34176_v43 = vpack.c.bf16 %v25546_v23, %v25534_v27  ;;  %v34196_v63 = vpack.c.bf16 %v25520_v9, %v41688_v14 }
0x1503   : > { %34177 = vmatprep.subr.bf16.mxu1 %v34176_v43 }
0x1504   : > { %34179 = vmatpush1.bf16.msra.mxu1 %v34178_v28 }
0x1505   : > { %34181 = vmatprep.subr.bf16.mxu1 %v34180_v11 }
0x1507   : > { %25612 = vmatmul.mubr.f32.vlgmr.msra.gmra.mrb[96].mxu1 %v37862_v55 }
0x1508   : > { %34183 = vmatpush1.bf16.msra.mxu1 %v34182_v46  ;;  %25698 = vmatprep.mubr.f32.mxu1 %v41276_v20 }
0x1509   : > { %34185 = vmatprep.subr.bf16.mxu1 %v34184_v1 }
0x150c   : > { %34187 = vmatpush1.bf16.msra.mxu1 %v34186_v48 }
0x150d   : > { %34189 = vmatprep.subr.bf16.mxu1 %v40089_v8 }
0x150f   : > { %25701 = vmatmul.mubr.f32.vlgmr.msra.gmra.mrb[96].mxu1 %v37875_v22 }
0x1510   : > { %34191 = vmatpush1.bf16.msra.mxu1 %v40092_v36  ;;  %25779 = vmatprep.mubr.f32.mxu1 %v41276_v20 }
0x1511   : > { %34193 = vmatprep.subr.bf16.mxu1 %v34168_v53 }
0x1514   : > { %34195 = vmatpush1.bf16.msra.mxu1 %v34170_v52 }
0x1515   : > { %34197 = vmatprep.subr.bf16.mxu1 %v34196_v63 }
0x1517   : > { %25783 = vmatmul.mubr.f32.vlgmr.msra.gmra.mrb[96].mxu1 %v37901_v29 }
0x1518   : > { %34199 = vmatpush1.bf16.msra.mxu1 %v34198_v47  ;;  %25877 = vmatprep.mubr.f32.mxu1 %v41276_v20 }
0x1519   : > { %34201 = vmatprep.subr.bf16.mxu1 %v34200_v59 }
0x151c   : > { %34203 = vmatpush1.bf16.msra.mxu1 %v34202_v38 }
0x151d   : > { %34205 = vmatprep.subr.bf16.mxu1 %v40089_v8 }
0x151f   : > { %25879 = vmatmul.mubr.f32.vlgmr.msra.gmra.mrb[96].mxu1 %v37862_v55 }
0x1520   : > { %34207 = vmatpush1.bf16.msra.mxu1 %v40092_v36  ;;  %25957 = vmatprep.mubr.f32.mxu1 %v41276_v20 }
0x1521   : > { %34209 = vmatprep.subr.bf16.mxu1 %v34168_v53 }
0x1524   : > { %34211 = vmatpush1.bf16.msra.mxu1 %v34170_v52 }
0x1527   : > { %25959 = vmatmul.mubr.f32.vlgmr.msra.gmra.mrb[96].mxu1 %v37862_v55 }
0x1528   : > { %26055 = vmatprep.mubr.f32.mxu1 %v41276_v20 }
0x15fa   : > { %v25960_v54 = vpop.f32.mrb[96].mxu1 }
0x15fb   : > { %v34460_v12 = vadd.f32 %v25960_v54, %v41386_v31  ;;  %v25962_v9 = vpop.f32.mrb[97].mxu1 }
0x15fc   : > { %v34461_v32 = vadd.f32 %v25962_v9, %v41386_v31 }
0x15fd   : > { %v40155_v45 = vmax.f32 %v39801_v15, %v34460_v12 }
0x15fe   : > { %v40158_v8 = vmax.f32 %v39804_v41, %v34461_v32 }
0x15ff   : > { %v25967_v53 = vsub.f32 %v39801_v15, %v40155_v45  ;;  %v25973_v52 = vsub.f32 %v34460_v12, %v40155_v45 }
0x1600   : > { %v25968_v36 = vsub.f32 %v39804_v41, %v40158_v8  ;;  %v25974_v50 = vsub.f32 %v34461_v32, %v40158_v8 }
0x1601   : > { %v25969_v30 = vmul.f32 1.442695, %v25967_v53  ;;  %v25975_v21 = vmul.f32 1.442695, %v25973_v52 }
0x1602   : > { %v25971_v4 = vmul.f32 1.442695, %v25968_v36  ;;  %v25977_v42 = vmul.f32 1.442695, %v25974_v50  ;;  %v41691_v50 = vld [vmem:[#allocation79_spill] sm:$0xff] }
0x1603   : > { %35965 = vpow2.f32 %v25969_v30  ;;  %v41692_v30 = vld [vmem:[#allocation85_spill] sm:$0xff] }
0x1604   : > { %35967 = vpow2.f32 %v25975_v21  ;;  %v41693_v21 = vld [vmem:[#allocation88_spill] sm:$0xff] }
0x1605   : > { %35969 = vpow2.f32 %v25971_v4  ;;  %v41694_v4 = vld [vmem:[#allocation90_spill] sm:$0xff] }
0x1606   : > { %35971 = vpow2.f32 %v25977_v42  ;;  %v41695_v42 = vld [vmem:[#allocation81_spill] sm:$0xff] }
0x160d   : > { %v35966_v2 = vpop.eup %35965 }
0x160e   : > { %v35968_v49 = vpop.eup %35967  ;;  %v25979_v57 = vmul.f32 %v35966_v2, %v39817_v35  ;;  %v25984_v15 = vsel %vm8550_vm2, %v35966_v2, 0  ;;  %v41696_v2 = vld [vmem:[#allocation80_spill] sm:$0xff] }
0x160f   : > { %v35970_v13 = vpop.eup %35969  ;;  %v40168_v26 = vand.u32 4294901760, %v25984_v15  ;;  %v26602_v41 = vsel %vm8550_vm2, %v35968_v49, 0 }
0x1610   : > { %v35972_v27 = vpop.eup %35971  ;;  %v40171_v23 = vadd.f32 %v35968_v49, %v25979_v57  ;;  %v25980_v3 = vmul.f32 %v35970_v13, %v39829_v56  ;;  %v25987_v43 = vsel %vm8550_vm2, %v35970_v13, 0  ;;  %v40175_v28 = vand.u32 4294901760, %v26602_v41  ;;  %v41698_v57 = vld [vmem:[#allocation25_spill] sm:$0xff]  ;;  %v41701_v13 = vld [vmem:[#allocation87_spill] sm:$0xff] }
0x1611   : > { %v40177_v11 = vand.u32 4294901760, %v25987_v43  ;;  %v26605_v35 = vsel %vm8550_vm2, %v35972_v27, 0  ;;  %v40181_v46 = vsub.f32 %v25984_v15, %v40168_v26  ;;  %v41697_v49 = vpack.c.bf16 %v41695_v42, %v41696_v2  ;;  %v41699_v15 = vld [vmem:[#allocation30_spill] sm:$0xff] }
0x1612   : > { %v40183_v1 = vadd.f32 %v35972_v27, %v25980_v3  ;;  %v40185_v48 = vand.u32 4294901760, %v26605_v35  ;;  %v40188_v14 = vsub.f32 %v26602_v41, %v40175_v28  ;;  %v41705_v27 = vld [vmem:[#allocation14_spill] sm:$0xff] }
0x1613   : > { %25990 = vmatprep.subr.mxu1 %v40177_v11  ;;  %v40192_v56 = vsub.f32 %v25987_v43, %v40177_v11  ;;  %v26108_v63 = vand.u32 4294901760, %v40181_v46  ;;  %v41706_v3 = vld [vmem:[#allocation18_spill] sm:$0xff]  ;;  %v41707_v43 = vld [vmem:[#allocation15_spill] sm:$0xff] }
0x1614   : > { %26608 = vmatprep.subr.mxu0 %v40185_v48  ;;  %25992 = vmatpush1.msra.mxu1 %v40168_v26  ;;  %v26719_v51 = vsub.f32 %v26605_v35, %v40185_v48  ;;  %v26726_v6 = vand.u32 4294901760, %v40188_v14  ;;  %v41710_v35 = vld [vmem:[#allocation17_spill] sm:$0xff] }
0x1615   : > { %26610 = vmatpush1.msra.mxu0 %v40175_v28  ;;  %26061 = vmatmul.mubr.f32.vlgmr.msra.gmra.mrb[98].mxu1 %v41391_v40  ;;  %v26102_v47 = vand.u32 4294901760, %v40192_v56  ;;  %v26109_v38 = vsub.f32 %v40181_v46, %v26108_v63 }
0x1616   : > { %26679 = vmatmul.mubr.f32.vlgmr.msra.gmra.mrb[92].mxu0 %v41391_v40  ;;  %26066 = vmatprep.mubr.f32.mxu1 %v41276_v20  ;;  %v26720_v59 = vand.u32 4294901760, %v26719_v51  ;;  %v26727_v12 = vsub.f32 %v40188_v14, %v26726_v6 }
0x1617   : > { %26684 = vmatprep.mubr.f32.mxu0 %v41276_v20  ;;  %v26103_v54 = vsub.f32 %v40192_v56, %v26102_v47  ;;  %v26110_v52 = vand.u32 4294901760, %v26109_v38 }
0x1618   : > { %v26721_v9 = vsub.f32 %v26719_v51, %v26720_v59  ;;  %v26728_v36 = vand.u32 4294901760, %v26727_v12  ;;  %v41718_v12 = vld [vmem:[#allocation28_spill] sm:$0xff] }
0x1619   : > { %26072 = vmatmul.mubr.f32.gmra.mrb[100].mxu1 %v38072_v60  ;;  %v26104_v32 = vand.u32 4294901760, %v26103_v54 }
0x161a   : > { %26690 = vmatmul.mubr.f32.gmra.mrb[94].mxu0 %v38072_v60  ;;  %v26722_v53 = vand.u32 4294901760, %v26721_v9  ;;  %26077 = vmatprep.mubr.f32.mxu1 %v41276_v20 }
0x161b   : > { %26105 = vmatprep.subr.mxu1 %v26104_v32  ;;  %26695 = vmatprep.mubr.f32.mxu0 %v41276_v20  ;;  %v41719_v32 = vld [vmem:[#allocation51_spill] sm:$0xff] }
0x161c   : > { %26723 = vmatprep.subr.mxu0 %v26722_v53  ;;  %26111 = vmatpush1.msra.mxu1 %v26110_v52 }
0x161d   : > { %26729 = vmatpush1.msra.mxu0 %v26728_v36  ;;  %26083 = vmatmul.mubr.f32.gmra.mrb[102].mxu1 %v38090_v17  ;;  %v41720_v36 = vld [vmem:[#allocation27_spill] sm:$0xff] }
0x161e   : > { %26205 = vmatprep.subr.mxu1 %v40192_v56  ;;  %26701 = vmatmul.mubr.f32.gmra.mrb[96].mxu0 %v38090_v17  ;;  %v41714_v56 = vld [vmem:[#allocation20_spill] sm:$0xff] }
0x161f   : > { %26823 = vmatprep.subr.mxu0 %v26719_v51  ;;  %26088 = vmatprep.mubr.f32.mxu1 %v41276_v20  ;;  %v41716_v51 = vld [vmem:[#allocation23_spill] sm:$0xff] }
0x1620   : > { %26706 = vmatprep.mubr.f32.mxu0 %v41276_v20 }
0x1621   : > { %26094 = vmatmul.mubr.f32.gmra.mrb[104].mxu1 %v38098_v37 }
0x1622   : > { %26712 = vmatmul.mubr.f32.gmra.mrb[98].mxu0 %v38098_v37  ;;  %26174 = vmatprep.mubr.f32.mxu1 %v41276_v20 }
0x1623   : > { %26792 = vmatprep.mubr.f32.mxu0 %v41276_v20 }
0x1625   : > { %26176 = vmatmul.mubr.f32.vlgmr.msra.gmra.mrb[98].mxu1 %v37984_v16 }
0x1626   : > { %26208 = vmatpush1.msra.mxu1 %v40181_v46  ;;  %26794 = vmatmul.mubr.f32.vlgmr.msra.gmra.mrb[92].mxu0 %v37984_v16  ;;  %v41711_v46 = vld [vmem:[#allocation22_spill] sm:$0xff] }
0x1627   : > { %26826 = vmatpush1.msra.mxu0 %v40188_v14  ;;  %26305 = vmatprep.subr.mxu1 %v40177_v11  ;;  %v41713_v14 = vld [vmem:[#allocation89_spill] sm:$0xff] }
0x1628   : > { %26923 = vmatprep.subr.mxu0 %v40185_v48  ;;  %26181 = vmatprep.mubr.f32.mxu1 %v41276_v20 }
0x1629   : > { %26799 = vmatprep.mubr.f32.mxu0 %v41276_v20  ;;  %26183 = vmatmul.mubr.f32.gmra.mrb[100].mxu1 %v38003_v39 }
0x162a   : > { %26801 = vmatmul.mubr.f32.gmra.mrb[94].mxu0 %v38003_v39  ;;  %26188 = vmatprep.mubr.f32.mxu1 %v41276_v20 }
0x162b   : > { %26806 = vmatprep.mubr.f32.mxu0 %v41276_v20 }
0x162d   : > { %26190 = vmatmul.mubr.f32.gmra.mrb[102].mxu1 %v38009_v19 }
0x162e   : > { %26808 = vmatmul.mubr.f32.gmra.mrb[96].mxu0 %v38009_v19  ;;  %26195 = vmatprep.mubr.f32.mxu1 %v41276_v20 }
0x162f   : > { %26813 = vmatprep.mubr.f32.mxu0 %v41276_v20 }
0x1631   : > { %26197 = vmatmul.mubr.f32.gmra.mrb[104].mxu1 %v38014_v62 }
0x1632   : > { %26815 = vmatmul.mubr.f32.gmra.mrb[98].mxu0 %v38014_v62  ;;  %26271 = vmatprep.mubr.f32.mxu1 %v41276_v20 }
0x1633   : > { %26889 = vmatprep.mubr.f32.mxu0 %v41276_v20 }
0x1635   : > { %26274 = vmatmul.mubr.f32.vlgmr.msra.gmra.mrb[98].mxu1 %v37997_v25 }
0x1636   : > { %26307 = vmatpush1.msra.mxu1 %v40168_v26  ;;  %26892 = vmatmul.mubr.f32.vlgmr.msra.gmra.mrb[92].mxu0 %v37997_v25 }
0x1637   : > { %26925 = vmatpush1.msra.mxu0 %v40175_v28  ;;  %26410 = vmatprep.subr.mxu1 %v26102_v47  ;;  %v41717_v47 = vld [vmem:[#allocation53_spill] sm:$0xff] }
0x1638   : > { %27028 = vmatprep.subr.mxu0 %v26720_v59  ;;  %26279 = vmatprep.mubr.f32.mxu1 %v41276_v20 }
0x1639   : > { %26897 = vmatprep.mubr.f32.mxu0 %v41276_v20  ;;  %26282 = vmatmul.mubr.f32.gmra.mrb[100].mxu1 %v38012_v33 }
0x163a   : > { %26900 = vmatmul.mubr.f32.gmra.mrb[94].mxu0 %v38012_v33  ;;  %26287 = vmatprep.mubr.f32.mxu1 %v41276_v20 }
0x163b   : > { %26905 = vmatprep.mubr.f32.mxu0 %v41276_v20 }
0x163d   : > { %26290 = vmatmul.mubr.f32.gmra.mrb[102].mxu1 %v38017_v24 }
0x163e   : > { %26908 = vmatmul.mubr.f32.gmra.mrb[96].mxu0 %v38017_v24  ;;  %26295 = vmatprep.mubr.f32.mxu1 %v41276_v20 }
0x163f   : > { %26913 = vmatprep.mubr.f32.mxu0 %v41276_v20 }
0x1641   : > { %26298 = vmatmul.mubr.f32.gmra.mrb[104].mxu1 %v38025_v5 }
0x1642   : > { %26916 = vmatmul.mubr.f32.gmra.mrb[98].mxu0 %v38025_v5  ;;  %26370 = vmatprep.mubr.f32.mxu1 %v41276_v20 }
0x1643   : > { %26988 = vmatprep.mubr.f32.mxu0 %v41276_v20 }
0x1645   : > { %26374 = vmatmul.mubr.f32.vlgmr.msra.gmra.mrb[98].mxu1 %v38007_v10 }
0x1646   : > { %26414 = vmatpush1.msra.mxu1 %v26108_v63  ;;  %26992 = vmatmul.mubr.f32.vlgmr.msra.gmra.mrb[92].mxu0 %v38007_v10  ;;  %v41715_v63 = vld [vmem:[#allocation21_spill] sm:$0xff] }
0x1647   : > { %27032 = vmatpush1.msra.mxu0 %v26726_v6  ;;  %26507 = vmatprep.subr.mxu1 %v40177_v11  ;;  %v41709_v11 = vld [vmem:[#allocation16_spill] sm:$0xff] }
0x1648   : > { %27125 = vmatprep.subr.mxu0 %v40185_v48  ;;  %26379 = vmatprep.mubr.f32.mxu1 %v41276_v20  ;;  %v41712_v48 = vld [vmem:[#allocation19_spill] sm:$0xff] }
0x1649   : > { %26997 = vmatprep.mubr.f32.mxu0 %v41276_v20  ;;  %26383 = vmatmul.mubr.f32.gmra.mrb[100].mxu1 %v38022_v58 }
0x164a   : > { %27001 = vmatmul.mubr.f32.gmra.mrb[94].mxu0 %v38022_v58  ;;  %26388 = vmatprep.mubr.f32.mxu1 %v41276_v20 }
0x164b   : > { %27006 = vmatprep.mubr.f32.mxu0 %v41276_v20 }
0x164d   : > { %26392 = vmatmul.mubr.f32.gmra.mrb[102].mxu1 %v38029_v0 }
0x164e   : > { %27010 = vmatmul.mubr.f32.gmra.mrb[96].mxu0 %v38029_v0  ;;  %26397 = vmatprep.mubr.f32.mxu1 %v41276_v20 }
0x164f   : > { %27015 = vmatprep.mubr.f32.mxu0 %v41276_v20 }
0x1651   : > { %26401 = vmatmul.mubr.f32.gmra.mrb[104].mxu1 %v38068_v18 }
0x1652   : > { %27019 = vmatmul.mubr.f32.gmra.mrb[98].mxu0 %v38068_v18  ;;  %26477 = vmatprep.mubr.f32.mxu1 %v41276_v20 }
0x1653   : > { %27095 = vmatprep.mubr.f32.mxu0 %v41276_v20 }
0x1655   : > { %26479 = vmatmul.mubr.f32.vlgmr.msra.gmra.mrb[98].mxu1 %v37984_v16 }
0x1656   : > { %26509 = vmatpush1.msra.mxu1 %v40168_v26  ;;  %27097 = vmatmul.mubr.f32.vlgmr.msra.gmra.mrb[92].mxu0 %v37984_v16  ;;  %v41702_v26 = vld [vmem:[#allocation86_spill] sm:$0xff] }
0x1657   : > { %27127 = vmatpush1.msra.mxu0 %v40175_v28  ;;  %34213 = vmatprep.subr.bf16.mxu1 %v41691_v50  ;;  %v41703_v41 = vpack.c.bf16 %v41701_v13, %v41702_v26  ;;  %v41708_v28 = vld [vmem:[#allocation84_spill] sm:$0xff]  ;;  %v41724_v13 = vld [vmem:[#allocation54_spill] sm:$0xff] }
0x1658   : > { %26484 = vmatprep.mubr.f32.mxu1 %v41276_v20  ;;  %27102 = vmatprep.mubr.f32.mxu0 %v41276_v20 }
0x1659   : > { %26486 = vmatmul.mubr.f32.gmra.mrb[100].mxu1 %v38003_v39 }
0x165a   : > { %27104 = vmatmul.mubr.f32.gmra.mrb[94].mxu0 %v38003_v39  ;;  %26491 = vmatprep.mubr.f32.mxu1 %v41276_v20 }
0x165b   : > { %27109 = vmatprep.mubr.f32.mxu0 %v41276_v20 }
0x165d   : > { %26493 = vmatmul.mubr.f32.gmra.mrb[102].mxu1 %v38009_v19 }
0x165e   : > { %27111 = vmatmul.mubr.f32.gmra.mrb[96].mxu0 %v38009_v19  ;;  %26498 = vmatprep.mubr.f32.mxu1 %v41276_v20 }
0x165f   : > { %27116 = vmatprep.mubr.f32.mxu0 %v41276_v20 }
0x1661   : > { %26500 = vmatmul.mubr.f32.gmra.mrb[104].mxu1 %v38014_v62 }
0x1662   : > { %27118 = vmatmul.mubr.f32.gmra.mrb[98].mxu0 %v38014_v62  ;;  %26572 = vmatprep.mubr.f32.mxu1 %v41276_v20 }
0x1663   : > { %27190 = vmatprep.mubr.f32.mxu0 %v41276_v20 }
0x1665   : > { %26574 = vmatmul.mubr.f32.vlgmr.msra.gmra.mrb[98].mxu1 %v37984_v16 }
0x1666   : > { %27192 = vmatmul.mubr.f32.vlgmr.msra.gmra.mrb[92].mxu0 %v37984_v16  ;;  %34215 = vmatpush1.bf16.msra.mxu1 %v41692_v30 }
0x1667   : > { %34217 = vmatprep.subr.bf16.mxu1 %v41693_v21  ;;  %26579 = vmatprep.mubr.f32.mxu1 %v41276_v20 }
0x1668   : > { %27197 = vmatprep.mubr.f32.mxu0 %v41276_v20 }
0x1669   : > { %26581 = vmatmul.mubr.f32.gmra.mrb[100].mxu1 %v38003_v39 }
0x166a   : > { %27199 = vmatmul.mubr.f32.gmra.mrb[94].mxu0 %v38003_v39  ;;  %26586 = vmatprep.mubr.f32.mxu1 %v41276_v20 }
0x166b   : > { %27204 = vmatprep.mubr.f32.mxu0 %v41276_v20 }
0x166d   : > { %26588 = vmatmul.mubr.f32.gmra.mrb[102].mxu1 %v38009_v19 }
0x166e   : > { %27206 = vmatmul.mubr.f32.gmra.mrb[96].mxu0 %v38009_v19  ;;  %26593 = vmatprep.mubr.f32.mxu1 %v41276_v20 }
0x166f   : > { %27211 = vmatprep.mubr.f32.mxu0 %v41276_v20 }
0x1671   : > { %26595 = vmatmul.mubr.f32.gmra.mrb[104].mxu1 %v38014_v62 }
0x1672   : > { %27213 = vmatmul.mubr.f32.gmra.mrb[98].mxu0 %v38014_v62  ;;  %27364 = vmatprep.mubr.f32.mxu1 %v41276_v20 }
0x1673   : > { %28006 = vmatprep.mubr.f32.mxu0 %v41276_v20 }
0x1675   : > { %27370 = vmatmul.mubr.f32.vlgmr.msra.gmra.mrb[106].mxu1 %v41356_v44  ;;  %v41700_v44 = vld [vmem:[#allocation12_spill] sm:$0xff] }
0x1676   : > { %34219 = vmatpush1.bf16.msra.mxu1 %v41694_v4  ;;  %27375 = vmatprep.mubr.f32.mxu1 %v41276_v20  ;;  %v41721_v4 = vld [vmem:[#allocation56_spill] sm:$0xff] }
0x1677   : > { %34221 = vmatprep.subr.bf16.mxu1 %v41697_v49 }
0x1679   : > { %27381 = vmatmul.mubr.f32.gmra.mrb[108].mxu1 %v37407_v7  ;;  %v41704_v7 = vld [vmem:[#allocation13_spill] sm:$0xff] }
0x167a   : > { %27386 = vmatprep.mubr.f32.mxu1 %v41276_v20 }
0x167d   : > { %27392 = vmatmul.mubr.f32.gmra.mrb[110].mxu1 %v41698_v57 }
0x167e   : > { %27397 = vmatprep.mubr.f32.mxu1 %v41276_v20 }
0x1681   : > { %27403 = vmatmul.mubr.f32.gmra.mrb[112].mxu1 %v41699_v15  ;;  %v41723_v15 = vld [vmem:[#allocation94_spill] sm:$0xff] }
0x1682   : > { %27493 = vmatprep.mubr.f32.mxu1 %v41276_v20 }
0x1685   : > { %27495 = vmatmul.mubr.f32.vlgmr.msra.gmra.mrb[106].mxu1 %v41700_v44 }
0x1686   : > { %34223 = vmatpush1.bf16.msra.mxu1 %v41703_v41  ;;  %27500 = vmatprep.mubr.f32.mxu1 %v41276_v20 }
0x1687   : > { %34225 = vmatprep.subr.bf16.mxu1 %v41691_v50 }
0x1689   : > { %27502 = vmatmul.mubr.f32.gmra.mrb[108].mxu1 %v41704_v7 }
0x168a   : > { %27507 = vmatprep.mubr.f32.mxu1 %v41276_v20 }
0x168d   : > { %27509 = vmatmul.mubr.f32.gmra.mrb[110].mxu1 %v41705_v27 }
0x168e   : > { %27514 = vmatprep.mubr.f32.mxu1 %v41276_v20 }
0x1691   : > { %27516 = vmatmul.mubr.f32.gmra.mrb[112].mxu1 %v41706_v3 }
0x1692   : > { %27594 = vmatprep.mubr.f32.mxu1 %v41276_v20 }
0x1695   : > { %27597 = vmatmul.mubr.f32.vlgmr.msra.gmra.mrb[106].mxu1 %v41707_v43 }
0x1696   : > { %34227 = vmatpush1.bf16.msra.mxu1 %v41692_v30  ;;  %27602 = vmatprep.mubr.f32.mxu1 %v41276_v20 }
0x1697   : > { %34229 = vmatprep.subr.bf16.mxu1 %v41708_v28  ;;  %v41727_v28 = vld [vmem:[#allocation58_spill] sm:$0xff] }
0x1699   : > { %27605 = vmatmul.mubr.f32.gmra.mrb[108].mxu1 %v41709_v11 }
0x169a   : > { %27610 = vmatprep.mubr.f32.mxu1 %v41276_v20 }
0x169d   : > { %27613 = vmatmul.mubr.f32.gmra.mrb[110].mxu1 %v41710_v35 }
0x169e   : > { %27618 = vmatprep.mubr.f32.mxu1 %v41276_v20 }
0x16a1   : > { %27621 = vmatmul.mubr.f32.gmra.mrb[112].mxu1 %v41711_v46 }
0x16a2   : > { %27695 = vmatprep.mubr.f32.mxu1 %v41276_v20 }
0x16a5   : > { %27699 = vmatmul.mubr.f32.vlgmr.msra.gmra.mrb[106].mxu1 %v41712_v48 }
0x16a6   : > { %34231 = vmatpush1.bf16.msra.mxu1 %v41713_v14  ;;  %27704 = vmatprep.mubr.f32.mxu1 %v41276_v20  ;;  %v41729_v14 = vld [vmem:[#allocation24_spill] sm:$0xff] }
0x16a7   : > { %34233 = vmatprep.subr.bf16.mxu1 %v41691_v50 }
0x16a9   : > { %27708 = vmatmul.mubr.f32.gmra.mrb[108].mxu1 %v41714_v56 }
0x16aa   : > { %27713 = vmatprep.mubr.f32.mxu1 %v41276_v20 }
0x16ad   : > { %27717 = vmatmul.mubr.f32.gmra.mrb[110].mxu1 %v41715_v63  ;;  %v41730_v63 = vld [vmem:[#allocation60_spill] sm:$0xff] }
0x16ae   : > { %27722 = vmatprep.mubr.f32.mxu1 %v41276_v20 }
0x16b1   : > { %27726 = vmatmul.mubr.f32.gmra.mrb[112].mxu1 %v41716_v51 }
0x16b2   : > { %27808 = vmatprep.mubr.f32.mxu1 %v41276_v20 }
0x16b5   : > { %27810 = vmatmul.mubr.f32.vlgmr.msra.gmra.mrb[106].mxu1 %v41700_v44 }
0x16b6   : > { %34235 = vmatpush1.bf16.msra.mxu1 %v41692_v30  ;;  %27815 = vmatprep.mubr.f32.mxu1 %v41276_v20 }
0x16b9   : > { %27817 = vmatmul.mubr.f32.gmra.mrb[108].mxu1 %v41704_v7 }
0x16ba   : > { %27822 = vmatprep.mubr.f32.mxu1 %v41276_v20 }
0x16bd   : > { %27824 = vmatmul.mubr.f32.gmra.mrb[110].mxu1 %v41705_v27 }
0x16be   : > { %27829 = vmatprep.mubr.f32.mxu1 %v41276_v20 }
0x16c1   : > { %27831 = vmatmul.mubr.f32.gmra.mrb[112].mxu1 %v41706_v3 }
0x16c2   : > { %27905 = vmatprep.mubr.f32.mxu1 %v41276_v20 }
0x16c5   : > { %27907 = vmatmul.mubr.f32.vlgmr.msra.gmra.mrb[106].mxu1 %v41700_v44 }
0x16c6   : > { %27912 = vmatprep.mubr.f32.mxu1 %v41276_v20 }
0x16c9   : > { %27914 = vmatmul.mubr.f32.gmra.mrb[108].mxu1 %v41704_v7  ;;  %v41725_v7 = vld [vmem:[#allocation104_spill] sm:$0xff] }
0x16ca   : > { %27919 = vmatprep.mubr.f32.mxu1 %v41276_v20 }
0x16cd   : > { %27921 = vmatmul.mubr.f32.gmra.mrb[110].mxu1 %v41705_v27 }
0x16ce   : > { %27926 = vmatprep.mubr.f32.mxu1 %v41276_v20 }
0x16d1   : > { %27928 = vmatmul.mubr.f32.gmra.mrb[112].mxu1 %v41706_v3 }
0x16d2   : > { %29185 = vmatprep.mubr.f32.mxu1 %v41276_v20 }
0x1738   : > { %v26575_v6 = vpop.f32.mrb[98].mxu1 }
0x1739   : > { %v27227_v59 = vmul.f32 %v26575_v6, %v41717_v47  ;;  %v27193_v38 = vpop.f32.mrb[92].mxu0  ;;  %v26577_v54 = vpop.f32.mrb[99].mxu1  ;;  %v41731_v47 = vld [vmem:[#allocation91_spill] sm:$0xff] }
0x173a   : > { %v27235_v9 = vmul.f32 %v41718_v12, %v27193_v38  ;;  %v27228_v53 = vmul.f32 %v26577_v54, %v41719_v32  ;;  %v27195_v52 = vpop.f32.mrb[93].mxu0  ;;  %v41733_v12 = vld [vmem:[#allocation41_spill] sm:$0xff] }
0x173b   : > { %v27236_v50 = vmul.f32 %v41720_v36, %v27195_v52  ;;  %v41735_v36 = vld [vmem:[#allocation101_spill] sm:$0xff] }
0x173c   : > { %v26582_v30 = vpop.f32.mrb[100].mxu1  ;;  %v40387_v21 = vadd.f32 %v27235_v9, %v27227_v59 }
0x173d   : > { %v27229_v42 = vmul.f32 %v26582_v30, %v41721_v4  ;;  %v27200_v2 = vpop.f32.mrb[94].mxu0  ;;  %v26584_v49 = vpop.f32.mrb[101].mxu1  ;;  %v40390_v57 = vadd.f32 %v27236_v50, %v27228_v53  ;;  %v41736_v30 = vld [vmem:[#allocation103_spill] sm:$0xff] }
0x173e   : > { %v27237_v44 = vmul.f32 %v41723_v15, %v27200_v2  ;;  %v27230_v26 = vmul.f32 %v26584_v49, %v41724_v13  ;;  %v27202_v41 = vpop.f32.mrb[95].mxu0 }
0x173f   : > { %41722 = vst [vmem:[#allocation105_spill] sm:$0xff] %v40390_v57  ;;  %v27238_v27 = vmul.f32 %v41725_v7, %v27202_v41 }
0x1740   : > { %v26589_v3 = vpop.f32.mrb[102].mxu1  ;;  %v40395_v43 = vadd.f32 %v27237_v44, %v27229_v42  ;;  %v27279_v44 = vpop.permute.xlu1 %27278 }
0x1741   : > { %v27231_v11 = vmul.f32 %v26589_v3, %v41727_v28  ;;  %v27207_v35 = vpop.f32.mrb[96].mxu0  ;;  %v26591_v46 = vpop.f32.mrb[103].mxu1  ;;  %v40398_v48 = vadd.f32 %v27238_v27, %v27230_v26 }
0x1742   : > { %41726 = vst [vmem:[#allocation29_spill] sm:$0xff] %v40395_v43  ;;  %v27239_v56 = vmul.f32 %v41729_v14, %v27207_v35  ;;  %v27232_v51 = vmul.f32 %v26591_v46, %v41730_v63  ;;  %v27209_v6 = vpop.f32.mrb[97].mxu0  ;;  %v27284_v27 = vpop.permute.xlu0 %27283 }
0x1743   : > { %41728 = vst [vmem:[#allocation92_spill] sm:$0xff] %v40398_v48  ;;  %v27240_v59 = vmul.f32 %v41731_v47, %v27209_v6 }
0x1744   : > { %v26596_v38 = vpop.f32.mrb[104].mxu1  ;;  %v40403_v54 = vadd.f32 %v27239_v56, %v27231_v11  ;;  %v27289_v63 = vpop.permute.xlu1 %27288 }
0x1745   : > { %v27233_v9 = vmul.f32 %v26596_v38, %v41733_v12  ;;  %v27214_v32 = vpop.f32.mrb[98].mxu0  ;;  %v26598_v53 = vpop.f32.mrb[105].mxu1  ;;  %v40406_v52 = vadd.f32 %v27240_v59, %v27232_v51 }
0x1746   : > { %41732 = vst [vmem:[#allocation102_spill] sm:$0xff] %v40403_v54  ;;  %v27241_v50 = vmul.f32 %v41735_v36, %v27214_v32  ;;  %v27234_v4 = vmul.f32 %v26598_v53, %v41736_v30  ;;  %v27216_v42 = vpop.f32.mrb[99].mxu0 }
0x1747   : > { %41734 = vst [vmem:[#allocation106_spill] sm:$0xff] %v40406_v52  ;;  %v27242_v2 = vmul.f32 %v40107_v34, %v27216_v42  ;;  %v27294_v42 = vpop.permute.xlu0 %27293 }
0x1748   : > { %v40411_v49 = vadd.f32 %v27241_v50, %v27233_v9 }
0x1749   : > { %v40413_v15 = vadd.f32 %v27242_v2, %v27234_v4 }
0x174a   : > { %41737 = vst [vmem:[#allocation26_spill] sm:$0xff] %v40411_v49 }
0x174b   : > { %41738 = vst [vmem:[#allocation59_spill] sm:$0xff] %v40413_v15 }
0x1798   : > { %v27908_v13 = vpop.f32.mrb[106].mxu1 }
0x1799   : > { %v40415_v26 = vadd.f32 %v27908_v13, %v27279_v44  ;;  %v27910_v41 = vpop.f32.mrb[107].mxu1 }
0x179a   : > { %v40417_v7 = vadd.f32 %v27910_v41, %v27279_v44 }
0x179b   : > { %v27936_v11 = vand.u32 4294901760, %v40415_v26 }
0x179c   : > { %41739 = vst [vmem:[#allocation66_spill] sm:$0xff] %v40417_v7  ;;  %v27934_v3 = vand.u32 4294901760, %v40417_v7  ;;  %v27915_v28 = vpop.f32.mrb[108].mxu1 }
0x179d   : > { %v40421_v35 = vadd.f32 %v27915_v28, %v27284_v27  ;;  %v27917_v34 = vpop.f32.mrb[109].mxu1  ;;  %v40431_v47 = vsub.f32 %v40415_v26, %v27936_v11 }
0x179e   : > { %v40424_v46 = vsub.f32 %v40417_v7, %v27934_v3  ;;  %v40426_v14 = vadd.f32 %v27917_v34, %v27284_v27 }
0x179f   : > { %41740 = vst [vmem:[#allocation68_spill] sm:$0xff] %v40421_v35  ;;  %v27940_v56 = vand.u32 4294901760, %v40421_v35  ;;  %v41745_v15 = vand.u32 4294901760, %v40431_v47 }
0x17a0   : > { %41741 = vst [vmem:[#allocation76_spill] sm:$0xff] %v40426_v14  ;;  %v27938_v51 = vand.u32 4294901760, %v40426_v14  ;;  %v27922_v6 = vpop.f32.mrb[110].mxu1  ;;  %v41235_v36 = vand.u32 4294901760, %v40424_v46 }
0x17a1   : > { %v40434_v59 = vsub.f32 %v40421_v35, %v27940_v56  ;;  %v40436_v38 = vadd.f32 %v27922_v6, %v27289_v63  ;;  %v27924_v12 = vpop.f32.mrb[111].mxu1  ;;  %v40446_v50 = vpack.c.bf16 %v27940_v56, %v27936_v11 }
0x17a2   : > { %v40439_v9 = vsub.f32 %v40426_v14, %v27938_v51  ;;  %v40441_v32 = vadd.f32 %v27924_v12, %v27289_v63  ;;  %v40443_v53 = vpack.c.bf16 %v27938_v51, %v27934_v3  ;;  %v28021_v56 = vsub.f32 %v40424_v46, %v41235_v36 }
0x17a3   : > { %41742 = vst [vmem:[#allocation61_spill] sm:$0xff] %v40436_v38  ;;  %v41238_v30 = vand.u32 4294901760, %v40434_v59  ;;  %v27944_v4 = vand.u32 4294901760, %v40436_v38 }
0x17a4   : > { %41743 = vst [vmem:[#allocation57_spill] sm:$0xff] %v40441_v32  ;;  %v27942_v2 = vand.u32 4294901760, %v40441_v32  ;;  %v27929_v44 = vpop.f32.mrb[112].mxu1  ;;  %34237 = vmatprep.subr.bf16.mxu0 %v40443_v53  ;;  %v28032_v13 = vand.u32 4294901760, %v40439_v9  ;;  %v28022_v52 = vand.u32 4294901760, %v28021_v56 }
0x17a5   : > { %v40455_v27 = vsub.f32 %v40436_v38, %v27944_v4  ;;  %v40457_v3 = vadd.f32 %v27929_v44, %v27294_v42  ;;  %v27931_v28 = vpop.f32.mrb[113].mxu1  ;;  %34239 = vmatpush1.bf16.msra.mxu0 %v40446_v50  ;;  %v28039_v51 = vsub.f32 %v40434_v59, %v41238_v30 }
0x17a6   : > { %v28043_v11 = vsub.f32 %v40441_v32, %v27942_v2  ;;  %v40461_v34 = vadd.f32 %v27931_v28, %v27294_v42  ;;  %v28033_v63 = vsub.f32 %v40439_v9, %v28032_v13  ;;  %v28027_v42 = vsub.f32 %v40431_v47, %v41745_v15 }
0x17a7   : > { %41744 = vst [vmem:[#allocation67_spill] sm:$0xff] %v40457_v3  ;;  %v27948_v6 = vand.u32 4294901760, %v40457_v3  ;;  %v28050_v28 = vand.u32 4294901760, %v40455_v27  ;;  %v28040_v54 = vand.u32 4294901760, %v28039_v51 }
0x17a8   : > { %v27946_v12 = vand.u32 4294901760, %v40461_v34  ;;  %v28034_v44 = vand.u32 4294901760, %v28033_v63  ;;  %v28044_v41 = vand.u32 4294901760, %v28043_v11  ;;  %v28028_v15 = vand.u32 4294901760, %v28027_v42 }
0x17a9   : > { %v28061_v36 = vsub.f32 %v40457_v3, %v27948_v6  ;;  %v34242_v38 = vpack.c.bf16 %v27948_v6, %v27944_v4  ;;  %v28051_v35 = vsub.f32 %v40455_v27, %v28050_v28  ;;  %v34252_v6 = vpack.c.bf16 %v40439_v9, %v40424_v46 }
0x17aa   : > { %v28055_v49 = vsub.f32 %v40461_v34, %v27946_v12  ;;  %v34240_v32 = vpack.c.bf16 %v27946_v12, %v27942_v2  ;;  %v34244_v14 = vpack.c.bf16 %v28034_v44, %v28022_v52  ;;  %v28045_v48 = vsub.f32 %v28043_v11, %v28044_v41 }
0x17ab   : > { %v28062_v30 = vand.u32 4294901760, %v28061_v36  ;;  %v34246_v57 = vpack.c.bf16 %v28040_v54, %v28028_v15  ;;  %v28052_v4 = vand.u32 4294901760, %v28051_v35  ;;  %v34254_v54 = vpack.c.bf16 %v40434_v59, %v40431_v47 }
0x17ac   : > { %34241 = vmatprep.subr.bf16.mxu0 %v34240_v32  ;;  %v28056_v63 = vand.u32 4294901760, %v28055_v49  ;;  %v28046_v2 = vand.u32 4294901760, %v28045_v48 }
0x17ad   : > { %v28063_v43 = vsub.f32 %v28061_v36, %v28062_v30  ;;  %34243 = vmatpush1.bf16.msra.mxu0 %v34242_v38 }
0x17ae   : > { %34245 = vmatprep.subr.bf16.mxu0 %v34244_v14  ;;  %v28057_v7 = vsub.f32 %v28055_v49, %v28056_v63  ;;  %v34272_v14 = vpack.c.bf16 %v28056_v63, %v28044_v41 }
0x17af   : > { %v28064_v3 = vand.u32 4294901760, %v28063_v43  ;;  %v41746_v43 = vand.u32 4294901760, %v40424_v46 }
0x17b0   : > { %28012 = vmatmul.mubr.f32.vlgmr.msra.gmra.mrb[100].mxu0 %v37935_v61  ;;  %v28058_v56 = vand.u32 4294901760, %v28057_v7  ;;  %v34256_v61 = vpack.c.bf16 %v28055_v49, %v28043_v11  ;;  %v41747_v49 = vand.u32 4294901760, %v40431_v47  ;;  %v41748_v7 = vand.u32 4294901760, %v40434_v59 }
0x17b1   : > { %34247 = vmatpush1.bf16.msra.mxu0 %v34246_v57  ;;  %28122 = vmatprep.mubr.f32.mxu0 %v41276_v20  ;;  %v34250_v51 = vpack.c.bf16 %v28064_v3, %v28052_v4  ;;  %v34258_v57 = vpack.c.bf16 %v28061_v36, %v40455_v27  ;;  %v34268_v48 = vpack.c.bf16 %v28032_v13, %v41746_v43 }
0x17b2   : > { %v34248_v52 = vpack.c.bf16 %v28058_v56, %v28046_v2  ;;  %v34270_v35 = vpack.c.bf16 %v41748_v7, %v41747_v49 }
0x17b4   : > { %34249 = vmatprep.subr.bf16.mxu0 %v34248_v52 }
0x17b5   : > { %34251 = vmatpush1.bf16.msra.mxu0 %v34250_v51 }
0x17b6   : > { %34253 = vmatprep.subr.bf16.mxu0 %v34252_v6 }
0x17b8   : > { %28124 = vmatmul.mubr.f32.vlgmr.msra.gmra.mrb[100].mxu0 %v37862_v55 }
0x17b9   : > { %34255 = vmatpush1.bf16.msra.mxu0 %v34254_v54  ;;  %28210 = vmatprep.mubr.f32.mxu0 %v41276_v20 }
0x17ba   : > { %34257 = vmatprep.subr.bf16.mxu0 %v34256_v61 }
0x17bd   : > { %34259 = vmatpush1.bf16.msra.mxu0 %v34258_v57 }
0x17be   : > { %34261 = vmatprep.subr.bf16.mxu0 %v40443_v53 }
0x17c0   : > { %28213 = vmatmul.mubr.f32.vlgmr.msra.gmra.mrb[100].mxu0 %v37875_v22  ;;  %v34274_v22 = vpack.c.bf16 %v28062_v30, %v28050_v28 }
0x17c1   : > { %34263 = vmatpush1.bf16.msra.mxu0 %v40446_v50  ;;  %28291 = vmatprep.mubr.f32.mxu0 %v41276_v20 }
0x17c2   : > { %34265 = vmatprep.subr.bf16.mxu0 %v34240_v32 }
0x17c5   : > { %34267 = vmatpush1.bf16.msra.mxu0 %v34242_v38 }
0x17c6   : > { %34269 = vmatprep.subr.bf16.mxu0 %v34268_v48 }
0x17c8   : > { %28295 = vmatmul.mubr.f32.vlgmr.msra.gmra.mrb[100].mxu0 %v37901_v29 }
0x17c9   : > { %34271 = vmatpush1.bf16.msra.mxu0 %v34270_v35  ;;  %28389 = vmatprep.mubr.f32.mxu0 %v41276_v20 }
0x17ca   : > { %34273 = vmatprep.subr.bf16.mxu0 %v34272_v14 }
0x17cd   : > { %34275 = vmatpush1.bf16.msra.mxu0 %v34274_v22 }
0x17ce   : > { %34277 = vmatprep.subr.bf16.mxu0 %v40443_v53 }
0x17d0   : > { %28391 = vmatmul.mubr.f32.vlgmr.msra.gmra.mrb[100].mxu0 %v37862_v55 }
0x17d1   : > { %34279 = vmatpush1.bf16.msra.mxu0 %v40446_v50  ;;  %28469 = vmatprep.mubr.f32.mxu0 %v41276_v20 }
0x17d2   : > { %34281 = vmatprep.subr.bf16.mxu0 %v34240_v32 }
0x17d5   : > { %34283 = vmatpush1.bf16.msra.mxu0 %v34242_v38 }
0x17d8   : > { %28471 = vmatmul.mubr.f32.vlgmr.msra.gmra.mrb[100].mxu0 %v37862_v55 }
0x17d9   : > { %28567 = vmatprep.mubr.f32.mxu0 %v41276_v20 }
0x18ab   : > { %v28472_v29 = vpop.f32.mrb[100].mxu0 }
0x18ac   : > { %v34470_v46 = vadd.f32 %v28472_v29, %v41386_v31  ;;  %v28474_v47 = vpop.f32.mrb[101].mxu0 }
0x18ad   : > { %v34471_v59 = vadd.f32 %v28474_v47, %v41386_v31 }
0x18ae   : > { %v28477_v9 = vmax.f32 %v40155_v45, %v34470_v46 }
0x18af   : > { %v28478_v53 = vmax.f32 %v40158_v8, %v34471_v59 }
0x18b0   : > { %v28479_v36 = vsub.f32 %v40155_v45, %v28477_v9  ;;  %v28485_v50 = vsub.f32 %v34470_v46, %v28477_v9 }
0x18b1   : > { %v28480_v32 = vsub.f32 %v40158_v8, %v28478_v53  ;;  %v28486_v38 = vsub.f32 %v34471_v59, %v28478_v53 }
0x18b2   : > { %v28481_v30 = vmul.f32 1.442695, %v28479_v36  ;;  %v28487_v55 = vmul.f32 1.442695, %v28485_v50 }
0x18b3   : > { %v28483_v13 = vmul.f32 1.442695, %v28480_v32  ;;  %v28489_v41 = vmul.f32 1.442695, %v28486_v38 }
0x18b4   : > { %35973 = vpow2.f32 %v28481_v30 }
0x18b5   : > { %35975 = vpow2.f32 %v28487_v55 }
0x18b6   : > { %35977 = vpow2.f32 %v28483_v13 }
0x18b7   : > { %35979 = vpow2.f32 %v28489_v41 }
0x18be   : > { %v35974_v27 = vpop.eup %35973 }
0x18bf   : > { %v35976_v31 = vpop.eup %35975  ;;  %v28491_v3 = vmul.f32 %v35974_v27, %v40171_v23  ;;  %v28496_v11 = vsel %vm8550_vm2, %v35974_v27, 0 }
0x18c0   : > { %v35978_v12 = vpop.eup %35977  ;;  %v40514_v45 = vand.u32 4294901760, %v28496_v11  ;;  %v29114_v8 = vsel %vm8550_vm2, %v35976_v31, 0 }
0x18c1   : > { %v35980_v44 = vpop.eup %35979  ;;  %v40517_v42 = vadd.f32 %v35976_v31, %v28491_v3  ;;  %v28492_v28 = vmul.f32 %v35978_v12, %v40183_v1  ;;  %v28499_v63 = vsel %vm8550_vm2, %v35978_v12, 0  ;;  %v40521_v15 = vand.u32 4294901760, %v29114_v8 }
0x18c2   : > { %v40523_v2 = vand.u32 4294901760, %v28499_v63  ;;  %v29117_v23 = vsel %vm8550_vm2, %v35980_v44, 0  ;;  %v40527_v56 = vsub.f32 %v28496_v11, %v40514_v45  ;;  %v41752_v11 = vld [vmem:[#allocation68_spill] sm:$0xff] }
0x18c3   : > { %v40529_v4 = vadd.f32 %v35980_v44, %v28492_v28  ;;  %v40531_v52 = vand.u32 4294901760, %v29117_v23  ;;  %v40534_v51 = vsub.f32 %v29114_v8, %v40521_v15  ;;  %v41754_v44 = vld [vmem:[#allocation76_spill] sm:$0xff] }
0x18c4   : > { %28502 = vmatprep.subr.mxu0 %v40523_v2  ;;  %v40538_v1 = vsub.f32 %v28499_v63, %v40523_v2  ;;  %v28620_v6 = vand.u32 4294901760, %v40527_v56  ;;  %v41755_v63 = vld [vmem:[#allocation102_spill] sm:$0xff] }
0x18c5   : > { %29120 = vmatprep.subr.mxu1 %v40531_v52  ;;  %28504 = vmatpush1.msra.mxu0 %v40514_v45  ;;  %v29231_v54 = vsub.f32 %v29117_v23, %v40531_v52  ;;  %v29238_v61 = vand.u32 4294901760, %v40534_v51  ;;  %35981 = vrcp.f32 %v40529_v4  ;;  %v41756_v4 = vld [vmem:[#allocation61_spill] sm:$0xff] }
0x18c6   : > { %29122 = vmatpush1.msra.mxu1 %v40521_v15  ;;  %28573 = vmatmul.mubr.f32.vlgmr.msra.gmra.mrb[102].mxu0 %v41391_v40  ;;  %v28614_v57 = vand.u32 4294901760, %v40538_v1  ;;  %v28621_v48 = vsub.f32 %v40527_v56, %v28620_v6  ;;  %35983 = vrcp.f32 %v40517_v42 }
0x18c7   : > { %29191 = vmatmul.mubr.f32.vlgmr.msra.gmra.mrb[114].mxu1 %v41391_v40  ;;  %28578 = vmatprep.mubr.f32.mxu0 %v41276_v20  ;;  %v29232_v43 = vand.u32 4294901760, %v29231_v54  ;;  %v29239_v7 = vsub.f32 %v40534_v51, %v29238_v61 }
0x18c8   : > { %29196 = vmatprep.mubr.f32.mxu1 %v41276_v20  ;;  %v28615_v49 = vsub.f32 %v40538_v1, %v28614_v57  ;;  %v28622_v29 = vand.u32 4294901760, %v28621_v48  ;;  %v41759_v48 = vld [vmem:[#allocation26_spill] sm:$0xff] }
0x18c9   : > { %v29233_v35 = vsub.f32 %v29231_v54, %v29232_v43  ;;  %v29240_v46 = vand.u32 4294901760, %v29239_v7 }
0x18ca   : > { %28584 = vmatmul.mubr.f32.gmra.mrb[104].mxu0 %v38072_v60  ;;  %v28616_v14 = vand.u32 4294901760, %v28615_v49 }
0x18cb   : > { %29202 = vmatmul.mubr.f32.gmra.mrb[116].mxu1 %v38072_v60  ;;  %v29234_v22 = vand.u32 4294901760, %v29233_v35  ;;  %28589 = vmatprep.mubr.f32.mxu0 %v41276_v20 }
0x18cc   : > { %28617 = vmatprep.subr.mxu0 %v28616_v14  ;;  %29207 = vmatprep.mubr.f32.mxu1 %v41276_v20 }
0x18cd   : > { %29235 = vmatprep.subr.mxu1 %v29234_v22  ;;  %28623 = vmatpush1.msra.mxu0 %v28622_v29  ;;  %v41760_v22 = vld [vmem:[#allocation67_spill] sm:$0xff] }
0x18ce   : > { %29241 = vmatpush1.msra.mxu1 %v29240_v46  ;;  %28595 = vmatmul.mubr.f32.gmra.mrb[106].mxu0 %v38090_v17  ;;  %v41761_v46 = vld [vmem:[#allocation59_spill] sm:$0xff] }
0x18cf   : > { %28717 = vmatprep.subr.mxu0 %v40538_v1  ;;  %29213 = vmatmul.mubr.f32.gmra.mrb[118].mxu1 %v38090_v17  ;;  %v35982_v47 = vpop.eup %35981 }
0x18d0   : > { %29335 = vmatprep.subr.mxu1 %v29231_v54  ;;  %28600 = vmatprep.mubr.f32.mxu0 %v41276_v20  ;;  %v29779_v59 = vsel %vm8550_vm2, %v35982_v47, 0  ;;  %v35984_v50 = vpop.eup %35983  ;;  %v41758_v54 = vld [vmem:[#allocation57_spill] sm:$0xff] }
0x18d1   : > { %29218 = vmatprep.mubr.f32.mxu1 %v41276_v20  ;;  %v40635_v9 = vand.u32 4294901760, %v29779_v59  ;;  %v29776_v32 = vsel %vm8550_vm2, %v35984_v50, 0  ;;  %v30409_v50 = vld [vmem:[%s41069_s10] sm:$0xff] }
0x18d2   : > { %28606 = vmatmul.mubr.f32.gmra.mrb[108].mxu0 %v38098_v37  ;;  %v40661_v30 = vand.u32 4294901760, %v29776_v32 }
0x18d3   : > { %29224 = vmatmul.mubr.f32.gmra.mrb[120].mxu1 %v38098_v37  ;;  %28686 = vmatprep.mubr.f32.mxu0 %v41276_v20  ;;  %v40645_v53 = vsub.f32 %v29779_v59, %v40635_v9 }
0x18d4   : > { %29304 = vmatprep.mubr.f32.mxu1 %v41276_v20  ;;  %v29899_v13 = vsub.f32 %v29776_v32, %v40661_v30  ;;  %v30424_v32 = vsel %vm10336_vm3, %v30409_v50, 0 }
0x18d5   : > { %v29894_v36 = vand.u32 4294901760, %v40645_v53 }
0x18d6   : > { %28688 = vmatmul.mubr.f32.vlgmr.msra.gmra.mrb[102].mxu0 %v37984_v16  ;;  %v29900_v41 = vand.u32 4294901760, %v29899_v13 }
0x18d7   : > { %28720 = vmatpush1.msra.mxu0 %v40527_v56  ;;  %29306 = vmatmul.mubr.f32.vlgmr.msra.gmra.mrb[114].mxu1 %v37984_v16  ;;  %v29895_v38 = vsub.f32 %v40645_v53, %v29894_v36 }
0x18d8   : > { %29338 = vmatpush1.msra.mxu1 %v40534_v51  ;;  %28817 = vmatprep.subr.mxu0 %v40523_v2  ;;  %v29901_v27 = vsub.f32 %v29899_v13, %v29900_v41  ;;  %v41757_v51 = vld [vmem:[#allocation106_spill] sm:$0xff] }
0x18d9   : > { %29435 = vmatprep.subr.mxu1 %v40531_v52  ;;  %28693 = vmatprep.mubr.f32.mxu0 %v41276_v20  ;;  %v29896_v55 = vand.u32 4294901760, %v29895_v38  ;;  %v30410_v38 = vld [vmem:[%s41069_s10 + $0x8] sm:$0xff] }
0x18da   : > { %29311 = vmatprep.mubr.f32.mxu1 %v41276_v20  ;;  %28695 = vmatmul.mubr.f32.gmra.mrb[104].mxu0 %v38003_v39  ;;  %v29902_v31 = vand.u32 4294901760, %v29901_v27 }
0x18db   : > { %29313 = vmatmul.mubr.f32.gmra.mrb[116].mxu1 %v38003_v39  ;;  %28700 = vmatprep.mubr.f32.mxu0 %v41276_v20 }
0x18dc   : > { %29318 = vmatprep.mubr.f32.mxu1 %v41276_v20 }
0x18de   : > { %28702 = vmatmul.mubr.f32.gmra.mrb[106].mxu0 %v38009_v19 }
0x18df   : > { %29320 = vmatmul.mubr.f32.gmra.mrb[118].mxu1 %v38009_v19  ;;  %28707 = vmatprep.mubr.f32.mxu0 %v41276_v20 }
0x18e0   : > { %29325 = vmatprep.mubr.f32.mxu1 %v41276_v20 }
0x18e2   : > { %28709 = vmatmul.mubr.f32.gmra.mrb[108].mxu0 %v38014_v62 }
0x18e3   : > { %29327 = vmatmul.mubr.f32.gmra.mrb[120].mxu1 %v38014_v62  ;;  %28783 = vmatprep.mubr.f32.mxu0 %v41276_v20 }
0x18e4   : > { %29401 = vmatprep.mubr.f32.mxu1 %v41276_v20 }
0x18e6   : > { %28786 = vmatmul.mubr.f32.vlgmr.msra.gmra.mrb[102].mxu0 %v37997_v25 }
0x18e7   : > { %28819 = vmatpush1.msra.mxu0 %v40514_v45  ;;  %29404 = vmatmul.mubr.f32.vlgmr.msra.gmra.mrb[114].mxu1 %v37997_v25 }
0x18e8   : > { %29437 = vmatpush1.msra.mxu1 %v40521_v15  ;;  %28922 = vmatprep.subr.mxu0 %v28614_v57 }
0x18e9   : > { %29540 = vmatprep.subr.mxu1 %v29232_v43  ;;  %28791 = vmatprep.mubr.f32.mxu0 %v41276_v20 }
0x18ea   : > { %29409 = vmatprep.mubr.f32.mxu1 %v41276_v20  ;;  %28794 = vmatmul.mubr.f32.gmra.mrb[104].mxu0 %v38012_v33 }
0x18eb   : > { %29412 = vmatmul.mubr.f32.gmra.mrb[116].mxu1 %v38012_v33  ;;  %28799 = vmatprep.mubr.f32.mxu0 %v41276_v20 }
0x18ec   : > { %29417 = vmatprep.mubr.f32.mxu1 %v41276_v20 }
0x18ee   : > { %28802 = vmatmul.mubr.f32.gmra.mrb[106].mxu0 %v38017_v24 }
0x18ef   : > { %29420 = vmatmul.mubr.f32.gmra.mrb[118].mxu1 %v38017_v24  ;;  %28807 = vmatprep.mubr.f32.mxu0 %v41276_v20 }
0x18f0   : > { %29425 = vmatprep.mubr.f32.mxu1 %v41276_v20 }
0x18f2   : > { %28810 = vmatmul.mubr.f32.gmra.mrb[108].mxu0 %v38025_v5 }
0x18f3   : > { %29428 = vmatmul.mubr.f32.gmra.mrb[120].mxu1 %v38025_v5  ;;  %28882 = vmatprep.mubr.f32.mxu0 %v41276_v20 }
0x18f4   : > { %29500 = vmatprep.mubr.f32.mxu1 %v41276_v20 }
0x18f6   : > { %28886 = vmatmul.mubr.f32.vlgmr.msra.gmra.mrb[102].mxu0 %v38007_v10 }
0x18f7   : > { %28926 = vmatpush1.msra.mxu0 %v28620_v6  ;;  %29504 = vmatmul.mubr.f32.vlgmr.msra.gmra.mrb[114].mxu1 %v38007_v10 }
0x18f8   : > { %29544 = vmatpush1.msra.mxu1 %v29238_v61  ;;  %29019 = vmatprep.subr.mxu0 %v40523_v2 }
0x18f9   : > { %29637 = vmatprep.subr.mxu1 %v40531_v52  ;;  %28891 = vmatprep.mubr.f32.mxu0 %v41276_v20 }
0x18fa   : > { %29509 = vmatprep.mubr.f32.mxu1 %v41276_v20  ;;  %28895 = vmatmul.mubr.f32.gmra.mrb[104].mxu0 %v38022_v58 }
0x18fb   : > { %29513 = vmatmul.mubr.f32.gmra.mrb[116].mxu1 %v38022_v58  ;;  %28900 = vmatprep.mubr.f32.mxu0 %v41276_v20 }
0x18fc   : > { %29518 = vmatprep.mubr.f32.mxu1 %v41276_v20 }
0x18fe   : > { %28904 = vmatmul.mubr.f32.gmra.mrb[106].mxu0 %v38029_v0 }
0x18ff   : > { %29522 = vmatmul.mubr.f32.gmra.mrb[118].mxu1 %v38029_v0  ;;  %28909 = vmatprep.mubr.f32.mxu0 %v41276_v20 }
0x1900   : > { %29527 = vmatprep.mubr.f32.mxu1 %v41276_v20 }
0x1902   : > { %28913 = vmatmul.mubr.f32.gmra.mrb[108].mxu0 %v38068_v18 }
0x1903   : > { %29531 = vmatmul.mubr.f32.gmra.mrb[120].mxu1 %v38068_v18  ;;  %28989 = vmatprep.mubr.f32.mxu0 %v41276_v20 }
0x1904   : > { %29607 = vmatprep.mubr.f32.mxu1 %v41276_v20 }
0x1906   : > { %28991 = vmatmul.mubr.f32.vlgmr.msra.gmra.mrb[102].mxu0 %v37984_v16 }
0x1907   : > { %29021 = vmatpush1.msra.mxu0 %v40514_v45  ;;  %29609 = vmatmul.mubr.f32.vlgmr.msra.gmra.mrb[114].mxu1 %v37984_v16  ;;  %v41753_v45 = vld [vmem:[#allocation92_spill] sm:$0xff] }
0x1908   : > { %29639 = vmatpush1.msra.mxu1 %v40521_v15  ;;  %29782 = vmatprep.subr.mxu0 %v40635_v9 }
0x1909   : > { %28996 = vmatprep.mubr.f32.mxu0 %v41276_v20  ;;  %29614 = vmatprep.mubr.f32.mxu1 %v41276_v20 }
0x190a   : > { %28998 = vmatmul.mubr.f32.gmra.mrb[104].mxu0 %v38003_v39 }
0x190b   : > { %29616 = vmatmul.mubr.f32.gmra.mrb[116].mxu1 %v38003_v39  ;;  %29003 = vmatprep.mubr.f32.mxu0 %v41276_v20 }
0x190c   : > { %29621 = vmatprep.mubr.f32.mxu1 %v41276_v20 }
0x190e   : > { %29005 = vmatmul.mubr.f32.gmra.mrb[106].mxu0 %v38009_v19 }
0x190f   : > { %29623 = vmatmul.mubr.f32.gmra.mrb[118].mxu1 %v38009_v19  ;;  %29010 = vmatprep.mubr.f32.mxu0 %v41276_v20 }
0x1910   : > { %29628 = vmatprep.mubr.f32.mxu1 %v41276_v20 }
0x1912   : > { %29012 = vmatmul.mubr.f32.gmra.mrb[108].mxu0 %v38014_v62 }
0x1913   : > { %29630 = vmatmul.mubr.f32.gmra.mrb[120].mxu1 %v38014_v62  ;;  %29084 = vmatprep.mubr.f32.mxu0 %v41276_v20 }
0x1914   : > { %29702 = vmatprep.mubr.f32.mxu1 %v41276_v20 }
0x1916   : > { %29086 = vmatmul.mubr.f32.vlgmr.msra.gmra.mrb[102].mxu0 %v37984_v16 }
0x1917   : > { %29704 = vmatmul.mubr.f32.vlgmr.msra.gmra.mrb[114].mxu1 %v37984_v16  ;;  %29784 = vmatpush1.msra.mxu0 %v40661_v30 }
0x1918   : > { %29897 = vmatprep.subr.mxu0 %v29896_v55  ;;  %29091 = vmatprep.mubr.f32.mxu0 %v41276_v20  ;;  %v30427_v55 = vsel %vm10336_vm3, %v30410_v38, 0 }
0x1919   : > { %29709 = vmatprep.mubr.f32.mxu1 %v41276_v20 }
0x191a   : > { %29093 = vmatmul.mubr.f32.gmra.mrb[104].mxu0 %v38003_v39 }
0x191b   : > { %29711 = vmatmul.mubr.f32.gmra.mrb[116].mxu1 %v38003_v39  ;;  %29098 = vmatprep.mubr.f32.mxu0 %v41276_v20 }
0x191c   : > { %29716 = vmatprep.mubr.f32.mxu1 %v41276_v20 }
0x191e   : > { %29100 = vmatmul.mubr.f32.gmra.mrb[106].mxu0 %v38009_v19 }
0x191f   : > { %29718 = vmatmul.mubr.f32.gmra.mrb[118].mxu1 %v38009_v19  ;;  %29105 = vmatprep.mubr.f32.mxu0 %v41276_v20 }
0x1920   : > { %29723 = vmatprep.mubr.f32.mxu1 %v41276_v20 }
0x1922   : > { %29107 = vmatmul.mubr.f32.gmra.mrb[108].mxu0 %v38014_v62 }
0x1923   : > { %29725 = vmatmul.mubr.f32.gmra.mrb[120].mxu1 %v38014_v62  ;;  %29847 = vmatprep.mubr.f32.mxu0 %v41276_v20 }
0x1924   : > { %30501 = vmatprep.mubr.f32.mxu1 %v41276_v20 }
0x1926   : > { %29853 = vmatmul.mubr.f32.vlgmr.msra.gmra.mrb[110].mxu0 %v41391_v40 }
0x1927   : > { %29903 = vmatpush1.msra.mxu0 %v29902_v31  ;;  %29858 = vmatprep.mubr.f32.mxu0 %v41276_v20 }
0x1928   : > { %29997 = vmatprep.subr.mxu0 %v40645_v53 }
0x192a   : > { %29864 = vmatmul.mubr.f32.gmra.mrb[112].mxu0 %v38072_v60  ;;  %v41751_v60 = vld [vmem:[#allocation29_spill] sm:$0xff] }
0x192b   : > { %29869 = vmatprep.mubr.f32.mxu0 %v41276_v20 }
0x192e   : > { %29875 = vmatmul.mubr.f32.gmra.mrb[114].mxu0 %v38090_v17 }
0x192f   : > { %29880 = vmatprep.mubr.f32.mxu0 %v41276_v20 }
0x1932   : > { %29886 = vmatmul.mubr.f32.gmra.mrb[116].mxu0 %v38098_v37 }
0x1933   : > { %29966 = vmatprep.mubr.f32.mxu0 %v41276_v20 }
0x1936   : > { %29968 = vmatmul.mubr.f32.vlgmr.msra.gmra.mrb[110].mxu0 %v37984_v16 }
0x1937   : > { %30000 = vmatpush1.msra.mxu0 %v29899_v13  ;;  %29973 = vmatprep.mubr.f32.mxu0 %v41276_v20 }
0x1938   : > { %30097 = vmatprep.subr.mxu0 %v40635_v9 }
0x193a   : > { %29975 = vmatmul.mubr.f32.gmra.mrb[112].mxu0 %v38003_v39 }
0x193b   : > { %29980 = vmatprep.mubr.f32.mxu0 %v41276_v20 }
0x193e   : > { %29982 = vmatmul.mubr.f32.gmra.mrb[114].mxu0 %v38009_v19 }
0x193f   : > { %29987 = vmatprep.mubr.f32.mxu0 %v41276_v20 }
0x1942   : > { %29989 = vmatmul.mubr.f32.gmra.mrb[116].mxu0 %v38014_v62 }
0x1943   : > { %30063 = vmatprep.mubr.f32.mxu0 %v41276_v20 }
0x1946   : > { %30066 = vmatmul.mubr.f32.vlgmr.msra.gmra.mrb[110].mxu0 %v37997_v25 }
0x1947   : > { %30099 = vmatpush1.msra.mxu0 %v40661_v30  ;;  %30071 = vmatprep.mubr.f32.mxu0 %v41276_v20 }
0x1948   : > { %30202 = vmatprep.subr.mxu0 %v29894_v36 }
0x194a   : > { %30074 = vmatmul.mubr.f32.gmra.mrb[112].mxu0 %v38012_v33 }
0x194b   : > { %30079 = vmatprep.mubr.f32.mxu0 %v41276_v20 }
0x194e   : > { %30082 = vmatmul.mubr.f32.gmra.mrb[114].mxu0 %v38017_v24  ;;  %v41749_v24 = vld [vmem:[#allocation105_spill] sm:$0xff] }
0x194f   : > { %30087 = vmatprep.mubr.f32.mxu0 %v41276_v20 }
0x1952   : > { %30090 = vmatmul.mubr.f32.gmra.mrb[116].mxu0 %v38025_v5  ;;  %v41750_v5 = vld [vmem:[#allocation66_spill] sm:$0xff] }
0x1953   : > { %30162 = vmatprep.mubr.f32.mxu0 %v41276_v20 }
0x1956   : > { %30166 = vmatmul.mubr.f32.vlgmr.msra.gmra.mrb[110].mxu0 %v38007_v10 }
0x1957   : > { %30206 = vmatpush1.msra.mxu0 %v29900_v41  ;;  %30171 = vmatprep.mubr.f32.mxu0 %v41276_v20 }
0x1958   : > { %30299 = vmatprep.subr.mxu0 %v40635_v9 }
0x195a   : > { %30175 = vmatmul.mubr.f32.gmra.mrb[112].mxu0 %v38022_v58 }
0x195b   : > { %30180 = vmatprep.mubr.f32.mxu0 %v41276_v20 }
0x195e   : > { %30184 = vmatmul.mubr.f32.gmra.mrb[114].mxu0 %v38029_v0 }
0x195f   : > { %30189 = vmatprep.mubr.f32.mxu0 %v41276_v20 }
0x1962   : > { %30193 = vmatmul.mubr.f32.gmra.mrb[116].mxu0 %v38068_v18 }
0x1963   : > { %30269 = vmatprep.mubr.f32.mxu0 %v41276_v20 }
0x1966   : > { %30271 = vmatmul.mubr.f32.vlgmr.msra.gmra.mrb[110].mxu0 %v37984_v16 }
0x1967   : > { %30301 = vmatpush1.msra.mxu0 %v40661_v30  ;;  %30276 = vmatprep.mubr.f32.mxu0 %v41276_v20  ;;  %v40757_v30 = vand.u32 4294901760, %v30424_v32 }
0x196a   : > { %30278 = vmatmul.mubr.f32.gmra.mrb[112].mxu0 %v38003_v39 }
0x196b   : > { %30283 = vmatprep.mubr.f32.mxu0 %v41276_v20 }
0x196e   : > { %30285 = vmatmul.mubr.f32.gmra.mrb[114].mxu0 %v38009_v19 }
0x196f   : > { %30290 = vmatprep.mubr.f32.mxu0 %v41276_v20 }
0x1972   : > { %30292 = vmatmul.mubr.f32.gmra.mrb[116].mxu0 %v38014_v62 }
0x1973   : > { %30364 = vmatprep.mubr.f32.mxu0 %v41276_v20 }
0x1976   : > { %30366 = vmatmul.mubr.f32.vlgmr.msra.gmra.mrb[110].mxu0 %v37984_v16 }
0x1977   : > { %30371 = vmatprep.mubr.f32.mxu0 %v41276_v20 }
0x197a   : > { %30373 = vmatmul.mubr.f32.gmra.mrb[112].mxu0 %v38003_v39 }
0x197b   : > { %30378 = vmatprep.mubr.f32.mxu0 %v41276_v20 }
0x197e   : > { %30380 = vmatmul.mubr.f32.gmra.mrb[114].mxu0 %v38009_v19 }
0x197f   : > { %30385 = vmatprep.mubr.f32.mxu0 %v41276_v20 }
0x1982   : > { %30387 = vmatmul.mubr.f32.gmra.mrb[116].mxu0 %v38014_v62 }
0x1983   : > { %32126 = vmatprep.mubr.f32.mxu0 %v41276_v20 }
0x19e9   : > { %v29087_v17 = vpop.f32.mrb[102].mxu0 }
0x19ea   : > { %v29739_v25 = vmul.f32 %v29087_v17, %v40387_v21  ;;  %v29705_v10 = vpop.f32.mrb[114].mxu1  ;;  %v29089_v33 = vpop.f32.mrb[103].mxu0  ;;  %v40763_v17 = vand.u32 4294901760, %v30427_v55 }
0x19eb   : > { %v29747_v16 = vmul.f32 %v40415_v26, %v29705_v10  ;;  %v29740_v58 = vmul.f32 %v29089_v33, %v41749_v24  ;;  %v29707_v39 = vpop.f32.mrb[115].mxu1 }
0x19ec   : > { %v29748_v0 = vmul.f32 %v41750_v5, %v29707_v39 }
0x19ed   : > { %v29094_v18 = vpop.f32.mrb[104].mxu0  ;;  %v29755_v19 = vadd.f32 %v29747_v16, %v29739_v25 }
0x19ee   : > { %v29741_v37 = vmul.f32 %v29094_v18, %v41751_v60  ;;  %v29712_v40 = vpop.f32.mrb[116].mxu1  ;;  %v29096_v62 = vpop.f32.mrb[105].mxu0  ;;  %v29756_v3 = vadd.f32 %v29748_v0, %v29740_v58  ;;  %v40771_v18 = vsub.f32 %v30427_v55, %v40763_v17 }
0x19ef   : > { %v29749_v12 = vmul.f32 %v41752_v11, %v29712_v40  ;;  %v29742_v21 = vmul.f32 %v29096_v62, %v41753_v45  ;;  %v29714_v8 = vpop.f32.mrb[117].mxu1 }
0x19f0   : > { %v29750_v42 = vmul.f32 %v41754_v44, %v29714_v8 }
0x19f1   : > { %v29101_v26 = vpop.f32.mrb[106].mxu0  ;;  %v29757_v28 = vadd.f32 %v29749_v12, %v29741_v37 }
0x19f2   : > { %v29743_v15 = vmul.f32 %v29101_v26, %v41755_v63  ;;  %v29719_v2 = vpop.f32.mrb[118].mxu1  ;;  %v29103_v23 = vpop.f32.mrb[107].mxu0  ;;  %v29758_v56 = vadd.f32 %v29750_v42, %v29742_v21  ;;  %v30515_v26 = vand.u32 4294901760, %v40771_v18 }
0x19f3   : > { %v29751_v52 = vmul.f32 %v41756_v4, %v29719_v2  ;;  %v29744_v1 = vmul.f32 %v29103_v23, %v41757_v51  ;;  %v29721_v6 = vpop.f32.mrb[119].mxu1 }
0x19f4   : > { %v29752_v61 = vmul.f32 %v41758_v54, %v29721_v6 }
0x19f5   : > { %v29108_v57 = vpop.f32.mrb[108].mxu0  ;;  %v29759_v43 = vadd.f32 %v29751_v52, %v29743_v15 }
0x19f6   : > { %v29745_v49 = vmul.f32 %v29108_v57, %v41759_v48  ;;  %v29726_v7 = vpop.f32.mrb[120].mxu1  ;;  %v29110_v35 = vpop.f32.mrb[109].mxu0  ;;  %v29760_v14 = vadd.f32 %v29752_v61, %v29744_v1 }
0x19f7   : > { %v29753_v29 = vmul.f32 %v41760_v22, %v29726_v7  ;;  %v29746_v47 = vmul.f32 %v29110_v35, %v41761_v46  ;;  %v29728_v59 = vpop.f32.mrb[121].mxu1 }
0x19f8   : > { %v29754_v9 = vmul.f32 %v40461_v34, %v29728_v59  ;;  %v40761_v34 = vsub.f32 %v30424_v32, %v40757_v30 }
0x19f9   : > { %v29761_v53 = vadd.f32 %v29753_v29, %v29745_v49 }
0x19fa   : > { %v29762_v36 = vadd.f32 %v29754_v9, %v29746_v47  ;;  %v30504_v39 = vand.u32 4294901760, %v40761_v34 }
0x19fc   : > { %v30505_v21 = vsub.f32 %v40761_v34, %v30504_v39 }
0x1a49   : > { %v30367_v13 = vpop.f32.mrb[110].mxu0 }
0x1a4a   : > { %v30401_v41 = vmul.f32 %v30367_v13, %v29755_v19  ;;  %v30369_v27 = vpop.f32.mrb[111].mxu0 }
0x1a4b   : > { %v30402_v31 = vmul.f32 %v30369_v27, %v29756_v3 }
0x1a4c   : > { %v30431_v25 = vand.u32 4294901760, %v30401_v41 }
0x1a4d   : > { %v30429_v10 = vand.u32 4294901760, %v30402_v31  ;;  %v30374_v33 = vpop.f32.mrb[112].mxu0 }
0x1a4e   : > { %v40765_v16 = vsub.f32 %v30401_v41, %v30431_v25  ;;  %v30403_v24 = vmul.f32 %v30374_v33, %v29757_v28  ;;  %v30376_v58 = vpop.f32.mrb[113].mxu0 }
0x1a4f   : > { %v40768_v5 = vsub.f32 %v30402_v31, %v30429_v10  ;;  %v30404_v0 = vmul.f32 %v30376_v58, %v29758_v56  ;;  %v30506_v31 = vand.u32 4294901760, %v30505_v21 }
0x1a50   : > { %v30532_v19 = vand.u32 4294901760, %v40765_v16  ;;  %v30435_v60 = vand.u32 4294901760, %v30403_v24 }
0x1a51   : > { %v30526_v37 = vand.u32 4294901760, %v40768_v5  ;;  %v30433_v40 = vand.u32 4294901760, %v30404_v0  ;;  %v30381_v62 = vpop.f32.mrb[114].mxu0 }
0x1a52   : > { %v40775_v3 = vpack.c.bf16 %v30435_v60, %v30431_v25  ;;  %v40777_v11 = vsub.f32 %v30403_v24, %v30435_v60  ;;  %v30405_v12 = vmul.f32 %v30381_v62, %v29759_v43  ;;  %v30383_v45 = vpop.f32.mrb[115].mxu0  ;;  %v30533_v28 = vsub.f32 %v40765_v16, %v30532_v19 }
0x1a53   : > { %v40782_v8 = vsub.f32 %v30404_v0, %v30433_v40  ;;  %v30406_v44 = vmul.f32 %v30383_v45, %v29760_v14  ;;  %v40784_v42 = vpack.c.bf16 %v30433_v40, %v30429_v10  ;;  %v30527_v52 = vsub.f32 %v40768_v5, %v30526_v37 }
0x1a54   : > { %v30544_v63 = vand.u32 4294901760, %v40777_v11  ;;  %v34302_v15 = vpack.c.bf16 %v40777_v11, %v40765_v16  ;;  %v30439_v2 = vand.u32 4294901760, %v30405_v12  ;;  %v30534_v35 = vand.u32 4294901760, %v30533_v28 }
0x1a55   : > { %v30538_v23 = vand.u32 4294901760, %v40782_v8  ;;  %v30437_v56 = vand.u32 4294901760, %v30406_v44  ;;  %v30388_v4 = vpop.f32.mrb[116].mxu0  ;;  %34285 = vmatprep.subr.bf16.mxu1 %v40784_v42  ;;  %v34300_v51 = vpack.c.bf16 %v40782_v8, %v40768_v5  ;;  %v30528_v59 = vand.u32 4294901760, %v30527_v52 }
0x1a56   : > { %v30545_v1 = vsub.f32 %v40777_v11, %v30544_v63  ;;  %v30555_v6 = vsub.f32 %v30405_v12, %v30439_v2  ;;  %v30407_v54 = vmul.f32 %v30388_v4, %v29761_v53  ;;  %v30390_v61 = vpop.f32.mrb[117].mxu0  ;;  %34287 = vmatpush1.bf16.msra.mxu1 %v40775_v3  ;;  %v40798_v57 = vpack.c.bf16 %v30544_v63, %v30532_v19 }
0x1a57   : > { %v30549_v43 = vsub.f32 %v30406_v44, %v30437_v56  ;;  %v30408_v48 = vmul.f32 %v30390_v61, %v29762_v36  ;;  %v30539_v49 = vsub.f32 %v40782_v8, %v30538_v23  ;;  %v34316_v7 = vpack.c.bf16 %v30538_v23, %v30526_v37 }
0x1a58   : > { %v30546_v14 = vand.u32 4294901760, %v30545_v1  ;;  %v30556_v22 = vand.u32 4294901760, %v30555_v6  ;;  %v30443_v29 = vand.u32 4294901760, %v30407_v54  ;;  %v30516_v10 = vsub.f32 %v40771_v18, %v30515_v26 }
0x1a59   : > { %v30550_v46 = vand.u32 4294901760, %v30549_v43  ;;  %v30441_v47 = vand.u32 4294901760, %v30408_v48  ;;  %v30540_v9 = vand.u32 4294901760, %v30539_v49 }
0x1a5a   : > { %v40801_v50 = vpack.c.bf16 %v30443_v29, %v30439_v2  ;;  %v30567_v53 = vsub.f32 %v30407_v54, %v30443_v29  ;;  %v34294_v32 = vpack.c.bf16 %v30546_v14, %v30534_v35  ;;  %v30557_v41 = vsub.f32 %v30555_v6, %v30556_v22 }
0x1a5b   : > { %v30561_v38 = vsub.f32 %v30408_v48, %v30441_v47  ;;  %v34288_v55 = vpack.c.bf16 %v30441_v47, %v30437_v56  ;;  %v34292_v13 = vpack.c.bf16 %v30540_v9, %v30528_v59  ;;  %v30551_v33 = vsub.f32 %v30549_v43, %v30550_v46 }
0x1a5c   : > { %v30568_v36 = vand.u32 4294901760, %v30567_v53  ;;  %v34306_v27 = vpack.c.bf16 %v30567_v53, %v30555_v6  ;;  %v30558_v19 = vand.u32 4294901760, %v30557_v41  ;;  %v30517_v37 = vand.u32 4294901760, %v30516_v10  ;;  %v31026_v10 = vld [vmem:[%s41072_s13] sm:$0xff] }
0x1a5d   : > { %v30562_v25 = vand.u32 4294901760, %v30561_v38  ;;  %34289 = vmatprep.subr.bf16.mxu1 %v34288_v55  ;;  %v34304_v16 = vpack.c.bf16 %v30561_v38, %v30549_v43  ;;  %v30552_v40 = vand.u32 4294901760, %v30551_v33  ;;  %v31525_v33 = vsel %vm8543_vm1, %v31026_v10, 0 }
0x1a5e   : > { %v30569_v24 = vsub.f32 %v30567_v53, %v30568_v36  ;;  %34291 = vmatpush1.bf16.msra.mxu1 %v40801_v50  ;;  %v34322_v58 = vpack.c.bf16 %v30568_v36, %v30556_v22 }
0x1a5f   : > { %34293 = vmatprep.subr.bf16.mxu1 %v34292_v13  ;;  %v30563_v5 = vsub.f32 %v30561_v38, %v30562_v25  ;;  %v34320_v0 = vpack.c.bf16 %v30562_v25, %v30550_v46 }
0x1a60   : > { %v30570_v60 = vand.u32 4294901760, %v30569_v24  ;;  %v40889_v24 = vand.u32 4294901760, %v31525_v33 }
0x1a61   : > { %30507 = vmatmul.mubr.f32.vlgmr.msra.gmra.mrb[122].mxu1 %v30506_v31  ;;  %v30564_v62 = vand.u32 4294901760, %v30563_v5 }
0x1a62   : > { %34295 = vmatpush1.bf16.msra.mxu1 %v34294_v32  ;;  %30512 = vmatprep.mubr.f32.mxu1 %v41276_v20  ;;  %v34298_v11 = vpack.c.bf16 %v30570_v60, %v30558_v19  ;;  %v40893_v5 = vsub.f32 %v31525_v33, %v40889_v24 }
0x1a63   : > { %v34296_v12 = vpack.c.bf16 %v30564_v62, %v30552_v40 }
0x1a64   : > { %v40898_v19 = vand.u32 4294901760, %v40893_v5 }
0x1a65   : > { %30518 = vmatmul.mubr.f32.gmra.mrb[124].mxu1 %v30517_v37  ;;  %34297 = vmatprep.subr.bf16.mxu1 %v34296_v12 }
0x1a66   : > { %34299 = vmatpush1.bf16.msra.mxu1 %v34298_v11  ;;  %30628 = vmatprep.mubr.f32.mxu1 %v41276_v20  ;;  %v31606_v11 = vsub.f32 %v40893_v5, %v40898_v19 }
0x1a67   : > { %34301 = vmatprep.subr.bf16.mxu1 %v34300_v51 }
0x1a69   : > { %30630 = vmatmul.mubr.f32.vlgmr.msra.gmra.mrb[122].mxu1 %v40757_v30 }
0x1a6a   : > { %34303 = vmatpush1.bf16.msra.mxu1 %v34302_v15  ;;  %30635 = vmatprep.mubr.f32.mxu1 %v41276_v20 }
0x1a6b   : > { %34305 = vmatprep.subr.bf16.mxu1 %v34304_v16  ;;  %v31027_v16 = vld [vmem:[%s41072_s13 + $0x8] sm:$0xff] }
0x1a6d   : > { %30637 = vmatmul.mubr.f32.gmra.mrb[124].mxu1 %v40763_v17 }
0x1a6e   : > { %34307 = vmatpush1.bf16.msra.mxu1 %v34306_v27  ;;  %30723 = vmatprep.mubr.f32.mxu1 %v41276_v20 }
0x1a6f   : > { %34309 = vmatprep.subr.bf16.mxu1 %v40784_v42 }
0x1a71   : > { %30726 = vmatmul.mubr.f32.vlgmr.msra.gmra.mrb[122].mxu1 %v40761_v34  ;;  %v31025_v34 = vld [vmem:[%s41071_s12] sm:$0xf] }
0x1a72   : > { %34311 = vmatpush1.bf16.msra.mxu1 %v40775_v3  ;;  %30731 = vmatprep.mubr.f32.mxu1 %v41276_v20 }
0x1a73   : > { %34313 = vmatprep.subr.bf16.mxu1 %v34288_v55 }
0x1a75   : > { %30734 = vmatmul.mubr.f32.gmra.mrb[124].mxu1 %v40771_v18 }
0x1a76   : > { %34315 = vmatpush1.bf16.msra.mxu1 %v40801_v50  ;;  %30812 = vmatprep.mubr.f32.mxu1 %v41276_v20 }
0x1a77   : > { %34317 = vmatprep.subr.bf16.mxu1 %v34316_v7 }
0x1a79   : > { %30816 = vmatmul.mubr.f32.vlgmr.msra.gmra.mrb[122].mxu1 %v30504_v39  ;;  %v31029_v39 = vsel %vm587_vm0, %v31025_v34, 0 }
0x1a7a   : > { %34319 = vmatpush1.bf16.msra.mxu1 %v40798_v57  ;;  %30821 = vmatprep.mubr.f32.mxu1 %v41276_v20  ;;  %v40842_v18 = vand.u32 4294901760, %v31029_v39 }
0x1a7b   : > { %34321 = vmatprep.subr.bf16.mxu1 %v34320_v0 }
0x1a7d   : > { %30825 = vmatmul.mubr.f32.gmra.mrb[124].mxu1 %v30515_v26 }
0x1a7e   : > { %34323 = vmatpush1.bf16.msra.mxu1 %v34322_v58  ;;  %30919 = vmatprep.mubr.f32.mxu1 %v41276_v20  ;;  %v31528_v58 = vsel %vm8543_vm1, %v31027_v16, 0 }
0x1a7f   : > { %34325 = vmatprep.subr.bf16.mxu1 %v40784_v42  ;;  %v40895_v0 = vand.u32 4294901760, %v31528_v58 }
0x1a81   : > { %30921 = vmatmul.mubr.f32.vlgmr.msra.gmra.mrb[122].mxu1 %v40757_v30  ;;  %v40901_v60 = vsub.f32 %v31528_v58, %v40895_v0 }
0x1a82   : > { %34327 = vmatpush1.bf16.msra.mxu1 %v40775_v3  ;;  %30926 = vmatprep.mubr.f32.mxu1 %v41276_v20  ;;  %v30416_v3 = vpop.permute.xlu1 %30415 }
0x1a83   : > { %34329 = vmatprep.subr.bf16.mxu1 %v34288_v55  ;;  %v40906_v12 = vand.u32 4294901760, %v40901_v60 }
0x1a85   : > { %30928 = vmatmul.mubr.f32.gmra.mrb[124].mxu1 %v40763_v17 }
0x1a86   : > { %34331 = vmatpush1.bf16.msra.mxu1 %v40801_v50  ;;  %31006 = vmatprep.mubr.f32.mxu1 %v41276_v20 }
0x1a89   : > { %31008 = vmatmul.mubr.f32.vlgmr.msra.gmra.mrb[122].mxu1 %v40757_v30  ;;  %v40845_v30 = vsub.f32 %v31029_v39, %v40842_v18 }
0x1a8a   : > { %31013 = vmatprep.mubr.f32.mxu1 %v41276_v20 }
0x1a8b   : > { %v40854_v4 = vand.u32 4294901760, %v40845_v30 }
0x1a8d   : > { %31015 = vmatmul.mubr.f32.gmra.mrb[124].mxu1 %v40763_v17  ;;  %v30421_v17 = vpop.permute.xlu0 %30420  ;;  %v31103_v57 = vsub.f32 %v40845_v30, %v40854_v4 }
0x1a8e   : > { %31099 = vmatprep.mubr.f32.mxu1 %v41276_v20 }
0x1a8f   : > { %v40868_v29 = vand.u32 4294901760, %v31103_v57 }
0x1b5c   : > { %v31009_v45 = vpop.f32.mrb[122].mxu1 }
0x1b5d   : > { %v34472_v21 = vadd.f32 %v31009_v45, %v30416_v3  ;;  %v31011_v8 = vpop.f32.mrb[123].mxu1 }
0x1b5e   : > { %v34473_v44 = vadd.f32 %v31011_v8, %v30416_v3  ;;  %v40910_v8 = vand.u32 4294901760, %v31606_v11 }
0x1b5f   : > { %v40847_v42 = vmax.f32 %v34472_v21, 0.0 }
0x1b60   : > { %v40849_v26 = vmax.f32 %v34473_v44, 0.0  ;;  %v31016_v28 = vpop.f32.mrb[124].mxu1  ;;  %v31617_v44 = vsub.f32 %v40901_v60, %v40906_v12 }
0x1b61   : > { %v31033_v63 = vand.u32 4294901760, %v40847_v42  ;;  %v34474_v15 = vadd.f32 %v31016_v28, %v30421_v17  ;;  %v31018_v2 = vpop.f32.mrb[125].mxu1 }
0x1b62   : > { %v31031_v23 = vand.u32 4294901760, %v40849_v26  ;;  %v34475_v56 = vadd.f32 %v31018_v2, %v30421_v17 }
0x1b63   : > { %v31118_v52 = vsub.f32 %v40847_v42, %v31033_v63  ;;  %v40857_v51 = vmax.f32 %v34474_v15, 0.0  ;;  %v40915_v15 = vand.u32 4294901760, %v31617_v44 }
0x1b64   : > { %v31112_v1 = vsub.f32 %v40849_v26, %v31031_v23  ;;  %v40860_v6 = vmax.f32 %v34475_v56, 0.0 }
0x1b65   : > { %v31037_v54 = vand.u32 4294901760, %v40857_v51  ;;  %v31119_v48 = vand.u32 4294901760, %v31118_v52 }
0x1b66   : > { %v31035_v61 = vand.u32 4294901760, %v40860_v6  ;;  %v31113_v43 = vand.u32 4294901760, %v31112_v1 }
0x1b67   : > { %v31130_v49 = vsub.f32 %v40857_v51, %v31037_v54  ;;  %v34334_v22 = vpack.c.bf16 %v31037_v54, %v31033_v63  ;;  %v31120_v59 = vsub.f32 %v31118_v52, %v31119_v48 }
0x1b68   : > { %v31124_v7 = vsub.f32 %v40860_v6, %v31035_v61  ;;  %v34332_v35 = vpack.c.bf16 %v31035_v61, %v31031_v23  ;;  %v31114_v46 = vsub.f32 %v31112_v1, %v31113_v43 }
0x1b69   : > { %v31131_v14 = vand.u32 4294901760, %v31130_v49  ;;  %v31121_v55 = vand.u32 4294901760, %v31120_v59  ;;  %v34342_v27 = vpack.c.bf16 %v31130_v49, %v31118_v52 }
0x1b6a   : > { %34333 = vmatprep.subr.bf16.mxu1 %v34332_v35  ;;  %v31125_v47 = vand.u32 4294901760, %v31124_v7  ;;  %v31115_v32 = vand.u32 4294901760, %v31114_v46  ;;  %v34340_v36 = vpack.c.bf16 %v31124_v7, %v31112_v1 }
0x1b6b   : > { %34335 = vmatpush1.bf16.msra.mxu1 %v34334_v22  ;;  %v31132_v9 = vsub.f32 %v31130_v49, %v31131_v14  ;;  %v34350_v25 = vpack.c.bf16 %v31131_v14, %v31119_v48 }
0x1b6c   : > { %v31126_v50 = vsub.f32 %v31124_v7, %v31125_v47  ;;  %v34348_v31 = vpack.c.bf16 %v31125_v47, %v31113_v43 }
0x1b6d   : > { %v31133_v53 = vand.u32 4294901760, %v31132_v9 }
0x1b6e   : > { %31105 = vmatmul.mubr.f32.vlgmr.msra.gmra.mrb[126].mxu1 %v40868_v29  ;;  %v31127_v38 = vand.u32 4294901760, %v31126_v50 }
0x1b6f   : > { %31195 = vmatprep.mubr.f32.mxu1 %v41276_v20  ;;  %v34338_v41 = vpack.c.bf16 %v31133_v53, %v31121_v55 }
0x1b70   : > { %v34336_v13 = vpack.c.bf16 %v31127_v38, %v31115_v32 }
0x1b72   : > { %34337 = vmatprep.subr.bf16.mxu1 %v34336_v13 }
0x1b73   : > { %34339 = vmatpush1.bf16.msra.mxu1 %v34338_v41 }
0x1b74   : > { %34341 = vmatprep.subr.bf16.mxu1 %v34340_v36 }
0x1b76   : > { %31197 = vmatmul.mubr.f32.vlgmr.msra.gmra.mrb[126].mxu1 %v40842_v18 }
0x1b77   : > { %34343 = vmatpush1.bf16.msra.mxu1 %v34342_v27  ;;  %31275 = vmatprep.mubr.f32.mxu1 %v41276_v20 }
0x1b78   : > { %34345 = vmatprep.subr.bf16.mxu1 %v34332_v35 }
0x1b7e   : > { %31278 = vmatmul.mubr.f32.vlgmr.msra.gmra.mrb[126].mxu1 %v40845_v30 }
0x1b7f   : > { %34347 = vmatpush1.bf16.msra.mxu1 %v34334_v22  ;;  %31352 = vmatprep.mubr.f32.mxu1 %v41276_v20 }
0x1b80   : > { %34349 = vmatprep.subr.bf16.mxu1 %v34348_v31 }
0x1b86   : > { %31356 = vmatmul.mubr.f32.vlgmr.msra.gmra.mrb[126].mxu1 %v40854_v4 }
0x1b87   : > { %34351 = vmatpush1.bf16.msra.mxu1 %v34350_v25  ;;  %31438 = vmatprep.mubr.f32.mxu1 %v41276_v20 }
0x1b88   : > { %34353 = vmatprep.subr.bf16.mxu1 %v34332_v35 }
0x1b8e   : > { %31440 = vmatmul.mubr.f32.vlgmr.msra.gmra.mrb[126].mxu1 %v40842_v18 }
0x1b8f   : > { %34355 = vmatpush1.bf16.msra.mxu1 %v34334_v22  ;;  %31514 = vmatprep.mubr.f32.mxu1 %v41276_v20 }
0x1b96   : > { %31516 = vmatmul.mubr.f32.vlgmr.msra.gmra.mrb[126].mxu1 %v40842_v18 }
0x1b97   : > { %31602 = vmatprep.mubr.f32.mxu1 %v41276_v20 }
0x1c69   : > { %v31517_v37 = vpop.f32.mrb[126].mxu1 }
0x1c6a   : > { %v31522_v40 = vmul.f32 0.25, %v31517_v37  ;;  %v31519_v62 = vpop.f32.mrb[127].mxu1 }
0x1c6b   : > { %v31523_v34 = vmul.f32 0.25, %v31519_v62 }
0x1c6c   : > { %v31531_v39 = vsel %vm8550_vm2, %v31522_v40, 0 }
0x1c6d   : > { %v31538_v3 = vand.u32 4294901760, %v31531_v39  ;;  %v31534_v45 = vsel %vm8550_vm2, %v31523_v34, 0 }
0x1c6e   : > { %v31536_v21 = vand.u32 4294901760, %v31534_v45 }
0x1c6f   : > { %v31632_v17 = vsub.f32 %v31531_v39, %v31538_v3 }
0x1c70   : > { %v31626_v28 = vsub.f32 %v31534_v45, %v31536_v21  ;;  %31537 = vmatprep.subr.mxu1 %v31536_v21 }
0x1c71   : > { %v31633_v63 = vand.u32 4294901760, %v31632_v17  ;;  %31539 = vmatpush1.msra.mxu1 %v31538_v3 }
0x1c72   : > { %31608 = vmatmul.mubr.f32.vlgmr.msra.gmra.mrb[128].mxu1 %v40910_v8  ;;  %v31627_v2 = vand.u32 4294901760, %v31626_v28 }
0x1c73   : > { %31613 = vmatprep.mubr.f32.mxu1 %v41276_v20  ;;  %v31634_v23 = vsub.f32 %v31632_v17, %v31633_v63 }
0x1c74   : > { %v31628_v56 = vsub.f32 %v31626_v28, %v31627_v2 }
0x1c75   : > { %v31635_v1 = vand.u32 4294901760, %v31634_v23 }
0x1c76   : > { %31619 = vmatmul.mubr.f32.gmra.mrb[130].mxu1 %v40915_v15  ;;  %v31629_v52 = vand.u32 4294901760, %v31628_v56 }
0x1c77   : > { %31699 = vmatprep.mubr.f32.mxu1 %v41276_v20 }
0x1c78   : > { %31630 = vmatprep.subr.mxu1 %v31629_v52 }
0x1c79   : > { %31636 = vmatpush1.msra.mxu1 %v31635_v1 }
0x1c7a   : > { %31701 = vmatmul.mubr.f32.vlgmr.msra.gmra.mrb[128].mxu1 %v40889_v24  ;;  %31716 = vmatprep.subr.mxu1 %v31626_v28 }
0x1c7b   : > { %31719 = vmatpush1.msra.mxu1 %v31632_v17  ;;  %31706 = vmatprep.mubr.f32.mxu1 %v41276_v20 }
0x1c7c   : > { %31800 = vmatprep.subr.mxu1 %v31536_v21 }
0x1c7e   : > { %31708 = vmatmul.mubr.f32.gmra.mrb[130].mxu1 %v40895_v0 }
0x1c7f   : > { %31782 = vmatprep.mubr.f32.mxu1 %v41276_v20 }
0x1c82   : > { %31785 = vmatmul.mubr.f32.vlgmr.msra.gmra.mrb[128].mxu1 %v40893_v5 }
0x1c83   : > { %31802 = vmatpush1.msra.mxu1 %v31538_v3  ;;  %31790 = vmatprep.mubr.f32.mxu1 %v41276_v20 }
0x1c84   : > { %31887 = vmatprep.subr.mxu1 %v31627_v2 }
0x1c86   : > { %31793 = vmatmul.mubr.f32.gmra.mrb[130].mxu1 %v40901_v60 }
0x1c87   : > { %31865 = vmatprep.mubr.f32.mxu1 %v41276_v20 }
0x1c8a   : > { %31869 = vmatmul.mubr.f32.vlgmr.msra.gmra.mrb[128].mxu1 %v40898_v19 }
0x1c8b   : > { %31891 = vmatpush1.msra.mxu1 %v31633_v63  ;;  %31874 = vmatprep.mubr.f32.mxu1 %v41276_v20 }
0x1c8c   : > { %31970 = vmatprep.subr.mxu1 %v31536_v21 }
0x1c8e   : > { %31878 = vmatmul.mubr.f32.gmra.mrb[130].mxu1 %v40906_v12 }
0x1c8f   : > { %31954 = vmatprep.mubr.f32.mxu1 %v41276_v20 }
0x1c92   : > { %31956 = vmatmul.mubr.f32.vlgmr.msra.gmra.mrb[128].mxu1 %v40889_v24 }
0x1c93   : > { %31972 = vmatpush1.msra.mxu1 %v31538_v3  ;;  %31961 = vmatprep.mubr.f32.mxu1 %v41276_v20 }
0x1c96   : > { %31963 = vmatmul.mubr.f32.gmra.mrb[130].mxu1 %v40895_v0 }
0x1c97   : > { %32035 = vmatprep.mubr.f32.mxu1 %v41276_v20 }
0x1c9a   : > { %32037 = vmatmul.mubr.f32.vlgmr.msra.gmra.mrb[128].mxu1 %v40889_v24 }
0x1c9b   : > { %32042 = vmatprep.mubr.f32.mxu1 %v41276_v20 }
0x1c9e   : > { %32044 = vmatmul.mubr.f32.gmra.mrb[130].mxu1 %v40895_v0 }
0x1d6d   : > { %v32038_v54 = vpop.f32.mrb[128].mxu1 }
0x1d6e   : > { %v40940_v61 = vsub.f32 %v40847_v42, %v32038_v54  ;;  %v32040_v57 = vpop.f32.mrb[129].mxu1 }
0x1d6f   : > { %v40943_v43 = vsub.f32 %v40849_v26, %v32040_v57 }
0x1d70   : > { %v32054_v48 = vmul.f32 %v40940_v61, %v40940_v61 }
0x1d71   : > { %v32055_v49 = vmul.f32 %v40943_v43, %v40943_v43  ;;  %v32045_v7 = vpop.f32.mrb[130].mxu1 }
0x1d72   : > { %v32060_v35 = vand.u32 4294901760, %v32054_v48  ;;  %v40950_v14 = vsub.f32 %v40857_v51, %v32045_v7  ;;  %v32047_v22 = vpop.f32.mrb[131].mxu1 }
0x1d73   : > { %v32058_v46 = vand.u32 4294901760, %v32055_v49  ;;  %v40953_v42 = vsub.f32 %v40860_v6, %v32047_v22 }
0x1d74   : > { %v32145_v47 = vsub.f32 %v32054_v48, %v32060_v35  ;;  %v32056_v26 = vmul.f32 %v40950_v14, %v40950_v14 }
0x1d75   : > { %v32139_v59 = vsub.f32 %v32055_v49, %v32058_v46  ;;  %v32057_v9 = vmul.f32 %v40953_v42, %v40953_v42 }
0x1d76   : > { %v32064_v50 = vand.u32 4294901760, %v32056_v26  ;;  %v32146_v38 = vand.u32 4294901760, %v32145_v47 }
0x1d77   : > { %v32062_v53 = vand.u32 4294901760, %v32057_v9  ;;  %v32140_v32 = vand.u32 4294901760, %v32139_v59 }
0x1d78   : > { %v32157_v55 = vsub.f32 %v32056_v26, %v32064_v50  ;;  %v34358_v41 = vpack.c.bf16 %v32064_v50, %v32060_v35  ;;  %v32147_v31 = vsub.f32 %v32145_v47, %v32146_v38 }
0x1d79   : > { %v32151_v51 = vsub.f32 %v32057_v9, %v32062_v53  ;;  %v34356_v13 = vpack.c.bf16 %v32062_v53, %v32058_v46  ;;  %v32141_v6 = vsub.f32 %v32139_v59, %v32140_v32 }
0x1d7a   : > { %v32158_v36 = vand.u32 4294901760, %v32157_v55  ;;  %v32148_v37 = vand.u32 4294901760, %v32147_v31  ;;  %v34366_v34 = vpack.c.bf16 %v32157_v55, %v32145_v47 }
0x1d7b   : > { %34357 = vmatprep.subr.bf16.mxu0 %v34356_v13  ;;  %v32152_v27 = vand.u32 4294901760, %v32151_v51  ;;  %v32142_v16 = vand.u32 4294901760, %v32141_v6  ;;  %v34364_v11 = vpack.c.bf16 %v32151_v51, %v32139_v59 }
0x1d7c   : > { %v32159_v25 = vsub.f32 %v32157_v55, %v32158_v36  ;;  %34359 = vmatpush1.bf16.msra.mxu0 %v34358_v41  ;;  %v34374_v39 = vpack.c.bf16 %v32158_v36, %v32146_v38 }
0x1d7d   : > { %v32153_v10 = vsub.f32 %v32151_v51, %v32152_v27 }
0x1d7e   : > { %v32160_v33 = vand.u32 4294901760, %v32159_v25 }
0x1d7f   : > { %32132 = vmatmul.mubr.f32.vlgmr.msra.gmra.mrb[118].mxu0 %v40868_v29  ;;  %v32154_v58 = vand.u32 4294901760, %v32153_v10  ;;  %v34372_v29 = vpack.c.bf16 %v32152_v27, %v32140_v32 }
0x1d80   : > { %32222 = vmatprep.mubr.f32.mxu0 %v41276_v20  ;;  %v34362_v62 = vpack.c.bf16 %v32160_v33, %v32148_v37 }
0x1d81   : > { %v34360_v40 = vpack.c.bf16 %v32154_v58, %v32142_v16 }
0x1d83   : > { %34361 = vmatprep.subr.bf16.mxu0 %v34360_v40 }
0x1d84   : > { %34363 = vmatpush1.bf16.msra.mxu0 %v34362_v62 }
0x1d85   : > { %34365 = vmatprep.subr.bf16.mxu0 %v34364_v11 }
0x1d87   : > { %32224 = vmatmul.mubr.f32.vlgmr.msra.gmra.mrb[118].mxu0 %v40842_v18 }
0x1d88   : > { %34367 = vmatpush1.bf16.msra.mxu0 %v34366_v34  ;;  %32302 = vmatprep.mubr.f32.mxu0 %v41276_v20 }
0x1d89   : > { %34369 = vmatprep.subr.bf16.mxu0 %v34356_v13 }
0x1d8f   : > { %32305 = vmatmul.mubr.f32.vlgmr.msra.gmra.mrb[118].mxu0 %v40845_v30 }
0x1d90   : > { %34371 = vmatpush1.bf16.msra.mxu0 %v34358_v41  ;;  %32379 = vmatprep.mubr.f32.mxu0 %v41276_v20 }
0x1d91   : > { %34373 = vmatprep.subr.bf16.mxu0 %v34372_v29 }
0x1d97   : > { %32383 = vmatmul.mubr.f32.vlgmr.msra.gmra.mrb[118].mxu0 %v40854_v4 }
0x1d98   : > { %34375 = vmatpush1.bf16.msra.mxu0 %v34374_v39  ;;  %32465 = vmatprep.mubr.f32.mxu0 %v41276_v20 }
0x1d99   : > { %34377 = vmatprep.subr.bf16.mxu0 %v34356_v13 }
0x1d9f   : > { %32467 = vmatmul.mubr.f32.vlgmr.msra.gmra.mrb[118].mxu0 %v40842_v18 }
0x1da0   : > { %34379 = vmatpush1.bf16.msra.mxu0 %v34358_v41  ;;  %32541 = vmatprep.mubr.f32.mxu0 %v41276_v20 }
0x1da7   : > { %32543 = vmatmul.mubr.f32.vlgmr.msra.gmra.mrb[118].mxu0 %v40842_v18 }
0x1da8   : > { %32627 = vmatprep.mubr.f32.mxu0 %v41276_v20 }
0x1e7a   : > { %v32544_v30 = vpop.f32.mrb[118].mxu0 }
0x1e7b   : > { %v32549_v3 = vmul.f32 0.25, %v32544_v30  ;;  %v32546_v45 = vpop.f32.mrb[119].mxu0 }
0x1e7c   : > { %v32550_v21 = vmul.f32 0.25, %v32546_v45 }
0x1e7d   : > { %v32551_v44 = vadd.f32 1e-05, %v32549_v3 }
0x1e7e   : > { %v32552_v17 = vadd.f32 1e-05, %v32550_v21 }
0x1e7f   : > { %35985 = vrsqrt.f32 %v32551_v44 }
0x1e80   : > { %35987 = vrsqrt.f32 %v32552_v17 }
0x1e89   : > { %v35986_v4 = vpop.eup %35985 }
0x1e8a   : > { %v35988_v28 = vpop.eup %35987  ;;  %v32556_v63 = vsel %vm8550_vm2, %v35986_v4, 0 }
0x1e8b   : > { %v32559_v2 = vsel %vm8550_vm2, %v35988_v28, 0  ;;  %v32563_v23 = vand.u32 4294901760, %v32556_v63 }
0x1e8c   : > { %v32561_v56 = vand.u32 4294901760, %v32559_v2 }
0x1e8d   : > { %v32657_v52 = vsub.f32 %v32556_v63, %v32563_v23 }
0x1e8e   : > { %32562 = vmatprep.subr.mxu0 %v32561_v56  ;;  %v32651_v18 = vsub.f32 %v32559_v2, %v32561_v56 }
0x1e8f   : > { %32564 = vmatpush1.msra.mxu0 %v32563_v23  ;;  %v32658_v1 = vand.u32 4294901760, %v32657_v52 }
0x1e90   : > { %32633 = vmatmul.mubr.f32.vlgmr.msra.gmra.mrb[120].mxu0 %v40910_v8  ;;  %v32652_v54 = vand.u32 4294901760, %v32651_v18  ;;  %v33089_v8 = vpop.permute.xlu0 %33088 }
0x1e91   : > { %32638 = vmatprep.mubr.f32.mxu0 %v41276_v20  ;;  %v32659_v57 = vsub.f32 %v32657_v52, %v32658_v1 }
0x1e92   : > { %v32653_v48 = vsub.f32 %v32651_v18, %v32652_v54 }
0x1e93   : > { %v32660_v7 = vand.u32 4294901760, %v32659_v57 }
0x1e94   : > { %32644 = vmatmul.mubr.f32.gmra.mrb[122].mxu0 %v40915_v15  ;;  %v32654_v49 = vand.u32 4294901760, %v32653_v48  ;;  %v33105_v9 = vpop.permute.xlu0 %33104 }
0x1e95   : > { %32724 = vmatprep.mubr.f32.mxu0 %v41276_v20 }
0x1e96   : > { %32655 = vmatprep.subr.mxu0 %v32654_v49 }
0x1e97   : > { %32661 = vmatpush1.msra.mxu0 %v32660_v7 }
0x1e98   : > { %32726 = vmatmul.mubr.f32.vlgmr.msra.gmra.mrb[120].mxu0 %v40889_v24  ;;  %32741 = vmatprep.subr.mxu0 %v32651_v18 }
0x1e99   : > { %32744 = vmatpush1.msra.mxu0 %v32657_v52  ;;  %32731 = vmatprep.mubr.f32.mxu0 %v41276_v20 }
0x1e9a   : > { %32825 = vmatprep.subr.mxu0 %v32561_v56 }
0x1e9c   : > { %32733 = vmatmul.mubr.f32.gmra.mrb[122].mxu0 %v40895_v0 }
0x1e9d   : > { %32807 = vmatprep.mubr.f32.mxu0 %v41276_v20 }
0x1ea0   : > { %32810 = vmatmul.mubr.f32.vlgmr.msra.gmra.mrb[120].mxu0 %v40893_v5  ;;  %v33084_v5 = vpop.permute.xlu1 %33083 }
0x1ea1   : > { %32827 = vmatpush1.msra.mxu0 %v32563_v23  ;;  %32815 = vmatprep.mubr.f32.mxu0 %v41276_v20 }
0x1ea2   : > { %32912 = vmatprep.subr.mxu0 %v32652_v54 }
0x1ea4   : > { %32818 = vmatmul.mubr.f32.gmra.mrb[122].mxu0 %v40901_v60  ;;  %v33100_v22 = vpop.permute.xlu1 %33099 }
0x1ea5   : > { %32890 = vmatprep.mubr.f32.mxu0 %v41276_v20 }
0x1ea8   : > { %32894 = vmatmul.mubr.f32.vlgmr.msra.gmra.mrb[120].mxu0 %v40898_v19 }
0x1ea9   : > { %32916 = vmatpush1.msra.mxu0 %v32658_v1  ;;  %32899 = vmatprep.mubr.f32.mxu0 %v41276_v20 }
0x1eaa   : > { %32995 = vmatprep.subr.mxu0 %v32561_v56 }
0x1eac   : > { %32903 = vmatmul.mubr.f32.gmra.mrb[122].mxu0 %v40906_v12 }
0x1ead   : > { %32979 = vmatprep.mubr.f32.mxu0 %v41276_v20 }
0x1eb0   : > { %32981 = vmatmul.mubr.f32.vlgmr.msra.gmra.mrb[120].mxu0 %v40889_v24 }
0x1eb1   : > { %32997 = vmatpush1.msra.mxu0 %v32563_v23  ;;  %32986 = vmatprep.mubr.f32.mxu0 %v41276_v20 }
0x1eb4   : > { %32988 = vmatmul.mubr.f32.gmra.mrb[122].mxu0 %v40895_v0 }
0x1eb5   : > { %33060 = vmatprep.mubr.f32.mxu0 %v41276_v20 }
0x1eb8   : > { %33062 = vmatmul.mubr.f32.vlgmr.msra.gmra.mrb[120].mxu0 %v40889_v24 }
0x1eb9   : > { %33067 = vmatprep.mubr.f32.mxu0 %v41276_v20 }
0x1ebc   : > { %33069 = vmatmul.mubr.f32.gmra.mrb[122].mxu0 %v40895_v0 }
0x1f8b   : > { %v33063_v19 = vpop.f32.mrb[120].mxu0 }
0x1f8c   : > { %v33075_v60 = vmul.f32 %v33063_v19, %v40940_v61  ;;  %v33065_v12 = vpop.f32.mrb[121].mxu0 }
0x1f8d   : > { %v33076_v15 = vmul.f32 %v33065_v12, %v40943_v43 }
0x1f8e   : > { %v33091_v35 = vmul.f32 %v33084_v5, %v33075_v60 }
0x1f8f   : > { %v33092_v46 = vmul.f32 %v33084_v5, %v33076_v15  ;;  %v33070_v24 = vpop.f32.mrb[122].mxu0 }
0x1f90   : > { %v33107_v47 = vadd.f32 %v33100_v22, %v33091_v35  ;;  %v33077_v20 = vmul.f32 %v33070_v24, %v40950_v14  ;;  %v33072_v0 = vpop.f32.mrb[123].mxu0 }
0x1f91   : > { %v33108_v26 = vadd.f32 %v33100_v22, %v33092_v46  ;;  %v33078_v59 = vmul.f32 %v33072_v0, %v40953_v42 }
0x1f92   : > { %33111 = vst [vmem:[%s554_s29] sm:$0xff] %v33107_v47  ;;  %v33093_v61 = vmul.f32 %v33089_v8, %v33077_v20 }
0x1f93   : > { %33112 = vst [vmem:[%s554_s29 + $0x8] sm:$0xff] %v33108_v26  ;;  %v33094_v43 = vmul.f32 %v33089_v8, %v33078_v59 }
0x1f94   : > { %v33109_v14 = vadd.f32 %v33105_v9, %v33093_v61 }
0x1f95   : > { %v33110_v50 = vadd.f32 %v33105_v9, %v33094_v43 }
0x1f96   : > { %33113 = vst [vmem:[%s554_s29 + $0x10] sm:$0xff] %v33109_v14 }
0x1f97   : > { %33114 = vst [vmem:[%s554_s29 + $0x18] sm:$0xff] %v33110_v50 }
0x1f98   : > { %36002 = shalt.err (!%p35999_p5)
}
0x1f99   : > { %s36003_s23 = scalar_lea.hbm %s41009_s20, 512  ;;  %s36007_s4 = scalar_lea.hbm %s41075_s16, 1024 }
0x1f9a   : > { %p36004_p6 = scmp.ne.s32.totalorder %s41009_s20, %s36003_s23  ;;  %p36008_p10 = scmp.lt.u32.totalorder %s41009_s20, %s41075_s16 }
0x1f9b   : > { %p36009_p11 = scmp.lt.u32.totalorder %s36007_s4, %s36003_s23  ;;  %p36011_p13 = scmp.lt.u32.totalorder %s36003_s23, %s41009_s20 }
0x1f9c   : > { %p36005_p7 = pnand %p36004_p6, %p36199_p4 }
0x1f9d   : > { %p36010_p12 = por %p36009_p11, %p36008_p10 }
0x1f9e   : > { %p36006_p9 = pneg %p36005_p7 }
0x1f9f   : > { %p36012_p0 = por %p36011_p13, %p36010_p12 }
0x1fa1   : > { %p36013_p1 = pnand %p36012_p0, %p36006_p9 }
0x1fa3   : > { %36016 = shalt.err (!%p36013_p1)
}
0x1fa4   : > { %s36072_s24 = smov 256   ;;  %s36073_s30 = smov 16  }
0x1fa5   : > { %35852 = dma.vmem_to_hbm [thread:$0]  (%p36199_p4), %s41004_s18, 512, %s41009_s20, %s41013_s27, %s36072_s24, %s36072_s24, %s36073_s30  }
0x1fa6 PF: > { %s41762_s17 = sld [smem:[#allocation6_spill]]  ;;  %p35858_p2 = scmp.ge.s32.totalorder %s36067_s26, 2 }
0x1fa8   : > { %p35855_p3 = pnand %p35858_p2, %p36206_p8 }
0x1fac   : > { %s33146_s25 = sand.u32 1, %s41762_s17  }
0x1fad   : > { %s33147_s23 = scalar_lea.sflag [#allocation4], %s33146_s25 }
0x1fae   : > { %36042 = dma.done.wait (!%p35855_p3), %s33147_s23, 512  }
0x1faf   : > { %36044 = vsyncadd (!%p35855_p3), %s33147_s23, 4294966784  ;;  %s29_s26 = sadd.s32 1, %s36067_s26   ;;  %s41764_s29 = sld [smem:[#allocation7_spill]] }
0x1fb0   : > { %p26_p5 = scmp.ge.s32.totalorder %s29_s26, 4   ;;  %s41765_s23 = sld [smem:[#allocation11_spill]] }
0x1fb1   : > { %s41766_s24 = sld [smem:[#allocation8_spill]]  ;;  %s41767_s25 = sld [smem:[#allocation9_spill]] }
0x1fb2   : > { %s41768_s21 = smov %s36051_s22  ;;  %28 = sbr.rel (!%p26_p5) target bundleno = 7 (0x7), region = 136 }
0x1fb5   : > { %s41769_s22 = smov %s41764_s29 }
0x1fb9   :  { %33152 = vsyncpa [#allocation4], 1 }
0x1fba   :  { %33154 = vsyncpa [#allocation4 + $0x1], 1 }

</bundles_post_ra>
